<compile_context>
chip_gen: v5e
topology: v5e:2x2
jax: 0.10.0
libtpu: 0.0.40
codegen_flags: <defaults>
</compile_context>

<pallas_src>
import math

import jax
import jax.numpy as jnp
from jax.experimental import pallas as pl
from jax.experimental.pallas import tpu as pltpu


# ----------------------------------------------------------------------------
# Pallas kernel: single-shot matmul + bias + ReLU (full K per grid step)
# used by all three conv layers (im2col form).
# ----------------------------------------------------------------------------
def _conv_mm_kernel(x_ref, w_ref, b_ref, o_ref):
    acc = jnp.dot(x_ref[...], w_ref[...], preferred_element_type=jnp.float32)
    acc = jnp.maximum(acc + b_ref[...], 0.0)
    o_ref[...] = acc.astype(o_ref.dtype)


def conv2d_relu(x, w_mat, b, *, ksize, stride, tm=512):
    """Conv2d (no padding) + ReLU on NHWC activations via im2col.

    x:     (B, H, W, C)  bf16, NHWC
    w_mat: (ksize*ksize*C, OutC) bf16   (pre-reshaped at init)
    b:     (1, OutC) f32
    returns (B, OH, OW, OutC) bf16
    """
    B, H, W, C = x.shape
    K, OutC = w_mat.shape
    OH = (H - ksize) // stride + 1
    OW = (W - ksize) // stride + 1

    # im2col in NHWC: feature order = (kh*KW + kw)*C + c, matching w_mat rows.
    cols = []
    for kh in range(ksize):
        for kw in range(ksize):
            cols.append(
                x[:, kh: kh + stride * (OH - 1) + 1: stride,
                     kw: kw + stride * (OW - 1) + 1: stride, :])
    xcol = jnp.concatenate(cols, axis=-1).reshape(B * OH * OW, ksize * ksize * C)

    M = B * OH * OW
    tm = min(tm, ((M + 7) // 8) * 8)
    grid_m = pl.cdiv(M, tm)  # partial last block handled by Pallas (masked writes)

    out = pl.pallas_call(
        _conv_mm_kernel,
        out_shape=jax.ShapeDtypeStruct((M, OutC), jnp.bfloat16),
        grid_spec=pltpu.PrefetchScalarGridSpec(
            num_scalar_prefetch=0,
            grid=(grid_m,),
            in_specs=[
                pl.BlockSpec((tm, K), lambda i: (i, 0)),      # full K: no k-loop
                pl.BlockSpec((K, OutC), lambda i: (0, 0)),    # weight resident
                pl.BlockSpec((1, OutC), lambda i: (0, 0)),    # bias resident
            ],
            # lane-dense-ish: last dim is the true OutC (full-dim), no padding
            # and no post-slice copy.
            out_specs=pl.BlockSpec((tm, OutC), lambda i: (i, 0)),
        ),
        compiler_params=pltpu.CompilerParams(
            dimension_semantics=("parallel",)),
    )(xcol, w_mat, b)
    return out.reshape(B, OH, OW, OutC)


# ----------------------------------------------------------------------------
# Pallas kernel: fused fc1 (K-streamed, ReLU) + fc2 epilogue in one launch.
# ----------------------------------------------------------------------------
def _fc_fused_kernel(x_ref, w1_ref, b1_ref, w2_ref, b2_ref, o_ref, acc_ref):
    k = pl.program_id(0)

    @pl.when(k == 0)
    def _():
        acc_ref[...] = jnp.zeros_like(acc_ref)

    acc_ref[...] += jnp.dot(x_ref[...], w1_ref[...],
                            preferred_element_type=jnp.float32)

    @pl.when(k == pl.num_programs(0) - 1)
    def _():
        h = jnp.maximum(acc_ref[...] + b1_ref[...], 0.0)        # (M, 512) f32
        q = jnp.dot(h, w2_ref[...],
                    preferred_element_type=jnp.float32) + b2_ref[...]
        o_ref[...] = q.astype(o_ref.dtype)


def fc_fused(x, w1, b1, w2, b2, *, tk=2048):
    """q = relu(x @ w1 + b1) @ w2 + b2 in a single pallas_call.

    x: (M, K) bf16;  w1: (K, 512) bf16;  b1: (1, 512) f32
    w2: (512, NA) f32;  b2: (1, NA) f32  ->  (M, NA) f32
    """
    M, K = x.shape
    K1, N1 = w1.shape
    assert K == K1
    NA = w2.shape[1]

    tk = min(tk, K)
    while K % tk:          # keep K exactly divisible (K=22528 -> tk=2048, 11 steps)
        tk //= 2
    nk = K // tk

    # NOTE(v7x): this fused fc uses a single sequential k-grid (one TC). If fc
    # latency matters there, unfuse fc2 and split N into 2 parallel tiles.
    return pl.pallas_call(
        _fc_fused_kernel,
        out_shape=jax.ShapeDtypeStruct((M, NA), jnp.float32),
        grid_spec=pltpu.PrefetchScalarGridSpec(
            num_scalar_prefetch=0,
            grid=(nk,),
            in_specs=[
                pl.BlockSpec((M, tk), lambda k: (0, k)),   # M=2, unpadded (full dim)
                pl.BlockSpec((tk, N1), lambda k: (k, 0)),  # stream fc1 weight
                pl.BlockSpec((1, N1), lambda k: (0, 0)),
                pl.BlockSpec((N1, NA), lambda k: (0, 0)),
                pl.BlockSpec((1, NA), lambda k: (0, 0)),
            ],
            out_specs=pl.BlockSpec((M, NA), lambda k: (0, 0)),
            scratch_shapes=[pltpu.VMEM((M, N1), jnp.float32)],
        ),
        compiler_params=pltpu.CompilerParams(
            dimension_semantics=("arbitrary",)),
    )(x, w1, b1, w2, b2)


# ----------------------------------------------------------------------------
# Parameter init (PyTorch-default-like uniform(-1/sqrt(fan_in))), then convert
# ONCE to kernel-friendly layout/dtype:
#   conv:  (OutC,C,KH,KW) -> (KH*KW*C, OutC) bf16
#   fc1:   (512, 64*22*16) with columns permuted NCHW->NHWC flatten, then T, bf16
#   fc2:   (NA, 512) -> (512, NA) f32
# ----------------------------------------------------------------------------
def _uniform(key, shape, fan):
    bound = 1.0 / math.sqrt(fan)
    return jax.random.uniform(key, shape, jnp.float32, -bound, bound)


def init_params(key, in_channels=10, n_actions=6):
    keys = jax.random.split(key, 10)
    p = {}

    def conv_pack(w):  # (OutC,C,KH,KW) -> (KH*KW*C, OutC)
        OutC, C, KH, KW = w.shape
        return jnp.transpose(w, (2, 3, 1, 0)).reshape(KH * KW * C, OutC)

    fan = in_channels * 8 * 8
    p["w1"] = conv_pack(_uniform(keys[0], (32, in_channels, 8, 8), fan)).astype(jnp.bfloat16)
    p["b1"] = _uniform(keys[1], (32,), fan).reshape(1, 32)

    fan = 32 * 4 * 4
    p["w2"] = conv_pack(_uniform(keys[2], (64, 32, 4, 4), fan)).astype(jnp.bfloat16)
    p["b2"] = _uniform(keys[3], (64,), fan).reshape(1, 64)

    fan = 64 * 3 * 3
    p["w3"] = conv_pack(_uniform(keys[4], (64, 64, 3, 3), fan)).astype(jnp.bfloat16)
    p["b3"] = _uniform(keys[5], (64,), fan).reshape(1, 64)

    fan = 64 * 22 * 16
    w = _uniform(keys[6], (512, fan), fan)
    # torch column order is (c, h, w); our activations flatten as (h, w, c).
    w = w.reshape(512, 64, 22, 16).transpose(0, 2, 3, 1).reshape(512, fan)
    p["wf1"] = w.T.astype(jnp.bfloat16)                       # (22528, 512)
    p["bf1"] = _uniform(keys[7], (512,), fan).reshape(1, 512)

    fan = 512
    p["wf2"] = _uniform(keys[8], (n_actions, fan), fan).T      # (512, NA) f32
    p["bf2"] = _uniform(keys[9], (n_actions,), fan).reshape(1, n_actions)
    return p


# ----------------------------------------------------------------------------
# Forward pass (mirrors Network.forward)
# ----------------------------------------------------------------------------
def network_forward(params, x):
    # x: (B, in_channels, 204, 156) f32 NCHW -> NHWC bf16 once.
    x = jnp.transpose(x, (0, 2, 3, 1)).astype(jnp.bfloat16)
    x = conv2d_relu(x, params["w1"], params["b1"], ksize=8, stride=4)   # (B,50,38,32)
    x = conv2d_relu(x, params["w2"], params["b2"], ksize=4, stride=2)   # (B,24,18,64)
    x = conv2d_relu(x, params["w3"], params["b3"], ksize=3, stride=1)   # (B,22,16,64)
    B = x.shape[0]
    x = x.reshape(B, -1)   # NHWC flatten; wf1 columns were permuted to match.
    return fc_fused(x, params["wf1"], params["bf1"],
                    params["wf2"], params["bf2"])                       # (B, NA) f32


if __name__ == "__main__":
    key = jax.random.PRNGKey(0)
    k_params, k_x = jax.random.split(key)

    in_channels, n_actions, batch = 10, 6, 2
    params = init_params(k_params, in_channels=in_channels, n_actions=n_actions)

    # Input spatial size fixed at 204x156 by fc1's hard-coded 64*22*16 features.
    x = jax.random.normal(k_x, (batch, in_channels, 204, 156), jnp.float32)

    out = jax.jit(network_forward)(params, x)
    out = jax.block_until_ready(out)
    assert out.shape == (batch, n_actions)
    assert out.dtype == jnp.float32
    print("KERNEL_OK")
</pallas_src>

<mosaic_0001>
module attributes {stable_mosaic.version = 11 : i64} {
  func.func @_conv_mm_kernel(%arg0: i32, %arg1: memref<512x640xbf16, #tpu.memory_space<vmem>>, %arg2: memref<640x32xbf16, #tpu.memory_space<vmem>>, %arg3: memref<1x32xf32, #tpu.memory_space<vmem>>, %arg4: memref<512x32xbf16, #tpu.memory_space<vmem>>) attributes {dimension_semantics = [#tpu.dimension_semantics<parallel>], iteration_bounds = array<i64: 8>, scalar_prefetch = 0 : i64, scratch_operands = 0 : i64, tpu.core_type = #tpu.core_type<tc>, window_params = [{transform_indices = @transform_0, window_bounds = array<i64: 512, 640>}, {pipeline_mode = #tpu.pipeline_mode<synchronous>, transform_indices = @transform_1, window_bounds = array<i64: 640, 32>}, {pipeline_mode = #tpu.pipeline_mode<synchronous>, transform_indices = @transform_2, window_bounds = array<i64: 1, 32>}, {transform_indices = @transform_3, window_bounds = array<i64: 512, 32>}]} {
    %c0 = arith.constant 0 : index
    %c0_0 = arith.constant 0 : index
    %0 = vector.load %arg1[%c0, %c0_0] : memref<512x640xbf16, #tpu.memory_space<vmem>>, vector<512x640xbf16>
    %c0_1 = arith.constant 0 : index
    %c0_2 = arith.constant 0 : index
    %1 = vector.load %arg2[%c0_1, %c0_2] : memref<640x32xbf16, #tpu.memory_space<vmem>>, vector<640x32xbf16>
    %cst = arith.constant dense<0.000000e+00> : vector<512x32xf32>
    %2 = tpu.matmul %0, %1, %cst {dimension_numbers = #tpu.dot_dimension_numbers<[1], [0], [0], [1], [0, 0, 1, 1], [], []>} : vector<512x640xbf16>, vector<640x32xbf16>, vector<512x32xf32> -> vector<512x32xf32>
    %c0_3 = arith.constant 0 : index
    %c0_4 = arith.constant 0 : index
    %3 = vector.load %arg3[%c0_3, %c0_4] : memref<1x32xf32, #tpu.memory_space<vmem>>, vector<1x32xf32>
    %4 = vector.broadcast %3 : vector<1x32xf32> to vector<512x32xf32>
    %5 = arith.addf %2, %4 : vector<512x32xf32>
    %cst_5 = arith.constant 0.000000e+00 : f32
    %6 = vector.broadcast %cst_5 : f32 to vector<512x32xf32>
    %7 = arith.maximumf %5, %6 : vector<512x32xf32>
    %8 = arith.truncf %7 : vector<512x32xf32> to vector<512x32xbf16>
    %c0_6 = arith.constant 0 : index
    %c0_7 = arith.constant 0 : index
    %9 = vector.load %arg4[%c0_6, %c0_7] : memref<512x32xbf16, #tpu.memory_space<vmem>>, vector<512x32xbf16>
    tpu.vector_store %arg4[%c0_6, %c0_7], %8 {strides = array<i32>} : memref<512x32xbf16, #tpu.memory_space<vmem>>, vector<512x32xbf16>,
    return
  }
  func.func @transform_0(%arg0: i32) -> (i32, i32) {
    %c0_i32 = arith.constant 0 : i32
    %c0_i32_0 = arith.constant 0 : i32
    return %arg0, %c0_i32 : i32, i32
  }
  func.func @transform_1(%arg0: i32) -> (i32, i32) {
    %c0_i32 = arith.constant 0 : i32
    %c0_i32_0 = arith.constant 0 : i32
    %c0_i32_1 = arith.constant 0 : i32
    return %c0_i32, %c0_i32_0 : i32, i32
  }
  func.func @transform_2(%arg0: i32) -> (i32, i32) {
    %c0_i32 = arith.constant 0 : i32
    %c0_i32_0 = arith.constant 0 : i32
    %c0_i32_1 = arith.constant 0 : i32
    return %c0_i32, %c0_i32_0 : i32, i32
  }
  func.func @transform_3(%arg0: i32) -> (i32, i32) {
    %c0_i32 = arith.constant 0 : i32
    %c0_i32_0 = arith.constant 0 : i32
    return %arg0, %c0_i32 : i32, i32
  }
}

module attributes {stable_mosaic.version = 11 : i64} {
  func.func @_conv_mm_kernel(%arg0: i32, %arg1: memref<512x512xbf16, #tpu.memory_space<vmem>>, %arg2: memref<512x64xbf16, #tpu.memory_space<vmem>>, %arg3: memref<1x64xf32, #tpu.memory_space<vmem>>, %arg4: memref<512x64xbf16, #tpu.memory_space<vmem>>) attributes {dimension_semantics = [#tpu.dimension_semantics<parallel>], iteration_bounds = array<i64: 2>, scalar_prefetch = 0 : i64, scratch_operands = 0 : i64, tpu.core_type = #tpu.core_type<tc>, window_params = [{transform_indices = @transform_0, window_bounds = array<i64: 512, 512>}, {pipeline_mode = #tpu.pipeline_mode<synchronous>, transform_indices = @transform_1, window_bounds = array<i64: 512, 64>}, {pipeline_mode = #tpu.pipeline_mode<synchronous>, transform_indices = @transform_2, window_bounds = array<i64: 1, 64>}, {transform_indices = @transform_3, window_bounds = array<i64: 512, 64>}]} {
    %c0 = arith.constant 0 : index
    %c0_0 = arith.constant 0 : index
    %0 = vector.load %arg1[%c0, %c0_0] : memref<512x512xbf16, #tpu.memory_space<vmem>>, vector<512x512xbf16>
    %c0_1 = arith.constant 0 : index
    %c0_2 = arith.constant 0 : index
    %1 = vector.load %arg2[%c0_1, %c0_2] : memref<512x64xbf16, #tpu.memory_space<vmem>>, vector<512x64xbf16>
    %cst = arith.constant dense<0.000000e+00> : vector<512x64xf32>
    %2 = tpu.matmul %0, %1, %cst {dimension_numbers = #tpu.dot_dimension_numbers<[1], [0], [0], [1], [0, 0, 1, 1], [], []>} : vector<512x512xbf16>, vector<512x64xbf16>, vector<512x64xf32> -> vector<512x64xf32>
    %c0_3 = arith.constant 0 : index
    %c0_4 = arith.constant 0 : index
    %3 = vector.load %arg3[%c0_3, %c0_4] : memref<1x64xf32, #tpu.memory_space<vmem>>, vector<1x64xf32>
    %4 = vector.broadcast %3 : vector<1x64xf32> to vector<512x64xf32>
    %5 = arith.addf %2, %4 : vector<512x64xf32>
    %cst_5 = arith.constant 0.000000e+00 : f32
    %6 = vector.broadcast %cst_5 : f32 to vector<512x64xf32>
    %7 = arith.maximumf %5, %6 : vector<512x64xf32>
    %8 = arith.truncf %7 : vector<512x64xf32> to vector<512x64xbf16>
    %c0_6 = arith.constant 0 : index
    %c0_7 = arith.constant 0 : index
    %9 = vector.load %arg4[%c0_6, %c0_7] : memref<512x64xbf16, #tpu.memory_space<vmem>>, vector<512x64xbf16>
    tpu.vector_store %arg4[%c0_6, %c0_7], %8 {strides = array<i32>} : memref<512x64xbf16, #tpu.memory_space<vmem>>, vector<512x64xbf16>,
    return
  }
  func.func @transform_0(%arg0: i32) -> (i32, i32) {
    %c0_i32 = arith.constant 0 : i32
    %c0_i32_0 = arith.constant 0 : i32
    return %arg0, %c0_i32 : i32, i32
  }
  func.func @transform_1(%arg0: i32) -> (i32, i32) {
    %c0_i32 = arith.constant 0 : i32
    %c0_i32_0 = arith.constant 0 : i32
    %c0_i32_1 = arith.constant 0 : i32
    return %c0_i32, %c0_i32_0 : i32, i32
  }
  func.func @transform_2(%arg0: i32) -> (i32, i32) {
    %c0_i32 = arith.constant 0 : i32
    %c0_i32_0 = arith.constant 0 : i32
    %c0_i32_1 = arith.constant 0 : i32
    return %c0_i32, %c0_i32_0 : i32, i32
  }
  func.func @transform_3(%arg0: i32) -> (i32, i32) {
    %c0_i32 = arith.constant 0 : i32
    %c0_i32_0 = arith.constant 0 : i32
    return %arg0, %c0_i32 : i32, i32
  }
}

module attributes {stable_mosaic.version = 11 : i64} {
  func.func @_conv_mm_kernel(%arg0: i32, %arg1: memref<512x576xbf16, #tpu.memory_space<vmem>>, %arg2: memref<576x64xbf16, #tpu.memory_space<vmem>>, %arg3: memref<1x64xf32, #tpu.memory_space<vmem>>, %arg4: memref<512x64xbf16, #tpu.memory_space<vmem>>) attributes {dimension_semantics = [#tpu.dimension_semantics<parallel>], iteration_bounds = array<i64: 2>, scalar_prefetch = 0 : i64, scratch_operands = 0 : i64, tpu.core_type = #tpu.core_type<tc>, window_params = [{transform_indices = @transform_0, window_bounds = array<i64: 512, 576>}, {pipeline_mode = #tpu.pipeline_mode<synchronous>, transform_indices = @transform_1, window_bounds = array<i64: 576, 64>}, {pipeline_mode = #tpu.pipeline_mode<synchronous>, transform_indices = @transform_2, window_bounds = array<i64: 1, 64>}, {transform_indices = @transform_3, window_bounds = array<i64: 512, 64>}]} {
    %c0 = arith.constant 0 : index
    %c0_0 = arith.constant 0 : index
    %0 = vector.load %arg1[%c0, %c0_0] : memref<512x576xbf16, #tpu.memory_space<vmem>>, vector<512x576xbf16>
    %c0_1 = arith.constant 0 : index
    %c0_2 = arith.constant 0 : index
    %1 = vector.load %arg2[%c0_1, %c0_2] : memref<576x64xbf16, #tpu.memory_space<vmem>>, vector<576x64xbf16>
    %cst = arith.constant dense<0.000000e+00> : vector<512x64xf32>
    %2 = tpu.matmul %0, %1, %cst {dimension_numbers = #tpu.dot_dimension_numbers<[1], [0], [0], [1], [0, 0, 1, 1], [], []>} : vector<512x576xbf16>, vector<576x64xbf16>, vector<512x64xf32> -> vector<512x64xf32>
    %c0_3 = arith.constant 0 : index
    %c0_4 = arith.constant 0 : index
    %3 = vector.load %arg3[%c0_3, %c0_4] : memref<1x64xf32, #tpu.memory_space<vmem>>, vector<1x64xf32>
    %4 = vector.broadcast %3 : vector<1x64xf32> to vector<512x64xf32>
    %5 = arith.addf %2, %4 : vector<512x64xf32>
    %cst_5 = arith.constant 0.000000e+00 : f32
    %6 = vector.broadcast %cst_5 : f32 to vector<512x64xf32>
    %7 = arith.maximumf %5, %6 : vector<512x64xf32>
    %8 = arith.truncf %7 : vector<512x64xf32> to vector<512x64xbf16>
    %c0_6 = arith.constant 0 : index
    %c0_7 = arith.constant 0 : index
    %9 = vector.load %arg4[%c0_6, %c0_7] : memref<512x64xbf16, #tpu.memory_space<vmem>>, vector<512x64xbf16>
    tpu.vector_store %arg4[%c0_6, %c0_7], %8 {strides = array<i32>} : memref<512x64xbf16, #tpu.memory_space<vmem>>, vector<512x64xbf16>,
    return
  }
  func.func @transform_0(%arg0: i32) -> (i32, i32) {
    %c0_i32 = arith.constant 0 : i32
    %c0_i32_0 = arith.constant 0 : i32
    return %arg0, %c0_i32 : i32, i32
  }
  func.func @transform_1(%arg0: i32) -> (i32, i32) {
    %c0_i32 = arith.constant 0 : i32
    %c0_i32_0 = arith.constant 0 : i32
    %c0_i32_1 = arith.constant 0 : i32
    return %c0_i32, %c0_i32_0 : i32, i32
  }
  func.func @transform_2(%arg0: i32) -> (i32, i32) {
    %c0_i32 = arith.constant 0 : i32
    %c0_i32_0 = arith.constant 0 : i32
    %c0_i32_1 = arith.constant 0 : i32
    return %c0_i32, %c0_i32_0 : i32, i32
  }
  func.func @transform_3(%arg0: i32) -> (i32, i32) {
    %c0_i32 = arith.constant 0 : i32
    %c0_i32_0 = arith.constant 0 : i32
    return %arg0, %c0_i32 : i32, i32
  }
}

module attributes {stable_mosaic.version = 11 : i64} {
  func.func @_fc_fused_kernel(%arg0: i32, %arg1: memref<2x2048xbf16, #tpu.memory_space<vmem>>, %arg2: memref<2048x512xbf16, #tpu.memory_space<vmem>>, %arg3: memref<1x512xf32, #tpu.memory_space<vmem>>, %arg4: memref<512x6xf32, #tpu.memory_space<vmem>>, %arg5: memref<1x6xf32, #tpu.memory_space<vmem>>, %arg6: memref<2x6xf32, #tpu.memory_space<vmem>>, %arg7: memref<2x512xf32, #tpu.memory_space<vmem>>) attributes {dimension_semantics = [#tpu.dimension_semantics<arbitrary>], iteration_bounds = array<i64: 11>, scalar_prefetch = 0 : i64, scratch_operands = 1 : i64, tpu.core_type = #tpu.core_type<tc>, window_params = [{transform_indices = @transform_0, window_bounds = array<i64: 2, 2048>}, {transform_indices = @transform_1, window_bounds = array<i64: 2048, 512>}, {pipeline_mode = #tpu.pipeline_mode<synchronous>, transform_indices = @transform_2, window_bounds = array<i64: 1, 512>}, {pipeline_mode = #tpu.pipeline_mode<synchronous>, transform_indices = @transform_3, window_bounds = array<i64: 512, 6>}, {pipeline_mode = #tpu.pipeline_mode<synchronous>, transform_indices = @transform_4, window_bounds = array<i64: 1, 6>}, {pipeline_mode = #tpu.pipeline_mode<synchronous>, transform_indices = @transform_5, window_bounds = array<i64: 2, 6>}]} {
    %c0_i32 = arith.constant 0 : i32
    %0 = arith.cmpi eq, %arg0, %c0_i32 : i32
    %1 = arith.extui %0 : i1 to i32
    %c0_i32_0 = arith.constant 0 : i32
    %2 = arith.cmpi ne, %1, %c0_i32_0 : i32
    scf.if %2 {
      %cst_9 = arith.constant 0.000000e+00 : f32
      %12 = vector.broadcast %cst_9 : f32 to vector<2x512xf32>
      %c0_10 = arith.constant 0 : index
      %c0_11 = arith.constant 0 : index
      %13 = vector.load %arg7[%c0_10, %c0_11] : memref<2x512xf32, #tpu.memory_space<vmem>>, vector<2x512xf32>
      tpu.vector_store %arg7[%c0_10, %c0_11], %12 {strides = array<i32>} : memref<2x512xf32, #tpu.memory_space<vmem>>, vector<2x512xf32>,
    } else {
    }
    %c0 = arith.constant 0 : index
    %c0_1 = arith.constant 0 : index
    %3 = vector.load %arg7[%c0, %c0_1] : memref<2x512xf32, #tpu.memory_space<vmem>>, vector<2x512xf32>
    %c0_2 = arith.constant 0 : index
    %c0_3 = arith.constant 0 : index
    %4 = vector.load %arg1[%c0_2, %c0_3] : memref<2x2048xbf16, #tpu.memory_space<vmem>>, vector<2x2048xbf16>
    %c0_4 = arith.constant 0 : index
    %c0_5 = arith.constant 0 : index
    %5 = vector.load %arg2[%c0_4, %c0_5] : memref<2048x512xbf16, #tpu.memory_space<vmem>>, vector<2048x512xbf16>
    %cst = arith.constant dense<0.000000e+00> : vector<2x512xf32>
    %6 = tpu.matmul %4, %5, %cst {dimension_numbers = #tpu.dot_dimension_numbers<[1], [0], [0], [1], [0, 0, 1, 1], [], []>} : vector<2x2048xbf16>, vector<2048x512xbf16>, vector<2x512xf32> -> vector<2x512xf32>
    %7 = arith.addf %3, %6 : vector<2x512xf32>
    %c0_6 = arith.constant 0 : index
    %c0_7 = arith.constant 0 : index
    %8 = vector.load %arg7[%c0_6, %c0_7] : memref<2x512xf32, #tpu.memory_space<vmem>>, vector<2x512xf32>
    tpu.vector_store %arg7[%c0_6, %c0_7], %7 {strides = array<i32>} : memref<2x512xf32, #tpu.memory_space<vmem>>, vector<2x512xf32>,
    %c10_i32 = arith.constant 10 : i32
    %9 = arith.cmpi eq, %arg0, %c10_i32 : i32
    %10 = arith.extui %9 : i1 to i32
    %c0_i32_8 = arith.constant 0 : i32
    %11 = arith.cmpi ne, %10, %c0_i32_8 : i32
    scf.if %11 {
      %c0_9 = arith.constant 0 : index
      %c0_10 = arith.constant 0 : index
      %12 = vector.load %arg7[%c0_9, %c0_10] : memref<2x512xf32, #tpu.memory_space<vmem>>, vector<2x512xf32>
      %c0_11 = arith.constant 0 : index
      %c0_12 = arith.constant 0 : index
      %13 = vector.load %arg3[%c0_11, %c0_12] : memref<1x512xf32, #tpu.memory_space<vmem>>, vector<1x512xf32>
      %14 = vector.broadcast %13 : vector<1x512xf32> to vector<2x512xf32>
      %15 = arith.addf %12, %14 : vector<2x512xf32>
      %cst_13 = arith.constant 0.000000e+00 : f32
      %16 = vector.broadcast %cst_13 : f32 to vector<2x512xf32>
      %17 = arith.maximumf %15, %16 : vector<2x512xf32>
      %c0_14 = arith.constant 0 : index
      %c0_15 = arith.constant 0 : index
      %18 = vector.load %arg4[%c0_14, %c0_15] : memref<512x6xf32, #tpu.memory_space<vmem>>, vector<512x6xf32>
      %cst_16 = arith.constant dense<0.000000e+00> : vector<2x6xf32>
      %19 = tpu.matmul %17, %18, %cst_16 {dimension_numbers = #tpu.dot_dimension_numbers<[1], [0], [0], [1], [0, 0, 1, 1], [], []>} : vector<2x512xf32>, vector<512x6xf32>, vector<2x6xf32> -> vector<2x6xf32>
      %c0_17 = arith.constant 0 : index
      %c0_18 = arith.constant 0 : index
      %20 = vector.load %arg5[%c0_17, %c0_18] : memref<1x6xf32, #tpu.memory_space<vmem>>, vector<1x6xf32>
      %21 = vector.broadcast %20 : vector<1x6xf32> to vector<2x6xf32>
      %22 = arith.addf %19, %21 : vector<2x6xf32>
      %c0_19 = arith.constant 0 : index
      %c0_20 = arith.constant 0 : index
      %23 = vector.load %arg6[%c0_19, %c0_20] : memref<2x6xf32, #tpu.memory_space<vmem>>, vector<2x6xf32>
      tpu.vector_store %arg6[%c0_19, %c0_20], %22 {strides = array<i32>} : memref<2x6xf32, #tpu.memory_space<vmem>>, vector<2x6xf32>,
    } else {
    }
    return
  }
  func.func @transform_0(%arg0: i32) -> (i32, i32) {
    %c0_i32 = arith.constant 0 : i32
    %c0_i32_0 = arith.constant 0 : i32
    return %c0_i32, %arg0 : i32, i32
  }
  func.func @transform_1(%arg0: i32) -> (i32, i32) {
    %c0_i32 = arith.constant 0 : i32
    %c0_i32_0 = arith.constant 0 : i32
    return %arg0, %c0_i32 : i32, i32
  }
  func.func @transform_2(%arg0: i32) -> (i32, i32) {
    %c0_i32 = arith.constant 0 : i32
    %c0_i32_0 = arith.constant 0 : i32
    %c0_i32_1 = arith.constant 0 : i32
    return %c0_i32, %c0_i32_0 : i32, i32
  }
  func.func @transform_3(%arg0: i32) -> (i32, i32) {
    %c0_i32 = arith.constant 0 : i32
    %c0_i32_0 = arith.constant 0 : i32
    %c0_i32_1 = arith.constant 0 : i32
    return %c0_i32, %c0_i32_0 : i32, i32
  }
  func.func @transform_4(%arg0: i32) -> (i32, i32) {
    %c0_i32 = arith.constant 0 : i32
    %c0_i32_0 = arith.constant 0 : i32
    %c0_i32_1 = arith.constant 0 : i32
    return %c0_i32, %c0_i32_0 : i32, i32
  }
  func.func @transform_5(%arg0: i32) -> (i32, i32) {
    %c0_i32 = arith.constant 0 : i32
    %c0_i32_0 = arith.constant 0 : i32
    %c0_i32_1 = arith.constant 0 : i32
    return %c0_i32, %c0_i32_0 : i32, i32
  }
}

</mosaic_0001>

<bundles_post_ra>
// kernel: network_forward.4
= control target key start
LH: loop header
LB: loop body
LE: loop exit
PB: predicated region body
PF: predicated region fallthrough
CT: control target
= control target key end

     0   :  { %s4177_s12 = smov 0   ;;  %s4179_s13 = smov 0   ;;  %s5200_s0 = inlined_call_operand.vmem [shape: bf16[3800,640], index: 0, kind: input, shape index: {}]   ;;  %s5201_s1 = inlined_call_operand.vmem [shape: bf16[640,32], index: 1, kind: input, shape index: {}]   ;;  %s5202_s2 = inlined_call_operand.vmem [shape: f32[1,32], index: 2, kind: input, shape index: {}]   ;;  %s5203_s3 = inlined_call_operand.vmem [shape: bf16[3800,32], index: 3, kind: output, shape index: {}]  }
   0x1   :  { %s4181_s14 = smov 0  }
   0x2 LB: > { %s4190_s15 = sadd.s32 4294967295, %s4123_s14   ;;  %s4192_s16 = sadd.s32 1, %s4123_s14   ;;  %s4123_s14 = sphi %s4181_s14, %s5258_s14   ;;  %s4119_s13 = sphi %s4179_s13, %s5257_s13   ;;  %s4115_s12 = sphi %s4177_s12, %s5256_s12  }
   0x3   : > { %s85_s17 = ssub.s32 %s4123_s14, %s4192_s16  ;;  %s88_s18 = sadd.s32 1, %s4119_s13 }
   0x4   : > { %p86_p0 = scmp.eq.s32.totalorder %s85_s17, 0  ;;  %p98_p1 = scmp.ne.s32.totalorder %s4119_s13, %s4115_s12 }
   0x5   : > { %p99_p2 = scmp.eq.s32.totalorder %s4190_s15, 7  ;;  %p2929_p3 = scmp.ge.s32.totalorder %s4123_s14, 1 }
   0x6   : > { %s4200_s19 = scalar_select %p86_p0, %s4119_s13, %s88_s18  }
   0x7   : > { %p4202_p4 = por %p99_p2, %p98_p1  ;;  %p149_p5 = scmp.lt.s32.totalorder %s4123_s14, 9 }
   0x9   : > { %p150_p6 = pnand %p2929_p3, %p149_p5 }
   0xb   : > { %153 = sbr.rel (%p150_p6) target bundleno = 887 (0x377), region = 32 }
  0x10   : > { %v3917_v0 = vld [vmem:[%s5201_s1 + $0x38] sm:$0xff]  ;;  %v3916_v1 = vld [vmem:[%s5201_s1 + $0x30] sm:$0xff]  ;;  %v3915_v2 = vld [vmem:[%s5201_s1 + $0x28] sm:$0xff]  ;;  %s4216_s27 = sshll.u32 %s4190_s15, 6  ;;  %vm2521_vm0 = vcmask 257024   ;;  %s3950_s11 = sshll.u32 (%p4202_p4), %s4190_s15, 8 }
  0x11   : > { %3953 = vmatpush.bf16.msra.mxu1 %v3917_v0  ;;  %3954 = vmatpush.bf16.msra.mxu2 %v3917_v0  ;;  %v3914_v3 = vld [vmem:[%s5201_s1 + $0x20] sm:$0xff]  ;;  %p184_p7 = scmp.lt.s32.totalorder %s4216_s27, 474  ;;  %v3913_v4 = vld [vmem:[%s5201_s1 + $0x18] sm:$0xff]  ;;  %v3912_v5 = vld [vmem:[%s5201_s1 + $0x10] sm:$0xff]  ;;  %s2594_s10 = ssub.s32 (%p4202_p4), 475, %s4216_s27 }
  0x12   : > { %3955 = vmatpush.bf16.msra.mxu3 %v3917_v0  ;;  %1548 = vmatpush.bf16.msra.mxu0 %v3917_v0  ;;  %v3911_v6 = vld [vmem:[%s5201_s1 + $0x8] sm:$0xff]  ;;  %v3910_v7 = vld [vmem:[%s5201_s1] sm:$0xff]  ;;  %v3933_v16 = vld [vmem:[%s5201_s1 + $0xb8] sm:$0xff]  ;;  %p2595_p8 = scmp.lt.s32.totalorder (%p4202_p4), %s2594_s10, 64  ;;  %s5065_s21 = scalar_lea.vmem (%p4202_p4), %s5203_s3, %s3950_s11  }
  0x13   : > { %s185_s5 = scalar_select %p184_p7, %s4216_s27, 474  ;;  %v3941_v17 = vld [vmem:[%s5201_s1 + $0xf8] sm:$0xff]  ;;  %v3932_v24 = vld [vmem:[%s5201_s1 + $0xb0] sm:$0xff]  ;;  %v3931_v28 = vld [vmem:[%s5201_s1 + $0xa8] sm:$0xff] }
  0x14   : > { %v3925_v22 = vld [vmem:[%s5201_s1 + $0x78] sm:$0xff]  ;;  %v3940_v25 = vld [vmem:[%s5201_s1 + $0xf0] sm:$0xff]  ;;  %v3939_v29 = vld [vmem:[%s5201_s1 + $0xe8] sm:$0xff] }
  0x15   : > { %3956 = vmatpush.bf16.msra.mxu1 %v3916_v1  ;;  %3957 = vmatpush.bf16.msra.mxu2 %v3916_v1  ;;  %s3977_s8 = smul.u32 20, %s185_s5  ;;  %v3949_v23 = vld [vmem:[%s5201_s1 + $0x138] sm:$0xff]  ;;  %v3924_v26 = vld [vmem:[%s5201_s1 + $0x70] sm:$0xff]  ;;  %v3923_v30 = vld [vmem:[%s5201_s1 + $0x68] sm:$0xff]  ;;  %s175_s5 = sand.u32 1, %s4115_s12  }
  0x16   : > { %3958 = vmatpush.bf16.msra.mxu3 %v3916_v1  ;;  %1549 = vmatpush.bf16.msra.mxu0 %v3916_v1  ;;  %v3948_v27 = vld [vmem:[%s5201_s1 + $0x130] sm:$0xff]  ;;  %v3947_v31 = vld [vmem:[%s5201_s1 + $0x128] sm:$0xff]  ;;  %v3930_v44 = vld [vmem:[%s5201_s1 + $0xa0] sm:$0xff]  ;;  %s2930_s6 = sshll.u32 %s175_s5, 8 }
  0x17   : > { %s4235_s17 = scalar_lea.vmem %s5200_s0, %s3977_s8  ;;  %v3938_v45 = vld [vmem:[%s5201_s1 + $0xe0] sm:$0xff]  ;;  %v3929_v60 = vld [vmem:[%s5201_s1 + $0x98] sm:$0xff]  ;;  %s4618_s12 = scalar_lea.vmem [#allocation2], %s2930_s6  }
  0x18   : > { %v3095_v8 = vld [vmem:[%s4235_s17 + $0x140] sm:$0xf]  ;;  %v3792_v9 = vld [vmem:[%s4235_s17 + $0x150] sm:$0xf0]  ;;  %v3115_v32 = vld [vmem:[%s4235_s17 + $0x168] sm:$0xf] }
  0x19   : > { %3959 = vmatpush.bf16.msra.mxu1 %v3915_v2  ;;  %3960 = vmatpush.bf16.msra.mxu2 %v3915_v2  ;;  %v3255_v10 = vld [vmem:[%s4235_s17 + $0x280] sm:$0xf]  ;;  %v3832_v11 = vld [vmem:[%s4235_s17 + $0x290] sm:$0xf0]  ;;  %v3096_v18 = vor.u32 %v3792_v9, %v3095_v8  ;;  %v3797_v33 = vld [vmem:[%s4235_s17 + $0x178] sm:$0xf0] }
  0x1a   : > { %3961 = vmatpush.bf16.msra.mxu3 %v3915_v2  ;;  %1550 = vmatpush.bf16.msra.mxu0 %v3915_v2  ;;  %v3415_v12 = vld [vmem:[%s4235_s17 + $0x3c0] sm:$0xf]  ;;  %v3872_v13 = vld [vmem:[%s4235_s17 + $0x3d0] sm:$0xf0]  ;;  %v3256_v19 = vor.u32 %v3832_v11, %v3255_v10  ;;  %v3275_v34 = vld [vmem:[%s4235_s17 + $0x2a8] sm:$0xf]  ;;  %v3116_v40 = vor.u32 %v3797_v33, %v3115_v32 }
  0x1b   : > { %v2935_v14 = vld [vmem:[%s4235_s17] sm:$0xf]  ;;  %v3752_v15 = vld [vmem:[%s4235_s17 + $0x10] sm:$0xf0]  ;;  %v3416_v20 = vor.u32 %v3872_v13, %v3415_v12  ;;  %v3837_v35 = vld [vmem:[%s4235_s17 + $0x2b8] sm:$0xf0] }
  0x1c   : > { %v2936_v21 = vor.u32 %v3752_v15, %v2935_v14  ;;  %v3435_v36 = vld [vmem:[%s4235_s17 + $0x3e8] sm:$0xf]  ;;  %v3877_v37 = vld [vmem:[%s4235_s17 + $0x3f8] sm:$0xf0]  ;;  %v3276_v41 = vor.u32 %v3837_v35, %v3275_v34  ;;  %v3922_v46 = vld [vmem:[%s5201_s1 + $0x60] sm:$0xff] }
  0x1d   : > { %3962 = vmatpush.bf16.msra.mxu1 %v3914_v3  ;;  %3963 = vmatpush.bf16.msra.mxu2 %v3914_v3  ;;  %v2955_v38 = vld [vmem:[%s4235_s17 + $0x28] sm:$0xf]  ;;  %v3757_v39 = vld [vmem:[%s4235_s17 + $0x38] sm:$0xf0]  ;;  %v3436_v42 = vor.u32 %v3877_v37, %v3435_v36  ;;  %v3946_v47 = vld [vmem:[%s5201_s1 + $0x120] sm:$0xff] }
  0x1e   : > { %3964 = vmatpush.bf16.msra.mxu3 %v3914_v3  ;;  %1551 = vmatpush.bf16.msra.mxu0 %v3914_v3  ;;  %v2956_v43 = vor.u32 %v3757_v39, %v2955_v38  ;;  %v3135_v48 = vld [vmem:[%s4235_s17 + $0x190] sm:$0xf]  ;;  %v3802_v49 = vld [vmem:[%s4235_s17 + $0x1a0] sm:$0xf0]  ;;  %v3937_v61 = vld [vmem:[%s5201_s1 + $0xd8] sm:$0xff] }
  0x1f   : > { %v3295_v50 = vld [vmem:[%s4235_s17 + $0x2d0] sm:$0xf]  ;;  %v3842_v51 = vld [vmem:[%s4235_s17 + $0x2e0] sm:$0xf0]  ;;  %v3136_v56 = vor.u32 %v3802_v49, %v3135_v48  ;;  %v3921_v62 = vld [vmem:[%s5201_s1 + $0x58] sm:$0xff] }
  0x20   : > { %v3455_v52 = vld [vmem:[%s4235_s17 + $0x410] sm:$0xf]  ;;  %v3882_v53 = vld [vmem:[%s4235_s17 + $0x420] sm:$0xf0]  ;;  %v3296_v57 = vor.u32 %v3842_v51, %v3295_v50  ;;  %v3945_v63 = vld [vmem:[%s5201_s1 + $0x118] sm:$0xff] }
  0x21   : > { %3965 = vmatpush.bf16.msra.mxu1 %v3913_v4  ;;  %3966 = vmatpush.bf16.msra.mxu2 %v3913_v4  ;;  %v2975_v54 = vld [vmem:[%s4235_s17 + $0x50] sm:$0xf]  ;;  %v3762_v55 = vld [vmem:[%s4235_s17 + $0x60] sm:$0xf0]  ;;  %v3456_v58 = vor.u32 %v3882_v53, %v3455_v52  ;;  %v3155_v0 = vld [vmem:[%s4235_s17 + $0x1b8] sm:$0xf] }
  0x22   : > { %3967 = vmatpush.bf16.msra.mxu3 %v3913_v4  ;;  %1552 = vmatpush.bf16.msra.mxu0 %v3913_v4  ;;  %v2976_v59 = vor.u32 %v3762_v55, %v2975_v54  ;;  %v3807_v1 = vld [vmem:[%s4235_s17 + $0x1c8] sm:$0xf0]  ;;  %v3315_v2 = vld [vmem:[%s4235_s17 + $0x2f8] sm:$0xf]  ;;  %v3928_v12 = vld [vmem:[%s5201_s1 + $0x90] sm:$0xff] }
  0x23   : > { %v3847_v3 = vld [vmem:[%s4235_s17 + $0x308] sm:$0xf0]  ;;  %v3475_v4 = vld [vmem:[%s4235_s17 + $0x438] sm:$0xf]  ;;  %v3156_v8 = vor.u32 %v3807_v1, %v3155_v0  ;;  %v3936_v13 = vld [vmem:[%s5201_s1 + $0xd0] sm:$0xff] }
  0x24   : > { %v3316_v9 = vor.u32 %v3847_v3, %v3315_v2  ;;  %v3920_v14 = vld [vmem:[%s5201_s1 + $0x50] sm:$0xff]  ;;  %v3195_v32 = vld [vmem:[%s4235_s17 + $0x208] sm:$0xf]  ;;  %v3817_v33 = vld [vmem:[%s4235_s17 + $0x218] sm:$0xf0] }
  0x25   : > { %3968 = vmatpush.bf16.msra.mxu1 %v3912_v5  ;;  %3969 = vmatpush.bf16.msra.mxu2 %v3912_v5  ;;  %v3944_v15 = vld [vmem:[%s5201_s1 + $0x110] sm:$0xff]  ;;  %v3355_v34 = vld [vmem:[%s4235_s17 + $0x348] sm:$0xf]  ;;  %v3857_v35 = vld [vmem:[%s4235_s17 + $0x358] sm:$0xf0] }
  0x26   : > { %3970 = vmatpush.bf16.msra.mxu3 %v3912_v5  ;;  %1553 = vmatpush.bf16.msra.mxu0 %v3912_v5  ;;  %v3887_v5 = vld [vmem:[%s4235_s17 + $0x448] sm:$0xf0]  ;;  %v3515_v36 = vld [vmem:[%s4235_s17 + $0x488] sm:$0xf]  ;;  %v3897_v37 = vld [vmem:[%s4235_s17 + $0x498] sm:$0xf0] }
  0x27   : > { %v3476_v10 = vor.u32 %v3887_v5, %v3475_v4  ;;  %v3035_v38 = vld [vmem:[%s4235_s17 + $0xc8] sm:$0xf]  ;;  %v3777_v39 = vld [vmem:[%s4235_s17 + $0xd8] sm:$0xf0]  ;;  %v3215_v48 = vld [vmem:[%s4235_s17 + $0x230] sm:$0xf] }
  0x28   : > { %v3822_v49 = vld [vmem:[%s4235_s17 + $0x240] sm:$0xf0]  ;;  %v3375_v50 = vld [vmem:[%s4235_s17 + $0x370] sm:$0xf]  ;;  %v3555_v0 = vld [vmem:[%s4235_s17 + $0x4d8] sm:$0xf] }
  0x29   : > { %3971 = vmatpush.bf16.msra.mxu1 %v3911_v6  ;;  %3972 = vmatpush.bf16.msra.mxu2 %v3911_v6  ;;  %v3862_v51 = vld [vmem:[%s4235_s17 + $0x380] sm:$0xf0]  ;;  %v3535_v52 = vld [vmem:[%s4235_s17 + $0x4b0] sm:$0xf]  ;;  %v3907_v1 = vld [vmem:[%s4235_s17 + $0x4e8] sm:$0xf0] }
  0x2a   : > { %3973 = vmatpush.bf16.msra.mxu3 %v3911_v6  ;;  %1554 = vmatpush.bf16.msra.mxu0 %v3911_v6  ;;  %v2995_v6 = vld [vmem:[%s4235_s17 + $0x78] sm:$0xf]  ;;  %v3902_v53 = vld [vmem:[%s4235_s17 + $0x4c0] sm:$0xf0]  ;;  %v3055_v54 = vld [vmem:[%s4235_s17 + $0xf0] sm:$0xf] }
  0x2b   : > { %v3782_v55 = vld [vmem:[%s4235_s17 + $0x100] sm:$0xf0]  ;;  %v3075_v2 = vld [vmem:[%s4235_s17 + $0x118] sm:$0xf]  ;;  %v3787_v3 = vld [vmem:[%s4235_s17 + $0x128] sm:$0xf0] }
  0x2d   : > { %3974 = vmatpush.bf16.msra.mxu1 %v3910_v7  ;;  %3975 = vmatpush.bf16.msra.mxu2 %v3910_v7 }
  0x2e   : > { %3976 = vmatpush.bf16.msra.mxu3 %v3910_v7  ;;  %1555 = vmatpush.bf16.msra.mxu0 %v3910_v7  ;;  %v3767_v7 = vld [vmem:[%s4235_s17 + $0x88] sm:$0xf0] }
  0x2f   : > { %v2996_v11 = vor.u32 %v3767_v7, %v2995_v6  ;;  %v3556_v6 = vor.u32 %v3907_v1, %v3555_v0  ;;  %v3076_v7 = vor.u32 %v3787_v3, %v3075_v2  ;;  %v3765_v2 = vld [vmem:[%s4235_s17 + $0x7c] sm:$0xf]  ;;  %v2997_v3 = vld [vmem:[%s4235_s17 + $0x8c] sm:$0xf0] }
  0x30   : > { %1596 = vmatmul.bf16.vlgmr.msra.gmra.mxu1 %v3096_v18  ;;  %1636 = vmatmul.bf16.vlgmr.msra.gmra.mxu2 %v3256_v19  ;;  %v3335_v18 = vld [vmem:[%s4235_s17 + $0x320] sm:$0xf]  ;;  %v3852_v19 = vld [vmem:[%s4235_s17 + $0x330] sm:$0xf0] }
  0x31   : > { %1886 = vmatpush.bf16.msrb.mxu2 %v3933_v16  ;;  %1676 = vmatmul.bf16.vlgmr.msra.gmra.mxu3 %v3416_v20  ;;  %v3175_v16 = vld [vmem:[%s4235_s17 + $0x1e0] sm:$0xf] }
  0x32   : > { %2055 = vmatpush.bf16.msrb.mxu3 %v3941_v17  ;;  %1556 = vmatmul.bf16.vlgmr.msra.gmra.mxu0 %v2936_v21  ;;  %v3812_v17 = vld [vmem:[%s4235_s17 + $0x1f0] sm:$0xf0]  ;;  %v3495_v20 = vld [vmem:[%s4235_s17 + $0x460] sm:$0xf] }
  0x33   : > { %1717 = vmatpush.bf16.msrb.mxu1 %v3925_v22  ;;  %2224 = vmatpush.bf16.msrb.mxu0 %v3949_v23  ;;  %v3892_v21 = vld [vmem:[%s4235_s17 + $0x470] sm:$0xf0]  ;;  %v3015_v22 = vld [vmem:[%s4235_s17 + $0xa0] sm:$0xf] }
  0x34   : > { %v3772_v23 = vld [vmem:[%s4235_s17 + $0xb0] sm:$0xf0] }
  0x35   : > { %1887 = vmatpush.bf16.msrb.mxu2 %v3932_v24  ;;  %v3176_v24 = vor.u32 %v3812_v17, %v3175_v16 }
  0x36   : > { %2056 = vmatpush.bf16.msrb.mxu3 %v3940_v25  ;;  %v3336_v25 = vor.u32 %v3852_v19, %v3335_v18 }
  0x37   : > { %1718 = vmatpush.bf16.msrb.mxu1 %v3924_v26  ;;  %2225 = vmatpush.bf16.msrb.mxu0 %v3948_v27  ;;  %v3496_v26 = vor.u32 %v3892_v21, %v3495_v20  ;;  %v3016_v27 = vor.u32 %v3772_v23, %v3015_v22 }
  0x39   : > { %1888 = vmatpush.bf16.msrb.mxu2 %v3931_v28  ;;  %v3927_v28 = vld [vmem:[%s5201_s1 + $0x88] sm:$0xff] }
  0x3a   : > { %2057 = vmatpush.bf16.msrb.mxu3 %v3939_v29  ;;  %v3935_v29 = vld [vmem:[%s5201_s1 + $0xc8] sm:$0xff] }
  0x3b   : > { %1719 = vmatpush.bf16.msrb.mxu1 %v3923_v30  ;;  %2226 = vmatpush.bf16.msrb.mxu0 %v3947_v31  ;;  %v3919_v30 = vld [vmem:[%s5201_s1 + $0x48] sm:$0xff] }
  0x3c   : > { %v3943_v31 = vld [vmem:[%s5201_s1 + $0x108] sm:$0xff] }
  0x3d   : > { %1889 = vmatpush.bf16.msrb.mxu2 %v3930_v44  ;;  %v3926_v44 = vld [vmem:[%s5201_s1 + $0x80] sm:$0xff] }
  0x3e   : > { %2058 = vmatpush.bf16.msrb.mxu3 %v3938_v45  ;;  %v3934_v45 = vld [vmem:[%s5201_s1 + $0xc0] sm:$0xff] }
  0x3f   : > { %1720 = vmatpush.bf16.msrb.mxu1 %v3922_v46  ;;  %2227 = vmatpush.bf16.msrb.mxu0 %v3946_v47  ;;  %v3918_v46 = vld [vmem:[%s5201_s1 + $0x40] sm:$0xff] }
  0x40   : > { %1601 = vmatmul.bf16.gmra.mxu1 %v3116_v40  ;;  %1641 = vmatmul.bf16.gmra.mxu2 %v3276_v41  ;;  %v3196_v40 = vor.u32 %v3817_v33, %v3195_v32  ;;  %v3356_v41 = vor.u32 %v3857_v35, %v3355_v34  ;;  %v3942_v47 = vld [vmem:[%s5201_s1 + $0x100] sm:$0xff]  ;;  %v2971_v32 = vld [vmem:[%s4235_s17 + $0x38] sm:$0xf]  ;;  %v3759_v33 = vld [vmem:[%s4235_s17 + $0x48] sm:$0xf0] }
  0x41   : > { %1681 = vmatmul.bf16.gmra.mxu3 %v3436_v42  ;;  %1890 = vmatpush.bf16.msrb.mxu2 %v3929_v60  ;;  %v3516_v42 = vor.u32 %v3897_v37, %v3515_v36  ;;  %v3235_v60 = vld [vmem:[%s4235_s17 + $0x258] sm:$0xf] }
  0x42   : > { %1561 = vmatmul.bf16.gmra.mxu0 %v2956_v43  ;;  %2059 = vmatpush.bf16.msrb.mxu3 %v3937_v61  ;;  %v3036_v43 = vor.u32 %v3777_v39, %v3035_v38  ;;  %v3827_v61 = vld [vmem:[%s4235_s17 + $0x268] sm:$0xf0] }
  0x43   : > { %1721 = vmatpush.bf16.msrb.mxu1 %v3921_v62  ;;  %2228 = vmatpush.bf16.msrb.mxu0 %v3945_v63  ;;  %v3395_v62 = vld [vmem:[%s4235_s17 + $0x398] sm:$0xf]  ;;  %v3867_v63 = vld [vmem:[%s4235_s17 + $0x3a8] sm:$0xf0]  ;;  %v3236_v4 = vor.u32 %v3827_v61, %v3235_v60 }
  0x44   : > { %v3396_v5 = vor.u32 %v3867_v63, %v3395_v62 }
  0x45   : > { %1891 = vmatpush.bf16.msrb.mxu2 %v3928_v12  ;;  %v3751_v12 = vld [vmem:[%s4235_s17 + $0xc] sm:$0xf] }
  0x46   : > { %2060 = vmatpush.bf16.msrb.mxu3 %v3936_v13  ;;  %v2945_v13 = vld [vmem:[%s4235_s17 + $0x1c] sm:$0xf0] }
  0x47   : > { %1722 = vmatpush.bf16.msrb.mxu1 %v3920_v14  ;;  %2229 = vmatpush.bf16.msrb.mxu0 %v3944_v15  ;;  %v2951_v14 = vld [vmem:[%s4235_s17 + $0x10] sm:$0xf]  ;;  %v3754_v15 = vld [vmem:[%s4235_s17 + $0x20] sm:$0xf0]  ;;  %v2948_v19 = vor.u32 %v3751_v12, %v2945_v13  ;;  %v3000_v12 = vor.u32 %v3765_v2, %v2997_v3 }
  0x48   : > { %v2952_v20 = vor.u32 %v3754_v15, %v2951_v14  ;;  %v3043_v2 = vld [vmem:[%s4235_s17 + $0xd0] sm:$0xf]  ;;  %v3778_v3 = vld [vmem:[%s4235_s17 + $0xe0] sm:$0xf0] }
  0x49   : > { %1892 = vmatpush.bf16.msrb.mxu2 %v3927_v28  ;;  %v2963_v28 = vld [vmem:[%s4235_s17 + $0x30] sm:$0xf] }
  0x4a   : > { %2061 = vmatpush.bf16.msrb.mxu3 %v3935_v29  ;;  %v3758_v29 = vld [vmem:[%s4235_s17 + $0x40] sm:$0xf0] }
  0x4b   : > { %1723 = vmatpush.bf16.msrb.mxu1 %v3919_v30  ;;  %2230 = vmatpush.bf16.msrb.mxu0 %v3943_v31  ;;  %v3756_v30 = vld [vmem:[%s4235_s17 + $0x34] sm:$0xf]  ;;  %v2965_v31 = vld [vmem:[%s4235_s17 + $0x44] sm:$0xf0]  ;;  %v2964_v37 = vor.u32 %v3758_v29, %v2963_v28  ;;  %v3770_v28 = vld [vmem:[%s4235_s17 + $0xa4] sm:$0xf] }
  0x4c   : > { %v2968_v39 = vor.u32 %v3756_v30, %v2965_v31  ;;  %v3017_v29 = vld [vmem:[%s4235_s17 + $0xb4] sm:$0xf0]  ;;  %v3023_v30 = vld [vmem:[%s4235_s17 + $0xa8] sm:$0xf]  ;;  %v3773_v31 = vld [vmem:[%s4235_s17 + $0xb8] sm:$0xf0] }
  0x4d   : > { %1893 = vmatpush.bf16.msrb.mxu2 %v3926_v44 }
  0x4e   : > { %2062 = vmatpush.bf16.msrb.mxu3 %v3934_v45 }
  0x4f   : > { %1724 = vmatpush.bf16.msrb.mxu1 %v3918_v46  ;;  %2231 = vmatpush.bf16.msrb.mxu0 %v3942_v47  ;;  %v3760_v46 = vld [vmem:[%s4235_s17 + $0x54] sm:$0xf]  ;;  %v2977_v47 = vld [vmem:[%s4235_s17 + $0x64] sm:$0xf0] }
  0x50   : > { %1606 = vmatmul.bf16.gmra.mxu1 %v3136_v56  ;;  %1646 = vmatmul.bf16.gmra.mxu2 %v3296_v57  ;;  %v3216_v56 = vor.u32 %v3822_v49, %v3215_v48  ;;  %v3376_v57 = vor.u32 %v3862_v51, %v3375_v50  ;;  %v2983_v48 = vld [vmem:[%s4235_s17 + $0x58] sm:$0xf]  ;;  %v3763_v49 = vld [vmem:[%s4235_s17 + $0x68] sm:$0xf0]  ;;  %v3761_v50 = vld [vmem:[%s4235_s17 + $0x5c] sm:$0xf] }
  0x51   : > { %1686 = vmatmul.bf16.gmra.mxu3 %v3456_v58  ;;  %v3536_v58 = vor.u32 %v3902_v53, %v3535_v52  ;;  %v2985_v51 = vld [vmem:[%s4235_s17 + $0x6c] sm:$0xf0]  ;;  %v2991_v52 = vld [vmem:[%s4235_s17 + $0x60] sm:$0xf]  ;;  %v3764_v53 = vld [vmem:[%s4235_s17 + $0x70] sm:$0xf0] }
  0x52   : > { %1566 = vmatmul.bf16.gmra.mxu0 %v2976_v59  ;;  %v3056_v59 = vor.u32 %v3782_v55, %v3055_v54  ;;  %v2992_v60 = vor.u32 %v3764_v53, %v2991_v52 }
  0x60   : > { %1611 = vmatmul.bf16.gmra.mxu1 %v3156_v8  ;;  %1651 = vmatmul.bf16.gmra.mxu2 %v3316_v9  ;;  %v3750_v8 = vld [vmem:[%s4235_s17 + $0x4] sm:$0xf]  ;;  %v2937_v9 = vld [vmem:[%s4235_s17 + $0x14] sm:$0xf0] }
  0x61   : > { %1691 = vmatmul.bf16.gmra.mxu3 %v3476_v10  ;;  %v2943_v10 = vld [vmem:[%s4235_s17 + $0x8] sm:$0xf]  ;;  %v2940_v16 = vor.u32 %v3750_v8, %v2937_v9  ;;  %v3769_v9 = vld [vmem:[%s4235_s17 + $0x98] sm:$0xf0] }
  0x62   : > { %1571 = vmatmul.bf16.gmra.mxu0 %v2996_v11  ;;  %v3753_v11 = vld [vmem:[%s4235_s17 + $0x18] sm:$0xf0]  ;;  %v3011_v8 = vld [vmem:[%s4235_s17 + $0x88] sm:$0xf] }
  0x63   : > { %v2944_v17 = vor.u32 %v3753_v11, %v2943_v10 }
  0x70   : > { %1616 = vmatmul.bf16.gmra.mxu1 %v3176_v24  ;;  %1656 = vmatmul.bf16.gmra.mxu2 %v3336_v25 }
  0x71   : > { %1696 = vmatmul.bf16.gmra.mxu3 %v3496_v26  ;;  %v3755_v26 = vld [vmem:[%s4235_s17 + $0x2c] sm:$0xf] }
  0x72   : > { %1576 = vmatmul.bf16.gmra.mxu0 %v3016_v27  ;;  %v2957_v27 = vld [vmem:[%s4235_s17 + $0x3c] sm:$0xf0] }
  0x73   : > { %v2960_v36 = vor.u32 %v3755_v26, %v2957_v27 }
  0x80   : > { %1621 = vmatmul.bf16.gmra.mxu1 %v3196_v40  ;;  %1661 = vmatmul.bf16.gmra.mxu2 %v3356_v41  ;;  %v2972_v40 = vor.u32 %v3759_v33, %v2971_v32  ;;  %v3771_v32 = vld [vmem:[%s4235_s17 + $0xac] sm:$0xf]  ;;  %v3025_v33 = vld [vmem:[%s4235_s17 + $0xbc] sm:$0xf0] }
  0x81   : > { %1701 = vmatmul.bf16.gmra.mxu3 %v3516_v42 }
  0x82   : > { %1581 = vmatmul.bf16.gmra.mxu0 %v3036_v43 }
  0x90   : > { %1626 = vmatmul.bf16.gmra.mxu1 %v3216_v56  ;;  %1666 = vmatmul.bf16.gmra.mxu2 %v3376_v57  ;;  %v2980_v56 = vor.u32 %v3760_v46, %v2977_v47  ;;  %v2984_v57 = vor.u32 %v3763_v49, %v2983_v48  ;;  %v3020_v46 = vor.u32 %v3770_v28, %v3017_v29 }
  0x91   : > { %1706 = vmatmul.bf16.gmra.mxu3 %v3536_v58  ;;  %v3024_v47 = vor.u32 %v3773_v31, %v3023_v30  ;;  %v3028_v49 = vor.u32 %v3771_v32, %v3025_v33 }
  0x92   : > { %1586 = vmatmul.bf16.gmra.mxu0 %v3056_v59  ;;  %v2988_v59 = vor.u32 %v3761_v50, %v2985_v51 }
  0xa0   : > { %1631 = vmatmul.bf16.gmra.mxu1 %v3236_v4  ;;  %1671 = vmatmul.bf16.gmra.mxu2 %v3396_v5  ;;  %v3003_v4 = vld [vmem:[%s4235_s17 + $0x80] sm:$0xf]  ;;  %v3768_v5 = vld [vmem:[%s4235_s17 + $0x90] sm:$0xf0] }
  0xa1   : > { %1711 = vmatmul.bf16.gmra.mxu3 %v3556_v6  ;;  %v3766_v6 = vld [vmem:[%s4235_s17 + $0x84] sm:$0xf]  ;;  %v3004_v13 = vor.u32 %v3768_v5, %v3003_v4  ;;  %v3776_v4 = vld [vmem:[%s4235_s17 + $0xd4] sm:$0xf]  ;;  %v3045_v5 = vld [vmem:[%s4235_s17 + $0xe4] sm:$0xf0] }
  0xa2   : > { %1591 = vmatmul.bf16.gmra.mxu0 %v3076_v7  ;;  %v3005_v7 = vld [vmem:[%s4235_s17 + $0x94] sm:$0xf0] }
  0xa3   : > { %v3008_v15 = vor.u32 %v3766_v6, %v3005_v7  ;;  %v3051_v6 = vld [vmem:[%s4235_s17 + $0xd8] sm:$0xf]  ;;  %v3779_v7 = vld [vmem:[%s4235_s17 + $0xe8] sm:$0xf0] }
  0xa4   : > { %v3052_v28 = vor.u32 %v3779_v7, %v3051_v6 }
  0xad   : > { %v4408_v18 = vpop.f32.mrf.mxu1 }
  0xaf   : > { %v4410_v21 = vpop.f32.mrf.mxu0 }
  0xb0   : > { %1725 = vmatmul.bf16.vlgmr.msrb.gmra.mxu1 %v2940_v16  ;;  %1894 = vmatmul.bf16.vlgmr.msrb.gmra.mxu2 %v2944_v17  ;;  %v3012_v16 = vor.u32 %v3769_v9, %v3011_v8 }
  0xb1   : > { %2063 = vmatmul.bf16.vlgmr.msrb.gmra.mxu3 %v2948_v19 }
  0xb2   : > { %2232 = vmatmul.bf16.vlgmr.msrb.gmra.mxu0 %v2952_v20 }
  0xb3   : > { %v4412_v22 = vpop.f32.mrf.mxu2 }
  0xb4   : > { %v4414_v23 = vpop.f32.mrf.mxu3 }
  0xb5   : > { %5205 = vst [vmem:[#allocation3_spill] sm:$0xff] %v4414_v23  ;;  %v4416_v24 = vpop.f32.mrf.mxu1 }
  0xb7   : > { %v4418_v25 = vpop.f32.mrf.mxu0 }
  0xbb   : > { %v4428_v34 = vpop.f32.mrf.mxu2 }
  0xbc   : > { %v4430_v35 = vpop.f32.mrf.mxu3 }
  0xbd   : > { %5206 = vst [vmem:[#allocation4_spill] sm:$0xff] %v4430_v35  ;;  %v4432_v38 = vpop.f32.mrf.mxu1  ;;  %v4603_v35 = vld [vmem:[%s5202_s2] ss:$0 sm:$0xff] }
  0xbf   : > { %v4434_v41 = vpop.f32.mrf.mxu0 }
  0xc0   : > { %1730 = vmatmul.bf16.gmra.mxu1 %v2960_v36  ;;  %1899 = vmatmul.bf16.gmra.mxu2 %v2964_v37  ;;  %v3031_v36 = vld [vmem:[%s4235_s17 + $0xb0] sm:$0xf]  ;;  %v3774_v37 = vld [vmem:[%s4235_s17 + $0xc0] sm:$0xf0] }
  0xc1   : > { %2068 = vmatmul.bf16.gmra.mxu3 %v2968_v39  ;;  %v3032_v50 = vor.u32 %v3774_v37, %v3031_v36  ;;  %v3780_v36 = vld [vmem:[%s4235_s17 + $0xf4] sm:$0xf]  ;;  %v3057_v37 = vld [vmem:[%s4235_s17 + $0x104] sm:$0xf0] }
  0xc2   : > { %2237 = vmatmul.bf16.gmra.mxu0 %v2972_v40 }
  0xc3   : > { %v4436_v42 = vpop.f32.mrf.mxu2 }
  0xc4   : > { %v4438_v43 = vpop.f32.mrf.mxu3 }
  0xc5   : > { %5207 = vst [vmem:[#allocation5_spill] sm:$0xff] %v4438_v43  ;;  %v4440_v44 = vpop.f32.mrf.mxu1 }
  0xc7   : > { %v4442_v45 = vpop.f32.mrf.mxu0 }
  0xcb   : > { %v4452_v54 = vpop.f32.mrf.mxu2 }
  0xcc   : > { %v4454_v55 = vpop.f32.mrf.mxu3 }
  0xcd   : > { %5208 = vst [vmem:[#allocation6_spill] sm:$0xff] %v4454_v55  ;;  %v4456_v58 = vpop.f32.mrf.mxu1 }
  0xcf   : > { %v4458_v61 = vpop.f32.mrf.mxu0 }
  0xd0   : > { %1735 = vmatmul.bf16.gmra.mxu1 %v2980_v56  ;;  %1904 = vmatmul.bf16.gmra.mxu2 %v2984_v57 }
  0xd1   : > { %2073 = vmatmul.bf16.gmra.mxu3 %v2988_v59  ;;  %v3775_v59 = vld [vmem:[%s4235_s17 + $0xcc] sm:$0xf] }
  0xd2   : > { %2242 = vmatmul.bf16.gmra.mxu0 %v2992_v60  ;;  %v3037_v60 = vld [vmem:[%s4235_s17 + $0xdc] sm:$0xf0] }
  0xd3   : > { %v4460_v62 = vpop.f32.mrf.mxu2 }
  0xd4   : > { %v4462_v63 = vpop.f32.mrf.mxu3 }
  0xd5   : > { %5209 = vst [vmem:[#allocation7_spill] sm:$0xff] %v4462_v63  ;;  %v4464_v0 = vpop.f32.mrf.mxu1  ;;  %v3794_v63 = vld [vmem:[%s4235_s17 + $0x160] sm:$0xf0] }
  0xd7   : > { %v4466_v1 = vpop.f32.mrf.mxu0 }
  0xdb   : > { %v4476_v10 = vpop.f32.mrf.mxu2 }
  0xdc   : > { %v4478_v11 = vpop.f32.mrf.mxu3 }
  0xdd   : > { %5210 = vst [vmem:[#allocation8_spill] sm:$0xff] %v4478_v11  ;;  %v4480_v14 = vpop.f32.mrf.mxu1  ;;  %v3111_v11 = vld [vmem:[%s4235_s17 + $0x150] sm:$0xf] }
  0xde   : > { %v3112_v43 = vor.u32 %v3794_v63, %v3111_v11 }
  0xdf   : > { %v4482_v17 = vpop.f32.mrf.mxu0 }
  0xe0   : > { %1740 = vmatmul.bf16.gmra.mxu1 %v3000_v12  ;;  %1909 = vmatmul.bf16.gmra.mxu2 %v3004_v13  ;;  %v3040_v12 = vor.u32 %v3775_v59, %v3037_v60  ;;  %v3044_v13 = vor.u32 %v3778_v3, %v3043_v2  ;;  %v3071_v59 = vld [vmem:[%s4235_s17 + $0x100] sm:$0xf]  ;;  %v3784_v60 = vld [vmem:[%s4235_s17 + $0x110] sm:$0xf0] }
  0xe1   : > { %2078 = vmatmul.bf16.gmra.mxu3 %v3008_v15 }
  0xe2   : > { %2247 = vmatmul.bf16.gmra.mxu0 %v3012_v16  ;;  %v3048_v16 = vor.u32 %v3776_v4, %v3045_v5  ;;  %v3060_v4 = vor.u32 %v3780_v36, %v3057_v37 }
  0xe3   : > { %v4484_v19 = vpop.f32.mrf.mxu2 }
  0xe4   : > { %v4486_v20 = vpop.f32.mrf.mxu3 }
  0xe5   : > { %5211 = vst [vmem:[#allocation9_spill] sm:$0xff] %v4486_v20  ;;  %v4488_v26 = vpop.f32.mrf.mxu1  ;;  %v3105_v20 = vld [vmem:[%s4235_s17 + $0x15c] sm:$0xf0] }
  0xe7   : > { %v4490_v27 = vpop.f32.mrf.mxu0 }
  0xeb   : > { %v4500_v39 = vpop.f32.mrf.mxu2 }
  0xec   : > { %v4502_v40 = vpop.f32.mrf.mxu3 }
  0xed   : > { %5212 = vst [vmem:[#allocation10_spill] sm:$0xff] %v4502_v40  ;;  %v4504_v48 = vpop.f32.mrf.mxu1 }
  0xef   : > { %v4506_v51 = vpop.f32.mrf.mxu0 }
  0xf0   : > { %1745 = vmatmul.bf16.gmra.mxu1 %v3020_v46  ;;  %1914 = vmatmul.bf16.gmra.mxu2 %v3024_v47  ;;  %v3063_v46 = vld [vmem:[%s4235_s17 + $0xf8] sm:$0xf]  ;;  %v3783_v47 = vld [vmem:[%s4235_s17 + $0x108] sm:$0xf0] }
  0xf1   : > { %2083 = vmatmul.bf16.gmra.mxu3 %v3028_v49  ;;  %v3781_v49 = vld [vmem:[%s4235_s17 + $0xfc] sm:$0xf]  ;;  %v3064_v5 = vor.u32 %v3783_v47, %v3063_v46  ;;  %v3077_v47 = vld [vmem:[%s4235_s17 + $0x12c] sm:$0xf0] }
  0xf2   : > { %2252 = vmatmul.bf16.gmra.mxu0 %v3032_v50  ;;  %v3065_v50 = vld [vmem:[%s4235_s17 + $0x10c] sm:$0xf0]  ;;  %v3785_v46 = vld [vmem:[%s4235_s17 + $0x11c] sm:$0xf] }
  0xf3   : > { %v4508_v52 = vpop.f32.mrf.mxu2  ;;  %v3068_v7 = vor.u32 %v3781_v49, %v3065_v50  ;;  %v3083_v49 = vld [vmem:[%s4235_s17 + $0x120] sm:$0xf]  ;;  %v3788_v50 = vld [vmem:[%s4235_s17 + $0x130] sm:$0xf0] }
  0xf4   : > { %v4510_v53 = vpop.f32.mrf.mxu3 }
  0xf5   : > { %5213 = vst [vmem:[#allocation11_spill] sm:$0xff] %v4510_v53  ;;  %v4512_v56 = vpop.f32.mrf.mxu1 }
  0xf7   : > { %v4514_v57 = vpop.f32.mrf.mxu0 }
  0xfb   : > { %v4524_v8 = vpop.f32.mrf.mxu2 }
  0xfc   : > { %5214 = vst [vmem:[#allocation12_spill] sm:$0xff] %v4524_v8  ;;  %v4526_v9 = vpop.f32.mrf.mxu3 }
  0xfd   : > { %5215 = vst [vmem:[#allocation13_spill] sm:$0xff] %v4526_v9  ;;  %v4528_v15 = vpop.f32.mrf.mxu1 }
  0xff   : > { %v4530_v29 = vpop.f32.mrf.mxu0 }
 0x100   : > { %1750 = vmatmul.bf16.gmra.mxu1 %v3040_v12  ;;  %1919 = vmatmul.bf16.gmra.mxu2 %v3044_v13  ;;  %v3072_v12 = vor.u32 %v3784_v60, %v3071_v59  ;;  %v3786_v59 = vld [vmem:[%s4235_s17 + $0x124] sm:$0xf]  ;;  %v3085_v60 = vld [vmem:[%s4235_s17 + $0x134] sm:$0xf0] }
 0x101   : > { %2088 = vmatmul.bf16.gmra.mxu3 %v3048_v16  ;;  %v3088_v9 = vor.u32 %v3786_v59, %v3085_v60  ;;  %v3097_v59 = vld [vmem:[%s4235_s17 + $0x154] sm:$0xf0]  ;;  %v3103_v60 = vld [vmem:[%s4235_s17 + $0x148] sm:$0xf] }
 0x102   : > { %2257 = vmatmul.bf16.gmra.mxu0 %v3052_v28 }
 0x103   : > { %v4532_v30 = vpop.f32.mrf.mxu2 }
 0x104   : > { %5216 = vst [vmem:[#allocation14_spill] sm:$0xff] %v4532_v30  ;;  %v4534_v31 = vpop.f32.mrf.mxu3 }
 0x105   : > { %5217 = vst [vmem:[#allocation15_spill] sm:$0xff] %v4534_v31  ;;  %v4536_v32 = vpop.f32.mrf.mxu1  ;;  %v3789_v31 = vld [vmem:[%s4235_s17 + $0x138] sm:$0xf0] }
 0x107   : > { %v4538_v33 = vpop.f32.mrf.mxu0 }
 0x10b   : > { %v4548_v2 = vpop.f32.mrf.mxu2 }
 0x10c   : > { %5218 = vst [vmem:[#allocation16_spill] sm:$0xff] %v4548_v2  ;;  %v4550_v3 = vpop.f32.mrf.mxu3 }
 0x10d   : > { %5219 = vst [vmem:[#allocation17_spill] sm:$0xff] %v4550_v3  ;;  %v4552_v6 = vpop.f32.mrf.mxu1  ;;  %v3091_v3 = vld [vmem:[%s4235_s17 + $0x128] sm:$0xf] }
 0x10e   : > { %v3092_v53 = vor.u32 %v3789_v31, %v3091_v3  ;;  %v3793_v31 = vld [vmem:[%s4235_s17 + $0x158] sm:$0xf0]  ;;  %v3791_v3 = vld [vmem:[%s4235_s17 + $0x14c] sm:$0xf] }
 0x10f   : > { %v4554_v13 = vpop.f32.mrf.mxu0  ;;  %v3108_v55 = vor.u32 %v3791_v3, %v3105_v20 }
 0x110   : > { %1755 = vmatmul.bf16.gmra.mxu1 %v3060_v4  ;;  %1924 = vmatmul.bf16.gmra.mxu2 %v3064_v5 }
 0x111   : > { %2093 = vmatmul.bf16.gmra.mxu3 %v3068_v7  ;;  %v3080_v7 = vor.u32 %v3785_v46, %v3077_v47 }
 0x112   : > { %2262 = vmatmul.bf16.gmra.mxu0 %v3072_v12  ;;  %v3084_v12 = vor.u32 %v3788_v50, %v3083_v49  ;;  %v3790_v50 = vld [vmem:[%s4235_s17 + $0x144] sm:$0xf] }
 0x113   : > { %v4556_v16 = vpop.f32.mrf.mxu2 }
 0x114   : > { %5220 = vst [vmem:[#allocation18_spill] sm:$0xff] %v4556_v16  ;;  %v4558_v28 = vpop.f32.mrf.mxu3 }
 0x115   : > { %5221 = vst [vmem:[#allocation19_spill] sm:$0xff] %v4558_v28  ;;  %v4560_v36 = vpop.f32.mrf.mxu1 }
 0x117   : > { %v4562_v37 = vpop.f32.mrf.mxu0 }
 0x11b   : > { %v4572_v4 = vpop.f32.mrf.mxu2 }
 0x11c   : > { %5222 = vst [vmem:[#allocation20_spill] sm:$0xff] %v4572_v4  ;;  %v4574_v5 = vpop.f32.mrf.mxu3 }
 0x11d   : > { %5223 = vst [vmem:[#allocation21_spill] sm:$0xff] %v4574_v5  ;;  %v4576_v28 = vpop.f32.mrf.mxu1 }
 0x11f   : > { %v4578_v40 = vpop.f32.mrf.mxu0 }
 0x120   : > { %1760 = vmatmul.bf16.gmra.mxu1 %v3080_v7  ;;  %1929 = vmatmul.bf16.gmra.mxu2 %v3084_v12  ;;  %v3104_v12 = vor.u32 %v3793_v31, %v3103_v60  ;;  %v1560_v31 = vadd.f32 %v4603_v35, %v4418_v25 }
 0x121   : > { %2098 = vmatmul.bf16.gmra.mxu3 %v3088_v9 }
 0x122   : > { %2267 = vmatmul.bf16.gmra.mxu0 %v3092_v53  ;;  %v3100_v53 = vor.u32 %v3790_v50, %v3097_v59 }
 0x123   : > { %v4580_v5 = vpop.f32.mrf.mxu2 }
 0x124   : > { %5224 = vst [vmem:[#allocation22_spill] sm:$0xff] %v4580_v5  ;;  %v4582_v46 = vpop.f32.mrf.mxu3  ;;  %v1558_v5 = vadd.f32 %v4603_v35, %v4410_v21 }
 0x125   : > { %5225 = vst [vmem:[#allocation23_spill] sm:$0xff] %v4582_v46  ;;  %v4584_v47 = vpop.f32.mrf.mxu1 }
 0x127   : > { %v4586_v49 = vpop.f32.mrf.mxu0 }
 0x12b   : > { %v4596_v7 = vpop.f32.mrf.mxu2 }
 0x12c   : > { %5226 = vst [vmem:[#allocation24_spill] sm:$0xff] %v4596_v7  ;;  %v4598_v9 = vpop.f32.mrf.mxu3  ;;  %v3799_v7 = vld [vmem:[%s4235_s17 + $0x188] sm:$0xf0] }
 0x12d   : > { %5227 = vst [vmem:[#allocation25_spill] sm:$0xff] %v4598_v9  ;;  %v1726_v46 = vpop.f32.mrf.mxu1 }
 0x12e   : > { %v1727_v20 = vadd.f32 %v1726_v46, %v1558_v5  ;;  %v3796_v5 = vld [vmem:[%s4235_s17 + $0x174] sm:$0xf]  ;;  %v3125_v46 = vld [vmem:[%s4235_s17 + $0x184] sm:$0xf0] }
 0x12f   : > { %v2233_v23 = vpop.f32.mrf.mxu0  ;;  %v3128_v25 = vor.u32 %v3796_v5, %v3125_v46  ;;  %v3137_v5 = vld [vmem:[%s4235_s17 + $0x1a4] sm:$0xf0]  ;;  %v3143_v46 = vld [vmem:[%s4235_s17 + $0x198] sm:$0xf] }
 0x130   : > { %1765 = vmatmul.bf16.gmra.mxu1 %v3100_v53  ;;  %1934 = vmatmul.bf16.gmra.mxu2 %v3104_v12  ;;  %v3117_v53 = vld [vmem:[%s4235_s17 + $0x17c] sm:$0xf0]  ;;  %v3798_v12 = vld [vmem:[%s4235_s17 + $0x180] sm:$0xf0] }
 0x131   : > { %2103 = vmatmul.bf16.gmra.mxu3 %v3108_v55  ;;  %v3795_v55 = vld [vmem:[%s4235_s17 + $0x16c] sm:$0xf] }
 0x132   : > { %2272 = vmatmul.bf16.gmra.mxu0 %v3112_v43  ;;  %v3123_v43 = vld [vmem:[%s4235_s17 + $0x170] sm:$0xf]  ;;  %v3120_v2 = vor.u32 %v3795_v55, %v3117_v53 }
 0x133   : > { %v1895_v63 = vpop.f32.mrf.mxu2  ;;  %v3124_v30 = vor.u32 %v3798_v12, %v3123_v43  ;;  %v3800_v12 = vld [vmem:[%s4235_s17 + $0x194] sm:$0xf] }
 0x134   : > { %v1896_v11 = vadd.f32 %v1895_v63, %v1727_v20  ;;  %v2064_v50 = vpop.f32.mrf.mxu3  ;;  %v3131_v63 = vld [vmem:[%s4235_s17 + $0x178] sm:$0xf] }
 0x135   : > { %v1728_v59 = vpop.f32.mrf.mxu1 }
 0x136   : > { %v2065_v60 = vadd.f32 %v2064_v50, %v1896_v11  ;;  %v1729_v20 = vadd.f32 %v1728_v59, %v1560_v31  ;;  %v1563_v31 = vadd.f32 %v4603_v35, %v4434_v41 }
 0x137   : > { %v2235_v21 = vpop.f32.mrf.mxu0 }
 0x138   : > { %v2234_v3 = vadd.f32 %v2233_v23, %v2065_v60  ;;  %v3132_v23 = vor.u32 %v3799_v7, %v3131_v63  ;;  %v3145_v63 = vld [vmem:[%s4235_s17 + $0x1ac] sm:$0xf0] }
 0x13a   : > { %v2393_v9 = vmax.f32 %v2234_v3, 0.0 }
 0x13b   : > { %v1897_v4 = vpop.f32.mrf.mxu2 }
 0x13c   : > { %v2457_v16 = vpack.c.bf16 %v2393_v9, %v2393_v9  ;;  %v1898_v11 = vadd.f32 %v1897_v4, %v1729_v20  ;;  %v2066_v50 = vpop.f32.mrf.mxu3  ;;  %v3801_v20 = vld [vmem:[%s4235_s17 + $0x19c] sm:$0xf] }
 0x13d   : > { %v1731_v8 = vpop.f32.mrf.mxu1 }
 0x13e   : > { %2522 = vst.msk [vmem:[%s4618_s12] sm:$0xf] %vm2521_vm0, %v2457_v16  ;;  %v2067_v60 = vadd.f32 %v2066_v50, %v1898_v11  ;;  %v1732_v7 = vadd.f32 %v1731_v8, %v1563_v31  ;;  %v3803_v8 = vld [vmem:[%s4235_s17 + $0x1a8] sm:$0xf0] }
 0x13f   : > { %v2238_v59 = vpop.f32.mrf.mxu0 }
 0x140   : > { %v2236_v3 = vadd.f32 %v2235_v21, %v2067_v60  ;;  %1770 = vmatmul.bf16.gmra.mxu1 %v3120_v2  ;;  %1939 = vmatmul.bf16.gmra.mxu2 %v3124_v30  ;;  %v1565_v21 = vadd.f32 %v4603_v35, %v4442_v45  ;;  %v3148_v45 = vor.u32 %v3801_v20, %v3145_v63 }
 0x141   : > { %2108 = vmatmul.bf16.gmra.mxu3 %v3128_v25  ;;  %v3151_v25 = vld [vmem:[%s4235_s17 + $0x1a0] sm:$0xf]  ;;  %v1570_v63 = vadd.f32 %v4603_v35, %v4466_v1 }
 0x142   : > { %2277 = vmatmul.bf16.gmra.mxu0 %v3132_v23  ;;  %v2394_v4 = vmax.f32 %v2236_v3, 0.0  ;;  %v3804_v23 = vld [vmem:[%s4235_s17 + $0x1b0] sm:$0xf0] }
 0x143   : > { %v1900_v16 = vpop.f32.mrf.mxu2 }
 0x144   : > { %v2458_v9 = vpack.c.bf16 %v2394_v4, %v2394_v4  ;;  %v1901_v55 = vadd.f32 %v1900_v16, %v1732_v7  ;;  %v2069_v53 = vpop.f32.mrf.mxu3  ;;  %v3140_v7 = vor.u32 %v3800_v12, %v3137_v5  ;;  %v3144_v16 = vor.u32 %v3803_v8, %v3143_v46 }
 0x145   : > { %v1733_v41 = vpop.f32.mrf.mxu1 }
 0x146   : > { %2523 = vst.msk [vmem:[%s4618_s12 + $0x4] sm:$0xf] %vm2521_vm0, %v2458_v9  ;;  %v2070_v2 = vadd.f32 %v2069_v53, %v1901_v55  ;;  %v1734_v50 = vadd.f32 %v1733_v41, %v1565_v21 }
 0x147   : > { %v2240_v30 = vpop.f32.mrf.mxu0 }
 0x148   : > { %v2239_v43 = vadd.f32 %v2238_v59, %v2070_v2  ;;  %v3152_v59 = vor.u32 %v3804_v23, %v3151_v25  ;;  %v1568_v2 = vadd.f32 %v4603_v35, %v4458_v61  ;;  %v3157_v25 = vld [vmem:[%s4235_s17 + $0x1cc] sm:$0xf0]  ;;  %v3163_v23 = vld [vmem:[%s4235_s17 + $0x1c0] sm:$0xf] }
 0x14a   : > { %v2395_v11 = vmax.f32 %v2239_v43, 0.0 }
 0x14b   : > { %v1902_v60 = vpop.f32.mrf.mxu2 }
 0x14c   : > { %v2459_v31 = vpack.c.bf16 %v2395_v11, %v2395_v11  ;;  %v1903_v3 = vadd.f32 %v1902_v60, %v1734_v50  ;;  %v2071_v4 = vpop.f32.mrf.mxu3  ;;  %v3805_v50 = vld [vmem:[%s4235_s17 + $0x1bc] sm:$0xf]  ;;  %v3808_v60 = vld [vmem:[%s4235_s17 + $0x1d0] sm:$0xf0] }
 0x14d   : > { %v1736_v9 = vpop.f32.mrf.mxu1 }
 0x14e   : > { %2524 = vst.msk [vmem:[%s4618_s12 + $0x8] sm:$0xf] %vm2521_vm0, %v2459_v31  ;;  %v2072_v55 = vadd.f32 %v2071_v4, %v1903_v3  ;;  %v1737_v43 = vadd.f32 %v1736_v9, %v1568_v2  ;;  %v3806_v31 = vld [vmem:[%s4235_s17 + $0x1c4] sm:$0xf]  ;;  %v3165_v3 = vld [vmem:[%s4235_s17 + $0x1d4] sm:$0xf0] }
 0x14f   : > { %v2243_v53 = vpop.f32.mrf.mxu0  ;;  %v3809_v9 = vld [vmem:[%s4235_s17 + $0x1d8] sm:$0xf0]  ;;  %v3168_v1 = vor.u32 %v3806_v31, %v3165_v3  ;;  %v3810_v3 = vld [vmem:[%s4235_s17 + $0x1e4] sm:$0xf] }
 0x150   : > { %v2241_v41 = vadd.f32 %v2240_v30, %v2072_v55  ;;  %1775 = vmatmul.bf16.gmra.mxu1 %v3140_v7  ;;  %1944 = vmatmul.bf16.gmra.mxu2 %v3144_v16  ;;  %v3171_v16 = vld [vmem:[%s4235_s17 + $0x1c8] sm:$0xf] }
 0x151   : > { %2113 = vmatmul.bf16.gmra.mxu3 %v3148_v45 }
 0x152   : > { %2282 = vmatmul.bf16.gmra.mxu0 %v3152_v59  ;;  %v2396_v21 = vmax.f32 %v2241_v41, 0.0  ;;  %v3160_v41 = vor.u32 %v3805_v50, %v3157_v25 }
 0x153   : > { %v1905_v12 = vpop.f32.mrf.mxu2 }
 0x154   : > { %v2460_v5 = vpack.c.bf16 %v2396_v21, %v2396_v21  ;;  %v1906_v46 = vadd.f32 %v1905_v12, %v1737_v43  ;;  %v2074_v8 = vpop.f32.mrf.mxu3  ;;  %v3164_v21 = vor.u32 %v3808_v60, %v3163_v23  ;;  %v1575_v60 = vadd.f32 %v4603_v35, %v4490_v27 }
 0x155   : > { %v1738_v61 = vpop.f32.mrf.mxu1 }
 0x156   : > { %2525 = vst.msk [vmem:[%s4618_s12 + $0xc] sm:$0xf] %vm2521_vm0, %v2460_v5  ;;  %v2075_v30 = vadd.f32 %v2074_v8, %v1906_v46  ;;  %v1739_v7 = vadd.f32 %v1738_v61, %v1570_v63  ;;  %v1573_v46 = vadd.f32 %v4603_v35, %v4482_v17 }
 0x157   : > { %v2245_v20 = vpop.f32.mrf.mxu0 }
 0x158   : > { %v2244_v11 = vadd.f32 %v2243_v53, %v2075_v30  ;;  %v3172_v53 = vor.u32 %v3809_v9, %v3171_v16  ;;  %v3813_v16 = vld [vmem:[%s4235_s17 + $0x1f8] sm:$0xf0]  ;;  %v3811_v9 = vld [vmem:[%s4235_s17 + $0x1ec] sm:$0xf] }
 0x15a   : > { %v2397_v4 = vmax.f32 %v2244_v11, 0.0 }
 0x15b   : > { %v1907_v45 = vpop.f32.mrf.mxu2 }
 0x15c   : > { %v2461_v59 = vpack.c.bf16 %v2397_v4, %v2397_v4  ;;  %v1908_v55 = vadd.f32 %v1907_v45, %v1739_v7  ;;  %v2076_v2 = vpop.f32.mrf.mxu3  ;;  %v3177_v4 = vld [vmem:[%s4235_s17 + $0x1f4] sm:$0xf0]  ;;  %v3183_v7 = vld [vmem:[%s4235_s17 + $0x1e8] sm:$0xf]  ;;  %v3185_v45 = vld [vmem:[%s4235_s17 + $0x1fc] sm:$0xf0] }
 0x15d   : > { %v1741_v43 = vpop.f32.mrf.mxu1  ;;  %v3188_v27 = vor.u32 %v3811_v9, %v3185_v45  ;;  %v3197_v9 = vld [vmem:[%s4235_s17 + $0x21c] sm:$0xf0]  ;;  %v3203_v45 = vld [vmem:[%s4235_s17 + $0x210] sm:$0xf] }
 0x15e   : > { %2526 = vst.msk [vmem:[%s4618_s12 + $0x10] sm:$0xf] %vm2521_vm0, %v2461_v59  ;;  %v2077_v12 = vadd.f32 %v2076_v2, %v1908_v55  ;;  %v1742_v30 = vadd.f32 %v1741_v43, %v1573_v46  ;;  %v3191_v2 = vld [vmem:[%s4235_s17 + $0x1f0] sm:$0xf]  ;;  %v3184_v46 = vor.u32 %v3813_v16, %v3183_v7  ;;  %v3815_v16 = vld [vmem:[%s4235_s17 + $0x20c] sm:$0xf] }
 0x15f   : > { %v2248_v5 = vpop.f32.mrf.mxu0 }
 0x160   : > { %v2246_v8 = vadd.f32 %v2245_v20, %v2077_v12  ;;  %1780 = vmatmul.bf16.gmra.mxu1 %v3160_v41  ;;  %1949 = vmatmul.bf16.gmra.mxu2 %v3164_v21  ;;  %v3814_v41 = vld [vmem:[%s4235_s17 + $0x200] sm:$0xf0]  ;;  %v3180_v12 = vor.u32 %v3810_v3, %v3177_v4  ;;  %v1580_v4 = vadd.f32 %v4603_v35, %v4514_v57 }
 0x161   : > { %2118 = vmatmul.bf16.gmra.mxu3 %v3168_v1 }
 0x162   : > { %2287 = vmatmul.bf16.gmra.mxu0 %v3172_v53  ;;  %v2398_v61 = vmax.f32 %v2246_v8, 0.0 }
 0x163   : > { %v1910_v63 = vpop.f32.mrf.mxu2 }
 0x164   : > { %v2462_v11 = vpack.c.bf16 %v2398_v61, %v2398_v61  ;;  %v1911_v50 = vadd.f32 %v1910_v63, %v1742_v30  ;;  %v2079_v25 = vpop.f32.mrf.mxu3  ;;  %v1578_v63 = vadd.f32 %v4603_v35, %v4506_v51 }
 0x165   : > { %v1743_v17 = vpop.f32.mrf.mxu1 }
 0x166   : > { %2527 = vst.msk [vmem:[%s4618_s12 + $0x14] sm:$0xf] %vm2521_vm0, %v2462_v11  ;;  %v2080_v20 = vadd.f32 %v2079_v25, %v1911_v50  ;;  %v1744_v55 = vadd.f32 %v1743_v17, %v1575_v60 }
 0x167   : > { %v2250_v23 = vpop.f32.mrf.mxu0 }
 0x168   : > { %v2249_v31 = vadd.f32 %v2248_v5, %v2080_v20  ;;  %v3192_v5 = vor.u32 %v3814_v41, %v3191_v2  ;;  %v3205_v2 = vld [vmem:[%s4235_s17 + $0x224] sm:$0xf0] }
 0x16a   : > { %v2399_v59 = vmax.f32 %v2249_v31, 0.0 }
 0x16b   : > { %v1912_v21 = vpop.f32.mrf.mxu2 }
 0x16c   : > { %v2463_v43 = vpack.c.bf16 %v2399_v59, %v2399_v59  ;;  %v1913_v1 = vadd.f32 %v1912_v21, %v1744_v55  ;;  %v2081_v53 = vpop.f32.mrf.mxu3  ;;  %v3818_v59 = vld [vmem:[%s4235_s17 + $0x220] sm:$0xf0]  ;;  %v3816_v55 = vld [vmem:[%s4235_s17 + $0x214] sm:$0xf] }
 0x16d   : > { %v1746_v8 = vpop.f32.mrf.mxu1  ;;  %v3208_v57 = vor.u32 %v3816_v55, %v3205_v2  ;;  %v3823_v55 = vld [vmem:[%s4235_s17 + $0x248] sm:$0xf0]  ;;  %v3821_v2 = vld [vmem:[%s4235_s17 + $0x23c] sm:$0xf] }
 0x16e   : > { %2528 = vst.msk [vmem:[%s4618_s12 + $0x18] sm:$0xf] %vm2521_vm0, %v2463_v43  ;;  %v2082_v61 = vadd.f32 %v2081_v53, %v1913_v1  ;;  %v1747_v25 = vadd.f32 %v1746_v8, %v1578_v63  ;;  %v3211_v43 = vld [vmem:[%s4235_s17 + $0x218] sm:$0xf]  ;;  %v3819_v1 = vld [vmem:[%s4235_s17 + $0x228] sm:$0xf0] }
 0x16f   : > { %v2253_v30 = vpop.f32.mrf.mxu0 }
 0x170   : > { %v2251_v11 = vadd.f32 %v2250_v23, %v2082_v61  ;;  %1785 = vmatmul.bf16.gmra.mxu1 %v3180_v12  ;;  %1954 = vmatmul.bf16.gmra.mxu2 %v3184_v46 }
 0x171   : > { %2123 = vmatmul.bf16.gmra.mxu3 %v3188_v27  ;;  %v3200_v27 = vor.u32 %v3815_v16, %v3197_v9  ;;  %v3820_v9 = vld [vmem:[%s4235_s17 + $0x234] sm:$0xf] }
 0x172   : > { %2292 = vmatmul.bf16.gmra.mxu0 %v3192_v5  ;;  %v2400_v50 = vmax.f32 %v2251_v11, 0.0  ;;  %v3204_v5 = vor.u32 %v3818_v59, %v3203_v45  ;;  %v3217_v45 = vld [vmem:[%s4235_s17 + $0x244] sm:$0xf0]  ;;  %v3223_v59 = vld [vmem:[%s4235_s17 + $0x238] sm:$0xf] }
 0x173   : > { %v1915_v17 = vpop.f32.mrf.mxu2 }
 0x174   : > { %v2464_v20 = vpack.c.bf16 %v2400_v50, %v2400_v50  ;;  %v1916_v60 = vadd.f32 %v1915_v17, %v1747_v25  ;;  %v2084_v31 = vpop.f32.mrf.mxu3  ;;  %v1583_v50 = vadd.f32 %v4603_v35, %v4530_v29 }
 0x175   : > { %v1748_v51 = vpop.f32.mrf.mxu1 }
 0x176   : > { %2529 = vst.msk [vmem:[%s4618_s12 + $0x1c] sm:$0xf] %vm2521_vm0, %v2464_v20  ;;  %v2085_v23 = vadd.f32 %v2084_v31, %v1916_v60  ;;  %v1749_v21 = vadd.f32 %v1748_v51, %v1580_v4 }
 0x177   : > { %v2255_v3 = vpop.f32.mrf.mxu0 }
 0x178   : > { %v2254_v7 = vadd.f32 %v2253_v30, %v2085_v23  ;;  %v3212_v30 = vor.u32 %v3819_v1, %v3211_v43  ;;  %v3231_v1 = vld [vmem:[%s4235_s17 + $0x240] sm:$0xf] }
 0x17a   : > { %v2401_v41 = vmax.f32 %v2254_v7, 0.0  ;;  %v1585_v7 = vadd.f32 %v4603_v35, %v4538_v33 }
 0x17b   : > { %v1917_v53 = vpop.f32.mrf.mxu2 }
 0x17c   : > { %v2465_v12 = vpack.c.bf16 %v2401_v41, %v2401_v41  ;;  %v1918_v46 = vadd.f32 %v1917_v53, %v1749_v21  ;;  %v2086_v8 = vpop.f32.mrf.mxu3  ;;  %v3225_v41 = vld [vmem:[%s4235_s17 + $0x24c] sm:$0xf0]  ;;  %v3824_v53 = vld [vmem:[%s4235_s17 + $0x250] sm:$0xf0] }
 0x17d   : > { %v1751_v61 = vpop.f32.mrf.mxu1  ;;  %v3228_v33 = vor.u32 %v3821_v2, %v3225_v41  ;;  %v3245_v2 = vld [vmem:[%s4235_s17 + $0x274] sm:$0xf0] }
 0x17e   : > { %2530 = vst.msk [vmem:[%s4618_s12 + $0x20] sm:$0xf] %vm2521_vm0, %v2465_v12  ;;  %v2087_v63 = vadd.f32 %v2086_v8, %v1918_v46  ;;  %v1752_v20 = vadd.f32 %v1751_v61, %v1583_v50  ;;  %v3224_v61 = vor.u32 %v3823_v55, %v3223_v59  ;;  %v1588_v50 = vadd.f32 %v4603_v35, %v4554_v13  ;;  %v3828_v59 = vld [vmem:[%s4235_s17 + $0x270] sm:$0xf0]  ;;  %v3826_v55 = vld [vmem:[%s4235_s17 + $0x264] sm:$0xf] }
 0x17f   : > { %v2258_v11 = vpop.f32.mrf.mxu0 }
 0x180   : > { %v2256_v25 = vadd.f32 %v2255_v3, %v2087_v63  ;;  %1790 = vmatmul.bf16.gmra.mxu1 %v3200_v27  ;;  %1959 = vmatmul.bf16.gmra.mxu2 %v3204_v5  ;;  %v3220_v5 = vor.u32 %v3820_v9, %v3217_v45  ;;  %v3237_v9 = vld [vmem:[%s4235_s17 + $0x26c] sm:$0xf0]  ;;  %v3243_v45 = vld [vmem:[%s4235_s17 + $0x260] sm:$0xf] }
 0x181   : > { %2128 = vmatmul.bf16.gmra.mxu3 %v3208_v57 }
 0x182   : > { %2297 = vmatmul.bf16.gmra.mxu0 %v3212_v30  ;;  %v2402_v17 = vmax.f32 %v2256_v25, 0.0  ;;  %v3232_v30 = vor.u32 %v3824_v53, %v3231_v1  ;;  %v3829_v1 = vld [vmem:[%s4235_s17 + $0x278] sm:$0xf0] }
 0x183   : > { %v1920_v60 = vpop.f32.mrf.mxu2 }
 0x184   : > { %v2466_v31 = vpack.c.bf16 %v2402_v17, %v2402_v17  ;;  %v1921_v51 = vadd.f32 %v1920_v60, %v1752_v20  ;;  %v2089_v23 = vpop.f32.mrf.mxu3 }
 0x185   : > { %v1753_v29 = vpop.f32.mrf.mxu1 }
 0x186   : > { %2531 = vst.msk [vmem:[%s4618_s12 + $0x24] sm:$0xf] %vm2521_vm0, %v2466_v31  ;;  %v2090_v3 = vadd.f32 %v2089_v23, %v1921_v51  ;;  %v1754_v43 = vadd.f32 %v1753_v29, %v1585_v7 }
 0x187   : > { %v2260_v4 = vpop.f32.mrf.mxu0 }
 0x188   : > { %v2259_v16 = vadd.f32 %v2258_v11, %v2090_v3 }
 0x18a   : > { %v2403_v21 = vmax.f32 %v2259_v16, 0.0  ;;  %v3825_v16 = vld [vmem:[%s4235_s17 + $0x25c] sm:$0xf] }
 0x18b   : > { %v1922_v12 = vpop.f32.mrf.mxu2 }
 0x18c   : > { %v2467_v46 = vpack.c.bf16 %v2403_v21, %v2403_v21  ;;  %v1923_v8 = vadd.f32 %v1922_v12, %v1754_v43  ;;  %v2091_v27 = vpop.f32.mrf.mxu3  ;;  %v3251_v43 = vld [vmem:[%s4235_s17 + $0x268] sm:$0xf] }
 0x18d   : > { %v1756_v57 = vpop.f32.mrf.mxu1 }
 0x18e   : > { %2532 = vst.msk [vmem:[%s4618_s12 + $0x28] sm:$0xf] %vm2521_vm0, %v2467_v46  ;;  %v2092_v63 = vadd.f32 %v2091_v27, %v1923_v8  ;;  %v1757_v20 = vadd.f32 %v1756_v57, %v1588_v50  ;;  %v3240_v27 = vor.u32 %v3825_v16, %v3237_v9  ;;  %v3252_v57 = vor.u32 %v3829_v1, %v3251_v43  ;;  %v3833_v16 = vld [vmem:[%s4235_s17 + $0x298] sm:$0xf0]  ;;  %v3831_v9 = vld [vmem:[%s4235_s17 + $0x28c] sm:$0xf] }
 0x18f   : > { %v2263_v11 = vpop.f32.mrf.mxu0 }
 0x190   : > { %v2261_v25 = vadd.f32 %v2260_v4, %v2092_v63  ;;  %1795 = vmatmul.bf16.gmra.mxu1 %v3220_v5  ;;  %1964 = vmatmul.bf16.gmra.mxu2 %v3224_v61  ;;  %v1590_v4 = vadd.f32 %v4603_v35, %v4562_v37  ;;  %v3244_v5 = vor.u32 %v3828_v59, %v3243_v45  ;;  %v3265_v45 = vld [vmem:[%s4235_s17 + $0x29c] sm:$0xf0] }
 0x191   : > { %2133 = vmatmul.bf16.gmra.mxu3 %v3228_v33  ;;  %v3248_v37 = vor.u32 %v3826_v55, %v3245_v2  ;;  %v1593_v63 = vadd.f32 %v4603_v35, %v4578_v40  ;;  %v3271_v2 = vld [vmem:[%s4235_s17 + $0x290] sm:$0xf] }
 0x192   : > { %2302 = vmatmul.bf16.gmra.mxu0 %v3232_v30  ;;  %v2404_v17 = vmax.f32 %v2261_v25, 0.0 }
 0x193   : > { %v1925_v60 = vpop.f32.mrf.mxu2 }
 0x194   : > { %v2468_v31 = vpack.c.bf16 %v2404_v17, %v2404_v17  ;;  %v1926_v51 = vadd.f32 %v1925_v60, %v1757_v20  ;;  %v2094_v23 = vpop.f32.mrf.mxu3 }
 0x195   : > { %v1758_v13 = vpop.f32.mrf.mxu1 }
 0x196   : > { %2533 = vst.msk [vmem:[%s4618_s12 + $0x2c] sm:$0xf] %vm2521_vm0, %v2468_v31  ;;  %v2095_v29 = vadd.f32 %v2094_v23, %v1926_v51  ;;  %v1759_v21 = vadd.f32 %v1758_v13, %v1590_v4  ;;  %v1595_v13 = vadd.f32 %v4603_v35, %v4586_v49  ;;  %v3257_v4 = vld [vmem:[%s4235_s17 + $0x294] sm:$0xf0]  ;;  %v3268_v49 = vor.u32 %v3831_v9, %v3265_v45  ;;  %v3839_v9 = vld [vmem:[%s4235_s17 + $0x2c8] sm:$0xf0] }
 0x197   : > { %v2265_v3 = vpop.f32.mrf.mxu0 }
 0x198   : > { %v2264_v7 = vadd.f32 %v2263_v11, %v2095_v29 }
 0x19a   : > { %v2405_v41 = vmax.f32 %v2264_v7, 0.0  ;;  %v3263_v7 = vld [vmem:[%s4235_s17 + $0x288] sm:$0xf] }
 0x19b   : > { %v1927_v53 = vpop.f32.mrf.mxu2 }
 0x19c   : > { %v2469_v12 = vpack.c.bf16 %v2405_v41, %v2405_v41  ;;  %v1928_v46 = vadd.f32 %v1927_v53, %v1759_v21  ;;  %v2096_v8 = vpop.f32.mrf.mxu3  ;;  %v3834_v41 = vld [vmem:[%s4235_s17 + $0x2a0] sm:$0xf0] }
 0x19d   : > { %v1761_v61 = vpop.f32.mrf.mxu1 }
 0x19e   : > { %2534 = vst.msk [vmem:[%s4618_s12 + $0x30] sm:$0xf] %vm2521_vm0, %v2469_v12  ;;  %v2097_v33 = vadd.f32 %v2096_v8, %v1928_v46  ;;  %v1762_v25 = vadd.f32 %v1761_v61, %v1593_v63  ;;  %v3264_v46 = vor.u32 %v3833_v16, %v3263_v7  ;;  %v3291_v16 = vld [vmem:[%s4235_s17 + $0x2b8] sm:$0xf] }
 0x19f   : > { %v2268_v30 = vpop.f32.mrf.mxu0 }
 0x1a0   : > { %v2266_v11 = vadd.f32 %v2265_v3, %v2097_v33  ;;  %1800 = vmatmul.bf16.gmra.mxu1 %v3240_v27  ;;  %1969 = vmatmul.bf16.gmra.mxu2 %v3244_v5  ;;  %v3830_v3 = vld [vmem:[%s4235_s17 + $0x284] sm:$0xf]  ;;  %v3272_v27 = vor.u32 %v3834_v41, %v3271_v2 }
 0x1a1   : > { %2138 = vmatmul.bf16.gmra.mxu3 %v3248_v37  ;;  %v3260_v12 = vor.u32 %v3830_v3, %v3257_v4  ;;  %v1598_v37 = vadd.f32 %v4603_v35, %v4408_v18  ;;  %v3285_v3 = vld [vmem:[%s4235_s17 + $0x2c4] sm:$0xf0] }
 0x1a2   : > { %2307 = vmatmul.bf16.gmra.mxu0 %v3252_v57  ;;  %v2406_v50 = vmax.f32 %v2266_v11, 0.0 }
 0x1a3   : > { %v1930_v17 = vpop.f32.mrf.mxu2 }
 0x1a4   : > { %v2470_v20 = vpack.c.bf16 %v2406_v50, %v2406_v50  ;;  %v1931_v60 = vadd.f32 %v1930_v17, %v1762_v25  ;;  %v2099_v31 = vpop.f32.mrf.mxu3 }
 0x1a5   : > { %v1763_v40 = vpop.f32.mrf.mxu1 }
 0x1a6   : > { %2535 = vst.msk [vmem:[%s4618_s12 + $0x34] sm:$0xf] %vm2521_vm0, %v2470_v20  ;;  %v2100_v51 = vadd.f32 %v2099_v31, %v1931_v60  ;;  %v1764_v55 = vadd.f32 %v1763_v40, %v1595_v13  ;;  %v1600_v60 = vadd.f32 %v4603_v35, %v4416_v24  ;;  %v3835_v40 = vld [vmem:[%s4235_s17 + $0x2ac] sm:$0xf]  ;;  %v3838_v13 = vld [vmem:[%s4235_s17 + $0x2c0] sm:$0xf0] }
 0x1a7   : > { %v2270_v23 = vpop.f32.mrf.mxu0 }
 0x1a8   : > { %v2269_v29 = vadd.f32 %v2268_v30, %v2100_v51  ;;  %v3277_v51 = vld [vmem:[%s4235_s17 + $0x2bc] sm:$0xf0] }
 0x1a9   : > { %v3280_v41 = vor.u32 %v3835_v40, %v3277_v51  ;;  %v3311_v51 = vld [vmem:[%s4235_s17 + $0x2e0] sm:$0xf] }
 0x1aa   : > { %v2407_v59 = vmax.f32 %v2269_v29, 0.0  ;;  %v3836_v29 = vld [vmem:[%s4235_s17 + $0x2b4] sm:$0xf] }
 0x1ab   : > { %v1932_v21 = vpop.f32.mrf.mxu2  ;;  %v3288_v24 = vor.u32 %v3836_v29, %v3285_v3 }
 0x1ac   : > { %v2471_v43 = vpack.c.bf16 %v2407_v59, %v2407_v59  ;;  %v1933_v1 = vadd.f32 %v1932_v21, %v1764_v55  ;;  %v2101_v53 = vpop.f32.mrf.mxu3 }
 0x1ad   : > { %v1766_v8 = vpop.f32.mrf.mxu1 }
 0x1ae   : > { %2536 = vst.msk [vmem:[%s4618_s12 + $0x38] sm:$0xf] %vm2521_vm0, %v2471_v43  ;;  %v2102_v5 = vadd.f32 %v2101_v53, %v1933_v1  ;;  %v1767_v30 = vadd.f32 %v1766_v8, %v1598_v37  ;;  %v3292_v1 = vor.u32 %v3839_v9, %v3291_v16 }
 0x1af   : > { %v2273_v61 = vpop.f32.mrf.mxu0 }
 0x1b0   : > { %v2271_v57 = vadd.f32 %v2270_v23, %v2102_v5  ;;  %1805 = vmatmul.bf16.gmra.mxu1 %v3260_v12  ;;  %1974 = vmatmul.bf16.gmra.mxu2 %v3264_v46  ;;  %v3283_v23 = vld [vmem:[%s4235_s17 + $0x2b0] sm:$0xf]  ;;  %v1603_v46 = vadd.f32 %v4603_v35, %v4432_v38 }
 0x1b1   : > { %2143 = vmatmul.bf16.gmra.mxu3 %v3268_v49  ;;  %v3284_v21 = vor.u32 %v3838_v13, %v3283_v23  ;;  %v3844_v23 = vld [vmem:[%s4235_s17 + $0x2f0] sm:$0xf0] }
 0x1b2   : > { %2312 = vmatmul.bf16.gmra.mxu0 %v3272_v27  ;;  %v2408_v33 = vmax.f32 %v2271_v57, 0.0 }
 0x1b3   : > { %v1935_v63 = vpop.f32.mrf.mxu2 }
 0x1b4   : > { %v2472_v11 = vpack.c.bf16 %v2408_v33, %v2408_v33  ;;  %v1936_v50 = vadd.f32 %v1935_v63, %v1767_v30  ;;  %v2104_v25 = vpop.f32.mrf.mxu3  ;;  %v1605_v63 = vadd.f32 %v4603_v35, %v4440_v44 }
 0x1b5   : > { %v1768_v18 = vpop.f32.mrf.mxu1 }
 0x1b6   : > { %2537 = vst.msk [vmem:[%s4618_s12 + $0x3c] sm:$0xf] %vm2521_vm0, %v2472_v11  ;;  %v2105_v17 = vadd.f32 %v2104_v25, %v1936_v50  ;;  %v1769_v7 = vadd.f32 %v1768_v18, %v1600_v60  ;;  %v3840_v50 = vld [vmem:[%s4235_s17 + $0x2d4] sm:$0xf]  ;;  %v3297_v25 = vld [vmem:[%s4235_s17 + $0x2e4] sm:$0xf0] }
 0x1b7   : > { %v2275_v20 = vpop.f32.mrf.mxu0  ;;  %v3303_v18 = vld [vmem:[%s4235_s17 + $0x2d8] sm:$0xf]  ;;  %v3305_v60 = vld [vmem:[%s4235_s17 + $0x2ec] sm:$0xf0] }
 0x1b8   : > { %v2274_v31 = vadd.f32 %v2273_v61, %v2105_v17  ;;  %v3843_v17 = vld [vmem:[%s4235_s17 + $0x2e8] sm:$0xf0] }
 0x1b9   : > { %v3304_v16 = vor.u32 %v3843_v17, %v3303_v18 }
 0x1ba   : > { %v2409_v4 = vmax.f32 %v2274_v31, 0.0 }
 0x1bb   : > { %v1937_v45 = vpop.f32.mrf.mxu2 }
 0x1bc   : > { %v2473_v59 = vpack.c.bf16 %v2409_v4, %v2409_v4  ;;  %v1938_v55 = vadd.f32 %v1937_v45, %v1769_v7  ;;  %v2106_v2 = vpop.f32.mrf.mxu3  ;;  %v3300_v7 = vor.u32 %v3840_v50, %v3297_v25  ;;  %v3312_v45 = vor.u32 %v3844_v23, %v3311_v51  ;;  %v3849_v50 = vld [vmem:[%s4235_s17 + $0x318] sm:$0xf0] }
 0x1bd   : > { %v1771_v43 = vpop.f32.mrf.mxu1 }
 0x1be   : > { %2538 = vst.msk [vmem:[%s4618_s12 + $0x40] sm:$0xf] %vm2521_vm0, %v2473_v59  ;;  %v2107_v53 = vadd.f32 %v2106_v2, %v1938_v55  ;;  %v1772_v27 = vadd.f32 %v1771_v43, %v1603_v46  ;;  %v1608_v2 = vadd.f32 %v4603_v35, %v4456_v58 }
 0x1bf   : > { %v2278_v12 = vpop.f32.mrf.mxu0 }
 0x1c0   : > { %v2276_v8 = vadd.f32 %v2275_v20, %v2107_v53  ;;  %1810 = vmatmul.bf16.gmra.mxu1 %v3280_v41  ;;  %1979 = vmatmul.bf16.gmra.mxu2 %v3284_v21  ;;  %v3841_v20 = vld [vmem:[%s4235_s17 + $0x2dc] sm:$0xf] }
 0x1c1   : > { %2148 = vmatmul.bf16.gmra.mxu3 %v3288_v24  ;;  %v3308_v44 = vor.u32 %v3841_v20, %v3305_v60 }
 0x1c2   : > { %2317 = vmatmul.bf16.gmra.mxu0 %v3292_v1  ;;  %v2410_v49 = vmax.f32 %v2276_v8, 0.0 }
 0x1c3   : > { %v1940_v5 = vpop.f32.mrf.mxu2 }
 0x1c4   : > { %v2474_v61 = vpack.c.bf16 %v2410_v49, %v2410_v49  ;;  %v1941_v37 = vadd.f32 %v1940_v5, %v1772_v27  ;;  %v2109_v57 = vpop.f32.mrf.mxu3  ;;  %v1610_v49 = vadd.f32 %v4603_v35, %v4464_v0  ;;  %v3845_v5 = vld [vmem:[%s4235_s17 + $0x2fc] sm:$0xf] }
 0x1c5   : > { %v1773_v38 = vpop.f32.mrf.mxu1 }
 0x1c6   : > { %2539 = vst.msk [vmem:[%s4618_s12 + $0x44] sm:$0xf] %vm2521_vm0, %v2474_v61  ;;  %v2110_v33 = vadd.f32 %v2109_v57, %v1941_v37  ;;  %v1774_v40 = vadd.f32 %v1773_v38, %v1605_v63  ;;  %v3317_v61 = vld [vmem:[%s4235_s17 + $0x30c] sm:$0xf0]  ;;  %v3323_v37 = vld [vmem:[%s4235_s17 + $0x300] sm:$0xf] }
 0x1c7   : > { %v2280_v30 = vpop.f32.mrf.mxu0  ;;  %v3848_v57 = vld [vmem:[%s4235_s17 + $0x310] sm:$0xf0]  ;;  %v3846_v38 = vld [vmem:[%s4235_s17 + $0x304] sm:$0xf]  ;;  %v3320_v60 = vor.u32 %v3845_v5, %v3317_v61 }
 0x1c8   : > { %v2279_v11 = vadd.f32 %v2278_v12, %v2110_v33  ;;  %v3325_v33 = vld [vmem:[%s4235_s17 + $0x314] sm:$0xf0] }
 0x1c9   : > { %v3328_v0 = vor.u32 %v3846_v38, %v3325_v33 }
 0x1ca   : > { %v2411_v31 = vmax.f32 %v2279_v11, 0.0  ;;  %v3331_v11 = vld [vmem:[%s4235_s17 + $0x308] sm:$0xf] }
 0x1cb   : > { %v1942_v13 = vpop.f32.mrf.mxu2  ;;  %v3332_v51 = vor.u32 %v3849_v50, %v3331_v11  ;;  %v1618_v50 = vadd.f32 %v4603_v35, %v4504_v48 }
 0x1cc   : > { %v2475_v29 = vpack.c.bf16 %v2411_v31, %v2411_v31  ;;  %v1943_v3 = vadd.f32 %v1942_v13, %v1774_v40  ;;  %v2111_v4 = vpop.f32.mrf.mxu3  ;;  %v3324_v31 = vor.u32 %v3848_v57, %v3323_v37 }
 0x1cd   : > { %v1776_v9 = vpop.f32.mrf.mxu1 }
 0x1ce   : > { %2540 = vst.msk [vmem:[%s4618_s12 + $0x48] sm:$0xf] %vm2521_vm0, %v2475_v29  ;;  %v2112_v59 = vadd.f32 %v2111_v4, %v1943_v3  ;;  %v1777_v43 = vadd.f32 %v1776_v9, %v1608_v2  ;;  %v1613_v29 = vadd.f32 %v4603_v35, %v4480_v14  ;;  %v1615_v2 = vadd.f32 %v4603_v35, %v4488_v26 }
 0x1cf   : > { %v2283_v55 = vpop.f32.mrf.mxu0 }
 0x1d0   : > { %v2281_v41 = vadd.f32 %v2280_v30, %v2112_v59  ;;  %1815 = vmatmul.bf16.gmra.mxu1 %v3300_v7  ;;  %1984 = vmatmul.bf16.gmra.mxu2 %v3304_v16 }
 0x1d1   : > { %2153 = vmatmul.bf16.gmra.mxu3 %v3308_v44 }
 0x1d2   : > { %2322 = vmatmul.bf16.gmra.mxu0 %v3312_v45  ;;  %v2412_v21 = vmax.f32 %v2281_v41, 0.0 }
 0x1d3   : > { %v1945_v24 = vpop.f32.mrf.mxu2 }
 0x1d4   : > { %v2476_v1 = vpack.c.bf16 %v2412_v21, %v2412_v21  ;;  %v1946_v53 = vadd.f32 %v1945_v24, %v1777_v43  ;;  %v2114_v12 = vpop.f32.mrf.mxu3  ;;  %v3850_v21 = vld [vmem:[%s4235_s17 + $0x324] sm:$0xf]  ;;  %v3337_v43 = vld [vmem:[%s4235_s17 + $0x334] sm:$0xf0]  ;;  %v3343_v24 = vld [vmem:[%s4235_s17 + $0x328] sm:$0xf] }
 0x1d5   : > { %v1778_v58 = vpop.f32.mrf.mxu1  ;;  %v3340_v57 = vor.u32 %v3850_v21, %v3337_v43 }
 0x1d6   : > { %2541 = vst.msk [vmem:[%s4618_s12 + $0x4c] sm:$0xf] %vm2521_vm0, %v2476_v1  ;;  %v2115_v46 = vadd.f32 %v2114_v12, %v1946_v53  ;;  %v1779_v63 = vadd.f32 %v1778_v58, %v1610_v49  ;;  %v3853_v1 = vld [vmem:[%s4235_s17 + $0x338] sm:$0xf0]  ;;  %v3851_v53 = vld [vmem:[%s4235_s17 + $0x32c] sm:$0xf] }
 0x1d7   : > { %v2285_v8 = vpop.f32.mrf.mxu0  ;;  %v3345_v12 = vld [vmem:[%s4235_s17 + $0x33c] sm:$0xf0]  ;;  %v3854_v49 = vld [vmem:[%s4235_s17 + $0x340] sm:$0xf0]  ;;  %v3344_v38 = vor.u32 %v3853_v1, %v3343_v24 }
 0x1d8   : > { %v2284_v27 = vadd.f32 %v2283_v55, %v2115_v46  ;;  %v3348_v26 = vor.u32 %v3851_v53, %v3345_v12 }
 0x1da   : > { %v2413_v30 = vmax.f32 %v2284_v27, 0.0 }
 0x1db   : > { %v1947_v25 = vpop.f32.mrf.mxu2 }
 0x1dc   : > { %v2477_v18 = vpack.c.bf16 %v2413_v30, %v2413_v30  ;;  %v1948_v17 = vadd.f32 %v1947_v25, %v1779_v63  ;;  %v2116_v20 = vpop.f32.mrf.mxu3 }
 0x1dd   : > { %v1781_v40 = vpop.f32.mrf.mxu1 }
 0x1de   : > { %2542 = vst.msk [vmem:[%s4618_s12 + $0x50] sm:$0xf] %vm2521_vm0, %v2477_v18  ;;  %v2117_v23 = vadd.f32 %v2116_v20, %v1948_v17  ;;  %v1782_v7 = vadd.f32 %v1781_v40, %v1613_v29  ;;  %v3855_v29 = vld [vmem:[%s4235_s17 + $0x34c] sm:$0xf] }
 0x1df   : > { %v2288_v13 = vpop.f32.mrf.mxu0 }
 0x1e0   : > { %v2286_v3 = vadd.f32 %v2285_v8, %v2117_v23  ;;  %1820 = vmatmul.bf16.gmra.mxu1 %v3320_v60  ;;  %1989 = vmatmul.bf16.gmra.mxu2 %v3324_v31  ;;  %v3351_v8 = vld [vmem:[%s4235_s17 + $0x330] sm:$0xf]  ;;  %v1620_v23 = vadd.f32 %v4603_v35, %v4512_v56 }
 0x1e1   : > { %2158 = vmatmul.bf16.gmra.mxu3 %v3328_v0  ;;  %v3352_v30 = vor.u32 %v3854_v49, %v3351_v8 }
 0x1e2   : > { %2327 = vmatmul.bf16.gmra.mxu0 %v3332_v51  ;;  %v2414_v4 = vmax.f32 %v2286_v3, 0.0  ;;  %v3357_v3 = vld [vmem:[%s4235_s17 + $0x35c] sm:$0xf0] }
 0x1e3   : > { %v1950_v16 = vpop.f32.mrf.mxu2  ;;  %v3360_v43 = vor.u32 %v3855_v29, %v3357_v3 }
 0x1e4   : > { %v2478_v9 = vpack.c.bf16 %v2414_v4, %v2414_v4  ;;  %v1951_v44 = vadd.f32 %v1950_v16, %v1782_v7  ;;  %v2119_v45 = vpop.f32.mrf.mxu3  ;;  %v3363_v4 = vld [vmem:[%s4235_s17 + $0x350] sm:$0xf]  ;;  %v3858_v7 = vld [vmem:[%s4235_s17 + $0x360] sm:$0xf0]  ;;  %v3856_v16 = vld [vmem:[%s4235_s17 + $0x354] sm:$0xf] }
 0x1e5   : > { %v1783_v14 = vpop.f32.mrf.mxu1  ;;  %v3364_v24 = vor.u32 %v3858_v7, %v3363_v4 }
 0x1e6   : > { %2543 = vst.msk [vmem:[%s4618_s12 + $0x54] sm:$0xf] %vm2521_vm0, %v2478_v9  ;;  %v2120_v59 = vadd.f32 %v2119_v45, %v1951_v44  ;;  %v1784_v46 = vadd.f32 %v1783_v14, %v1615_v2  ;;  %v3365_v9 = vld [vmem:[%s4235_s17 + $0x364] sm:$0xf0]  ;;  %v3371_v14 = vld [vmem:[%s4235_s17 + $0x358] sm:$0xf] }
 0x1e7   : > { %v2290_v55 = vpop.f32.mrf.mxu0  ;;  %v3368_v35 = vor.u32 %v3856_v16, %v3365_v9 }
 0x1e8   : > { %v2289_v41 = vadd.f32 %v2288_v13, %v2120_v59  ;;  %v3859_v59 = vld [vmem:[%s4235_s17 + $0x368] sm:$0xf0] }
 0x1e9   : > { %v3372_v56 = vor.u32 %v3859_v59, %v3371_v14 }
 0x1ea   : > { %v2415_v58 = vmax.f32 %v2289_v41, 0.0 }
 0x1eb   : > { %v1952_v27 = vpop.f32.mrf.mxu2 }
 0x1ec   : > { %v2479_v5 = vpack.c.bf16 %v2415_v58, %v2415_v58  ;;  %v1953_v61 = vadd.f32 %v1952_v27, %v1784_v46  ;;  %v2121_v37 = vpop.f32.mrf.mxu3  ;;  %v4817_v58 = vld [vmem:[%s5202_s2] ss:$0 sm:$0xff] }
 0x1ed   : > { %v1786_v33 = vpop.f32.mrf.mxu1  ;;  %v1623_v46 = vadd.f32 %v4817_v58, %v4528_v15  ;;  %v1628_v9 = vadd.f32 %v4817_v58, %v4552_v6 }
 0x1ee   : > { %2544 = vst.msk [vmem:[%s4618_s12 + $0x58] sm:$0xf] %vm2521_vm0, %v2479_v5  ;;  %v2122_v63 = vadd.f32 %v2121_v37, %v1953_v61  ;;  %v1787_v17 = vadd.f32 %v1786_v33, %v1618_v50  ;;  %v3383_v50 = vld [vmem:[%s4235_s17 + $0x378] sm:$0xf] }
 0x1ef   : > { %v2293_v11 = vpop.f32.mrf.mxu0 }
 0x1f0   : > { %v2291_v25 = vadd.f32 %v2290_v55, %v2122_v63  ;;  %1825 = vmatmul.bf16.gmra.mxu1 %v3340_v57  ;;  %1994 = vmatmul.bf16.gmra.mxu2 %v3344_v38  ;;  %v3860_v63 = vld [vmem:[%s4235_s17 + $0x374] sm:$0xf] }
 0x1f1   : > { %2163 = vmatmul.bf16.gmra.mxu3 %v3348_v26  ;;  %v1625_v26 = vadd.f32 %v4817_v58, %v4536_v32 }
 0x1f2   : > { %2332 = vmatmul.bf16.gmra.mxu0 %v3352_v30  ;;  %v2416_v18 = vmax.f32 %v2291_v25, 0.0  ;;  %v3863_v25 = vld [vmem:[%s4235_s17 + $0x388] sm:$0xf0] }
 0x1f3   : > { %v1955_v20 = vpop.f32.mrf.mxu2  ;;  %v3384_v29 = vor.u32 %v3863_v25, %v3383_v50  ;;  %v1633_v25 = vadd.f32 %v4817_v58, %v4576_v28 }
 0x1f4   : > { %v2480_v60 = vpack.c.bf16 %v2416_v18, %v2416_v18  ;;  %v1956_v31 = vadd.f32 %v1955_v20, %v1787_v17  ;;  %v2124_v40 = vpop.f32.mrf.mxu3  ;;  %v3861_v18 = vld [vmem:[%s4235_s17 + $0x37c] sm:$0xf]  ;;  %v3385_v17 = vld [vmem:[%s4235_s17 + $0x38c] sm:$0xf0] }
 0x1f5   : > { %v1788_v48 = vpop.f32.mrf.mxu1  ;;  %v3388_v32 = vor.u32 %v3861_v18, %v3385_v17 }
 0x1f6   : > { %2545 = vst.msk [vmem:[%s4618_s12 + $0x5c] sm:$0xf] %vm2521_vm0, %v2480_v60  ;;  %v2125_v0 = vadd.f32 %v2124_v40, %v1956_v31  ;;  %v1789_v45 = vadd.f32 %v1788_v48, %v1620_v23  ;;  %v3391_v31 = vld [vmem:[%s4235_s17 + $0x380] sm:$0xf]  ;;  %v3864_v40 = vld [vmem:[%s4235_s17 + $0x390] sm:$0xf0] }
 0x1f7   : > { %v2295_v51 = vpop.f32.mrf.mxu0  ;;  %v3392_v4 = vor.u32 %v3864_v40, %v3391_v31 }
 0x1f8   : > { %v2294_v13 = vadd.f32 %v2293_v11, %v2125_v0  ;;  %v3377_v11 = vld [vmem:[%s4235_s17 + $0x384] sm:$0xf0] }
 0x1fa   : > { %v2417_v44 = vmax.f32 %v2294_v13, 0.0  ;;  %v3380_v13 = vor.u32 %v3860_v63, %v3377_v11 }
 0x1fb   : > { %v1957_v55 = vpop.f32.mrf.mxu2 }
 0x1fc   : > { %v2481_v2 = vpack.c.bf16 %v2417_v44, %v2417_v44  ;;  %v1958_v41 = vadd.f32 %v1957_v55, %v1789_v45  ;;  %v2126_v21 = vpop.f32.mrf.mxu3 }
 0x1fd   : > { %v1791_v1 = vpop.f32.mrf.mxu1 }
 0x1fe   : > { %2546 = vst.msk [vmem:[%s4618_s12 + $0x60] sm:$0xf] %vm2521_vm0, %v2481_v2  ;;  %v2127_v53 = vadd.f32 %v2126_v21, %v1958_v41  ;;  %v1792_v27 = vadd.f32 %v1791_v1, %v1623_v46  ;;  %v3866_v46 = vld [vmem:[%s4235_s17 + $0x3a4] sm:$0xf] }
 0x1ff   : > { %v2298_v12 = vpop.f32.mrf.mxu0 }
 0x200   : > { %v2296_v8 = vadd.f32 %v2295_v51, %v2127_v53  ;;  %1830 = vmatmul.bf16.gmra.mxu1 %v3360_v43  ;;  %1999 = vmatmul.bf16.gmra.mxu2 %v3364_v24  ;;  %v1630_v24 = vadd.f32 %v4817_v58, %v4560_v36  ;;  %v3403_v53 = vld [vmem:[%s4235_s17 + $0x3a0] sm:$0xf] }
 0x201   : > { %2168 = vmatmul.bf16.gmra.mxu3 %v3368_v35  ;;  %v3865_v35 = vld [vmem:[%s4235_s17 + $0x39c] sm:$0xf] }
 0x202   : > { %2337 = vmatmul.bf16.gmra.mxu0 %v3372_v56  ;;  %v2418_v49 = vmax.f32 %v2296_v8, 0.0  ;;  %v3397_v56 = vld [vmem:[%s4235_s17 + $0x3ac] sm:$0xf0]  ;;  %v3405_v8 = vld [vmem:[%s4235_s17 + $0x3b4] sm:$0xf0] }
 0x203   : > { %v1960_v5 = vpop.f32.mrf.mxu2  ;;  %v3408_v36 = vor.u32 %v3866_v46, %v3405_v8 }
 0x204   : > { %v2482_v61 = vpack.c.bf16 %v2418_v49, %v2418_v49  ;;  %v1961_v37 = vadd.f32 %v1960_v5, %v1792_v27  ;;  %v2129_v57 = vpop.f32.mrf.mxu3  ;;  %v3411_v5 = vld [vmem:[%s4235_s17 + $0x3a8] sm:$0xf] }
 0x205   : > { %v1793_v15 = vpop.f32.mrf.mxu1 }
 0x206   : > { %2547 = vst.msk [vmem:[%s4618_s12 + $0x64] sm:$0xf] %vm2521_vm0, %v2482_v61  ;;  %v2130_v38 = vadd.f32 %v2129_v57, %v1961_v37  ;;  %v1794_v60 = vadd.f32 %v1793_v15, %v1625_v26  ;;  %v3869_v61 = vld [vmem:[%s4235_s17 + $0x3b8] sm:$0xf0] }
 0x207   : > { %v2300_v33 = vpop.f32.mrf.mxu0  ;;  %v3412_v63 = vor.u32 %v3869_v61, %v3411_v5 }
 0x208   : > { %v2299_v30 = vadd.f32 %v2298_v12, %v2130_v38  ;;  %v3868_v12 = vld [vmem:[%s4235_s17 + $0x3b0] sm:$0xf0] }
 0x209   : > { %v3404_v26 = vor.u32 %v3868_v12, %v3403_v53 }
 0x20a   : > { %v2419_v20 = vmax.f32 %v2299_v30, 0.0 }
 0x20b   : > { %v1962_v48 = vpop.f32.mrf.mxu2 }
 0x20c   : > { %v2483_v0 = vpack.c.bf16 %v2419_v20, %v2419_v20  ;;  %v1963_v51 = vadd.f32 %v1962_v48, %v1794_v60  ;;  %v2131_v23 = vpop.f32.mrf.mxu3 }
 0x20d   : > { %v1796_v3 = vpop.f32.mrf.mxu1 }
 0x20e   : > { %2548 = vst.msk [vmem:[%s4618_s12 + $0x68] sm:$0xf] %vm2521_vm0, %v2483_v0  ;;  %v2132_v7 = vadd.f32 %v2131_v23, %v1963_v51  ;;  %v1797_v14 = vadd.f32 %v1796_v3, %v1628_v9  ;;  %v1635_v23 = vadd.f32 %v4817_v58, %v4584_v47  ;;  %v3417_v3 = vld [vmem:[%s4235_s17 + $0x3d4] sm:$0xf0] }
 0x20f   : > { %v2303_v16 = vpop.f32.mrf.mxu0 }
 0x210   : > { %v2301_v44 = vadd.f32 %v2300_v33, %v2132_v7  ;;  %1835 = vmatmul.bf16.gmra.mxu1 %v3380_v13  ;;  %2004 = vmatmul.bf16.gmra.mxu2 %v3384_v29  ;;  %v3400_v33 = vor.u32 %v3865_v35, %v3397_v56  ;;  %v3870_v29 = vld [vmem:[%s4235_s17 + $0x3c4] sm:$0xf]  ;;  %v3871_v7 = vld [vmem:[%s4235_s17 + $0x3cc] sm:$0xf]  ;;  %v1638_v56 = vadd.f32 %v4817_v58, %v4412_v22 }
 0x211   : > { %2173 = vmatmul.bf16.gmra.mxu3 %v3388_v32  ;;  %v3423_v32 = vld [vmem:[%s4235_s17 + $0x3c8] sm:$0xf] }
 0x212   : > { %2342 = vmatmul.bf16.gmra.mxu0 %v3392_v4  ;;  %v2420_v45 = vmax.f32 %v2301_v44, 0.0  ;;  %v3873_v4 = vld [vmem:[%s4235_s17 + $0x3d8] sm:$0xf0] }
 0x213   : > { %v1965_v59 = vpop.f32.mrf.mxu2 }
 0x214   : > { %v2484_v55 = vpack.c.bf16 %v2420_v45, %v2420_v45  ;;  %v1966_v2 = vadd.f32 %v1965_v59, %v1797_v14  ;;  %v2134_v41 = vpop.f32.mrf.mxu3  ;;  %v3431_v45 = vld [vmem:[%s4235_s17 + $0x3d0] sm:$0xf]  ;;  %v3874_v14 = vld [vmem:[%s4235_s17 + $0x3e0] sm:$0xf0] }
 0x215   : > { %v1798_v6 = vpop.f32.mrf.mxu1 }
 0x216   : > { %2549 = vst.msk [vmem:[%s4618_s12 + $0x6c] sm:$0xf] %vm2521_vm0, %v2484_v55  ;;  %v2135_v21 = vadd.f32 %v2134_v41, %v1966_v2  ;;  %v1799_v27 = vadd.f32 %v1798_v6, %v1630_v24  ;;  %v3420_v6 = vor.u32 %v3870_v29, %v3417_v3  ;;  %v3432_v24 = vor.u32 %v3874_v14, %v3431_v45 }
 0x217   : > { %v2305_v43 = vpop.f32.mrf.mxu0  ;;  %v1645_v14 = vadd.f32 %v4817_v58, %v4452_v54 }
 0x218   : > { %v2304_v1 = vadd.f32 %v2303_v16, %v2135_v21  ;;  %v3425_v16 = vld [vmem:[%s4235_s17 + $0x3dc] sm:$0xf0]  ;;  %v3424_v21 = vor.u32 %v3873_v4, %v3423_v32 }
 0x219   : > { %v3428_v47 = vor.u32 %v3871_v7, %v3425_v16 }
 0x21a   : > { %v2421_v49 = vmax.f32 %v2304_v1, 0.0 }
 0x21b   : > { %v1967_v37 = vpop.f32.mrf.mxu2 }
 0x21c   : > { %v2485_v57 = vpack.c.bf16 %v2421_v49, %v2421_v49  ;;  %v1968_v15 = vadd.f32 %v1967_v37, %v1799_v27  ;;  %v2136_v38 = vpop.f32.mrf.mxu3 }
 0x21d   : > { %v1801_v30 = vpop.f32.mrf.mxu1 }
 0x21e   : > { %2550 = vst.msk [vmem:[%s4618_s12 + $0x70] sm:$0xf] %vm2521_vm0, %v2485_v57  ;;  %v2137_v11 = vadd.f32 %v2136_v38, %v1968_v15  ;;  %v1802_v20 = vadd.f32 %v1801_v30, %v1633_v25  ;;  %v1640_v57 = vadd.f32 %v4817_v58, %v4428_v34  ;;  %v3875_v38 = vld [vmem:[%s4235_s17 + $0x3ec] sm:$0xf]  ;;  %v3878_v30 = vld [vmem:[%s4235_s17 + $0x400] sm:$0xf0] }
 0x21f   : > { %v2308_v50 = vpop.f32.mrf.mxu0  ;;  %v3451_v25 = vld [vmem:[%s4235_s17 + $0x3f8] sm:$0xf] }
 0x220   : > { %v2306_v18 = vadd.f32 %v2305_v43, %v2137_v11  ;;  %1840 = vmatmul.bf16.gmra.mxu1 %v3400_v33  ;;  %2009 = vmatmul.bf16.gmra.mxu2 %v3404_v26  ;;  %v3437_v33 = vld [vmem:[%s4235_s17 + $0x3fc] sm:$0xf0]  ;;  %v3443_v26 = vld [vmem:[%s4235_s17 + $0x3f0] sm:$0xf] }
 0x221   : > { %2178 = vmatmul.bf16.gmra.mxu3 %v3408_v36  ;;  %v3876_v36 = vld [vmem:[%s4235_s17 + $0x3f4] sm:$0xf] }
 0x222   : > { %2347 = vmatmul.bf16.gmra.mxu0 %v3412_v63  ;;  %v2422_v17 = vmax.f32 %v2306_v18, 0.0  ;;  %v3445_v63 = vld [vmem:[%s4235_s17 + $0x404] sm:$0xf0]  ;;  %v3879_v18 = vld [vmem:[%s4235_s17 + $0x408] sm:$0xf0] }
 0x223   : > { %v1970_v60 = vpop.f32.mrf.mxu2  ;;  %v3448_v34 = vor.u32 %v3876_v36, %v3445_v63 }
 0x224   : > { %v2486_v31 = vpack.c.bf16 %v2422_v17, %v2422_v17  ;;  %v1971_v40 = vadd.f32 %v1970_v60, %v1802_v20  ;;  %v2139_v48 = vpop.f32.mrf.mxu3 }
 0x225   : > { %v1803_v28 = vpop.f32.mrf.mxu1 }
 0x226   : > { %2551 = vst.msk [vmem:[%s4618_s12 + $0x74] sm:$0xf] %vm2521_vm0, %v2486_v31  ;;  %v2140_v0 = vadd.f32 %v2139_v48, %v1971_v40  ;;  %v1804_v44 = vadd.f32 %v1803_v28, %v1635_v23  ;;  %v3440_v40 = vor.u32 %v3875_v38, %v3437_v33  ;;  %v3444_v48 = vor.u32 %v3878_v30, %v3443_v26 }
 0x227   : > { %v2310_v51 = vpop.f32.mrf.mxu0 }
 0x228   : > { %v2309_v13 = vadd.f32 %v2308_v50, %v2140_v0  ;;  %v3452_v0 = vor.u32 %v3879_v18, %v3451_v25  ;;  %v3885_v18 = vld [vmem:[%s4235_s17 + $0x43c] sm:$0xf] }
 0x22a   : > { %v2423_v9 = vmax.f32 %v2309_v13, 0.0  ;;  %v1643_v13 = vadd.f32 %v4817_v58, %v4436_v42 }
 0x22b   : > { %v1972_v59 = vpop.f32.mrf.mxu2 }
 0x22c   : > { %v2487_v55 = vpack.c.bf16 %v2423_v9, %v2423_v9  ;;  %v1973_v2 = vadd.f32 %v1972_v59, %v1804_v44  ;;  %v2141_v41 = vpop.f32.mrf.mxu3 }
 0x22d   : > { %v1806_v43 = vpop.f32.mrf.mxu1 }
 0x22e   : > { %2552 = vst.msk [vmem:[%s4618_s12 + $0x78] sm:$0xf] %vm2521_vm0, %v2487_v55  ;;  %v2142_v1 = vadd.f32 %v2141_v41, %v1973_v2  ;;  %v1807_v46 = vadd.f32 %v1806_v43, %v1638_v56  ;;  %v3880_v55 = vld [vmem:[%s4235_s17 + $0x414] sm:$0xf]  ;;  %v3457_v2 = vld [vmem:[%s4235_s17 + $0x424] sm:$0xf0] }
 0x22f   : > { %v2313_v35 = vpop.f32.mrf.mxu0  ;;  %v3463_v41 = vld [vmem:[%s4235_s17 + $0x418] sm:$0xf]  ;;  %v3465_v43 = vld [vmem:[%s4235_s17 + $0x42c] sm:$0xf0] }
 0x230   : > { %v2311_v53 = vadd.f32 %v2310_v51, %v2142_v1  ;;  %1845 = vmatmul.bf16.gmra.mxu1 %v3420_v6  ;;  %2014 = vmatmul.bf16.gmra.mxu2 %v3424_v21  ;;  %v3883_v6 = vld [vmem:[%s4235_s17 + $0x428] sm:$0xf0]  ;;  %v3881_v21 = vld [vmem:[%s4235_s17 + $0x41c] sm:$0xf]  ;;  %v3471_v1 = vld [vmem:[%s4235_s17 + $0x420] sm:$0xf] }
 0x231   : > { %2183 = vmatmul.bf16.gmra.mxu3 %v3428_v47  ;;  %v3468_v54 = vor.u32 %v3881_v21, %v3465_v43  ;;  %v1655_v43 = vadd.f32 %v4817_v58, %v4500_v39 }
 0x232   : > { %2352 = vmatmul.bf16.gmra.mxu0 %v3432_v24  ;;  %v2424_v12 = vmax.f32 %v2311_v53, 0.0 }
 0x233   : > { %v1975_v8 = vpop.f32.mrf.mxu2 }
 0x234   : > { %v2488_v49 = vpack.c.bf16 %v2424_v12, %v2424_v12  ;;  %v1976_v27 = vadd.f32 %v1975_v8, %v1807_v46  ;;  %v2144_v5 = vpop.f32.mrf.mxu3  ;;  %v3460_v8 = vor.u32 %v3880_v55, %v3457_v2 }
 0x235   : > { %v1808_v22 = vpop.f32.mrf.mxu1 }
 0x236   : > { %2553 = vst.msk [vmem:[%s4618_s12 + $0x7c] sm:$0xf] %vm2521_vm0, %v2488_v49  ;;  %v2145_v61 = vadd.f32 %v2144_v5, %v1976_v27  ;;  %v1809_v50 = vadd.f32 %v1808_v22, %v1640_v57  ;;  %v3464_v49 = vor.u32 %v3883_v6, %v3463_v41 }
 0x237   : > { %v2315_v37 = vpop.f32.mrf.mxu0 }
 0x238   : > { %v2314_v15 = vadd.f32 %v2313_v35, %v2145_v61  ;;  %v3884_v35 = vld [vmem:[%s4235_s17 + $0x430] sm:$0xf0] }
 0x239   : > { %v3472_v5 = vor.u32 %v3884_v35, %v3471_v1  ;;  %v3497_v1 = vld [vmem:[%s4235_s17 + $0x474] sm:$0xf0]  ;;  %v3503_v35 = vld [vmem:[%s4235_s17 + $0x468] sm:$0xf] }
 0x23a   : > { %v2425_v11 = vmax.f32 %v2314_v15, 0.0 }
 0x23b   : > { %v1977_v17 = vpop.f32.mrf.mxu2 }
 0x23c   : > { %v2489_v20 = vpack.c.bf16 %v2425_v11, %v2425_v11  ;;  %v1978_v60 = vadd.f32 %v1977_v17, %v1809_v50  ;;  %v2146_v31 = vpop.f32.mrf.mxu3  ;;  %v1650_v50 = vadd.f32 %v4817_v58, %v4476_v10  ;;  %v3477_v17 = vld [vmem:[%s4235_s17 + $0x44c] sm:$0xf0] }
 0x23d   : > { %v1811_v28 = vpop.f32.mrf.mxu1 }
 0x23e   : > { %2554 = vst.msk [vmem:[%s4618_s12 + $0x80] sm:$0xf] %vm2521_vm0, %v2489_v20  ;;  %v2147_v51 = vadd.f32 %v2146_v31, %v1978_v60  ;;  %v1812_v32 = vadd.f32 %v1811_v28, %v1643_v13  ;;  %v3483_v20 = vld [vmem:[%s4235_s17 + $0x440] sm:$0xf]  ;;  %v3888_v60 = vld [vmem:[%s4235_s17 + $0x450] sm:$0xf0] }
 0x23f   : > { %v2318_v23 = vpop.f32.mrf.mxu0  ;;  %v3886_v31 = vld [vmem:[%s4235_s17 + $0x444] sm:$0xf] }
 0x240   : > { %v2316_v29 = vadd.f32 %v2315_v37, %v2147_v51  ;;  %1850 = vmatmul.bf16.gmra.mxu1 %v3440_v40  ;;  %2019 = vmatmul.bf16.gmra.mxu2 %v3444_v48  ;;  %v1648_v37 = vadd.f32 %v4817_v58, %v4460_v62  ;;  %v3485_v40 = vld [vmem:[%s4235_s17 + $0x454] sm:$0xf0] }
 0x241   : > { %2188 = vmatmul.bf16.gmra.mxu3 %v3448_v34  ;;  %v3491_v34 = vld [vmem:[%s4235_s17 + $0x448] sm:$0xf]  ;;  %v3488_v10 = vor.u32 %v3886_v31, %v3485_v40 }
 0x242   : > { %2357 = vmatmul.bf16.gmra.mxu0 %v3452_v0  ;;  %v2426_v3 = vmax.f32 %v2316_v29, 0.0  ;;  %v3889_v0 = vld [vmem:[%s4235_s17 + $0x458] sm:$0xf0] }
 0x243   : > { %v1980_v4 = vpop.f32.mrf.mxu2 }
 0x244   : > { %v2490_v7 = vpack.c.bf16 %v2426_v3, %v2426_v3  ;;  %v1981_v16 = vadd.f32 %v1980_v4, %v1812_v32  ;;  %v2149_v9 = vpop.f32.mrf.mxu3  ;;  %v3480_v3 = vor.u32 %v3885_v18, %v3477_v17  ;;  %v3484_v32 = vor.u32 %v3888_v60, %v3483_v20  ;;  %v5228_v60 = vld [vmem:[#allocation12_spill] sm:$0xff] }
 0x245   : > { %v1813_v42 = vpop.f32.mrf.mxu1  ;;  %v1660_v31 = vadd.f32 %v4817_v58, %v5228_v60 }
 0x246   : > { %2555 = vst.msk [vmem:[%s4618_s12 + $0x84] sm:$0xf] %vm2521_vm0, %v2490_v7  ;;  %v2150_v44 = vadd.f32 %v2149_v9, %v1981_v16  ;;  %v1814_v24 = vadd.f32 %v1813_v42, %v1645_v14  ;;  %v3492_v7 = vor.u32 %v3889_v0, %v3491_v34  ;;  %v1653_v42 = vadd.f32 %v4817_v58, %v4484_v19  ;;  %v3523_v34 = vld [vmem:[%s4235_s17 + $0x490] sm:$0xf]  ;;  %v3898_v0 = vld [vmem:[%s4235_s17 + $0x4a0] sm:$0xf0] }
 0x247   : > { %v2320_v45 = vpop.f32.mrf.mxu0 }
 0x248   : > { %v2319_v59 = vadd.f32 %v2318_v23, %v2150_v44 }
 0x24a   : > { %v2427_v47 = vmax.f32 %v2319_v59, 0.0 }
 0x24b   : > { %v1982_v56 = vpop.f32.mrf.mxu2 }
 0x24c   : > { %v2491_v53 = vpack.c.bf16 %v2427_v47, %v2427_v47  ;;  %v1983_v12 = vadd.f32 %v1982_v56, %v1814_v24  ;;  %v2151_v46 = vpop.f32.mrf.mxu3  ;;  %v3890_v24 = vld [vmem:[%s4235_s17 + $0x464] sm:$0xf]  ;;  %v3893_v56 = vld [vmem:[%s4235_s17 + $0x478] sm:$0xf0] }
 0x24d   : > { %v1816_v27 = vpop.f32.mrf.mxu1 }
 0x24e   : > { %2556 = vst.msk [vmem:[%s4618_s12 + $0x88] sm:$0xf] %vm2521_vm0, %v2491_v53  ;;  %v2152_v22 = vadd.f32 %v2151_v46, %v1983_v12  ;;  %v1817_v38 = vadd.f32 %v1816_v27, %v1648_v37  ;;  %v3891_v53 = vld [vmem:[%s4235_s17 + $0x46c] sm:$0xf]  ;;  %v3505_v12 = vld [vmem:[%s4235_s17 + $0x47c] sm:$0xf0]  ;;  %v3500_v37 = vor.u32 %v3890_v24, %v3497_v1 }
 0x24f   : > { %v2323_v61 = vpop.f32.mrf.mxu0  ;;  %v3894_v27 = vld [vmem:[%s4235_s17 + $0x480] sm:$0xf0]  ;;  %v3508_v39 = vor.u32 %v3891_v53, %v3505_v12  ;;  %v5230_v12 = vld [vmem:[#allocation16_spill] sm:$0xff] }
 0x250   : > { %v2321_v57 = vadd.f32 %v2320_v45, %v2152_v22  ;;  %1855 = vmatmul.bf16.gmra.mxu1 %v3460_v8  ;;  %2024 = vmatmul.bf16.gmra.mxu2 %v3464_v49  ;;  %v3511_v49 = vld [vmem:[%s4235_s17 + $0x470] sm:$0xf] }
 0x251   : > { %2193 = vmatmul.bf16.gmra.mxu3 %v3468_v54 }
 0x252   : > { %2362 = vmatmul.bf16.gmra.mxu0 %v3472_v5  ;;  %v2428_v15 = vmax.f32 %v2321_v57, 0.0  ;;  %v3504_v57 = vor.u32 %v3893_v56, %v3503_v35 }
 0x253   : > { %v1985_v33 = vpop.f32.mrf.mxu2 }
 0x254   : > { %v2492_v26 = vpack.c.bf16 %v2428_v15, %v2428_v15  ;;  %v1986_v30 = vadd.f32 %v1985_v33, %v1817_v38  ;;  %v2154_v36 = vpop.f32.mrf.mxu3  ;;  %v3512_v38 = vor.u32 %v3894_v27, %v3511_v49  ;;  %v3900_v49 = vld [vmem:[%s4235_s17 + $0x4b4] sm:$0xf]  ;;  %v3537_v27 = vld [vmem:[%s4235_s17 + $0x4c4] sm:$0xf0] }
 0x255   : > { %v1818_v62 = vpop.f32.mrf.mxu1 }
 0x256   : > { %2557 = vst.msk [vmem:[%s4618_s12 + $0x8c] sm:$0xf] %vm2521_vm0, %v2492_v26  ;;  %v2155_v63 = vadd.f32 %v2154_v36, %v1986_v30  ;;  %v1819_v28 = vadd.f32 %v1818_v62, %v1650_v50  ;;  %v1658_v30 = vadd.f32 %v4817_v58, %v4508_v52 }
 0x257   : > { %v2325_v11 = vpop.f32.mrf.mxu0 }
 0x258   : > { %v2324_v25 = vadd.f32 %v2323_v61, %v2155_v63 }
 0x25a   : > { %v2429_v48 = vmax.f32 %v2324_v25, 0.0 }
 0x25b   : > { %v1987_v51 = vpop.f32.mrf.mxu2 }
 0x25c   : > { %v2493_v23 = vpack.c.bf16 %v2429_v48, %v2429_v48  ;;  %v1988_v13 = vadd.f32 %v1987_v51, %v1819_v28  ;;  %v2156_v29 = vpop.f32.mrf.mxu3  ;;  %v3895_v48 = vld [vmem:[%s4235_s17 + $0x48c] sm:$0xf]  ;;  %v3517_v28 = vld [vmem:[%s4235_s17 + $0x49c] sm:$0xf0]  ;;  %v3896_v51 = vld [vmem:[%s4235_s17 + $0x494] sm:$0xf] }
 0x25d   : > { %v1821_v4 = vpop.f32.mrf.mxu1 }
 0x25e   : > { %2558 = vst.msk [vmem:[%s4618_s12 + $0x90] sm:$0xf] %vm2521_vm0, %v2493_v23  ;;  %v2157_v16 = vadd.f32 %v2156_v29, %v1988_v13  ;;  %v1822_v14 = vadd.f32 %v1821_v4, %v1653_v42  ;;  %v3525_v23 = vld [vmem:[%s4235_s17 + $0x4a4] sm:$0xf0]  ;;  %v3524_v42 = vor.u32 %v3898_v0, %v3523_v34 }
 0x25f   : > { %v2328_v9 = vpop.f32.mrf.mxu0 }
 0x260   : > { %v2326_v44 = vadd.f32 %v2325_v11, %v2157_v16  ;;  %1860 = vmatmul.bf16.gmra.mxu1 %v3480_v3  ;;  %2029 = vmatmul.bf16.gmra.mxu2 %v3484_v32  ;;  %v3531_v3 = vld [vmem:[%s4235_s17 + $0x498] sm:$0xf]  ;;  %v3899_v32 = vld [vmem:[%s4235_s17 + $0x4a8] sm:$0xf0] }
 0x261   : > { %2198 = vmatmul.bf16.gmra.mxu3 %v3488_v10 }
 0x262   : > { %2367 = vmatmul.bf16.gmra.mxu0 %v3492_v7  ;;  %v2430_v45 = vmax.f32 %v2326_v44, 0.0 }
 0x263   : > { %v1990_v59 = vpop.f32.mrf.mxu2 }
 0x264   : > { %v2494_v55 = vpack.c.bf16 %v2430_v45, %v2430_v45  ;;  %v1991_v2 = vadd.f32 %v1990_v59, %v1822_v14  ;;  %v2159_v41 = vpop.f32.mrf.mxu3  ;;  %v3528_v45 = vor.u32 %v3896_v51, %v3525_v23  ;;  %v3532_v14 = vor.u32 %v3899_v32, %v3531_v3  ;;  %v3905_v32 = vld [vmem:[%s4235_s17 + $0x4dc] sm:$0xf] }
 0x265   : > { %v1823_v19 = vpop.f32.mrf.mxu1 }
 0x266   : > { %2559 = vst.msk [vmem:[%s4618_s12 + $0x94] sm:$0xf] %vm2521_vm0, %v2494_v55  ;;  %v2160_v6 = vadd.f32 %v2159_v41, %v1991_v2  ;;  %v1824_v8 = vadd.f32 %v1823_v19, %v1655_v43  ;;  %v5229_v2 = vld [vmem:[#allocation14_spill] sm:$0xff] }
 0x267   : > { %v2330_v21 = vpop.f32.mrf.mxu0  ;;  %v1663_v41 = vadd.f32 %v4817_v58, %v5229_v2 }
 0x268   : > { %v2329_v47 = vadd.f32 %v2328_v9, %v2160_v6  ;;  %v3520_v9 = vor.u32 %v3895_v48, %v3517_v28 }
 0x26a   : > { %v2431_v46 = vmax.f32 %v2329_v47, 0.0 }
 0x26b   : > { %v1992_v54 = vpop.f32.mrf.mxu2 }
 0x26c   : > { %v2495_v5 = vpack.c.bf16 %v2431_v46, %v2431_v46  ;;  %v1993_v22 = vadd.f32 %v1992_v54, %v1824_v8  ;;  %v2161_v61 = vpop.f32.mrf.mxu3  ;;  %v1665_v46 = vadd.f32 %v4817_v58, %v5230_v12  ;;  %v3543_v54 = vld [vmem:[%s4235_s17 + $0x4b8] sm:$0xf] }
 0x26d   : > { %v1826_v15 = vpop.f32.mrf.mxu1 }
 0x26e   : > { %2560 = vst.msk [vmem:[%s4618_s12 + $0x98] sm:$0xf] %vm2521_vm0, %v2495_v5  ;;  %v2162_v33 = vadd.f32 %v2161_v61, %v1993_v22  ;;  %v1827_v63 = vadd.f32 %v1826_v15, %v1658_v30  ;;  %v3903_v5 = vld [vmem:[%s4235_s17 + $0x4c8] sm:$0xf0]  ;;  %v3901_v22 = vld [vmem:[%s4235_s17 + $0x4bc] sm:$0xf] }
 0x26f   : > { %v2333_v26 = vpop.f32.mrf.mxu0  ;;  %v3545_v61 = vld [vmem:[%s4235_s17 + $0x4cc] sm:$0xf0]  ;;  %v3551_v15 = vld [vmem:[%s4235_s17 + $0x4c0] sm:$0xf] }
 0x270   : > { %v2331_v36 = vadd.f32 %v2330_v21, %v2162_v33  ;;  %1865 = vmatmul.bf16.gmra.mxu1 %v3500_v37  ;;  %2034 = vmatmul.bf16.gmra.mxu2 %v3504_v57 }
 0x271   : > { %2203 = vmatmul.bf16.gmra.mxu3 %v3508_v39  ;;  %v3904_v39 = vld [vmem:[%s4235_s17 + $0x4d0] sm:$0xf0] }
 0x272   : > { %2372 = vmatmul.bf16.gmra.mxu0 %v3512_v38  ;;  %v2432_v62 = vmax.f32 %v2331_v36, 0.0  ;;  %v3540_v36 = vor.u32 %v3900_v49, %v3537_v27 }
 0x273   : > { %v1995_v11 = vpop.f32.mrf.mxu2 }
 0x274   : > { %v2496_v50 = vpack.c.bf16 %v2432_v62, %v2432_v62  ;;  %v1996_v25 = vadd.f32 %v1995_v11, %v1827_v63  ;;  %v2164_v18 = vpop.f32.mrf.mxu3  ;;  %v3544_v62 = vor.u32 %v3903_v5, %v3543_v54  ;;  %v3548_v11 = vor.u32 %v3901_v22, %v3545_v61 }
 0x275   : > { %v1828_v52 = vpop.f32.mrf.mxu1 }
 0x276   : > { %2561 = vst.msk [vmem:[%s4618_s12 + $0x9c] sm:$0xf] %vm2521_vm0, %v2496_v50  ;;  %v2165_v17 = vadd.f32 %v2164_v18, %v1996_v25  ;;  %v1829_v29 = vadd.f32 %v1828_v52, %v1660_v31  ;;  %v3552_v50 = vor.u32 %v3904_v39, %v3551_v15  ;;  %v5231_v52 = vld [vmem:[#allocation18_spill] sm:$0xff] }
 0x277   : > { %v2335_v20 = vpop.f32.mrf.mxu0 }
 0x278   : > { %v2334_v40 = vadd.f32 %v2333_v26, %v2165_v17  ;;  %v1668_v17 = vadd.f32 %v4817_v58, %v5231_v52 }
 0x27a   : > { %v2433_v13 = vmax.f32 %v2334_v40, 0.0 }
 0x27b   : > { %v1997_v4 = vpop.f32.mrf.mxu2 }
 0x27c   : > { %v2497_v10 = vpack.c.bf16 %v2433_v13, %v2433_v13  ;;  %v1998_v7 = vadd.f32 %v1997_v4, %v1829_v29  ;;  %v2166_v16 = vpop.f32.mrf.mxu3  ;;  %v5232_v13 = vld [vmem:[#allocation20_spill] sm:$0xff]  ;;  %v3557_v4 = vld [vmem:[%s4235_s17 + $0x4ec] sm:$0xf0] }
 0x27d   : > { %v1831_v44 = vpop.f32.mrf.mxu1  ;;  %v1670_v29 = vadd.f32 %v4817_v58, %v5232_v13 }
 0x27e   : > { %2562 = vst.msk [vmem:[%s4618_s12 + $0xa0] sm:$0xf] %vm2521_vm0, %v2497_v10  ;;  %v2167_v59 = vadd.f32 %v2166_v16, %v1998_v7  ;;  %v1832_v21 = vadd.f32 %v1831_v44, %v1663_v41  ;;  %v3563_v10 = vld [vmem:[%s4235_s17 + $0x4e0] sm:$0xf]  ;;  %v3908_v7 = vld [vmem:[%s4235_s17 + $0x4f0] sm:$0xf0] }
 0x27f   : > { %v2338_v55 = vpop.f32.mrf.mxu0  ;;  %v3906_v16 = vld [vmem:[%s4235_s17 + $0x4e4] sm:$0xf] }
 0x280   : > { %v2336_v19 = vadd.f32 %v2335_v20, %v2167_v59  ;;  %1870 = vmatmul.bf16.gmra.mxu1 %v3520_v9  ;;  %2039 = vmatmul.bf16.gmra.mxu2 %v3524_v42  ;;  %v3565_v9 = vld [vmem:[%s4235_s17 + $0x4f4] sm:$0xf0] }
 0x281   : > { %2208 = vmatmul.bf16.gmra.mxu3 %v3528_v45  ;;  %v3571_v45 = vld [vmem:[%s4235_s17 + $0x4e8] sm:$0xf] }
 0x282   : > { %2377 = vmatmul.bf16.gmra.mxu0 %v3532_v14  ;;  %v2434_v6 = vmax.f32 %v2336_v19, 0.0  ;;  %v3909_v14 = vld [vmem:[%s4235_s17 + $0x4f8] sm:$0xf0]  ;;  %v3560_v19 = vor.u32 %v3905_v32, %v3557_v4 }
 0x283   : > { %v2000_v43 = vpop.f32.mrf.mxu2 }
 0x284   : > { %v2498_v47 = vpack.c.bf16 %v2434_v6, %v2434_v6  ;;  %v2001_v24 = vadd.f32 %v2000_v43, %v1832_v21  ;;  %v2169_v1 = vpop.f32.mrf.mxu3  ;;  %v3564_v6 = vor.u32 %v3908_v7, %v3563_v10  ;;  %v3568_v43 = vor.u32 %v3906_v16, %v3565_v9 }
 0x285   : > { %v1833_v35 = vpop.f32.mrf.mxu1 }
 0x286   : > { %2563 = vst.msk [vmem:[%s4618_s12 + $0xa4] sm:$0xf] %vm2521_vm0, %v2498_v47  ;;  %v2170_v56 = vadd.f32 %v2169_v1, %v2001_v24  ;;  %v1834_v57 = vadd.f32 %v1833_v35, %v1665_v46  ;;  %v3572_v47 = vor.u32 %v3909_v14, %v3571_v45  ;;  %v5233_v35 = vld [vmem:[#allocation22_spill] sm:$0xff] }
 0x287   : > { %v2340_v53 = vpop.f32.mrf.mxu0 }
 0x288   : > { %v2339_v8 = vadd.f32 %v2338_v55, %v2170_v56  ;;  %v1673_v56 = vadd.f32 %v4817_v58, %v5233_v35 }
 0x28a   : > { %v2435_v37 = vmax.f32 %v2339_v8, 0.0 }
 0x28b   : > { %v2002_v38 = vpop.f32.mrf.mxu2 }
 0x28c   : > { %v2499_v33 = vpack.c.bf16 %v2435_v37, %v2435_v37  ;;  %v2003_v26 = vadd.f32 %v2002_v38, %v1834_v57  ;;  %v2171_v30 = vpop.f32.mrf.mxu3  ;;  %v5234_v37 = vld [vmem:[#allocation24_spill] sm:$0xff] }
 0x28d   : > { %v1836_v63 = vpop.f32.mrf.mxu1  ;;  %v1675_v57 = vadd.f32 %v4817_v58, %v5234_v37 }
 0x28e   : > { %2564 = vst.msk [vmem:[%s4618_s12 + $0xa8] sm:$0xf] %vm2521_vm0, %v2499_v33  ;;  %v2172_v25 = vadd.f32 %v2171_v30, %v2003_v26  ;;  %v1837_v31 = vadd.f32 %v1836_v63, %v1668_v17 }
 0x28f   : > { %v2343_v18 = vpop.f32.mrf.mxu0 }
 0x290   : > { %v2341_v20 = vadd.f32 %v2340_v53, %v2172_v25  ;;  %1875 = vmatmul.bf16.gmra.mxu1 %v3540_v36  ;;  %2044 = vmatmul.bf16.gmra.mxu2 %v3544_v62 }
 0x291   : > { %2213 = vmatmul.bf16.gmra.mxu3 %v3548_v11 }
 0x292   : > { %2382 = vmatmul.bf16.gmra.mxu0 %v3552_v50  ;;  %v2436_v60 = vmax.f32 %v2341_v20, 0.0  ;;  %v5235_v50 = vld [vmem:[#allocation3_spill] sm:$0xff] }
 0x293   : > { %v2005_v40 = vpop.f32.mrf.mxu2  ;;  %v1678_v25 = vadd.f32 %v4817_v58, %v5235_v50 }
 0x294   : > { %v2500_v48 = vpack.c.bf16 %v2436_v60, %v2436_v60  ;;  %v2006_v28 = vadd.f32 %v2005_v40, %v1837_v31  ;;  %v2174_v34 = vpop.f32.mrf.mxu3 }
 0x295   : > { %v1838_v0 = vpop.f32.mrf.mxu1 }
 0x296   : > { %2565 = vst.msk [vmem:[%s4618_s12 + $0xac] sm:$0xf] %vm2521_vm0, %v2500_v48  ;;  %v2175_v51 = vadd.f32 %v2174_v34, %v2006_v28  ;;  %v1839_v44 = vadd.f32 %v1838_v0, %v1670_v29  ;;  %v5236_v0 = vld [vmem:[#allocation4_spill] sm:$0xff] }
 0x297   : > { %v2345_v23 = vpop.f32.mrf.mxu0 }
 0x298   : > { %v2344_v3 = vadd.f32 %v2343_v18, %v2175_v51  ;;  %v1680_v51 = vadd.f32 %v4817_v58, %v5236_v0 }
 0x29a   : > { %v2437_v42 = vmax.f32 %v2344_v3, 0.0 }
 0x29b   : > { %v2007_v59 = vpop.f32.mrf.mxu2 }
 0x29c   : > { %v2501_v55 = vpack.c.bf16 %v2437_v42, %v2437_v42  ;;  %v2008_v2 = vadd.f32 %v2007_v59, %v1839_v44  ;;  %v2176_v41 = vpop.f32.mrf.mxu3  ;;  %v5237_v42 = vld [vmem:[#allocation5_spill] sm:$0xff] }
 0x29d   : > { %v1841_v21 = vpop.f32.mrf.mxu1  ;;  %v1683_v44 = vadd.f32 %v4817_v58, %v5237_v42 }
 0x29e   : > { %2566 = vst.msk [vmem:[%s4618_s12 + $0xb0] sm:$0xf] %vm2521_vm0, %v2501_v55  ;;  %v2177_v24 = vadd.f32 %v2176_v41, %v2008_v2  ;;  %v1842_v46 = vadd.f32 %v1841_v21, %v1673_v56 }
 0x29f   : > { %v2348_v1 = vpop.f32.mrf.mxu0 }
 0x2a0   : > { %v2346_v53 = vadd.f32 %v2345_v23, %v2177_v24  ;;  %1880 = vmatmul.bf16.gmra.mxu1 %v3560_v19  ;;  %2049 = vmatmul.bf16.gmra.mxu2 %v3564_v6 }
 0x2a1   : > { %2218 = vmatmul.bf16.gmra.mxu3 %v3568_v43 }
 0x2a2   : > { %2387 = vmatmul.bf16.gmra.mxu0 %v3572_v47  ;;  %v2438_v12 = vmax.f32 %v2346_v53, 0.0  ;;  %v5238_v47 = vld [vmem:[#allocation6_spill] sm:$0xff] }
 0x2a3   : > { %v2010_v8 = vpop.f32.mrf.mxu2  ;;  %v1685_v24 = vadd.f32 %v4817_v58, %v5238_v47 }
 0x2a4   : > { %v2502_v49 = vpack.c.bf16 %v2438_v12, %v2438_v12  ;;  %v2011_v27 = vadd.f32 %v2010_v8, %v1842_v46  ;;  %v2179_v54 = vpop.f32.mrf.mxu3 }
 0x2a5   : > { %v1843_v5 = vpop.f32.mrf.mxu1 }
 0x2a6   : > { %2567 = vst.msk [vmem:[%s4618_s12 + $0xb4] sm:$0xf] %vm2521_vm0, %v2502_v49  ;;  %v2180_v22 = vadd.f32 %v2179_v54, %v2011_v27  ;;  %v1844_v38 = vadd.f32 %v1843_v5, %v1675_v57  ;;  %v5239_v5 = vld [vmem:[#allocation7_spill] sm:$0xff] }
 0x2a7   : > { %v2350_v61 = vpop.f32.mrf.mxu0 }
 0x2a8   : > { %v2349_v15 = vadd.f32 %v2348_v1, %v2180_v22  ;;  %v1688_v22 = vadd.f32 %v4817_v58, %v5239_v5 }
 0x2aa   : > { %v2439_v39 = vmax.f32 %v2349_v15, 0.0 }
 0x2ab   : > { %v2012_v33 = vpop.f32.mrf.mxu2 }
 0x2ac   : > { %v2503_v26 = vpack.c.bf16 %v2439_v39, %v2439_v39  ;;  %v2013_v30 = vadd.f32 %v2012_v33, %v1844_v38  ;;  %v2181_v36 = vpop.f32.mrf.mxu3 }
 0x2ad   : > { %v1846_v62 = vpop.f32.mrf.mxu1 }
 0x2ae   : > { %2568 = vst.msk [vmem:[%s4618_s12 + $0xb8] sm:$0xf] %vm2521_vm0, %v2503_v26  ;;  %v2182_v63 = vadd.f32 %v2181_v36, %v2013_v30  ;;  %v1847_v17 = vadd.f32 %v1846_v62, %v1678_v25  ;;  %v5240_v62 = vld [vmem:[#allocation8_spill] sm:$0xff] }
 0x2af   : > { %v2353_v11 = vpop.f32.mrf.mxu0 }
 0x2b0   : > { %v2351_v18 = vadd.f32 %v2350_v61, %v2182_v63  ;;  %v1690_v63 = vadd.f32 %v4817_v58, %v5240_v62 }
 0x2b2   : > { %v2440_v52 = vmax.f32 %v2351_v18, 0.0 }
 0x2b3   : > { %v2015_v20 = vpop.f32.mrf.mxu2 }
 0x2b4   : > { %v2504_v60 = vpack.c.bf16 %v2440_v52, %v2440_v52  ;;  %v2016_v31 = vadd.f32 %v2015_v20, %v1847_v17  ;;  %v2184_v40 = vpop.f32.mrf.mxu3 }
 0x2b5   : > { %v1848_v48 = vpop.f32.mrf.mxu1 }
 0x2b6   : > { %2569 = vst.msk [vmem:[%s4618_s12 + $0xbc] sm:$0xf] %vm2521_vm0, %v2504_v60  ;;  %v2185_v28 = vadd.f32 %v2184_v40, %v2016_v31  ;;  %v1849_v29 = vadd.f32 %v1848_v48, %v1680_v51  ;;  %v5241_v48 = vld [vmem:[#allocation9_spill] sm:$0xff] }
 0x2b7   : > { %v2355_v34 = vpop.f32.mrf.mxu0 }
 0x2b8   : > { %v2354_v23 = vadd.f32 %v2353_v11, %v2185_v28  ;;  %v1693_v28 = vadd.f32 %v4817_v58, %v5241_v48 }
 0x2ba   : > { %v2441_v13 = vmax.f32 %v2354_v23, 0.0 }
 0x2bb   : > { %v2017_v3 = vpop.f32.mrf.mxu2 }
 0x2bc   : > { %v2505_v32 = vpack.c.bf16 %v2441_v13, %v2441_v13  ;;  %v2018_v4 = vadd.f32 %v2017_v3, %v1849_v29  ;;  %v2186_v10 = vpop.f32.mrf.mxu3 }
 0x2bd   : > { %v1851_v7 = vpop.f32.mrf.mxu1 }
 0x2be   : > { %2570 = vst.msk [vmem:[%s4618_s12 + $0xc0] sm:$0xf] %vm2521_vm0, %v2505_v32  ;;  %v2187_v16 = vadd.f32 %v2186_v10, %v2018_v4  ;;  %v1852_v59 = vadd.f32 %v1851_v7, %v1683_v44  ;;  %v5018_v7 = vld [vmem:[%s5202_s2] ss:$0 sm:$0xff] }
 0x2bf   : > { %v2358_v9 = vpop.f32.mrf.mxu0 }
 0x2c0   : > { %v2356_v45 = vadd.f32 %v2355_v34, %v2187_v16  ;;  %v5242_v16 = vld [vmem:[#allocation10_spill] sm:$0xff] }
 0x2c1   : > { %v1695_v58 = vadd.f32 %v5018_v7, %v5242_v16 }
 0x2c2   : > { %v2442_v14 = vmax.f32 %v2356_v45, 0.0 }
 0x2c3   : > { %v2020_v55 = vpop.f32.mrf.mxu2 }
 0x2c4   : > { %v2506_v2 = vpack.c.bf16 %v2442_v14, %v2442_v14  ;;  %v2021_v41 = vadd.f32 %v2020_v55, %v1852_v59  ;;  %v2189_v19 = vpop.f32.mrf.mxu3 }
 0x2c5   : > { %v1853_v6 = vpop.f32.mrf.mxu1 }
 0x2c6   : > { %2571 = vst.msk [vmem:[%s4618_s12 + $0xc4] sm:$0xf] %vm2521_vm0, %v2506_v2  ;;  %v2190_v21 = vadd.f32 %v2189_v19, %v2021_v41  ;;  %v1854_v56 = vadd.f32 %v1853_v6, %v1685_v24  ;;  %v5243_v6 = vld [vmem:[#allocation11_spill] sm:$0xff] }
 0x2c7   : > { %v2360_v43 = vpop.f32.mrf.mxu0 }
 0x2c8   : > { %v2359_v1 = vadd.f32 %v2358_v9, %v2190_v21  ;;  %v1698_v21 = vadd.f32 %v5018_v7, %v5243_v6 }
 0x2ca   : > { %v2443_v35 = vmax.f32 %v2359_v1, 0.0 }
 0x2cb   : > { %v2022_v53 = vpop.f32.mrf.mxu2 }
 0x2cc   : > { %v2507_v12 = vpack.c.bf16 %v2443_v35, %v2443_v35  ;;  %v2023_v46 = vadd.f32 %v2022_v53, %v1854_v56  ;;  %v2191_v8 = vpop.f32.mrf.mxu3 }
 0x2cd   : > { %v1856_v49 = vpop.f32.mrf.mxu1 }
 0x2ce   : > { %2572 = vst.msk [vmem:[%s4618_s12 + $0xc8] sm:$0xf] %vm2521_vm0, %v2507_v12  ;;  %v2192_v27 = vadd.f32 %v2191_v8, %v2023_v46  ;;  %v1857_v57 = vadd.f32 %v1856_v49, %v1688_v22  ;;  %v5244_v49 = vld [vmem:[#allocation13_spill] sm:$0xff] }
 0x2cf   : > { %v2363_v54 = vpop.f32.mrf.mxu0 }
 0x2d0   : > { %v2361_v61 = vadd.f32 %v2360_v43, %v2192_v27  ;;  %v1700_v27 = vadd.f32 %v5018_v7, %v5244_v49 }
 0x2d2   : > { %v2444_v37 = vmax.f32 %v2361_v61, 0.0 }
 0x2d3   : > { %v2025_v15 = vpop.f32.mrf.mxu2 }
 0x2d4   : > { %v2508_v39 = vpack.c.bf16 %v2444_v37, %v2444_v37  ;;  %v2026_v38 = vadd.f32 %v2025_v15, %v1857_v57  ;;  %v2194_v33 = vpop.f32.mrf.mxu3 }
 0x2d5   : > { %v1858_v26 = vpop.f32.mrf.mxu1 }
 0x2d6   : > { %2573 = vst.msk [vmem:[%s4618_s12 + $0xcc] sm:$0xf] %vm2521_vm0, %v2508_v39  ;;  %v2195_v30 = vadd.f32 %v2194_v33, %v2026_v38  ;;  %v1859_v25 = vadd.f32 %v1858_v26, %v1690_v63  ;;  %v5245_v26 = vld [vmem:[#allocation15_spill] sm:$0xff] }
 0x2d7   : > { %v2365_v36 = vpop.f32.mrf.mxu0 }
 0x2d8   : > { %v2364_v11 = vadd.f32 %v2363_v54, %v2195_v30  ;;  %v1703_v30 = vadd.f32 %v5018_v7, %v5245_v26 }
 0x2da   : > { %v2445_v50 = vmax.f32 %v2364_v11, 0.0 }
 0x2db   : > { %v2027_v18 = vpop.f32.mrf.mxu2 }
 0x2dc   : > { %v2509_v52 = vpack.c.bf16 %v2445_v50, %v2445_v50  ;;  %v2028_v17 = vadd.f32 %v2027_v18, %v1859_v25  ;;  %v2196_v20 = vpop.f32.mrf.mxu3 }
 0x2dd   : > { %v1861_v60 = vpop.f32.mrf.mxu1 }
 0x2de   : > { %2574 = vst.msk [vmem:[%s4618_s12 + $0xd0] sm:$0xf] %vm2521_vm0, %v2509_v52  ;;  %v2197_v31 = vadd.f32 %v2196_v20, %v2028_v17  ;;  %v1862_v51 = vadd.f32 %v1861_v60, %v1693_v28  ;;  %v5246_v60 = vld [vmem:[#allocation17_spill] sm:$0xff] }
 0x2df   : > { %v2368_v40 = vpop.f32.mrf.mxu0 }
 0x2e0   : > { %v2366_v34 = vadd.f32 %v2365_v36, %v2197_v31  ;;  %v1705_v31 = vadd.f32 %v5018_v7, %v5246_v60 }
 0x2e2   : > { %v2446_v0 = vmax.f32 %v2366_v34, 0.0 }
 0x2e3   : > { %v2030_v23 = vpop.f32.mrf.mxu2 }
 0x2e4   : > { %v2510_v13 = vpack.c.bf16 %v2446_v0, %v2446_v0  ;;  %v2031_v29 = vadd.f32 %v2030_v23, %v1862_v51  ;;  %v2199_v3 = vpop.f32.mrf.mxu3 }
 0x2e5   : > { %v1863_v32 = vpop.f32.mrf.mxu1 }
 0x2e6   : > { %2575 = vst.msk [vmem:[%s4618_s12 + $0xd4] sm:$0xf] %vm2521_vm0, %v2510_v13  ;;  %v2200_v4 = vadd.f32 %v2199_v3, %v2031_v29  ;;  %v1864_v44 = vadd.f32 %v1863_v32, %v1695_v58  ;;  %v5247_v3 = vld [vmem:[#allocation19_spill] sm:$0xff] }
 0x2e7   : > { %v2370_v10 = vpop.f32.mrf.mxu0  ;;  %v1708_v32 = vadd.f32 %v5018_v7, %v5247_v3 }
 0x2e8   : > { %v2369_v9 = vadd.f32 %v2368_v40, %v2200_v4 }
 0x2ea   : > { %v2447_v42 = vmax.f32 %v2369_v9, 0.0 }
 0x2eb   : > { %v2032_v45 = vpop.f32.mrf.mxu2 }
 0x2ec   : > { %v2511_v14 = vpack.c.bf16 %v2447_v42, %v2447_v42  ;;  %v2033_v59 = vadd.f32 %v2032_v45, %v1864_v44  ;;  %v2201_v55 = vpop.f32.mrf.mxu3 }
 0x2ed   : > { %v1866_v2 = vpop.f32.mrf.mxu1 }
 0x2ee   : > { %2576 = vst.msk [vmem:[%s4618_s12 + $0xd8] sm:$0xf] %vm2521_vm0, %v2511_v14  ;;  %v2202_v41 = vadd.f32 %v2201_v55, %v2033_v59  ;;  %v1867_v24 = vadd.f32 %v1866_v2, %v1698_v21  ;;  %v5248_v55 = vld [vmem:[#allocation21_spill] sm:$0xff] }
 0x2ef   : > { %v2373_v19 = vpop.f32.mrf.mxu0  ;;  %v1710_v2 = vadd.f32 %v5018_v7, %v5248_v55 }
 0x2f0   : > { %v2371_v43 = vadd.f32 %v2370_v10, %v2202_v41 }
 0x2f2   : > { %v2448_v47 = vmax.f32 %v2371_v43, 0.0 }
 0x2f3   : > { %v2035_v1 = vpop.f32.mrf.mxu2 }
 0x2f4   : > { %v2512_v35 = vpack.c.bf16 %v2448_v47, %v2448_v47  ;;  %v2036_v56 = vadd.f32 %v2035_v1, %v1867_v24  ;;  %v2204_v53 = vpop.f32.mrf.mxu3 }
 0x2f5   : > { %v1868_v12 = vpop.f32.mrf.mxu1 }
 0x2f6   : > { %2577 = vst.msk [vmem:[%s4618_s12 + $0xdc] sm:$0xf] %vm2521_vm0, %v2512_v35  ;;  %v2205_v46 = vadd.f32 %v2204_v53, %v2036_v56  ;;  %v1869_v22 = vadd.f32 %v1868_v12, %v1700_v27  ;;  %v5249_v53 = vld [vmem:[#allocation23_spill] sm:$0xff] }
 0x2f7   : > { %v2375_v8 = vpop.f32.mrf.mxu0  ;;  %v1713_v12 = vadd.f32 %v5018_v7, %v5249_v53 }
 0x2f8   : > { %v2374_v54 = vadd.f32 %v2373_v19, %v2205_v46 }
 0x2fa   : > { %v2449_v5 = vmax.f32 %v2374_v54, 0.0 }
 0x2fb   : > { %v2037_v61 = vpop.f32.mrf.mxu2 }
 0x2fc   : > { %v2513_v37 = vpack.c.bf16 %v2449_v5, %v2449_v5  ;;  %v2038_v57 = vadd.f32 %v2037_v61, %v1869_v22  ;;  %v2206_v15 = vpop.f32.mrf.mxu3 }
 0x2fd   : > { %v1871_v39 = vpop.f32.mrf.mxu1 }
 0x2fe   : > { %2578 = vst.msk [vmem:[%s4618_s12 + $0xe0] sm:$0xf] %vm2521_vm0, %v2513_v37  ;;  %v2207_v38 = vadd.f32 %v2206_v15, %v2038_v57  ;;  %v1872_v63 = vadd.f32 %v1871_v39, %v1703_v30  ;;  %v5250_v15 = vld [vmem:[#allocation25_spill] sm:$0xff] }
 0x2ff   : > { %v2378_v33 = vpop.f32.mrf.mxu0  ;;  %v1715_v39 = vadd.f32 %v5018_v7, %v5250_v15 }
 0x300   : > { %v2376_v36 = vadd.f32 %v2375_v8, %v2207_v38 }
 0x302   : > { %v2450_v62 = vmax.f32 %v2376_v36, 0.0 }
 0x303   : > { %v2040_v11 = vpop.f32.mrf.mxu2 }
 0x304   : > { %v2514_v50 = vpack.c.bf16 %v2450_v62, %v2450_v62  ;;  %v2041_v25 = vadd.f32 %v2040_v11, %v1872_v63  ;;  %v2209_v18 = vpop.f32.mrf.mxu3 }
 0x305   : > { %v1873_v52 = vpop.f32.mrf.mxu1 }
 0x306   : > { %2579 = vst.msk [vmem:[%s4618_s12 + $0xe4] sm:$0xf] %vm2521_vm0, %v2514_v50  ;;  %v2210_v17 = vadd.f32 %v2209_v18, %v2041_v25  ;;  %v1874_v28 = vadd.f32 %v1873_v52, %v1705_v31 }
 0x307   : > { %v2380_v20 = vpop.f32.mrf.mxu0 }
 0x308   : > { %v2379_v40 = vadd.f32 %v2378_v33, %v2210_v17 }
 0x30a   : > { %v2451_v48 = vmax.f32 %v2379_v40, 0.0 }
 0x30b   : > { %v2042_v34 = vpop.f32.mrf.mxu2 }
 0x30c   : > { %v2515_v0 = vpack.c.bf16 %v2451_v48, %v2451_v48  ;;  %v2043_v51 = vadd.f32 %v2042_v34, %v1874_v28  ;;  %v2211_v23 = vpop.f32.mrf.mxu3 }
 0x30d   : > { %v1876_v13 = vpop.f32.mrf.mxu1 }
 0x30e   : > { %2580 = vst.msk [vmem:[%s4618_s12 + $0xe8] sm:$0xf] %vm2521_vm0, %v2515_v0  ;;  %v2212_v29 = vadd.f32 %v2211_v23, %v2043_v51  ;;  %v1877_v58 = vadd.f32 %v1876_v13, %v1708_v32 }
 0x30f   : > { %v2383_v10 = vpop.f32.mrf.mxu0 }
 0x310   : > { %v2381_v4 = vadd.f32 %v2380_v20, %v2212_v29 }
 0x312   : > { %v2452_v16 = vmax.f32 %v2381_v4, 0.0 }
 0x313   : > { %v2045_v9 = vpop.f32.mrf.mxu2 }
 0x314   : > { %v2516_v42 = vpack.c.bf16 %v2452_v16, %v2452_v16  ;;  %v2046_v44 = vadd.f32 %v2045_v9, %v1877_v58  ;;  %v2214_v45 = vpop.f32.mrf.mxu3 }
 0x315   : > { %v1878_v14 = vpop.f32.mrf.mxu1 }
 0x316   : > { %2581 = vst.msk [vmem:[%s4618_s12 + $0xec] sm:$0xf] %vm2521_vm0, %v2516_v42  ;;  %v2215_v59 = vadd.f32 %v2214_v45, %v2046_v44  ;;  %v1879_v6 = vadd.f32 %v1878_v14, %v1710_v2 }
 0x317   : > { %v2385_v21 = vpop.f32.mrf.mxu0 }
 0x318   : > { %v2384_v41 = vadd.f32 %v2383_v10, %v2215_v59 }
 0x31a   : > { %v2453_v19 = vmax.f32 %v2384_v41, 0.0 }
 0x31b   : > { %v2047_v43 = vpop.f32.mrf.mxu2 }
 0x31c   : > { %v2517_v47 = vpack.c.bf16 %v2453_v19, %v2453_v19  ;;  %v2048_v24 = vadd.f32 %v2047_v43, %v1879_v6  ;;  %v2216_v1 = vpop.f32.mrf.mxu3 }
 0x31d   : > { %v1881_v35 = vpop.f32.mrf.mxu1 }
 0x31e   : > { %2582 = vst.msk [vmem:[%s4618_s12 + $0xf0] sm:$0xf] %vm2521_vm0, %v2517_v47  ;;  %v2217_v56 = vadd.f32 %v2216_v1, %v2048_v24  ;;  %v1882_v49 = vadd.f32 %v1881_v35, %v1713_v12 }
 0x31f   : > { %v2388_v61 = vpop.f32.mrf.mxu0 }
 0x320   : > { %v2386_v46 = vadd.f32 %v2385_v21, %v2217_v56 }
 0x322   : > { %v2454_v8 = vmax.f32 %v2386_v46, 0.0 }
 0x323   : > { %v2050_v27 = vpop.f32.mrf.mxu2 }
 0x324   : > { %v2518_v54 = vpack.c.bf16 %v2454_v8, %v2454_v8  ;;  %v2051_v5 = vadd.f32 %v2050_v27, %v1882_v49  ;;  %v2219_v22 = vpop.f32.mrf.mxu3 }
 0x325   : > { %v1883_v57 = vpop.f32.mrf.mxu1 }
 0x326   : > { %2583 = vst.msk [vmem:[%s4618_s12 + $0xf4] sm:$0xf] %vm2521_vm0, %v2518_v54  ;;  %v2220_v37 = vadd.f32 %v2219_v22, %v2051_v5  ;;  %v1884_v26 = vadd.f32 %v1883_v57, %v1715_v39 }
 0x327   : > { %v2390_v50 = vpop.f32.mrf.mxu0 }
 0x328   : > { %v2389_v38 = vadd.f32 %v2388_v61, %v2220_v37 }
 0x32a   : > { %v2455_v33 = vmax.f32 %v2389_v38, 0.0 }
 0x32b   : > { %v2052_v30 = vpop.f32.mrf.mxu2 }
 0x32c   : > { %v2519_v36 = vpack.c.bf16 %v2455_v33, %v2455_v33  ;;  %v2053_v62 = vadd.f32 %v2052_v30, %v1884_v26  ;;  %v2221_v63 = vpop.f32.mrf.mxu3 }
 0x32e   : > { %2584 = vst.msk [vmem:[%s4618_s12 + $0xf8] sm:$0xf] %vm2521_vm0, %v2519_v36  ;;  %v2222_v11 = vadd.f32 %v2221_v63, %v2053_v62 }
 0x330   : > { %v2391_v25 = vadd.f32 %v2390_v50, %v2222_v11 }
 0x332   : > { %v2456_v18 = vmax.f32 %v2391_v25, 0.0  ;;  %2592 = sbr.rel (!%p4202_p4) target bundleno = 887 (0x377), region = 36 }
 0x334   : > { %v2520_v52 = vpack.c.bf16 %v2456_v18, %v2456_v18 }
 0x336   : > { %2585 = vst.msk [vmem:[%s4618_s12 + $0xfc] sm:$0xf] %vm2521_vm0, %v2520_v52 }
 0x337   : > { %s5260_s10 = smov (!%p2595_p8, %s2594_s10), 64 }
 0x338   : > { %s3735_s22 = sshll.u32 %s5260_s10, 2 }
 0x339   : > { %p3738_p9 = scmp.eq.s32.totalorder %s3735_s22, 0 }
 0x33a   : > { %s5071_s23 = sshrl.u32 (!%p3738_p9), %s5260_s10, 5 }
 0x33b   : > { %2603 = sbr.rel (%p3738_p9) target bundleno = 887 (0x377), region = 40  ;;  %p3739_p10 = scmp.le.s32.totalorder (!%p3738_p9), %s5071_s23, 0 }
 0x340   : > { %2882 = sbr.rel (%p3739_p10) target bundleno = 870 (0x366), region = 112  ;;  %s5251_s15 = smov (!%p3739_p10), %s5065_s21 }
 0x341   : > { %s5252_s20 = smov (!%p3739_p10), %s4618_s12  ;;  %s5080_s27 = smov (!%p3739_p10), 0  }
 0x342   : > { %s5082_s24 = smov (!%p3739_p10), 0  }
 0x345 LB: >> { %v2620_v7 = vld [vmem:[%s4131_s20] sm:$0xf]  ;;  %v2622_v17 = vld [vmem:[%s4131_s20 + $0x4] sm:$0xf]  ;;  %v2624_v20 = vld [vmem:[%s4131_s20 + $0x8] sm:$0xf]  ;;  %s4139_s24 = sphi %s5082_s24, %s2614_s24   ;;  %s4135_s27 = sphi %s5080_s27, %s5255_s27   ;;  %s4131_s20 = sphi %s5252_s20, %s5254_s20   ;;  %s4127_s15 = sphi %s5251_s15, %s5253_s15  }
 0x346   : >> { %2621 = vst [vmem:[%s4127_s15] sm:$0xf] %v2620_v7  ;;  %v2626_v60 = vld [vmem:[%s4131_s20 + $0xc] sm:$0xf]  ;;  %v2628_v31 = vld [vmem:[%s4131_s20 + $0x10] sm:$0xf]  ;;  %s2684_s25 = sadd.s32 1, %s4135_s27 }
 0x347   : >> { %2623 = vst [vmem:[%s4127_s15 + $0x4] sm:$0xf] %v2622_v17  ;;  %v2630_v40 = vld [vmem:[%s4131_s20 + $0x14] sm:$0xf]  ;;  %v2632_v48 = vld [vmem:[%s4131_s20 + $0x18] sm:$0xf]  ;;  %p2685_p11 = scmp.ge.s32.totalorder %s2684_s25, %s5071_s23 }
 0x348   : >> { %2625 = vst [vmem:[%s4127_s15 + $0x8] sm:$0xf] %v2624_v20  ;;  %v2634_v28 = vld [vmem:[%s4131_s20 + $0x1c] sm:$0xf]  ;;  %v2636_v34 = vld [vmem:[%s4131_s20 + $0x20] sm:$0xf] }
 0x349   : >> { %2627 = vst [vmem:[%s4127_s15 + $0xc] sm:$0xf] %v2626_v60  ;;  %v2638_v0 = vld [vmem:[%s4131_s20 + $0x24] sm:$0xf]  ;;  %v2640_v51 = vld [vmem:[%s4131_s20 + $0x28] sm:$0xf] }
 0x34a   : >> { %2629 = vst [vmem:[%s4127_s15 + $0x10] sm:$0xf] %v2628_v31  ;;  %v2642_v23 = vld [vmem:[%s4131_s20 + $0x2c] sm:$0xf]  ;;  %v2644_v13 = vld [vmem:[%s4131_s20 + $0x30] sm:$0xf] }
 0x34b   : >> { %2631 = vst [vmem:[%s4127_s15 + $0x14] sm:$0xf] %v2630_v40  ;;  %v2646_v29 = vld [vmem:[%s4131_s20 + $0x34] sm:$0xf]  ;;  %v2648_v3 = vld [vmem:[%s4131_s20 + $0x38] sm:$0xf] }
 0x34c   : >> { %2633 = vst [vmem:[%s4127_s15 + $0x18] sm:$0xf] %v2632_v48  ;;  %v2650_v32 = vld [vmem:[%s4131_s20 + $0x3c] sm:$0xf]  ;;  %v2652_v4 = vld [vmem:[%s4131_s20 + $0x40] sm:$0xf] }
 0x34d   : >> { %2635 = vst [vmem:[%s4127_s15 + $0x1c] sm:$0xf] %v2634_v28  ;;  %v2654_v10 = vld [vmem:[%s4131_s20 + $0x44] sm:$0xf]  ;;  %s5262_s25 = smov (%p2685_p11, %s2684_s25), 0  ;;  %s2614_s24 = sadd.s32 1, %s4139_s24  }
 0x34e   : >> { %2637 = vst [vmem:[%s4127_s15 + $0x20] sm:$0xf] %v2636_v34  ;;  %v2656_v16 = vld [vmem:[%s4131_s20 + $0x48] sm:$0xf]  ;;  %v2658_v58 = vld [vmem:[%s4131_s20 + $0x4c] sm:$0xf]  ;;  %p2613_p12 = scmp.ge.s32.totalorder %s2614_s24, %s5071_s23  ;;  %s5255_s27 = smov %s5262_s25 }
 0x34f   : >> { %2639 = vst [vmem:[%s4127_s15 + $0x24] sm:$0xf] %v2638_v0  ;;  %s3740_s26 = sshll.u32 %s5262_s25, 7  ;;  %v2660_v9 = vld [vmem:[%s4131_s20 + $0x50] sm:$0xf] }
 0x350   : >> { %2641 = vst [vmem:[%s4127_s15 + $0x28] sm:$0xf] %v2640_v51  ;;  %s5141_s28 = scalar_lea.vmem %s4618_s12, %s3740_s26 [#allocation2]   ;;  %s2690_s29 = scalar_lea.vmem %s5065_s21, %s3740_s26   ;;  %v2662_v42 = vld [vmem:[%s4131_s20 + $0x54] sm:$0xf]  ;;  %v2664_v44 = vld [vmem:[%s4131_s20 + $0x58] sm:$0xf] }
 0x351   : >> { %2643 = vst [vmem:[%s4127_s15 + $0x2c] sm:$0xf] %v2642_v23  ;;  %v2666_v45 = vld [vmem:[%s4131_s20 + $0x5c] sm:$0xf]  ;;  %v2668_v14 = vld [vmem:[%s4131_s20 + $0x60] sm:$0xf] }
 0x352   : >> { %2645 = vst [vmem:[%s4127_s15 + $0x30] sm:$0xf] %v2644_v13  ;;  %v2670_v59 = vld [vmem:[%s4131_s20 + $0x64] sm:$0xf]  ;;  %v2672_v55 = vld [vmem:[%s4131_s20 + $0x68] sm:$0xf] }
 0x353   : >> { %2647 = vst [vmem:[%s4127_s15 + $0x34] sm:$0xf] %v2646_v29  ;;  %v2674_v2 = vld [vmem:[%s4131_s20 + $0x6c] sm:$0xf]  ;;  %v2676_v41 = vld [vmem:[%s4131_s20 + $0x70] sm:$0xf] }
 0x354   : >> { %2649 = vst [vmem:[%s4127_s15 + $0x38] sm:$0xf] %v2648_v3  ;;  %v2678_v19 = vld [vmem:[%s4131_s20 + $0x74] sm:$0xf]  ;;  %v2680_v6 = vld [vmem:[%s4131_s20 + $0x78] sm:$0xf] }
 0x355   : >> { %2651 = vst [vmem:[%s4127_s15 + $0x3c] sm:$0xf] %v2650_v32  ;;  %v2682_v21 = vld [vmem:[%s4131_s20 + $0x7c] sm:$0xf]  ;;  %s5254_s20 = smov %s5141_s28 }
 0x356   : >> { %2653 = vst [vmem:[%s4127_s15 + $0x40] sm:$0xf] %v2652_v4 }
 0x357   : >> { %2655 = vst [vmem:[%s4127_s15 + $0x44] sm:$0xf] %v2654_v10 }
 0x358   : >> { %2657 = vst [vmem:[%s4127_s15 + $0x48] sm:$0xf] %v2656_v16 }
 0x359   : >> { %2659 = vst [vmem:[%s4127_s15 + $0x4c] sm:$0xf] %v2658_v58 }
 0x35a   : >> { %2661 = vst [vmem:[%s4127_s15 + $0x50] sm:$0xf] %v2660_v9 }
 0x35b   : >> { %2663 = vst [vmem:[%s4127_s15 + $0x54] sm:$0xf] %v2662_v42 }
 0x35c   : >> { %2665 = vst [vmem:[%s4127_s15 + $0x58] sm:$0xf] %v2664_v44 }
 0x35d   : >> { %2667 = vst [vmem:[%s4127_s15 + $0x5c] sm:$0xf] %v2666_v45 }
 0x35e   : >> { %2669 = vst [vmem:[%s4127_s15 + $0x60] sm:$0xf] %v2668_v14 }
 0x35f   : >> { %2671 = vst [vmem:[%s4127_s15 + $0x64] sm:$0xf] %v2670_v59 }
 0x360   : >> { %2673 = vst [vmem:[%s4127_s15 + $0x68] sm:$0xf] %v2672_v55 }
 0x361   : >> { %2675 = vst [vmem:[%s4127_s15 + $0x6c] sm:$0xf] %v2674_v2  ;;  %2616 = sbr.rel (!%p2613_p12) target bundleno = 837 (0x345), region = 118 }
 0x362   : >> { %2677 = vst [vmem:[%s4127_s15 + $0x70] sm:$0xf] %v2676_v41 }
 0x363   : >> { %2679 = vst [vmem:[%s4127_s15 + $0x74] sm:$0xf] %v2678_v19 }
 0x364   : >> { %2681 = vst [vmem:[%s4127_s15 + $0x78] sm:$0xf] %v2680_v6 }
 0x365   : >> { %2683 = vst [vmem:[%s4127_s15 + $0x7c] sm:$0xf] %v2682_v21  ;;  %s5253_s15 = smov %s2690_s29 }
 0x366 PF: > { %s5182_s30 = sand.u32 31, %s5260_s10   ;;  %s3951_s4 = sshll.u32 %s5071_s23, 7 }
 0x367   : > { %s2695_s5 = scalar_lea.vmem %s4618_s12, %s3951_s4 [#allocation2]   ;;  %s2697_s6 = scalar_lea.vmem %s5065_s21, %s3951_s4  }
 0x368   : > { %p3745_p13 = scmp.le.s32.totalorder %s5182_s30, 0 }
 0x369   : > { %s4141_s7 = smov (!%p3745_p13), %s2697_s6   ;;  %s4145_s8 = smov (!%p3745_p13), %s2695_s5  }
 0x36a   : > { %2896 = sbr.rel (%p3745_p13) target bundleno = 887 (0x377), region = 123  ;;  %s4149_s17 = smov (!%p3745_p13), 0  }
 0x36b   : > { %s4153_s9 = smov (!%p3745_p13), 0  }
 0x36f LB: >> { %v2707_v43 = vld [vmem:[%s4147_s8] sm:$0xf]  ;;  %s2709_s10 = sadd.s32 1, %s4151_s17  ;;  %s2701_s9 = sadd.s32 1, %s4155_s9   ;;  %s4155_s9 = sphi %s4153_s9, %s2701_s9   ;;  %s4151_s17 = sphi %s4149_s17, %s4150_s17   ;;  %s4147_s8 = sphi %s4145_s8, %s2714_s8   ;;  %s4143_s7 = sphi %s4141_s7, %s2715_s7  }
 0x370   : >> { %2708 = vst [vmem:[%s4143_s7] sm:$0xf] %v2707_v43  ;;  %p2710_p0 = scmp.ge.s32.totalorder %s2709_s10, %s5182_s30  ;;  %p2700_p1 = scmp.ge.s32.totalorder %s2701_s9, %s5182_s30 }
 0x372   : >> { %s5264_s10 = smov (%p2710_p0, %s2709_s10), 0  ;;  %2703 = sbr.rel (!%p2700_p1) target bundleno = 879 (0x36f), region = 129 }
 0x373   : >> { %s3746_s12 = sshll.u32 %s5264_s10, 2  ;;  %s4150_s17 = smov %s5264_s10  }
 0x374   : >> { %s2714_s8 = scalar_lea.vmem %s2695_s5, %s3746_s12 [#allocation2]   ;;  %s2715_s7 = scalar_lea.vmem %s2697_s6, %s3746_s12  }
 0x377 PF: > { %p10_p2 = scmp.ge.s32.totalorder %s4192_s16, 10   ;;  %s5256_s12 = smov %s4119_s13 }
 0x378   : > { %s5257_s13 = smov %s4200_s19  ;;  %s5258_s14 = smov %s4192_s16 }
 0x379   :  { %12 = sbr.rel (!%p10_p2) target bundleno = 2 (0x2), region = 140 }

// kernel: network_forward.5
= control target key start
LH: loop header
LB: loop body
LE: loop exit
PB: predicated region body
PF: predicated region fallthrough
CT: control target
= control target key end

     0   :  { %s3465_s12 = smov 0   ;;  %s3467_s13 = smov 0   ;;  %s4201_s0 = inlined_call_operand.vmem [shape: bf16[864,512], index: 0, kind: input, shape index: {}]   ;;  %s4202_s1 = inlined_call_operand.vmem [shape: bf16[512,64], index: 1, kind: input, shape index: {}]   ;;  %s4203_s2 = inlined_call_operand.vmem [shape: f32[1,64], index: 2, kind: input, shape index: {}]   ;;  %s4204_s3 = inlined_call_operand.vmem [shape: bf16[864,64], index: 3, kind: output, shape index: {}]  }
   0x1   :  { %s3469_s14 = smov 0  }
   0x2 LB: > { %s3478_s15 = sadd.s32 4294967295, %s3411_s14   ;;  %s3480_s16 = sadd.s32 1, %s3411_s14   ;;  %s3411_s14 = sphi %s3469_s14, %s4213_s14   ;;  %s3407_s13 = sphi %s3467_s13, %s4212_s13   ;;  %s3403_s12 = sphi %s3465_s12, %s4211_s12  }
   0x3   : > { %s85_s17 = ssub.s32 %s3411_s14, %s3480_s16  ;;  %s88_s18 = sadd.s32 1, %s3407_s13 }
   0x4   : > { %p86_p0 = scmp.eq.s32.totalorder %s85_s17, 0  ;;  %p98_p1 = scmp.ne.s32.totalorder %s3407_s13, %s3403_s12 }
   0x5   : > { %p99_p2 = scmp.eq.s32.totalorder %s3478_s15, 1  ;;  %p2440_p3 = scmp.ge.s32.totalorder %s3411_s14, 1 }
   0x6   : > { %s3488_s19 = scalar_select %p86_p0, %s3407_s13, %s88_s18  }
   0x7   : > { %p3490_p4 = por %p99_p2, %p98_p1  ;;  %p149_p5 = scmp.lt.s32.totalorder %s3411_s14, 3 }
   0x9   : > { %p150_p6 = pnand %p2440_p3, %p149_p5 }
   0xa   : > { %s3531_s24 = sshll.u32 (!%p150_p6), %s3478_s15, 6  ;;  %s175_s5 = sand.u32 (!%p150_p6), 1, %s3403_s12  }
   0xb   : > { %153 = sbr.rel (%p150_p6) target bundleno = 759 (0x2f7), region = 32  ;;  %p184_p7 = scmp.lt.s32.totalorder (!%p150_p6), %s3531_s24, 107 }
   0xc   : > { %s2441_s6 = sshll.u32 (!%p150_p6), %s175_s5, 8 }
   0xd   : > { %s3688_s12 = scalar_lea.vmem (!%p150_p6), [#allocation2], %s2441_s6  }
  0x10   : > { %v3238_v0 = vld [vmem:[%s4202_s1 + $0x38] sm:$0xff]  ;;  %v3237_v4 = vld [vmem:[%s4202_s1 + $0x30] sm:$0xff]  ;;  %v3236_v8 = vld [vmem:[%s4202_s1 + $0x28] sm:$0xff]  ;;  %s185_s18 = scalar_select %p184_p7, %s3531_s24, 107  ;;  %vm2032_vm0 = vcmask 519168  }
  0x11   : > { %v3246_v1 = vld [vmem:[%s4202_s1 + $0x78] sm:$0xff]  ;;  %1228 = vmatpush.bf16.msra.mxu0 %v3238_v0  ;;  %v3245_v5 = vld [vmem:[%s4202_s1 + $0x70] sm:$0xff]  ;;  %v3244_v9 = vld [vmem:[%s4202_s1 + $0x68] sm:$0xff]  ;;  %s2105_s11 = ssub.s32 (%p3490_p4), 108, %s3531_s24  ;;  %s3263_s14 = sshll.u32 (%p3490_p4), %s3478_s15, 8 }
  0x12   : > { %v3254_v2 = vld [vmem:[%s4202_s1 + $0xb8] sm:$0xff]  ;;  %1397 = vmatpush.bf16.msra.mxu1 %v3246_v1  ;;  %v3253_v6 = vld [vmem:[%s4202_s1 + $0xb0] sm:$0xff]  ;;  %v3252_v10 = vld [vmem:[%s4202_s1 + $0xa8] sm:$0xff]  ;;  %s3102_s30 = sshll.u32 %s185_s18, 4  ;;  %p2106_p8 = scmp.lt.s32.totalorder (%p3490_p4), %s2105_s11, 64 }
  0x13   : > { %v3262_v3 = vld [vmem:[%s4202_s1 + $0xf8] sm:$0xff]  ;;  %1566 = vmatpush.bf16.msra.mxu2 %v3254_v2  ;;  %v3261_v7 = vld [vmem:[%s4202_s1 + $0xf0] sm:$0xff]  ;;  %v3260_v11 = vld [vmem:[%s4202_s1 + $0xe8] sm:$0xff]  ;;  %s3580_s10 = scalar_lea.vmem %s4201_s0, %s3102_s30  ;;  %s4066_s21 = scalar_lea.vmem (%p3490_p4), %s4204_s3, %s3263_s14  }
  0x14   : > { %1735 = vmatpush.bf16.msra.mxu3 %v3262_v3  ;;  %v3235_v12 = vld [vmem:[%s4202_s1 + $0x20] sm:$0xff]  ;;  %v3234_v16 = vld [vmem:[%s4202_s1 + $0x18] sm:$0xff]  ;;  %v3233_v20 = vld [vmem:[%s4202_s1 + $0x10] sm:$0xff] }
  0x15   : > { %1229 = vmatpush.bf16.msra.mxu0 %v3237_v4  ;;  %v3243_v13 = vld [vmem:[%s4202_s1 + $0x60] sm:$0xff]  ;;  %v3242_v17 = vld [vmem:[%s4202_s1 + $0x58] sm:$0xff]  ;;  %v3241_v21 = vld [vmem:[%s4202_s1 + $0x50] sm:$0xff] }
  0x16   : > { %1398 = vmatpush.bf16.msra.mxu1 %v3245_v5  ;;  %v3251_v14 = vld [vmem:[%s4202_s1 + $0xa0] sm:$0xff]  ;;  %v3250_v18 = vld [vmem:[%s4202_s1 + $0x98] sm:$0xff]  ;;  %v3249_v22 = vld [vmem:[%s4202_s1 + $0x90] sm:$0xff] }
  0x17   : > { %1567 = vmatpush.bf16.msra.mxu2 %v3253_v6  ;;  %v3259_v15 = vld [vmem:[%s4202_s1 + $0xe0] sm:$0xff]  ;;  %v3258_v19 = vld [vmem:[%s4202_s1 + $0xd8] sm:$0xff]  ;;  %v3257_v23 = vld [vmem:[%s4202_s1 + $0xd0] sm:$0xff] }
  0x18   : > { %1736 = vmatpush.bf16.msra.mxu3 %v3261_v7  ;;  %v3232_v24 = vld [vmem:[%s4202_s1 + $0x8] sm:$0xff]  ;;  %v3231_v28 = vld [vmem:[%s4202_s1] sm:$0xff]  ;;  %v3105_v33 = vld [vmem:[%s3580_s10 + $0xc] sm:$0xf0] }
  0x19   : > { %1230 = vmatpush.bf16.msra.mxu0 %v3236_v8  ;;  %v3240_v25 = vld [vmem:[%s4202_s1 + $0x48] sm:$0xff]  ;;  %v3239_v29 = vld [vmem:[%s4202_s1 + $0x40] sm:$0xff]  ;;  %v2449_v35 = vld [vmem:[%s3580_s10 + $0x10] sm:$0xf0] }
  0x1a   : > { %1399 = vmatpush.bf16.msra.mxu1 %v3244_v9  ;;  %v3248_v26 = vld [vmem:[%s4202_s1 + $0x88] sm:$0xff]  ;;  %v3247_v30 = vld [vmem:[%s4202_s1 + $0x80] sm:$0xff]  ;;  %v3106_v37 = vld [vmem:[%s3580_s10 + $0x14] sm:$0xf0] }
  0x1b   : > { %1568 = vmatpush.bf16.msra.mxu2 %v3252_v10  ;;  %v3256_v27 = vld [vmem:[%s4202_s1 + $0xc8] sm:$0xff]  ;;  %v3255_v31 = vld [vmem:[%s4202_s1 + $0xc0] sm:$0xff]  ;;  %v2457_v39 = vld [vmem:[%s3580_s10 + $0x18] sm:$0xf0] }
  0x1c   : > { %1737 = vmatpush.bf16.msra.mxu3 %v3260_v11  ;;  %v2447_v32 = vld [vmem:[%s3580_s10] sm:$0xf]  ;;  %v3103_v34 = vld [vmem:[%s3580_s10 + $0x4] sm:$0xf]  ;;  %v2455_v36 = vld [vmem:[%s3580_s10 + $0x8] sm:$0xf] }
  0x1d   : > { %1231 = vmatpush.bf16.msra.mxu0 %v3235_v12  ;;  %v3104_v38 = vld [vmem:[%s3580_s10 + $0xc] sm:$0xf]  ;;  %v2448_v40 = vor.u32 %v3105_v33, %v2447_v32  ;;  %v2452_v41 = vor.u32 %v3103_v34, %v2449_v35  ;;  %v2456_v42 = vor.u32 %v3106_v37, %v2455_v36  ;;  %v2463_v44 = vld [vmem:[%s3580_s10 + $0x20] sm:$0xf]  ;;  %v3109_v45 = vld [vmem:[%s3580_s10 + $0x2c] sm:$0xf0] }
  0x1e   : > { %1400 = vmatpush.bf16.msra.mxu1 %v3243_v13  ;;  %v2460_v43 = vor.u32 %v3104_v38, %v2457_v39  ;;  %v3107_v46 = vld [vmem:[%s3580_s10 + $0x24] sm:$0xf]  ;;  %v2465_v47 = vld [vmem:[%s3580_s10 + $0x30] sm:$0xf0]  ;;  %v2471_v48 = vld [vmem:[%s3580_s10 + $0x28] sm:$0xf]  ;;  %v2464_v52 = vor.u32 %v3109_v45, %v2463_v44 }
  0x1f   : > { %1569 = vmatpush.bf16.msra.mxu2 %v3251_v14  ;;  %v3110_v49 = vld [vmem:[%s3580_s10 + $0x34] sm:$0xf0]  ;;  %v3108_v50 = vld [vmem:[%s3580_s10 + $0x2c] sm:$0xf]  ;;  %v2473_v51 = vld [vmem:[%s3580_s10 + $0x38] sm:$0xf0]  ;;  %v2468_v53 = vor.u32 %v3107_v46, %v2465_v47 }
  0x20   : > { %1738 = vmatpush.bf16.msra.mxu3 %v3259_v15  ;;  %v2472_v54 = vor.u32 %v3110_v49, %v2471_v48  ;;  %v2476_v55 = vor.u32 %v3108_v50, %v2473_v51  ;;  %v2479_v56 = vld [vmem:[%s3580_s10 + $0x40] sm:$0xf]  ;;  %v3113_v57 = vld [vmem:[%s3580_s10 + $0x4c] sm:$0xf0]  ;;  %v3111_v58 = vld [vmem:[%s3580_s10 + $0x44] sm:$0xf] }
  0x21   : > { %1232 = vmatpush.bf16.msra.mxu0 %v3234_v16  ;;  %v2481_v59 = vld [vmem:[%s3580_s10 + $0x50] sm:$0xf0]  ;;  %v2487_v60 = vld [vmem:[%s3580_s10 + $0x48] sm:$0xf]  ;;  %v3114_v61 = vld [vmem:[%s3580_s10 + $0x54] sm:$0xf0]  ;;  %v2480_v0 = vor.u32 %v3113_v57, %v2479_v56 }
  0x22   : > { %1401 = vmatpush.bf16.msra.mxu1 %v3242_v17  ;;  %v3112_v62 = vld [vmem:[%s3580_s10 + $0x4c] sm:$0xf]  ;;  %v2489_v63 = vld [vmem:[%s3580_s10 + $0x58] sm:$0xf0]  ;;  %v2484_v1 = vor.u32 %v3111_v58, %v2481_v59  ;;  %v2488_v2 = vor.u32 %v3114_v61, %v2487_v60  ;;  %v2495_v4 = vld [vmem:[%s3580_s10 + $0x60] sm:$0xf] }
  0x23   : > { %1570 = vmatpush.bf16.msra.mxu2 %v3250_v18  ;;  %v2492_v3 = vor.u32 %v3112_v62, %v2489_v63  ;;  %v3117_v5 = vld [vmem:[%s3580_s10 + $0x6c] sm:$0xf0]  ;;  %v3115_v6 = vld [vmem:[%s3580_s10 + $0x64] sm:$0xf]  ;;  %v2497_v7 = vld [vmem:[%s3580_s10 + $0x70] sm:$0xf0] }
  0x24   : > { %1739 = vmatpush.bf16.msra.mxu3 %v3258_v19  ;;  %v2503_v8 = vld [vmem:[%s3580_s10 + $0x68] sm:$0xf]  ;;  %v3118_v9 = vld [vmem:[%s3580_s10 + $0x74] sm:$0xf0]  ;;  %v3116_v10 = vld [vmem:[%s3580_s10 + $0x6c] sm:$0xf]  ;;  %v2496_v12 = vor.u32 %v3117_v5, %v2495_v4  ;;  %v2500_v13 = vor.u32 %v3115_v6, %v2497_v7 }
  0x25   : > { %1233 = vmatpush.bf16.msra.mxu0 %v3233_v20  ;;  %v2505_v11 = vld [vmem:[%s3580_s10 + $0x78] sm:$0xf0]  ;;  %v2504_v14 = vor.u32 %v3118_v9, %v2503_v8  ;;  %v2511_v16 = vld [vmem:[%s3580_s10 + $0x80] sm:$0xf]  ;;  %v3121_v17 = vld [vmem:[%s3580_s10 + $0x8c] sm:$0xf0] }
  0x26   : > { %1402 = vmatpush.bf16.msra.mxu1 %v3241_v21  ;;  %v2508_v15 = vor.u32 %v3116_v10, %v2505_v11  ;;  %v3119_v18 = vld [vmem:[%s3580_s10 + $0x84] sm:$0xf]  ;;  %v2513_v19 = vld [vmem:[%s3580_s10 + $0x90] sm:$0xf0]  ;;  %v2519_v20 = vld [vmem:[%s3580_s10 + $0x88] sm:$0xf] }
  0x27   : > { %1571 = vmatpush.bf16.msra.mxu2 %v3249_v22  ;;  %v3122_v21 = vld [vmem:[%s3580_s10 + $0x94] sm:$0xf0]  ;;  %v3120_v22 = vld [vmem:[%s3580_s10 + $0x8c] sm:$0xf]  ;;  %v2535_v32 = vld [vmem:[%s3580_s10 + $0xa8] sm:$0xf] }
  0x28   : > { %1740 = vmatpush.bf16.msra.mxu3 %v3257_v23  ;;  %v2521_v23 = vld [vmem:[%s3580_s10 + $0x98] sm:$0xf0]  ;;  %v3126_v33 = vld [vmem:[%s3580_s10 + $0xb4] sm:$0xf0]  ;;  %v3124_v34 = vld [vmem:[%s3580_s10 + $0xac] sm:$0xf] }
  0x29   : > { %1234 = vmatpush.bf16.msra.mxu0 %v3232_v24  ;;  %v2512_v24 = vor.u32 %v3121_v17, %v2511_v16  ;;  %v2537_v35 = vld [vmem:[%s3580_s10 + $0xb8] sm:$0xf0]  ;;  %v2536_v38 = vor.u32 %v3126_v33, %v2535_v32  ;;  %v2551_v44 = vld [vmem:[%s3580_s10 + $0xc8] sm:$0xf]  ;;  %v3130_v45 = vld [vmem:[%s3580_s10 + $0xd4] sm:$0xf0] }
  0x2a   : > { %1403 = vmatpush.bf16.msra.mxu1 %v3240_v25  ;;  %v2516_v25 = vor.u32 %v3119_v18, %v2513_v19  ;;  %v2540_v39 = vor.u32 %v3124_v34, %v2537_v35  ;;  %v3128_v46 = vld [vmem:[%s3580_s10 + $0xcc] sm:$0xf]  ;;  %v2553_v47 = vld [vmem:[%s3580_s10 + $0xd8] sm:$0xf0]  ;;  %v2552_v50 = vor.u32 %v3130_v45, %v2551_v44  ;;  %v2567_v56 = vld [vmem:[%s3580_s10 + $0xe8] sm:$0xf] }
  0x2b   : > { %1572 = vmatpush.bf16.msra.mxu2 %v3248_v26  ;;  %v2520_v26 = vor.u32 %v3122_v21, %v2519_v20  ;;  %v2556_v51 = vor.u32 %v3128_v46, %v2553_v47  ;;  %v3134_v57 = vld [vmem:[%s3580_s10 + $0xf4] sm:$0xf0]  ;;  %v3132_v58 = vld [vmem:[%s3580_s10 + $0xec] sm:$0xf]  ;;  %v2569_v59 = vld [vmem:[%s3580_s10 + $0xf8] sm:$0xf0] }
  0x2c   : > { %1741 = vmatpush.bf16.msra.mxu3 %v3256_v27  ;;  %v2524_v27 = vor.u32 %v3120_v22, %v2521_v23  ;;  %v2568_v62 = vor.u32 %v3134_v57, %v2567_v56  ;;  %v2572_v63 = vor.u32 %v3132_v58, %v2569_v59  ;;  %v2577_v4 = vld [vmem:[%s3580_s10 + $0x110] sm:$0xf0]  ;;  %v2583_v5 = vld [vmem:[%s3580_s10 + $0x108] sm:$0xf]  ;;  %v3138_v6 = vld [vmem:[%s3580_s10 + $0x114] sm:$0xf0] }
  0x2d   : > { %1235 = vmatpush.bf16.msra.mxu0 %v3231_v28  ;;  %v2527_v28 = vld [vmem:[%s3580_s10 + $0xa0] sm:$0xf]  ;;  %v3136_v7 = vld [vmem:[%s3580_s10 + $0x10c] sm:$0xf]  ;;  %v2585_v8 = vld [vmem:[%s3580_s10 + $0x118] sm:$0xf0] }
  0x2e   : > { %1404 = vmatpush.bf16.msra.mxu1 %v3239_v29  ;;  %v3125_v29 = vld [vmem:[%s3580_s10 + $0xac] sm:$0xf0]  ;;  %v2601_v32 = vld [vmem:[%s3580_s10 + $0x138] sm:$0xf0]  ;;  %v2607_v56 = vld [vmem:[%s3580_s10 + $0x140] sm:$0xf] }
  0x2f   : > { %1573 = vmatpush.bf16.msra.mxu2 %v3247_v30  ;;  %v3123_v30 = vld [vmem:[%s3580_s10 + $0xa4] sm:$0xf]  ;;  %v2528_v36 = vor.u32 %v3125_v29, %v2527_v28  ;;  %v2593_v28 = vld [vmem:[%s3580_s10 + $0x130] sm:$0xf0]  ;;  %v2599_v29 = vld [vmem:[%s3580_s10 + $0x128] sm:$0xf] }
  0x30   : > { %1742 = vmatpush.bf16.msra.mxu3 %v3255_v31  ;;  %1236 = vmatmul.bf16.vlgmr.msra.gmra.mxu0 %v2448_v40  ;;  %v2529_v31 = vld [vmem:[%s3580_s10 + $0xb0] sm:$0xf0]  ;;  %v2543_v40 = vld [vmem:[%s3580_s10 + $0xc0] sm:$0xf]  ;;  %v3145_v57 = vld [vmem:[%s3580_s10 + $0x14c] sm:$0xf0] }
  0x31   : > { %1405 = vmatmul.bf16.vlgmr.msra.gmra.mxu1 %v2452_v41  ;;  %v2532_v37 = vor.u32 %v3123_v30, %v2529_v31  ;;  %v3129_v41 = vld [vmem:[%s3580_s10 + $0xcc] sm:$0xf0]  ;;  %v3142_v30 = vld [vmem:[%s3580_s10 + $0x134] sm:$0xf0]  ;;  %v3140_v31 = vld [vmem:[%s3580_s10 + $0x12c] sm:$0xf] }
  0x32   : > { %1574 = vmatmul.bf16.vlgmr.msra.gmra.mxu2 %v2456_v42  ;;  %v3127_v42 = vld [vmem:[%s3580_s10 + $0xc4] sm:$0xf]  ;;  %v2544_v48 = vor.u32 %v3129_v41, %v2543_v40 }
  0x33   : > { %1743 = vmatmul.bf16.vlgmr.msra.gmra.mxu3 %v2460_v43  ;;  %v2545_v43 = vld [vmem:[%s3580_s10 + $0xd0] sm:$0xf0]  ;;  %v3143_v58 = vld [vmem:[%s3580_s10 + $0x144] sm:$0xf] }
  0x34   : > { %v2548_v49 = vor.u32 %v3127_v42, %v2545_v43  ;;  %v2600_v42 = vor.u32 %v3142_v30, %v2599_v29  ;;  %v2604_v43 = vor.u32 %v3140_v31, %v2601_v32  ;;  %v2625_v29 = vld [vmem:[%s3580_s10 + $0x170] sm:$0xf0]  ;;  %v2631_v30 = vld [vmem:[%s3580_s10 + $0x168] sm:$0xf]  ;;  %v3150_v31 = vld [vmem:[%s3580_s10 + $0x174] sm:$0xf0] }
  0x35   : > { %v3148_v32 = vld [vmem:[%s3580_s10 + $0x16c] sm:$0xf] }
  0x40   : > { %1241 = vmatmul.bf16.gmra.mxu0 %v2464_v52  ;;  %v2559_v52 = vld [vmem:[%s3580_s10 + $0xe0] sm:$0xf] }
  0x41   : > { %1410 = vmatmul.bf16.gmra.mxu1 %v2468_v53  ;;  %v3133_v53 = vld [vmem:[%s3580_s10 + $0xec] sm:$0xf0] }
  0x42   : > { %1579 = vmatmul.bf16.gmra.mxu2 %v2472_v54  ;;  %v3131_v54 = vld [vmem:[%s3580_s10 + $0xe4] sm:$0xf]  ;;  %v2560_v60 = vor.u32 %v3133_v53, %v2559_v52 }
  0x43   : > { %1748 = vmatmul.bf16.gmra.mxu3 %v2476_v55  ;;  %v2561_v55 = vld [vmem:[%s3580_s10 + $0xf0] sm:$0xf0] }
  0x44   : > { %v2564_v61 = vor.u32 %v3131_v54, %v2561_v55 }
  0x50   : > { %1246 = vmatmul.bf16.gmra.mxu0 %v2480_v0  ;;  %v3667_v0 = vld [vmem:[%s4203_s2] ss:$0 sm:$0xff] }
  0x51   : > { %1415 = vmatmul.bf16.gmra.mxu1 %v2484_v1  ;;  %v2575_v1 = vld [vmem:[%s3580_s10 + $0x100] sm:$0xf] }
  0x52   : > { %1584 = vmatmul.bf16.gmra.mxu2 %v2488_v2  ;;  %v3137_v2 = vld [vmem:[%s3580_s10 + $0x10c] sm:$0xf0] }
  0x53   : > { %1753 = vmatmul.bf16.gmra.mxu3 %v2492_v3  ;;  %v3135_v3 = vld [vmem:[%s3580_s10 + $0x104] sm:$0xf]  ;;  %v2576_v9 = vor.u32 %v3137_v2, %v2575_v1  ;;  %v2617_v1 = vld [vmem:[%s3580_s10 + $0x158] sm:$0xf0] }
  0x54   : > { %v2580_v10 = vor.u32 %v3135_v3, %v2577_v4 }
  0x60   : > { %1251 = vmatmul.bf16.gmra.mxu0 %v2496_v12 }
  0x61   : > { %1420 = vmatmul.bf16.gmra.mxu1 %v2500_v13  ;;  %v2584_v13 = vor.u32 %v3138_v6, %v2583_v5  ;;  %v2608_v6 = vor.u32 %v3145_v57, %v2607_v56  ;;  %v2639_v57 = vld [vmem:[%s3580_s10 + $0x180] sm:$0xf] }
  0x62   : > { %1589 = vmatmul.bf16.gmra.mxu2 %v2504_v14  ;;  %v2588_v14 = vor.u32 %v3136_v7, %v2585_v8 }
  0x63   : > { %1758 = vmatmul.bf16.gmra.mxu3 %v2508_v15 }
  0x70   : > { %1256 = vmatmul.bf16.gmra.mxu0 %v2512_v24  ;;  %v2591_v24 = vld [vmem:[%s3580_s10 + $0x120] sm:$0xf] }
  0x71   : > { %1425 = vmatmul.bf16.gmra.mxu1 %v2516_v25  ;;  %v3141_v25 = vld [vmem:[%s3580_s10 + $0x12c] sm:$0xf0] }
  0x72   : > { %1594 = vmatmul.bf16.gmra.mxu2 %v2520_v26  ;;  %v3139_v26 = vld [vmem:[%s3580_s10 + $0x124] sm:$0xf] }
  0x73   : > { %1763 = vmatmul.bf16.gmra.mxu3 %v2524_v27 }
  0x80   : > { %1261 = vmatmul.bf16.gmra.mxu0 %v2528_v36 }
  0x81   : > { %1430 = vmatmul.bf16.gmra.mxu1 %v2532_v37  ;;  %v2592_v37 = vor.u32 %v3141_v25, %v2591_v24  ;;  %v2623_v25 = vld [vmem:[%s3580_s10 + $0x160] sm:$0xf] }
  0x82   : > { %1599 = vmatmul.bf16.gmra.mxu2 %v2536_v38  ;;  %v2596_v38 = vor.u32 %v3139_v26, %v2593_v28  ;;  %v3149_v26 = vld [vmem:[%s3580_s10 + $0x16c] sm:$0xf0] }
  0x83   : > { %1768 = vmatmul.bf16.gmra.mxu3 %v2540_v39 }
  0x90   : > { %1266 = vmatmul.bf16.gmra.mxu0 %v2544_v48 }
  0x91   : > { %1435 = vmatmul.bf16.gmra.mxu1 %v2548_v49 }
  0x92   : > { %1604 = vmatmul.bf16.gmra.mxu2 %v2552_v50 }
  0x93   : > { %1773 = vmatmul.bf16.gmra.mxu3 %v2556_v51 }
  0xa0   : > { %1271 = vmatmul.bf16.gmra.mxu0 %v2560_v60  ;;  %v2609_v60 = vld [vmem:[%s3580_s10 + $0x150] sm:$0xf0] }
  0xa1   : > { %1440 = vmatmul.bf16.gmra.mxu1 %v2564_v61  ;;  %v2615_v61 = vld [vmem:[%s3580_s10 + $0x148] sm:$0xf]  ;;  %v2612_v7 = vor.u32 %v3143_v58, %v2609_v60  ;;  %v3153_v58 = vld [vmem:[%s3580_s10 + $0x18c] sm:$0xf0] }
  0xa2   : > { %1609 = vmatmul.bf16.gmra.mxu2 %v2568_v62  ;;  %v3146_v62 = vld [vmem:[%s3580_s10 + $0x154] sm:$0xf0] }
  0xa3   : > { %1778 = vmatmul.bf16.gmra.mxu3 %v2572_v63  ;;  %v3144_v63 = vld [vmem:[%s3580_s10 + $0x14c] sm:$0xf] }
  0xad   : > { %v1237_v11 = vpop.f32.mrf.mxu0 }
  0xae   : > { %v1406_v12 = vpop.f32.mrf.mxu1  ;;  %v1238_v15 = vadd.f32 %v3667_v0, %v1237_v11  ;;  %v2616_v11 = vor.u32 %v3146_v62, %v2615_v61  ;;  %v2641_v61 = vld [vmem:[%s3580_s10 + $0x190] sm:$0xf0]  ;;  %v2647_v62 = vld [vmem:[%s3580_s10 + $0x188] sm:$0xf] }
  0xb0   : > { %1276 = vmatmul.bf16.gmra.mxu0 %v2576_v9  ;;  %v1407_v16 = vadd.f32 %v1406_v12, %v1238_v15  ;;  %v2620_v12 = vor.u32 %v3144_v63, %v2617_v1  ;;  %v3154_v63 = vld [vmem:[%s3580_s10 + $0x194] sm:$0xf0]  ;;  %v3152_v1 = vld [vmem:[%s3580_s10 + $0x18c] sm:$0xf] }
  0xb1   : > { %1445 = vmatmul.bf16.gmra.mxu1 %v2580_v10 }
  0xb2   : > { %1614 = vmatmul.bf16.gmra.mxu2 %v2584_v13 }
  0xb3   : > { %1783 = vmatmul.bf16.gmra.mxu3 %v2588_v14 }
  0xb5   : > { %v1575_v17 = vpop.f32.mrf.mxu2  ;;  %v1239_v20 = vpop.f32.mrf.mxu0 }
  0xb6   : > { %v1744_v18 = vpop.f32.mrf.mxu3  ;;  %v1576_v19 = vadd.f32 %v1575_v17, %v1407_v16  ;;  %v1408_v21 = vpop.f32.mrf.mxu1  ;;  %v1240_v23 = vadd.f32 %v3667_v0, %v1239_v20 }
  0xb8   : > { %v1745_v22 = vadd.f32 %v1744_v18, %v1576_v19  ;;  %v1409_v34 = vadd.f32 %v1408_v21, %v1240_v23 }
  0xba   : > { %v1904_v27 = vmax.f32 %v1745_v22, 0.0 }
  0xbc   : > { %v1968_v33 = vpack.c.bf16 %v1904_v27, %v1904_v27  ;;  %v3147_v27 = vld [vmem:[%s3580_s10 + $0x164] sm:$0xf] }
  0xbd   : > { %v1577_v35 = vpop.f32.mrf.mxu2  ;;  %v1242_v40 = vpop.f32.mrf.mxu0 }
  0xbe   : > { %v1746_v36 = vpop.f32.mrf.mxu3  ;;  %2033 = vst.msk [vmem:[%s3688_s12] sm:$0xf] %vm2032_vm0, %v1968_v33  ;;  %v1578_v39 = vadd.f32 %v1577_v35, %v1409_v34  ;;  %v1411_v41 = vpop.f32.mrf.mxu1  ;;  %v1243_v44 = vadd.f32 %v3667_v0, %v1242_v40  ;;  %v2633_v33 = vld [vmem:[%s3580_s10 + $0x178] sm:$0xf0] }
  0xc0   : > { %v1747_v45 = vadd.f32 %v1746_v36, %v1578_v39  ;;  %1281 = vmatmul.bf16.gmra.mxu0 %v2592_v37  ;;  %v1412_v47 = vadd.f32 %v1411_v41, %v1243_v44  ;;  %v2628_v39 = vor.u32 %v3147_v27, %v2625_v29  ;;  %v2636_v44 = vor.u32 %v3148_v32, %v2633_v33  ;;  %v3157_v27 = vld [vmem:[%s3580_s10 + $0x1ac] sm:$0xf0]  ;;  %v3158_v32 = vld [vmem:[%s3580_s10 + $0x1b4] sm:$0xf0]  ;;  %v3156_v33 = vld [vmem:[%s3580_s10 + $0x1ac] sm:$0xf] }
  0xc1   : > { %1450 = vmatmul.bf16.gmra.mxu1 %v2596_v38  ;;  %v2624_v38 = vor.u32 %v3149_v26, %v2623_v25  ;;  %v2655_v26 = vld [vmem:[%s3580_s10 + $0x1a0] sm:$0xf] }
  0xc2   : > { %v1905_v46 = vmax.f32 %v1747_v45, 0.0  ;;  %1619 = vmatmul.bf16.gmra.mxu2 %v2600_v42 }
  0xc3   : > { %1788 = vmatmul.bf16.gmra.mxu3 %v2604_v43  ;;  %v2632_v43 = vor.u32 %v3150_v31, %v2631_v30  ;;  %v2657_v30 = vld [vmem:[%s3580_s10 + $0x1b0] sm:$0xf0]  ;;  %v2663_v31 = vld [vmem:[%s3580_s10 + $0x1a8] sm:$0xf] }
  0xc4   : > { %v1969_v48 = vpack.c.bf16 %v1905_v46, %v1905_v46 }
  0xc5   : > { %v1580_v49 = vpop.f32.mrf.mxu2  ;;  %v1244_v52 = vpop.f32.mrf.mxu0 }
  0xc6   : > { %v1749_v50 = vpop.f32.mrf.mxu3  ;;  %2034 = vst.msk [vmem:[%s3688_s12 + $0x4] sm:$0xf] %vm2032_vm0, %v1969_v48  ;;  %v1581_v51 = vadd.f32 %v1580_v49, %v1412_v47  ;;  %v1413_v53 = vpop.f32.mrf.mxu1  ;;  %v1245_v55 = vadd.f32 %v3667_v0, %v1244_v52 }
  0xc8   : > { %v1750_v54 = vadd.f32 %v1749_v50, %v1581_v51  ;;  %v1414_v3 = vadd.f32 %v1413_v53, %v1245_v55 }
  0xca   : > { %v1906_v59 = vmax.f32 %v1750_v54, 0.0 }
  0xcc   : > { %v1970_v2 = vpack.c.bf16 %v1906_v59, %v1906_v59  ;;  %v3151_v59 = vld [vmem:[%s3580_s10 + $0x184] sm:$0xf] }
  0xcd   : > { %v1582_v4 = vpop.f32.mrf.mxu2  ;;  %v1247_v9 = vpop.f32.mrf.mxu0 }
  0xce   : > { %v1751_v5 = vpop.f32.mrf.mxu3  ;;  %2035 = vst.msk [vmem:[%s3688_s12 + $0x8] sm:$0xf] %vm2032_vm0, %v1970_v2  ;;  %v1583_v8 = vadd.f32 %v1582_v4, %v1414_v3  ;;  %v1416_v10 = vpop.f32.mrf.mxu1  ;;  %v1248_v13 = vadd.f32 %v3667_v0, %v1247_v9  ;;  %v2649_v2 = vld [vmem:[%s3580_s10 + $0x198] sm:$0xf0] }
  0xd0   : > { %v1752_v14 = vadd.f32 %v1751_v5, %v1583_v8  ;;  %1286 = vmatmul.bf16.gmra.mxu0 %v2608_v6  ;;  %v1417_v16 = vadd.f32 %v1416_v10, %v1248_v13  ;;  %v2644_v8 = vor.u32 %v3151_v59, %v2641_v61  ;;  %v2652_v13 = vor.u32 %v3152_v1, %v2649_v2  ;;  %v3161_v59 = vld [vmem:[%s3580_s10 + $0x1cc] sm:$0xf0]  ;;  %v3162_v1 = vld [vmem:[%s3580_s10 + $0x1d4] sm:$0xf0]  ;;  %v3160_v2 = vld [vmem:[%s3580_s10 + $0x1cc] sm:$0xf] }
  0xd1   : > { %1455 = vmatmul.bf16.gmra.mxu1 %v2612_v7  ;;  %v2640_v7 = vor.u32 %v3153_v58, %v2639_v57  ;;  %v2671_v58 = vld [vmem:[%s3580_s10 + $0x1c0] sm:$0xf] }
  0xd2   : > { %v1907_v15 = vmax.f32 %v1752_v14, 0.0  ;;  %1624 = vmatmul.bf16.gmra.mxu2 %v2616_v11 }
  0xd3   : > { %1793 = vmatmul.bf16.gmra.mxu3 %v2620_v12  ;;  %v2648_v12 = vor.u32 %v3154_v63, %v2647_v62  ;;  %v2673_v62 = vld [vmem:[%s3580_s10 + $0x1d0] sm:$0xf0]  ;;  %v2679_v63 = vld [vmem:[%s3580_s10 + $0x1c8] sm:$0xf] }
  0xd4   : > { %v1971_v17 = vpack.c.bf16 %v1907_v15, %v1907_v15 }
  0xd5   : > { %v1585_v18 = vpop.f32.mrf.mxu2  ;;  %v1249_v21 = vpop.f32.mrf.mxu0 }
  0xd6   : > { %v1754_v19 = vpop.f32.mrf.mxu3  ;;  %2036 = vst.msk [vmem:[%s3688_s12 + $0xc] sm:$0xf] %vm2032_vm0, %v1971_v17  ;;  %v1586_v20 = vadd.f32 %v1585_v18, %v1417_v16  ;;  %v1418_v22 = vpop.f32.mrf.mxu1  ;;  %v1250_v24 = vadd.f32 %v3667_v0, %v1249_v21 }
  0xd8   : > { %v1755_v23 = vadd.f32 %v1754_v19, %v1586_v20  ;;  %v1419_v35 = vadd.f32 %v1418_v22, %v1250_v24 }
  0xda   : > { %v1908_v28 = vmax.f32 %v1755_v23, 0.0 }
  0xdc   : > { %v1972_v34 = vpack.c.bf16 %v1908_v28, %v1908_v28  ;;  %v3155_v28 = vld [vmem:[%s3580_s10 + $0x1a4] sm:$0xf] }
  0xdd   : > { %v1587_v36 = vpop.f32.mrf.mxu2  ;;  %v1252_v41 = vpop.f32.mrf.mxu0 }
  0xde   : > { %v1756_v37 = vpop.f32.mrf.mxu3  ;;  %2037 = vst.msk [vmem:[%s3688_s12 + $0x10] sm:$0xf] %vm2032_vm0, %v1972_v34  ;;  %v1588_v40 = vadd.f32 %v1587_v36, %v1419_v35  ;;  %v1421_v42 = vpop.f32.mrf.mxu1  ;;  %v1253_v45 = vadd.f32 %v3667_v0, %v1252_v41  ;;  %v2665_v34 = vld [vmem:[%s3580_s10 + $0x1b8] sm:$0xf0] }
  0xe0   : > { %v1757_v46 = vadd.f32 %v1756_v37, %v1588_v40  ;;  %1291 = vmatmul.bf16.gmra.mxu0 %v2624_v38  ;;  %v1422_v48 = vadd.f32 %v1421_v42, %v1253_v45  ;;  %v2660_v40 = vor.u32 %v3155_v28, %v2657_v30  ;;  %v2668_v45 = vor.u32 %v3156_v33, %v2665_v34  ;;  %v3165_v28 = vld [vmem:[%s3580_s10 + $0x1ec] sm:$0xf0]  ;;  %v3166_v33 = vld [vmem:[%s3580_s10 + $0x1f4] sm:$0xf0]  ;;  %v3164_v34 = vld [vmem:[%s3580_s10 + $0x1ec] sm:$0xf] }
  0xe1   : > { %1460 = vmatmul.bf16.gmra.mxu1 %v2628_v39  ;;  %v2656_v39 = vor.u32 %v3157_v27, %v2655_v26  ;;  %v2687_v27 = vld [vmem:[%s3580_s10 + $0x1e0] sm:$0xf] }
  0xe2   : > { %v1909_v47 = vmax.f32 %v1757_v46, 0.0  ;;  %1629 = vmatmul.bf16.gmra.mxu2 %v2632_v43 }
  0xe3   : > { %1798 = vmatmul.bf16.gmra.mxu3 %v2636_v44  ;;  %v2664_v44 = vor.u32 %v3158_v32, %v2663_v31  ;;  %v2689_v31 = vld [vmem:[%s3580_s10 + $0x1f0] sm:$0xf0]  ;;  %v2695_v32 = vld [vmem:[%s3580_s10 + $0x1e8] sm:$0xf] }
  0xe4   : > { %v1973_v49 = vpack.c.bf16 %v1909_v47, %v1909_v47 }
  0xe5   : > { %v1590_v50 = vpop.f32.mrf.mxu2  ;;  %v1254_v53 = vpop.f32.mrf.mxu0 }
  0xe6   : > { %v1759_v51 = vpop.f32.mrf.mxu3  ;;  %2038 = vst.msk [vmem:[%s3688_s12 + $0x14] sm:$0xf] %vm2032_vm0, %v1973_v49  ;;  %v1591_v52 = vadd.f32 %v1590_v50, %v1422_v48  ;;  %v1423_v54 = vpop.f32.mrf.mxu1  ;;  %v1255_v56 = vadd.f32 %v3667_v0, %v1254_v53 }
  0xe8   : > { %v1760_v55 = vadd.f32 %v1759_v51, %v1591_v52  ;;  %v1424_v4 = vadd.f32 %v1423_v54, %v1255_v56 }
  0xea   : > { %v1910_v60 = vmax.f32 %v1760_v55, 0.0 }
  0xec   : > { %v1974_v3 = vpack.c.bf16 %v1910_v60, %v1910_v60  ;;  %v3159_v60 = vld [vmem:[%s3580_s10 + $0x1c4] sm:$0xf] }
  0xed   : > { %v1592_v5 = vpop.f32.mrf.mxu2  ;;  %v1257_v10 = vpop.f32.mrf.mxu0 }
  0xee   : > { %v1761_v6 = vpop.f32.mrf.mxu3  ;;  %2039 = vst.msk [vmem:[%s3688_s12 + $0x18] sm:$0xf] %vm2032_vm0, %v1974_v3  ;;  %v1593_v9 = vadd.f32 %v1592_v5, %v1424_v4  ;;  %v1426_v11 = vpop.f32.mrf.mxu1  ;;  %v1258_v14 = vadd.f32 %v3667_v0, %v1257_v10  ;;  %v2681_v3 = vld [vmem:[%s3580_s10 + $0x1d8] sm:$0xf0] }
  0xf0   : > { %v1762_v15 = vadd.f32 %v1761_v6, %v1593_v9  ;;  %1296 = vmatmul.bf16.gmra.mxu0 %v2640_v7  ;;  %v1427_v17 = vadd.f32 %v1426_v11, %v1258_v14  ;;  %v2676_v9 = vor.u32 %v3159_v60, %v2673_v62  ;;  %v2684_v14 = vor.u32 %v3160_v2, %v2681_v3  ;;  %v3169_v60 = vld [vmem:[%s3580_s10 + $0x20c] sm:$0xf0]  ;;  %v3170_v2 = vld [vmem:[%s3580_s10 + $0x214] sm:$0xf0]  ;;  %v3168_v3 = vld [vmem:[%s3580_s10 + $0x20c] sm:$0xf] }
  0xf1   : > { %1465 = vmatmul.bf16.gmra.mxu1 %v2644_v8  ;;  %v2672_v8 = vor.u32 %v3161_v59, %v2671_v58  ;;  %v2703_v59 = vld [vmem:[%s3580_s10 + $0x200] sm:$0xf] }
  0xf2   : > { %v1911_v16 = vmax.f32 %v1762_v15, 0.0  ;;  %1634 = vmatmul.bf16.gmra.mxu2 %v2648_v12 }
  0xf3   : > { %1803 = vmatmul.bf16.gmra.mxu3 %v2652_v13  ;;  %v2680_v13 = vor.u32 %v3162_v1, %v2679_v63  ;;  %v2705_v63 = vld [vmem:[%s3580_s10 + $0x210] sm:$0xf0]  ;;  %v2711_v1 = vld [vmem:[%s3580_s10 + $0x208] sm:$0xf] }
  0xf4   : > { %v1975_v18 = vpack.c.bf16 %v1911_v16, %v1911_v16 }
  0xf5   : > { %v1595_v19 = vpop.f32.mrf.mxu2  ;;  %v1259_v22 = vpop.f32.mrf.mxu0 }
  0xf6   : > { %v1764_v20 = vpop.f32.mrf.mxu3  ;;  %2040 = vst.msk [vmem:[%s3688_s12 + $0x1c] sm:$0xf] %vm2032_vm0, %v1975_v18  ;;  %v1596_v21 = vadd.f32 %v1595_v19, %v1427_v17  ;;  %v1428_v23 = vpop.f32.mrf.mxu1  ;;  %v1260_v25 = vadd.f32 %v3667_v0, %v1259_v22 }
  0xf8   : > { %v1765_v24 = vadd.f32 %v1764_v20, %v1596_v21  ;;  %v1429_v36 = vadd.f32 %v1428_v23, %v1260_v25 }
  0xfa   : > { %v1912_v29 = vmax.f32 %v1765_v24, 0.0 }
  0xfc   : > { %v1976_v35 = vpack.c.bf16 %v1912_v29, %v1912_v29  ;;  %v3163_v29 = vld [vmem:[%s3580_s10 + $0x1e4] sm:$0xf] }
  0xfd   : > { %v1597_v37 = vpop.f32.mrf.mxu2  ;;  %v1262_v42 = vpop.f32.mrf.mxu0 }
  0xfe   : > { %v1766_v38 = vpop.f32.mrf.mxu3  ;;  %2041 = vst.msk [vmem:[%s3688_s12 + $0x20] sm:$0xf] %vm2032_vm0, %v1976_v35  ;;  %v1598_v41 = vadd.f32 %v1597_v37, %v1429_v36  ;;  %v1431_v43 = vpop.f32.mrf.mxu1  ;;  %v1263_v46 = vadd.f32 %v3667_v0, %v1262_v42  ;;  %v2697_v35 = vld [vmem:[%s3580_s10 + $0x1f8] sm:$0xf0] }
 0x100   : > { %v1767_v47 = vadd.f32 %v1766_v38, %v1598_v41  ;;  %1301 = vmatmul.bf16.gmra.mxu0 %v2656_v39  ;;  %v1432_v49 = vadd.f32 %v1431_v43, %v1263_v46  ;;  %v2692_v41 = vor.u32 %v3163_v29, %v2689_v31  ;;  %v2700_v46 = vor.u32 %v3164_v34, %v2697_v35  ;;  %v3173_v29 = vld [vmem:[%s3580_s10 + $0x22c] sm:$0xf0]  ;;  %v3174_v34 = vld [vmem:[%s3580_s10 + $0x234] sm:$0xf0]  ;;  %v3172_v35 = vld [vmem:[%s3580_s10 + $0x22c] sm:$0xf] }
 0x101   : > { %1470 = vmatmul.bf16.gmra.mxu1 %v2660_v40  ;;  %v2688_v40 = vor.u32 %v3165_v28, %v2687_v27  ;;  %v2719_v28 = vld [vmem:[%s3580_s10 + $0x220] sm:$0xf] }
 0x102   : > { %v1913_v48 = vmax.f32 %v1767_v47, 0.0  ;;  %1639 = vmatmul.bf16.gmra.mxu2 %v2664_v44 }
 0x103   : > { %1808 = vmatmul.bf16.gmra.mxu3 %v2668_v45  ;;  %v2696_v45 = vor.u32 %v3166_v33, %v2695_v32  ;;  %v2721_v32 = vld [vmem:[%s3580_s10 + $0x230] sm:$0xf0]  ;;  %v2727_v33 = vld [vmem:[%s3580_s10 + $0x228] sm:$0xf] }
 0x104   : > { %v1977_v50 = vpack.c.bf16 %v1913_v48, %v1913_v48 }
 0x105   : > { %v1600_v51 = vpop.f32.mrf.mxu2  ;;  %v1264_v54 = vpop.f32.mrf.mxu0 }
 0x106   : > { %v1769_v52 = vpop.f32.mrf.mxu3  ;;  %2042 = vst.msk [vmem:[%s3688_s12 + $0x24] sm:$0xf] %vm2032_vm0, %v1977_v50  ;;  %v1601_v53 = vadd.f32 %v1600_v51, %v1432_v49  ;;  %v1433_v55 = vpop.f32.mrf.mxu1  ;;  %v1265_v57 = vadd.f32 %v3667_v0, %v1264_v54 }
 0x108   : > { %v1770_v56 = vadd.f32 %v1769_v52, %v1601_v53  ;;  %v1434_v5 = vadd.f32 %v1433_v55, %v1265_v57 }
 0x10a   : > { %v1914_v61 = vmax.f32 %v1770_v56, 0.0 }
 0x10c   : > { %v1978_v4 = vpack.c.bf16 %v1914_v61, %v1914_v61  ;;  %v3167_v61 = vld [vmem:[%s3580_s10 + $0x204] sm:$0xf] }
 0x10d   : > { %v1602_v6 = vpop.f32.mrf.mxu2  ;;  %v1267_v11 = vpop.f32.mrf.mxu0 }
 0x10e   : > { %v1771_v7 = vpop.f32.mrf.mxu3  ;;  %2043 = vst.msk [vmem:[%s3688_s12 + $0x28] sm:$0xf] %vm2032_vm0, %v1978_v4  ;;  %v1603_v10 = vadd.f32 %v1602_v6, %v1434_v5  ;;  %v1436_v12 = vpop.f32.mrf.mxu1  ;;  %v1268_v15 = vadd.f32 %v3667_v0, %v1267_v11  ;;  %v2713_v4 = vld [vmem:[%s3580_s10 + $0x218] sm:$0xf0] }
 0x110   : > { %v1772_v16 = vadd.f32 %v1771_v7, %v1603_v10  ;;  %1306 = vmatmul.bf16.gmra.mxu0 %v2672_v8  ;;  %v1437_v18 = vadd.f32 %v1436_v12, %v1268_v15  ;;  %v2708_v10 = vor.u32 %v3167_v61, %v2705_v63  ;;  %v2716_v15 = vor.u32 %v3168_v3, %v2713_v4  ;;  %v3177_v61 = vld [vmem:[%s3580_s10 + $0x24c] sm:$0xf0]  ;;  %v3178_v3 = vld [vmem:[%s3580_s10 + $0x254] sm:$0xf0]  ;;  %v3176_v4 = vld [vmem:[%s3580_s10 + $0x24c] sm:$0xf] }
 0x111   : > { %1475 = vmatmul.bf16.gmra.mxu1 %v2676_v9  ;;  %v2704_v9 = vor.u32 %v3169_v60, %v2703_v59  ;;  %v2735_v60 = vld [vmem:[%s3580_s10 + $0x240] sm:$0xf] }
 0x112   : > { %v1915_v17 = vmax.f32 %v1772_v16, 0.0  ;;  %1644 = vmatmul.bf16.gmra.mxu2 %v2680_v13 }
 0x113   : > { %1813 = vmatmul.bf16.gmra.mxu3 %v2684_v14  ;;  %v2712_v14 = vor.u32 %v3170_v2, %v2711_v1  ;;  %v2737_v1 = vld [vmem:[%s3580_s10 + $0x250] sm:$0xf0]  ;;  %v2743_v2 = vld [vmem:[%s3580_s10 + $0x248] sm:$0xf] }
 0x114   : > { %v1979_v19 = vpack.c.bf16 %v1915_v17, %v1915_v17 }
 0x115   : > { %v1605_v20 = vpop.f32.mrf.mxu2  ;;  %v1269_v23 = vpop.f32.mrf.mxu0 }
 0x116   : > { %v1774_v21 = vpop.f32.mrf.mxu3  ;;  %2044 = vst.msk [vmem:[%s3688_s12 + $0x2c] sm:$0xf] %vm2032_vm0, %v1979_v19  ;;  %v1606_v22 = vadd.f32 %v1605_v20, %v1437_v18  ;;  %v1438_v24 = vpop.f32.mrf.mxu1  ;;  %v1270_v26 = vadd.f32 %v3667_v0, %v1269_v23 }
 0x118   : > { %v1775_v25 = vadd.f32 %v1774_v21, %v1606_v22  ;;  %v1439_v37 = vadd.f32 %v1438_v24, %v1270_v26 }
 0x11a   : > { %v1916_v30 = vmax.f32 %v1775_v25, 0.0 }
 0x11c   : > { %v1980_v36 = vpack.c.bf16 %v1916_v30, %v1916_v30  ;;  %v3171_v30 = vld [vmem:[%s3580_s10 + $0x224] sm:$0xf] }
 0x11d   : > { %v1607_v38 = vpop.f32.mrf.mxu2  ;;  %v1272_v43 = vpop.f32.mrf.mxu0 }
 0x11e   : > { %v1776_v39 = vpop.f32.mrf.mxu3  ;;  %2045 = vst.msk [vmem:[%s3688_s12 + $0x30] sm:$0xf] %vm2032_vm0, %v1980_v36  ;;  %v1608_v42 = vadd.f32 %v1607_v38, %v1439_v37  ;;  %v1441_v44 = vpop.f32.mrf.mxu1  ;;  %v1273_v47 = vadd.f32 %v3667_v0, %v1272_v43  ;;  %v2729_v36 = vld [vmem:[%s3580_s10 + $0x238] sm:$0xf0] }
 0x120   : > { %v1777_v48 = vadd.f32 %v1776_v39, %v1608_v42  ;;  %1311 = vmatmul.bf16.gmra.mxu0 %v2688_v40  ;;  %v1442_v50 = vadd.f32 %v1441_v44, %v1273_v47  ;;  %v2724_v42 = vor.u32 %v3171_v30, %v2721_v32  ;;  %v2732_v47 = vor.u32 %v3172_v35, %v2729_v36  ;;  %v3181_v30 = vld [vmem:[%s3580_s10 + $0x26c] sm:$0xf0]  ;;  %v3182_v35 = vld [vmem:[%s3580_s10 + $0x274] sm:$0xf0]  ;;  %v3180_v36 = vld [vmem:[%s3580_s10 + $0x26c] sm:$0xf] }
 0x121   : > { %1480 = vmatmul.bf16.gmra.mxu1 %v2692_v41  ;;  %v2720_v41 = vor.u32 %v3173_v29, %v2719_v28  ;;  %v2751_v29 = vld [vmem:[%s3580_s10 + $0x260] sm:$0xf] }
 0x122   : > { %v1917_v49 = vmax.f32 %v1777_v48, 0.0  ;;  %1649 = vmatmul.bf16.gmra.mxu2 %v2696_v45 }
 0x123   : > { %1818 = vmatmul.bf16.gmra.mxu3 %v2700_v46  ;;  %v2728_v46 = vor.u32 %v3174_v34, %v2727_v33  ;;  %v2753_v33 = vld [vmem:[%s3580_s10 + $0x270] sm:$0xf0]  ;;  %v2759_v34 = vld [vmem:[%s3580_s10 + $0x268] sm:$0xf] }
 0x124   : > { %v1981_v51 = vpack.c.bf16 %v1917_v49, %v1917_v49 }
 0x125   : > { %v1610_v52 = vpop.f32.mrf.mxu2  ;;  %v1274_v55 = vpop.f32.mrf.mxu0 }
 0x126   : > { %v1779_v53 = vpop.f32.mrf.mxu3  ;;  %2046 = vst.msk [vmem:[%s3688_s12 + $0x34] sm:$0xf] %vm2032_vm0, %v1981_v51  ;;  %v1611_v54 = vadd.f32 %v1610_v52, %v1442_v50  ;;  %v1443_v56 = vpop.f32.mrf.mxu1  ;;  %v1275_v58 = vadd.f32 %v3667_v0, %v1274_v55 }
 0x128   : > { %v1780_v57 = vadd.f32 %v1779_v53, %v1611_v54  ;;  %v1444_v6 = vadd.f32 %v1443_v56, %v1275_v58 }
 0x12a   : > { %v1918_v62 = vmax.f32 %v1780_v57, 0.0 }
 0x12c   : > { %v1982_v5 = vpack.c.bf16 %v1918_v62, %v1918_v62  ;;  %v3175_v62 = vld [vmem:[%s3580_s10 + $0x244] sm:$0xf] }
 0x12d   : > { %v1612_v7 = vpop.f32.mrf.mxu2  ;;  %v1277_v12 = vpop.f32.mrf.mxu0 }
 0x12e   : > { %v1781_v8 = vpop.f32.mrf.mxu3  ;;  %2047 = vst.msk [vmem:[%s3688_s12 + $0x38] sm:$0xf] %vm2032_vm0, %v1982_v5  ;;  %v1613_v11 = vadd.f32 %v1612_v7, %v1444_v6  ;;  %v1446_v13 = vpop.f32.mrf.mxu1  ;;  %v1278_v16 = vadd.f32 %v3667_v0, %v1277_v12  ;;  %v2745_v5 = vld [vmem:[%s3580_s10 + $0x258] sm:$0xf0] }
 0x130   : > { %v1782_v17 = vadd.f32 %v1781_v8, %v1613_v11  ;;  %1316 = vmatmul.bf16.gmra.mxu0 %v2704_v9  ;;  %v1447_v19 = vadd.f32 %v1446_v13, %v1278_v16  ;;  %v2740_v11 = vor.u32 %v3175_v62, %v2737_v1  ;;  %v2748_v16 = vor.u32 %v3176_v4, %v2745_v5  ;;  %v3185_v62 = vld [vmem:[%s3580_s10 + $0x28c] sm:$0xf0]  ;;  %v3186_v4 = vld [vmem:[%s3580_s10 + $0x294] sm:$0xf0]  ;;  %v3184_v5 = vld [vmem:[%s3580_s10 + $0x28c] sm:$0xf] }
 0x131   : > { %1485 = vmatmul.bf16.gmra.mxu1 %v2708_v10  ;;  %v2736_v10 = vor.u32 %v3177_v61, %v2735_v60  ;;  %v2767_v61 = vld [vmem:[%s3580_s10 + $0x280] sm:$0xf] }
 0x132   : > { %v1919_v18 = vmax.f32 %v1782_v17, 0.0  ;;  %1654 = vmatmul.bf16.gmra.mxu2 %v2712_v14 }
 0x133   : > { %1823 = vmatmul.bf16.gmra.mxu3 %v2716_v15  ;;  %v2744_v15 = vor.u32 %v3178_v3, %v2743_v2  ;;  %v2769_v2 = vld [vmem:[%s3580_s10 + $0x290] sm:$0xf0]  ;;  %v2775_v3 = vld [vmem:[%s3580_s10 + $0x288] sm:$0xf] }
 0x134   : > { %v1983_v20 = vpack.c.bf16 %v1919_v18, %v1919_v18 }
 0x135   : > { %v1615_v21 = vpop.f32.mrf.mxu2  ;;  %v1279_v24 = vpop.f32.mrf.mxu0 }
 0x136   : > { %v1784_v22 = vpop.f32.mrf.mxu3  ;;  %2048 = vst.msk [vmem:[%s3688_s12 + $0x3c] sm:$0xf] %vm2032_vm0, %v1983_v20  ;;  %v1616_v23 = vadd.f32 %v1615_v21, %v1447_v19  ;;  %v1448_v25 = vpop.f32.mrf.mxu1  ;;  %v1280_v27 = vadd.f32 %v3667_v0, %v1279_v24 }
 0x138   : > { %v1785_v26 = vadd.f32 %v1784_v22, %v1616_v23  ;;  %v1449_v38 = vadd.f32 %v1448_v25, %v1280_v27 }
 0x13a   : > { %v1920_v31 = vmax.f32 %v1785_v26, 0.0 }
 0x13c   : > { %v1984_v37 = vpack.c.bf16 %v1920_v31, %v1920_v31  ;;  %v3179_v31 = vld [vmem:[%s3580_s10 + $0x264] sm:$0xf] }
 0x13d   : > { %v1617_v39 = vpop.f32.mrf.mxu2  ;;  %v1282_v44 = vpop.f32.mrf.mxu0 }
 0x13e   : > { %v1786_v40 = vpop.f32.mrf.mxu3  ;;  %2049 = vst.msk [vmem:[%s3688_s12 + $0x40] sm:$0xf] %vm2032_vm0, %v1984_v37  ;;  %v1618_v43 = vadd.f32 %v1617_v39, %v1449_v38  ;;  %v1451_v45 = vpop.f32.mrf.mxu1  ;;  %v1283_v48 = vadd.f32 %v3667_v0, %v1282_v44  ;;  %v2761_v37 = vld [vmem:[%s3580_s10 + $0x278] sm:$0xf0] }
 0x140   : > { %v1787_v49 = vadd.f32 %v1786_v40, %v1618_v43  ;;  %1321 = vmatmul.bf16.gmra.mxu0 %v2720_v41  ;;  %v1452_v51 = vadd.f32 %v1451_v45, %v1283_v48  ;;  %v2756_v43 = vor.u32 %v3179_v31, %v2753_v33  ;;  %v2764_v48 = vor.u32 %v3180_v36, %v2761_v37  ;;  %v3189_v31 = vld [vmem:[%s3580_s10 + $0x2ac] sm:$0xf0]  ;;  %v3190_v36 = vld [vmem:[%s3580_s10 + $0x2b4] sm:$0xf0]  ;;  %v3188_v37 = vld [vmem:[%s3580_s10 + $0x2ac] sm:$0xf] }
 0x141   : > { %1490 = vmatmul.bf16.gmra.mxu1 %v2724_v42  ;;  %v2752_v42 = vor.u32 %v3181_v30, %v2751_v29  ;;  %v2783_v30 = vld [vmem:[%s3580_s10 + $0x2a0] sm:$0xf] }
 0x142   : > { %v1921_v50 = vmax.f32 %v1787_v49, 0.0  ;;  %1659 = vmatmul.bf16.gmra.mxu2 %v2728_v46 }
 0x143   : > { %1828 = vmatmul.bf16.gmra.mxu3 %v2732_v47  ;;  %v2760_v47 = vor.u32 %v3182_v35, %v2759_v34  ;;  %v2785_v34 = vld [vmem:[%s3580_s10 + $0x2b0] sm:$0xf0]  ;;  %v2791_v35 = vld [vmem:[%s3580_s10 + $0x2a8] sm:$0xf] }
 0x144   : > { %v1985_v52 = vpack.c.bf16 %v1921_v50, %v1921_v50 }
 0x145   : > { %v1620_v53 = vpop.f32.mrf.mxu2  ;;  %v1284_v56 = vpop.f32.mrf.mxu0 }
 0x146   : > { %v1789_v54 = vpop.f32.mrf.mxu3  ;;  %2050 = vst.msk [vmem:[%s3688_s12 + $0x44] sm:$0xf] %vm2032_vm0, %v1985_v52  ;;  %v1621_v55 = vadd.f32 %v1620_v53, %v1452_v51  ;;  %v1453_v57 = vpop.f32.mrf.mxu1  ;;  %v1285_v59 = vadd.f32 %v3667_v0, %v1284_v56 }
 0x148   : > { %v1790_v58 = vadd.f32 %v1789_v54, %v1621_v55  ;;  %v1454_v7 = vadd.f32 %v1453_v57, %v1285_v59 }
 0x14a   : > { %v1922_v63 = vmax.f32 %v1790_v58, 0.0 }
 0x14c   : > { %v1986_v6 = vpack.c.bf16 %v1922_v63, %v1922_v63  ;;  %v3183_v63 = vld [vmem:[%s3580_s10 + $0x284] sm:$0xf] }
 0x14d   : > { %v1622_v8 = vpop.f32.mrf.mxu2  ;;  %v1287_v13 = vpop.f32.mrf.mxu0 }
 0x14e   : > { %v1791_v9 = vpop.f32.mrf.mxu3  ;;  %2051 = vst.msk [vmem:[%s3688_s12 + $0x48] sm:$0xf] %vm2032_vm0, %v1986_v6  ;;  %v1623_v12 = vadd.f32 %v1622_v8, %v1454_v7  ;;  %v1456_v14 = vpop.f32.mrf.mxu1  ;;  %v1288_v17 = vadd.f32 %v3667_v0, %v1287_v13  ;;  %v2777_v6 = vld [vmem:[%s3580_s10 + $0x298] sm:$0xf0] }
 0x150   : > { %v1792_v18 = vadd.f32 %v1791_v9, %v1623_v12  ;;  %1326 = vmatmul.bf16.gmra.mxu0 %v2736_v10  ;;  %v1457_v20 = vadd.f32 %v1456_v14, %v1288_v17  ;;  %v2772_v12 = vor.u32 %v3183_v63, %v2769_v2  ;;  %v2780_v17 = vor.u32 %v3184_v5, %v2777_v6  ;;  %v3193_v63 = vld [vmem:[%s3580_s10 + $0x2cc] sm:$0xf0]  ;;  %v3194_v5 = vld [vmem:[%s3580_s10 + $0x2d4] sm:$0xf0]  ;;  %v3192_v6 = vld [vmem:[%s3580_s10 + $0x2cc] sm:$0xf] }
 0x151   : > { %1495 = vmatmul.bf16.gmra.mxu1 %v2740_v11  ;;  %v2768_v11 = vor.u32 %v3185_v62, %v2767_v61  ;;  %v2799_v62 = vld [vmem:[%s3580_s10 + $0x2c0] sm:$0xf] }
 0x152   : > { %v1923_v19 = vmax.f32 %v1792_v18, 0.0  ;;  %1664 = vmatmul.bf16.gmra.mxu2 %v2744_v15 }
 0x153   : > { %1833 = vmatmul.bf16.gmra.mxu3 %v2748_v16  ;;  %v2776_v16 = vor.u32 %v3186_v4, %v2775_v3  ;;  %v2801_v3 = vld [vmem:[%s3580_s10 + $0x2d0] sm:$0xf0]  ;;  %v2807_v4 = vld [vmem:[%s3580_s10 + $0x2c8] sm:$0xf] }
 0x154   : > { %v1987_v21 = vpack.c.bf16 %v1923_v19, %v1923_v19 }
 0x155   : > { %v1625_v22 = vpop.f32.mrf.mxu2  ;;  %v1289_v25 = vpop.f32.mrf.mxu0 }
 0x156   : > { %v1794_v23 = vpop.f32.mrf.mxu3  ;;  %2052 = vst.msk [vmem:[%s3688_s12 + $0x4c] sm:$0xf] %vm2032_vm0, %v1987_v21  ;;  %v1626_v24 = vadd.f32 %v1625_v22, %v1457_v20  ;;  %v1458_v26 = vpop.f32.mrf.mxu1  ;;  %v1290_v28 = vadd.f32 %v3667_v0, %v1289_v25 }
 0x158   : > { %v1795_v27 = vadd.f32 %v1794_v23, %v1626_v24  ;;  %v1459_v39 = vadd.f32 %v1458_v26, %v1290_v28 }
 0x15a   : > { %v1924_v32 = vmax.f32 %v1795_v27, 0.0 }
 0x15c   : > { %v1988_v38 = vpack.c.bf16 %v1924_v32, %v1924_v32  ;;  %v3187_v32 = vld [vmem:[%s3580_s10 + $0x2a4] sm:$0xf] }
 0x15d   : > { %v1627_v40 = vpop.f32.mrf.mxu2  ;;  %v1292_v45 = vpop.f32.mrf.mxu0 }
 0x15e   : > { %v1796_v41 = vpop.f32.mrf.mxu3  ;;  %2053 = vst.msk [vmem:[%s3688_s12 + $0x50] sm:$0xf] %vm2032_vm0, %v1988_v38  ;;  %v1628_v44 = vadd.f32 %v1627_v40, %v1459_v39  ;;  %v1461_v46 = vpop.f32.mrf.mxu1  ;;  %v1293_v49 = vadd.f32 %v3667_v0, %v1292_v45  ;;  %v2793_v38 = vld [vmem:[%s3580_s10 + $0x2b8] sm:$0xf0] }
 0x160   : > { %v1797_v50 = vadd.f32 %v1796_v41, %v1628_v44  ;;  %1331 = vmatmul.bf16.gmra.mxu0 %v2752_v42  ;;  %v1462_v52 = vadd.f32 %v1461_v46, %v1293_v49  ;;  %v2788_v44 = vor.u32 %v3187_v32, %v2785_v34  ;;  %v2796_v49 = vor.u32 %v3188_v37, %v2793_v38  ;;  %v3197_v32 = vld [vmem:[%s3580_s10 + $0x2ec] sm:$0xf0]  ;;  %v3198_v37 = vld [vmem:[%s3580_s10 + $0x2f4] sm:$0xf0]  ;;  %v3196_v38 = vld [vmem:[%s3580_s10 + $0x2ec] sm:$0xf] }
 0x161   : > { %1500 = vmatmul.bf16.gmra.mxu1 %v2756_v43  ;;  %v2784_v43 = vor.u32 %v3189_v31, %v2783_v30  ;;  %v2815_v31 = vld [vmem:[%s3580_s10 + $0x2e0] sm:$0xf] }
 0x162   : > { %v1925_v51 = vmax.f32 %v1797_v50, 0.0  ;;  %1669 = vmatmul.bf16.gmra.mxu2 %v2760_v47 }
 0x163   : > { %1838 = vmatmul.bf16.gmra.mxu3 %v2764_v48  ;;  %v2792_v48 = vor.u32 %v3190_v36, %v2791_v35  ;;  %v2817_v35 = vld [vmem:[%s3580_s10 + $0x2f0] sm:$0xf0]  ;;  %v2823_v36 = vld [vmem:[%s3580_s10 + $0x2e8] sm:$0xf] }
 0x164   : > { %v1989_v53 = vpack.c.bf16 %v1925_v51, %v1925_v51 }
 0x165   : > { %v1630_v54 = vpop.f32.mrf.mxu2  ;;  %v1294_v57 = vpop.f32.mrf.mxu0 }
 0x166   : > { %v1799_v55 = vpop.f32.mrf.mxu3  ;;  %2054 = vst.msk [vmem:[%s3688_s12 + $0x54] sm:$0xf] %vm2032_vm0, %v1989_v53  ;;  %v1631_v56 = vadd.f32 %v1630_v54, %v1462_v52  ;;  %v1463_v58 = vpop.f32.mrf.mxu1  ;;  %v1295_v60 = vadd.f32 %v3667_v0, %v1294_v57 }
 0x168   : > { %v1800_v59 = vadd.f32 %v1799_v55, %v1631_v56  ;;  %v1464_v8 = vadd.f32 %v1463_v58, %v1295_v60  ;;  %v3866_v60 = vld [vmem:[%s4203_s2] ss:$0 sm:$0xff] }
 0x16a   : > { %v1926_v1 = vmax.f32 %v1800_v59, 0.0 }
 0x16c   : > { %v1990_v7 = vpack.c.bf16 %v1926_v1, %v1926_v1  ;;  %v3191_v1 = vld [vmem:[%s3580_s10 + $0x2c4] sm:$0xf] }
 0x16d   : > { %v1632_v9 = vpop.f32.mrf.mxu2  ;;  %v1297_v14 = vpop.f32.mrf.mxu0 }
 0x16e   : > { %v1801_v10 = vpop.f32.mrf.mxu3  ;;  %2055 = vst.msk [vmem:[%s3688_s12 + $0x58] sm:$0xf] %vm2032_vm0, %v1990_v7  ;;  %v1633_v13 = vadd.f32 %v1632_v9, %v1464_v8  ;;  %v1466_v15 = vpop.f32.mrf.mxu1  ;;  %v1298_v18 = vadd.f32 %v3667_v0, %v1297_v14  ;;  %v2809_v7 = vld [vmem:[%s3580_s10 + $0x2d8] sm:$0xf0] }
 0x170   : > { %v1802_v19 = vadd.f32 %v1801_v10, %v1633_v13  ;;  %1336 = vmatmul.bf16.gmra.mxu0 %v2768_v11  ;;  %v1467_v21 = vadd.f32 %v1466_v15, %v1298_v18  ;;  %v2804_v13 = vor.u32 %v3191_v1, %v2801_v3  ;;  %v2812_v18 = vor.u32 %v3192_v6, %v2809_v7  ;;  %v3201_v1 = vld [vmem:[%s3580_s10 + $0x30c] sm:$0xf0]  ;;  %v3202_v6 = vld [vmem:[%s3580_s10 + $0x314] sm:$0xf0]  ;;  %v3200_v7 = vld [vmem:[%s3580_s10 + $0x30c] sm:$0xf] }
 0x171   : > { %1505 = vmatmul.bf16.gmra.mxu1 %v2772_v12  ;;  %v2800_v12 = vor.u32 %v3193_v63, %v2799_v62  ;;  %v2831_v63 = vld [vmem:[%s3580_s10 + $0x300] sm:$0xf] }
 0x172   : > { %v1927_v20 = vmax.f32 %v1802_v19, 0.0  ;;  %1674 = vmatmul.bf16.gmra.mxu2 %v2776_v16 }
 0x173   : > { %1843 = vmatmul.bf16.gmra.mxu3 %v2780_v17  ;;  %v2808_v17 = vor.u32 %v3194_v5, %v2807_v4  ;;  %v2833_v4 = vld [vmem:[%s3580_s10 + $0x310] sm:$0xf0]  ;;  %v2839_v5 = vld [vmem:[%s3580_s10 + $0x308] sm:$0xf] }
 0x174   : > { %v1991_v22 = vpack.c.bf16 %v1927_v20, %v1927_v20 }
 0x175   : > { %v1635_v23 = vpop.f32.mrf.mxu2  ;;  %v1299_v26 = vpop.f32.mrf.mxu0 }
 0x176   : > { %v1804_v24 = vpop.f32.mrf.mxu3  ;;  %2056 = vst.msk [vmem:[%s3688_s12 + $0x5c] sm:$0xf] %vm2032_vm0, %v1991_v22  ;;  %v1636_v25 = vadd.f32 %v1635_v23, %v1467_v21  ;;  %v1468_v27 = vpop.f32.mrf.mxu1  ;;  %v1300_v29 = vadd.f32 %v3667_v0, %v1299_v26 }
 0x178   : > { %v1805_v28 = vadd.f32 %v1804_v24, %v1636_v25  ;;  %v1469_v40 = vadd.f32 %v1468_v27, %v1300_v29 }
 0x17a   : > { %v1928_v33 = vmax.f32 %v1805_v28, 0.0 }
 0x17c   : > { %v1992_v39 = vpack.c.bf16 %v1928_v33, %v1928_v33  ;;  %v3195_v33 = vld [vmem:[%s3580_s10 + $0x2e4] sm:$0xf] }
 0x17d   : > { %v1637_v41 = vpop.f32.mrf.mxu2  ;;  %v1302_v46 = vpop.f32.mrf.mxu0 }
 0x17e   : > { %v1806_v42 = vpop.f32.mrf.mxu3  ;;  %2057 = vst.msk [vmem:[%s3688_s12 + $0x60] sm:$0xf] %vm2032_vm0, %v1992_v39  ;;  %v1638_v45 = vadd.f32 %v1637_v41, %v1469_v40  ;;  %v1471_v47 = vpop.f32.mrf.mxu1  ;;  %v1303_v50 = vadd.f32 %v3667_v0, %v1302_v46  ;;  %v2825_v39 = vld [vmem:[%s3580_s10 + $0x2f8] sm:$0xf0] }
 0x180   : > { %v1807_v51 = vadd.f32 %v1806_v42, %v1638_v45  ;;  %1341 = vmatmul.bf16.gmra.mxu0 %v2784_v43  ;;  %v1472_v53 = vadd.f32 %v1471_v47, %v1303_v50  ;;  %v2820_v45 = vor.u32 %v3195_v33, %v2817_v35  ;;  %v2828_v50 = vor.u32 %v3196_v38, %v2825_v39  ;;  %v3205_v33 = vld [vmem:[%s3580_s10 + $0x32c] sm:$0xf0]  ;;  %v3206_v38 = vld [vmem:[%s3580_s10 + $0x334] sm:$0xf0]  ;;  %v3204_v39 = vld [vmem:[%s3580_s10 + $0x32c] sm:$0xf] }
 0x181   : > { %1510 = vmatmul.bf16.gmra.mxu1 %v2788_v44  ;;  %v2816_v44 = vor.u32 %v3197_v32, %v2815_v31  ;;  %v2847_v32 = vld [vmem:[%s3580_s10 + $0x320] sm:$0xf] }
 0x182   : > { %v1929_v52 = vmax.f32 %v1807_v51, 0.0  ;;  %1679 = vmatmul.bf16.gmra.mxu2 %v2792_v48 }
 0x183   : > { %1848 = vmatmul.bf16.gmra.mxu3 %v2796_v49  ;;  %v2824_v49 = vor.u32 %v3198_v37, %v2823_v36  ;;  %v2849_v36 = vld [vmem:[%s3580_s10 + $0x330] sm:$0xf0]  ;;  %v2855_v37 = vld [vmem:[%s3580_s10 + $0x328] sm:$0xf] }
 0x184   : > { %v1993_v54 = vpack.c.bf16 %v1929_v52, %v1929_v52 }
 0x185   : > { %v1640_v55 = vpop.f32.mrf.mxu2  ;;  %v1304_v57 = vpop.f32.mrf.mxu0 }
 0x186   : > { %v1809_v56 = vpop.f32.mrf.mxu3  ;;  %2058 = vst.msk [vmem:[%s3688_s12 + $0x64] sm:$0xf] %vm2032_vm0, %v1993_v54  ;;  %v1641_v0 = vadd.f32 %v1640_v55, %v1472_v53  ;;  %v1473_v58 = vpop.f32.mrf.mxu1  ;;  %v1305_v61 = vadd.f32 %v3866_v60, %v1304_v57 }
 0x188   : > { %v1810_v59 = vadd.f32 %v1809_v56, %v1641_v0  ;;  %v1474_v9 = vadd.f32 %v1473_v58, %v1305_v61 }
 0x18a   : > { %v1930_v2 = vmax.f32 %v1810_v59, 0.0 }
 0x18c   : > { %v1994_v8 = vpack.c.bf16 %v1930_v2, %v1930_v2  ;;  %v3199_v2 = vld [vmem:[%s3580_s10 + $0x304] sm:$0xf] }
 0x18d   : > { %v1642_v10 = vpop.f32.mrf.mxu2  ;;  %v1307_v15 = vpop.f32.mrf.mxu0 }
 0x18e   : > { %v1811_v11 = vpop.f32.mrf.mxu3  ;;  %2059 = vst.msk [vmem:[%s3688_s12 + $0x68] sm:$0xf] %vm2032_vm0, %v1994_v8  ;;  %v1643_v14 = vadd.f32 %v1642_v10, %v1474_v9  ;;  %v1476_v16 = vpop.f32.mrf.mxu1  ;;  %v1308_v19 = vadd.f32 %v3866_v60, %v1307_v15  ;;  %v2841_v8 = vld [vmem:[%s3580_s10 + $0x318] sm:$0xf0] }
 0x190   : > { %v1812_v20 = vadd.f32 %v1811_v11, %v1643_v14  ;;  %1346 = vmatmul.bf16.gmra.mxu0 %v2800_v12  ;;  %v1477_v22 = vadd.f32 %v1476_v16, %v1308_v19  ;;  %v2836_v14 = vor.u32 %v3199_v2, %v2833_v4  ;;  %v2844_v19 = vor.u32 %v3200_v7, %v2841_v8  ;;  %v3209_v2 = vld [vmem:[%s3580_s10 + $0x34c] sm:$0xf0]  ;;  %v3210_v7 = vld [vmem:[%s3580_s10 + $0x354] sm:$0xf0]  ;;  %v3208_v8 = vld [vmem:[%s3580_s10 + $0x34c] sm:$0xf] }
 0x191   : > { %1515 = vmatmul.bf16.gmra.mxu1 %v2804_v13  ;;  %v2832_v13 = vor.u32 %v3201_v1, %v2831_v63  ;;  %v2863_v1 = vld [vmem:[%s3580_s10 + $0x340] sm:$0xf] }
 0x192   : > { %v1931_v21 = vmax.f32 %v1812_v20, 0.0  ;;  %1684 = vmatmul.bf16.gmra.mxu2 %v2808_v17 }
 0x193   : > { %1853 = vmatmul.bf16.gmra.mxu3 %v2812_v18  ;;  %v2840_v18 = vor.u32 %v3202_v6, %v2839_v5  ;;  %v2865_v5 = vld [vmem:[%s3580_s10 + $0x350] sm:$0xf0]  ;;  %v2871_v6 = vld [vmem:[%s3580_s10 + $0x348] sm:$0xf] }
 0x194   : > { %v1995_v23 = vpack.c.bf16 %v1931_v21, %v1931_v21 }
 0x195   : > { %v1645_v24 = vpop.f32.mrf.mxu2  ;;  %v1309_v27 = vpop.f32.mrf.mxu0 }
 0x196   : > { %v1814_v25 = vpop.f32.mrf.mxu3  ;;  %2060 = vst.msk [vmem:[%s3688_s12 + $0x6c] sm:$0xf] %vm2032_vm0, %v1995_v23  ;;  %v1646_v26 = vadd.f32 %v1645_v24, %v1477_v22  ;;  %v1478_v28 = vpop.f32.mrf.mxu1  ;;  %v1310_v30 = vadd.f32 %v3866_v60, %v1309_v27 }
 0x198   : > { %v1815_v29 = vadd.f32 %v1814_v25, %v1646_v26  ;;  %v1479_v41 = vadd.f32 %v1478_v28, %v1310_v30 }
 0x19a   : > { %v1932_v34 = vmax.f32 %v1815_v29, 0.0 }
 0x19c   : > { %v1996_v40 = vpack.c.bf16 %v1932_v34, %v1932_v34  ;;  %v3203_v34 = vld [vmem:[%s3580_s10 + $0x324] sm:$0xf] }
 0x19d   : > { %v1647_v42 = vpop.f32.mrf.mxu2  ;;  %v1312_v47 = vpop.f32.mrf.mxu0 }
 0x19e   : > { %v1816_v43 = vpop.f32.mrf.mxu3  ;;  %2061 = vst.msk [vmem:[%s3688_s12 + $0x70] sm:$0xf] %vm2032_vm0, %v1996_v40  ;;  %v1648_v46 = vadd.f32 %v1647_v42, %v1479_v41  ;;  %v1481_v48 = vpop.f32.mrf.mxu1  ;;  %v1313_v51 = vadd.f32 %v3866_v60, %v1312_v47  ;;  %v2857_v40 = vld [vmem:[%s3580_s10 + $0x338] sm:$0xf0] }
 0x1a0   : > { %v1817_v52 = vadd.f32 %v1816_v43, %v1648_v46  ;;  %1351 = vmatmul.bf16.gmra.mxu0 %v2816_v44  ;;  %v1482_v54 = vadd.f32 %v1481_v48, %v1313_v51  ;;  %v2852_v46 = vor.u32 %v3203_v34, %v2849_v36  ;;  %v2860_v51 = vor.u32 %v3204_v39, %v2857_v40  ;;  %v3213_v34 = vld [vmem:[%s3580_s10 + $0x36c] sm:$0xf0]  ;;  %v3214_v39 = vld [vmem:[%s3580_s10 + $0x374] sm:$0xf0]  ;;  %v3212_v40 = vld [vmem:[%s3580_s10 + $0x36c] sm:$0xf] }
 0x1a1   : > { %1520 = vmatmul.bf16.gmra.mxu1 %v2820_v45  ;;  %v2848_v45 = vor.u32 %v3205_v33, %v2847_v32  ;;  %v2879_v33 = vld [vmem:[%s3580_s10 + $0x360] sm:$0xf] }
 0x1a2   : > { %v1933_v53 = vmax.f32 %v1817_v52, 0.0  ;;  %1689 = vmatmul.bf16.gmra.mxu2 %v2824_v49 }
 0x1a3   : > { %1858 = vmatmul.bf16.gmra.mxu3 %v2828_v50  ;;  %v2856_v50 = vor.u32 %v3206_v38, %v2855_v37  ;;  %v2881_v37 = vld [vmem:[%s3580_s10 + $0x370] sm:$0xf0]  ;;  %v2887_v38 = vld [vmem:[%s3580_s10 + $0x368] sm:$0xf] }
 0x1a4   : > { %v1997_v55 = vpack.c.bf16 %v1933_v53, %v1933_v53 }
 0x1a5   : > { %v1650_v56 = vpop.f32.mrf.mxu2  ;;  %v1314_v58 = vpop.f32.mrf.mxu0 }
 0x1a6   : > { %v1819_v0 = vpop.f32.mrf.mxu3  ;;  %2062 = vst.msk [vmem:[%s3688_s12 + $0x74] sm:$0xf] %vm2032_vm0, %v1997_v55  ;;  %v1651_v57 = vadd.f32 %v1650_v56, %v1482_v54  ;;  %v1483_v59 = vpop.f32.mrf.mxu1  ;;  %v1315_v62 = vadd.f32 %v3866_v60, %v1314_v58 }
 0x1a8   : > { %v1820_v61 = vadd.f32 %v1819_v0, %v1651_v57  ;;  %v1484_v10 = vadd.f32 %v1483_v59, %v1315_v62 }
 0x1aa   : > { %v1934_v3 = vmax.f32 %v1820_v61, 0.0 }
 0x1ac   : > { %v1998_v9 = vpack.c.bf16 %v1934_v3, %v1934_v3  ;;  %v3207_v3 = vld [vmem:[%s3580_s10 + $0x344] sm:$0xf] }
 0x1ad   : > { %v1652_v11 = vpop.f32.mrf.mxu2  ;;  %v1317_v16 = vpop.f32.mrf.mxu0 }
 0x1ae   : > { %v1821_v12 = vpop.f32.mrf.mxu3  ;;  %2063 = vst.msk [vmem:[%s3688_s12 + $0x78] sm:$0xf] %vm2032_vm0, %v1998_v9  ;;  %v1653_v15 = vadd.f32 %v1652_v11, %v1484_v10  ;;  %v1486_v17 = vpop.f32.mrf.mxu1  ;;  %v1318_v20 = vadd.f32 %v3866_v60, %v1317_v16  ;;  %v2873_v9 = vld [vmem:[%s3580_s10 + $0x358] sm:$0xf0] }
 0x1b0   : > { %v1822_v21 = vadd.f32 %v1821_v12, %v1653_v15  ;;  %1356 = vmatmul.bf16.gmra.mxu0 %v2832_v13  ;;  %v1487_v23 = vadd.f32 %v1486_v17, %v1318_v20  ;;  %v2868_v15 = vor.u32 %v3207_v3, %v2865_v5  ;;  %v2876_v20 = vor.u32 %v3208_v8, %v2873_v9  ;;  %v3217_v3 = vld [vmem:[%s3580_s10 + $0x38c] sm:$0xf0]  ;;  %v3218_v8 = vld [vmem:[%s3580_s10 + $0x394] sm:$0xf0]  ;;  %v3216_v9 = vld [vmem:[%s3580_s10 + $0x38c] sm:$0xf] }
 0x1b1   : > { %1525 = vmatmul.bf16.gmra.mxu1 %v2836_v14  ;;  %v2864_v14 = vor.u32 %v3209_v2, %v2863_v1  ;;  %v2895_v2 = vld [vmem:[%s3580_s10 + $0x380] sm:$0xf] }
 0x1b2   : > { %v1935_v22 = vmax.f32 %v1822_v21, 0.0  ;;  %1694 = vmatmul.bf16.gmra.mxu2 %v2840_v18 }
 0x1b3   : > { %1863 = vmatmul.bf16.gmra.mxu3 %v2844_v19  ;;  %v2872_v19 = vor.u32 %v3210_v7, %v2871_v6  ;;  %v2897_v6 = vld [vmem:[%s3580_s10 + $0x390] sm:$0xf0]  ;;  %v2903_v7 = vld [vmem:[%s3580_s10 + $0x388] sm:$0xf] }
 0x1b4   : > { %v1999_v24 = vpack.c.bf16 %v1935_v22, %v1935_v22 }
 0x1b5   : > { %v1655_v25 = vpop.f32.mrf.mxu2  ;;  %v1319_v28 = vpop.f32.mrf.mxu0 }
 0x1b6   : > { %v1824_v26 = vpop.f32.mrf.mxu3  ;;  %2064 = vst.msk [vmem:[%s3688_s12 + $0x7c] sm:$0xf] %vm2032_vm0, %v1999_v24  ;;  %v1656_v27 = vadd.f32 %v1655_v25, %v1487_v23  ;;  %v1488_v29 = vpop.f32.mrf.mxu1  ;;  %v1320_v31 = vadd.f32 %v3866_v60, %v1319_v28 }
 0x1b8   : > { %v1825_v30 = vadd.f32 %v1824_v26, %v1656_v27  ;;  %v1489_v42 = vadd.f32 %v1488_v29, %v1320_v31 }
 0x1ba   : > { %v1936_v35 = vmax.f32 %v1825_v30, 0.0 }
 0x1bc   : > { %v2000_v41 = vpack.c.bf16 %v1936_v35, %v1936_v35  ;;  %v3211_v35 = vld [vmem:[%s3580_s10 + $0x364] sm:$0xf] }
 0x1bd   : > { %v1657_v43 = vpop.f32.mrf.mxu2  ;;  %v1322_v48 = vpop.f32.mrf.mxu0 }
 0x1be   : > { %v1826_v44 = vpop.f32.mrf.mxu3  ;;  %2065 = vst.msk [vmem:[%s3688_s12 + $0x80] sm:$0xf] %vm2032_vm0, %v2000_v41  ;;  %v1658_v47 = vadd.f32 %v1657_v43, %v1489_v42  ;;  %v1491_v49 = vpop.f32.mrf.mxu1  ;;  %v1323_v52 = vadd.f32 %v3866_v60, %v1322_v48  ;;  %v2889_v41 = vld [vmem:[%s3580_s10 + $0x378] sm:$0xf0] }
 0x1c0   : > { %v1827_v53 = vadd.f32 %v1826_v44, %v1658_v47  ;;  %1361 = vmatmul.bf16.gmra.mxu0 %v2848_v45  ;;  %v1492_v55 = vadd.f32 %v1491_v49, %v1323_v52  ;;  %v2884_v47 = vor.u32 %v3211_v35, %v2881_v37  ;;  %v2892_v52 = vor.u32 %v3212_v40, %v2889_v41  ;;  %v3221_v35 = vld [vmem:[%s3580_s10 + $0x3ac] sm:$0xf0]  ;;  %v3222_v40 = vld [vmem:[%s3580_s10 + $0x3b4] sm:$0xf0]  ;;  %v3220_v41 = vld [vmem:[%s3580_s10 + $0x3ac] sm:$0xf] }
 0x1c1   : > { %1530 = vmatmul.bf16.gmra.mxu1 %v2852_v46  ;;  %v2880_v46 = vor.u32 %v3213_v34, %v2879_v33  ;;  %v2911_v34 = vld [vmem:[%s3580_s10 + $0x3a0] sm:$0xf] }
 0x1c2   : > { %v1937_v54 = vmax.f32 %v1827_v53, 0.0  ;;  %1699 = vmatmul.bf16.gmra.mxu2 %v2856_v50 }
 0x1c3   : > { %1868 = vmatmul.bf16.gmra.mxu3 %v2860_v51  ;;  %v2888_v51 = vor.u32 %v3214_v39, %v2887_v38  ;;  %v2913_v38 = vld [vmem:[%s3580_s10 + $0x3b0] sm:$0xf0]  ;;  %v2919_v39 = vld [vmem:[%s3580_s10 + $0x3a8] sm:$0xf] }
 0x1c4   : > { %v2001_v56 = vpack.c.bf16 %v1937_v54, %v1937_v54 }
 0x1c5   : > { %v1660_v0 = vpop.f32.mrf.mxu2  ;;  %v1324_v59 = vpop.f32.mrf.mxu0 }
 0x1c6   : > { %v1829_v57 = vpop.f32.mrf.mxu3  ;;  %2066 = vst.msk [vmem:[%s3688_s12 + $0x84] sm:$0xf] %vm2032_vm0, %v2001_v56  ;;  %v1661_v58 = vadd.f32 %v1660_v0, %v1492_v55  ;;  %v1493_v61 = vpop.f32.mrf.mxu1  ;;  %v1325_v63 = vadd.f32 %v3866_v60, %v1324_v59 }
 0x1c8   : > { %v1830_v62 = vadd.f32 %v1829_v57, %v1661_v58  ;;  %v1494_v11 = vadd.f32 %v1493_v61, %v1325_v63 }
 0x1ca   : > { %v1938_v4 = vmax.f32 %v1830_v62, 0.0 }
 0x1cc   : > { %v2002_v10 = vpack.c.bf16 %v1938_v4, %v1938_v4  ;;  %v3215_v4 = vld [vmem:[%s3580_s10 + $0x384] sm:$0xf] }
 0x1cd   : > { %v1662_v12 = vpop.f32.mrf.mxu2  ;;  %v1327_v17 = vpop.f32.mrf.mxu0 }
 0x1ce   : > { %v1831_v13 = vpop.f32.mrf.mxu3  ;;  %2067 = vst.msk [vmem:[%s3688_s12 + $0x88] sm:$0xf] %vm2032_vm0, %v2002_v10  ;;  %v1663_v16 = vadd.f32 %v1662_v12, %v1494_v11  ;;  %v1496_v18 = vpop.f32.mrf.mxu1  ;;  %v1328_v21 = vadd.f32 %v3866_v60, %v1327_v17  ;;  %v2905_v10 = vld [vmem:[%s3580_s10 + $0x398] sm:$0xf0] }
 0x1d0   : > { %v1832_v22 = vadd.f32 %v1831_v13, %v1663_v16  ;;  %1366 = vmatmul.bf16.gmra.mxu0 %v2864_v14  ;;  %v1497_v24 = vadd.f32 %v1496_v18, %v1328_v21  ;;  %v2900_v16 = vor.u32 %v3215_v4, %v2897_v6  ;;  %v2908_v21 = vor.u32 %v3216_v9, %v2905_v10  ;;  %v3225_v4 = vld [vmem:[%s3580_s10 + $0x3cc] sm:$0xf0]  ;;  %v3226_v9 = vld [vmem:[%s3580_s10 + $0x3d4] sm:$0xf0]  ;;  %v3224_v10 = vld [vmem:[%s3580_s10 + $0x3cc] sm:$0xf] }
 0x1d1   : > { %1535 = vmatmul.bf16.gmra.mxu1 %v2868_v15  ;;  %v2896_v15 = vor.u32 %v3217_v3, %v2895_v2  ;;  %v2927_v3 = vld [vmem:[%s3580_s10 + $0x3c0] sm:$0xf] }
 0x1d2   : > { %v1939_v23 = vmax.f32 %v1832_v22, 0.0  ;;  %1704 = vmatmul.bf16.gmra.mxu2 %v2872_v19 }
 0x1d3   : > { %1873 = vmatmul.bf16.gmra.mxu3 %v2876_v20  ;;  %v2904_v20 = vor.u32 %v3218_v8, %v2903_v7  ;;  %v2929_v7 = vld [vmem:[%s3580_s10 + $0x3d0] sm:$0xf0]  ;;  %v2935_v8 = vld [vmem:[%s3580_s10 + $0x3c8] sm:$0xf] }
 0x1d4   : > { %v2003_v25 = vpack.c.bf16 %v1939_v23, %v1939_v23 }
 0x1d5   : > { %v1665_v26 = vpop.f32.mrf.mxu2  ;;  %v1329_v29 = vpop.f32.mrf.mxu0 }
 0x1d6   : > { %v1834_v27 = vpop.f32.mrf.mxu3  ;;  %2068 = vst.msk [vmem:[%s3688_s12 + $0x8c] sm:$0xf] %vm2032_vm0, %v2003_v25  ;;  %v1666_v28 = vadd.f32 %v1665_v26, %v1497_v24  ;;  %v1498_v30 = vpop.f32.mrf.mxu1  ;;  %v1330_v32 = vadd.f32 %v3866_v60, %v1329_v29 }
 0x1d8   : > { %v1835_v31 = vadd.f32 %v1834_v27, %v1666_v28  ;;  %v1499_v43 = vadd.f32 %v1498_v30, %v1330_v32 }
 0x1da   : > { %v1940_v36 = vmax.f32 %v1835_v31, 0.0 }
 0x1dc   : > { %v2004_v42 = vpack.c.bf16 %v1940_v36, %v1940_v36  ;;  %v3219_v36 = vld [vmem:[%s3580_s10 + $0x3a4] sm:$0xf] }
 0x1dd   : > { %v1667_v44 = vpop.f32.mrf.mxu2  ;;  %v1332_v49 = vpop.f32.mrf.mxu0 }
 0x1de   : > { %v1836_v45 = vpop.f32.mrf.mxu3  ;;  %2069 = vst.msk [vmem:[%s3688_s12 + $0x90] sm:$0xf] %vm2032_vm0, %v2004_v42  ;;  %v1668_v48 = vadd.f32 %v1667_v44, %v1499_v43  ;;  %v1501_v50 = vpop.f32.mrf.mxu1  ;;  %v1333_v53 = vadd.f32 %v3866_v60, %v1332_v49  ;;  %v2921_v42 = vld [vmem:[%s3580_s10 + $0x3b8] sm:$0xf0] }
 0x1e0   : > { %v1837_v54 = vadd.f32 %v1836_v45, %v1668_v48  ;;  %1371 = vmatmul.bf16.gmra.mxu0 %v2880_v46  ;;  %v1502_v56 = vadd.f32 %v1501_v50, %v1333_v53  ;;  %v2916_v48 = vor.u32 %v3219_v36, %v2913_v38  ;;  %v2924_v53 = vor.u32 %v3220_v41, %v2921_v42  ;;  %v3229_v36 = vld [vmem:[%s3580_s10 + $0x3ec] sm:$0xf0]  ;;  %v3230_v41 = vld [vmem:[%s3580_s10 + $0x3f4] sm:$0xf0]  ;;  %v3228_v42 = vld [vmem:[%s3580_s10 + $0x3ec] sm:$0xf] }
 0x1e1   : > { %1540 = vmatmul.bf16.gmra.mxu1 %v2884_v47  ;;  %v2912_v47 = vor.u32 %v3221_v35, %v2911_v34  ;;  %v2943_v35 = vld [vmem:[%s3580_s10 + $0x3e0] sm:$0xf] }
 0x1e2   : > { %v1941_v55 = vmax.f32 %v1837_v54, 0.0  ;;  %1709 = vmatmul.bf16.gmra.mxu2 %v2888_v51 }
 0x1e3   : > { %1878 = vmatmul.bf16.gmra.mxu3 %v2892_v52  ;;  %v2920_v52 = vor.u32 %v3222_v40, %v2919_v39  ;;  %v2945_v39 = vld [vmem:[%s3580_s10 + $0x3f0] sm:$0xf0]  ;;  %v2951_v40 = vld [vmem:[%s3580_s10 + $0x3e8] sm:$0xf] }
 0x1e4   : > { %v2005_v0 = vpack.c.bf16 %v1941_v55, %v1941_v55 }
 0x1e5   : > { %v1670_v57 = vpop.f32.mrf.mxu2  ;;  %v1334_v61 = vpop.f32.mrf.mxu0 }
 0x1e6   : > { %v1839_v58 = vpop.f32.mrf.mxu3  ;;  %2070 = vst.msk [vmem:[%s3688_s12 + $0x94] sm:$0xf] %vm2032_vm0, %v2005_v0  ;;  %v1671_v59 = vadd.f32 %v1670_v57, %v1502_v56  ;;  %v1503_v62 = vpop.f32.mrf.mxu1  ;;  %v1335_v1 = vadd.f32 %v3866_v60, %v1334_v61 }
 0x1e8   : > { %v1840_v63 = vadd.f32 %v1839_v58, %v1671_v59  ;;  %v1504_v12 = vadd.f32 %v1503_v62, %v1335_v1 }
 0x1ea   : > { %v1942_v5 = vmax.f32 %v1840_v63, 0.0 }
 0x1ec   : > { %v2006_v11 = vpack.c.bf16 %v1942_v5, %v1942_v5  ;;  %v3223_v5 = vld [vmem:[%s3580_s10 + $0x3c4] sm:$0xf] }
 0x1ed   : > { %v1672_v13 = vpop.f32.mrf.mxu2  ;;  %v1337_v18 = vpop.f32.mrf.mxu0 }
 0x1ee   : > { %v1841_v14 = vpop.f32.mrf.mxu3  ;;  %2071 = vst.msk [vmem:[%s3688_s12 + $0x98] sm:$0xf] %vm2032_vm0, %v2006_v11  ;;  %v1673_v17 = vadd.f32 %v1672_v13, %v1504_v12  ;;  %v1506_v19 = vpop.f32.mrf.mxu1  ;;  %v1338_v22 = vadd.f32 %v3866_v60, %v1337_v18  ;;  %v2937_v11 = vld [vmem:[%s3580_s10 + $0x3d8] sm:$0xf0] }
 0x1f0   : > { %v1842_v23 = vadd.f32 %v1841_v14, %v1673_v17  ;;  %1376 = vmatmul.bf16.gmra.mxu0 %v2896_v15  ;;  %v1507_v25 = vadd.f32 %v1506_v19, %v1338_v22  ;;  %v2932_v17 = vor.u32 %v3223_v5, %v2929_v7  ;;  %v2940_v22 = vor.u32 %v3224_v10, %v2937_v11 }
 0x1f1   : > { %1545 = vmatmul.bf16.gmra.mxu1 %v2900_v16  ;;  %v2928_v16 = vor.u32 %v3225_v4, %v2927_v3 }
 0x1f2   : > { %v1943_v24 = vmax.f32 %v1842_v23, 0.0  ;;  %1714 = vmatmul.bf16.gmra.mxu2 %v2904_v20 }
 0x1f3   : > { %1883 = vmatmul.bf16.gmra.mxu3 %v2908_v21  ;;  %v2936_v21 = vor.u32 %v3226_v9, %v2935_v8 }
 0x1f4   : > { %v2007_v26 = vpack.c.bf16 %v1943_v24, %v1943_v24 }
 0x1f5   : > { %v1675_v27 = vpop.f32.mrf.mxu2  ;;  %v1339_v30 = vpop.f32.mrf.mxu0 }
 0x1f6   : > { %v1844_v28 = vpop.f32.mrf.mxu3  ;;  %2072 = vst.msk [vmem:[%s3688_s12 + $0x9c] sm:$0xf] %vm2032_vm0, %v2007_v26  ;;  %v1676_v29 = vadd.f32 %v1675_v27, %v1507_v25  ;;  %v1508_v31 = vpop.f32.mrf.mxu1  ;;  %v1340_v33 = vadd.f32 %v3866_v60, %v1339_v30 }
 0x1f8   : > { %v1845_v32 = vadd.f32 %v1844_v28, %v1676_v29  ;;  %v1509_v44 = vadd.f32 %v1508_v31, %v1340_v33 }
 0x1fa   : > { %v1944_v37 = vmax.f32 %v1845_v32, 0.0 }
 0x1fc   : > { %v2008_v43 = vpack.c.bf16 %v1944_v37, %v1944_v37  ;;  %v3227_v37 = vld [vmem:[%s3580_s10 + $0x3e4] sm:$0xf] }
 0x1fd   : > { %v1677_v45 = vpop.f32.mrf.mxu2  ;;  %v1342_v50 = vpop.f32.mrf.mxu0 }
 0x1fe   : > { %v1846_v46 = vpop.f32.mrf.mxu3  ;;  %2073 = vst.msk [vmem:[%s3688_s12 + $0xa0] sm:$0xf] %vm2032_vm0, %v2008_v43  ;;  %v1678_v49 = vadd.f32 %v1677_v45, %v1509_v44  ;;  %v1511_v51 = vpop.f32.mrf.mxu1  ;;  %v1343_v54 = vadd.f32 %v3866_v60, %v1342_v50  ;;  %v2953_v43 = vld [vmem:[%s3580_s10 + $0x3f8] sm:$0xf0] }
 0x200   : > { %v1847_v55 = vadd.f32 %v1846_v46, %v1678_v49  ;;  %1381 = vmatmul.bf16.gmra.mxu0 %v2912_v47  ;;  %v1512_v0 = vadd.f32 %v1511_v51, %v1343_v54  ;;  %v2948_v49 = vor.u32 %v3227_v37, %v2945_v39  ;;  %v2956_v54 = vor.u32 %v3228_v42, %v2953_v43 }
 0x201   : > { %1550 = vmatmul.bf16.gmra.mxu1 %v2916_v48  ;;  %v2944_v48 = vor.u32 %v3229_v36, %v2943_v35 }
 0x202   : > { %v1945_v56 = vmax.f32 %v1847_v55, 0.0  ;;  %1719 = vmatmul.bf16.gmra.mxu2 %v2920_v52 }
 0x203   : > { %1888 = vmatmul.bf16.gmra.mxu3 %v2924_v53  ;;  %v2952_v53 = vor.u32 %v3230_v41, %v2951_v40 }
 0x204   : > { %v2009_v57 = vpack.c.bf16 %v1945_v56, %v1945_v56 }
 0x205   : > { %v1680_v58 = vpop.f32.mrf.mxu2  ;;  %v1344_v62 = vpop.f32.mrf.mxu0 }
 0x206   : > { %v1849_v59 = vpop.f32.mrf.mxu3  ;;  %2074 = vst.msk [vmem:[%s3688_s12 + $0xa4] sm:$0xf] %vm2032_vm0, %v2009_v57  ;;  %v1681_v61 = vadd.f32 %v1680_v58, %v1512_v0  ;;  %v1513_v63 = vpop.f32.mrf.mxu1  ;;  %v1345_v2 = vadd.f32 %v3866_v60, %v1344_v62 }
 0x208   : > { %v1850_v1 = vadd.f32 %v1849_v59, %v1681_v61  ;;  %v1514_v13 = vadd.f32 %v1513_v63, %v1345_v2 }
 0x20a   : > { %v1946_v6 = vmax.f32 %v1850_v1, 0.0 }
 0x20c   : > { %v2010_v12 = vpack.c.bf16 %v1946_v6, %v1946_v6 }
 0x20d   : > { %v1682_v14 = vpop.f32.mrf.mxu2  ;;  %v1347_v19 = vpop.f32.mrf.mxu0 }
 0x20e   : > { %v1851_v15 = vpop.f32.mrf.mxu3  ;;  %2075 = vst.msk [vmem:[%s3688_s12 + $0xa8] sm:$0xf] %vm2032_vm0, %v2010_v12  ;;  %v1683_v18 = vadd.f32 %v1682_v14, %v1514_v13  ;;  %v1516_v20 = vpop.f32.mrf.mxu1  ;;  %v1348_v23 = vadd.f32 %v3866_v60, %v1347_v19 }
 0x210   : > { %v1852_v24 = vadd.f32 %v1851_v15, %v1683_v18  ;;  %1386 = vmatmul.bf16.gmra.mxu0 %v2928_v16  ;;  %v1517_v26 = vadd.f32 %v1516_v20, %v1348_v23 }
 0x211   : > { %1555 = vmatmul.bf16.gmra.mxu1 %v2932_v17 }
 0x212   : > { %v1947_v25 = vmax.f32 %v1852_v24, 0.0  ;;  %1724 = vmatmul.bf16.gmra.mxu2 %v2936_v21 }
 0x213   : > { %1893 = vmatmul.bf16.gmra.mxu3 %v2940_v22 }
 0x214   : > { %v2011_v27 = vpack.c.bf16 %v1947_v25, %v1947_v25 }
 0x215   : > { %v1685_v28 = vpop.f32.mrf.mxu2  ;;  %v1349_v31 = vpop.f32.mrf.mxu0 }
 0x216   : > { %v1854_v29 = vpop.f32.mrf.mxu3  ;;  %2076 = vst.msk [vmem:[%s3688_s12 + $0xac] sm:$0xf] %vm2032_vm0, %v2011_v27  ;;  %v1686_v30 = vadd.f32 %v1685_v28, %v1517_v26  ;;  %v1518_v32 = vpop.f32.mrf.mxu1  ;;  %v1350_v34 = vadd.f32 %v3866_v60, %v1349_v31 }
 0x218   : > { %v1855_v33 = vadd.f32 %v1854_v29, %v1686_v30  ;;  %v1519_v45 = vadd.f32 %v1518_v32, %v1350_v34 }
 0x21a   : > { %v1948_v38 = vmax.f32 %v1855_v33, 0.0 }
 0x21c   : > { %v2012_v44 = vpack.c.bf16 %v1948_v38, %v1948_v38 }
 0x21d   : > { %v1687_v46 = vpop.f32.mrf.mxu2  ;;  %v1352_v51 = vpop.f32.mrf.mxu0 }
 0x21e   : > { %v1856_v47 = vpop.f32.mrf.mxu3  ;;  %2077 = vst.msk [vmem:[%s3688_s12 + $0xb0] sm:$0xf] %vm2032_vm0, %v2012_v44  ;;  %v1688_v50 = vadd.f32 %v1687_v46, %v1519_v45  ;;  %v1521_v52 = vpop.f32.mrf.mxu1  ;;  %v1353_v55 = vadd.f32 %v3866_v60, %v1352_v51 }
 0x220   : > { %v1857_v56 = vadd.f32 %v1856_v47, %v1688_v50  ;;  %1391 = vmatmul.bf16.gmra.mxu0 %v2944_v48  ;;  %v1522_v57 = vadd.f32 %v1521_v52, %v1353_v55 }
 0x221   : > { %1560 = vmatmul.bf16.gmra.mxu1 %v2948_v49 }
 0x222   : > { %v1949_v0 = vmax.f32 %v1857_v56, 0.0  ;;  %1729 = vmatmul.bf16.gmra.mxu2 %v2952_v53 }
 0x223   : > { %1898 = vmatmul.bf16.gmra.mxu3 %v2956_v54 }
 0x224   : > { %v2013_v58 = vpack.c.bf16 %v1949_v0, %v1949_v0 }
 0x225   : > { %v1690_v59 = vpop.f32.mrf.mxu2  ;;  %v1354_v63 = vpop.f32.mrf.mxu0 }
 0x226   : > { %v1859_v61 = vpop.f32.mrf.mxu3  ;;  %2078 = vst.msk [vmem:[%s3688_s12 + $0xb4] sm:$0xf] %vm2032_vm0, %v2013_v58  ;;  %v1691_v62 = vadd.f32 %v1690_v59, %v1522_v57  ;;  %v1523_v1 = vpop.f32.mrf.mxu1  ;;  %v1355_v3 = vadd.f32 %v3866_v60, %v1354_v63 }
 0x228   : > { %v1860_v2 = vadd.f32 %v1859_v61, %v1691_v62  ;;  %v1524_v6 = vadd.f32 %v1523_v1, %v1355_v3 }
 0x22a   : > { %v1950_v4 = vmax.f32 %v1860_v2, 0.0 }
 0x22c   : > { %v2014_v5 = vpack.c.bf16 %v1950_v4, %v1950_v4 }
 0x22d   : > { %v1692_v7 = vpop.f32.mrf.mxu2  ;;  %v1357_v10 = vpop.f32.mrf.mxu0 }
 0x22e   : > { %v1861_v8 = vpop.f32.mrf.mxu3  ;;  %2079 = vst.msk [vmem:[%s3688_s12 + $0xb8] sm:$0xf] %vm2032_vm0, %v2014_v5  ;;  %v1693_v9 = vadd.f32 %v1692_v7, %v1524_v6  ;;  %v1526_v11 = vpop.f32.mrf.mxu1  ;;  %v1358_v12 = vadd.f32 %v3866_v60, %v1357_v10 }
 0x230   : > { %v1862_v13 = vadd.f32 %v1861_v8, %v1693_v9  ;;  %v1527_v15 = vadd.f32 %v1526_v11, %v1358_v12 }
 0x232   : > { %v1951_v14 = vmax.f32 %v1862_v13, 0.0 }
 0x234   : > { %v2015_v16 = vpack.c.bf16 %v1951_v14, %v1951_v14 }
 0x235   : > { %v1695_v17 = vpop.f32.mrf.mxu2  ;;  %v1359_v20 = vpop.f32.mrf.mxu0 }
 0x236   : > { %v1864_v18 = vpop.f32.mrf.mxu3  ;;  %2080 = vst.msk [vmem:[%s3688_s12 + $0xbc] sm:$0xf] %vm2032_vm0, %v2015_v16  ;;  %v1696_v19 = vadd.f32 %v1695_v17, %v1527_v15  ;;  %v1528_v21 = vpop.f32.mrf.mxu1  ;;  %v1360_v23 = vadd.f32 %v3866_v60, %v1359_v20 }
 0x238   : > { %v1865_v22 = vadd.f32 %v1864_v18, %v1696_v19  ;;  %v1529_v26 = vadd.f32 %v1528_v21, %v1360_v23 }
 0x23a   : > { %v1952_v24 = vmax.f32 %v1865_v22, 0.0 }
 0x23c   : > { %v2016_v25 = vpack.c.bf16 %v1952_v24, %v1952_v24 }
 0x23d   : > { %v1697_v27 = vpop.f32.mrf.mxu2  ;;  %v1362_v30 = vpop.f32.mrf.mxu0 }
 0x23e   : > { %v1866_v28 = vpop.f32.mrf.mxu3  ;;  %2081 = vst.msk [vmem:[%s3688_s12 + $0xc0] sm:$0xf] %vm2032_vm0, %v2016_v25  ;;  %v1698_v29 = vadd.f32 %v1697_v27, %v1529_v26  ;;  %v1531_v31 = vpop.f32.mrf.mxu1  ;;  %v1363_v32 = vadd.f32 %v3866_v60, %v1362_v30 }
 0x240   : > { %v1867_v33 = vadd.f32 %v1866_v28, %v1698_v29  ;;  %v1532_v35 = vadd.f32 %v1531_v31, %v1363_v32 }
 0x242   : > { %v1953_v34 = vmax.f32 %v1867_v33, 0.0 }
 0x244   : > { %v2017_v36 = vpack.c.bf16 %v1953_v34, %v1953_v34 }
 0x245   : > { %v1700_v37 = vpop.f32.mrf.mxu2  ;;  %v1364_v40 = vpop.f32.mrf.mxu0 }
 0x246   : > { %v1869_v38 = vpop.f32.mrf.mxu3  ;;  %2082 = vst.msk [vmem:[%s3688_s12 + $0xc4] sm:$0xf] %vm2032_vm0, %v2017_v36  ;;  %v1701_v39 = vadd.f32 %v1700_v37, %v1532_v35  ;;  %v1533_v41 = vpop.f32.mrf.mxu1  ;;  %v1365_v43 = vadd.f32 %v3866_v60, %v1364_v40 }
 0x248   : > { %v1870_v42 = vadd.f32 %v1869_v38, %v1701_v39  ;;  %v1534_v46 = vadd.f32 %v1533_v41, %v1365_v43 }
 0x24a   : > { %v1954_v44 = vmax.f32 %v1870_v42, 0.0 }
 0x24c   : > { %v2018_v45 = vpack.c.bf16 %v1954_v44, %v1954_v44 }
 0x24d   : > { %v1702_v47 = vpop.f32.mrf.mxu2  ;;  %v1367_v50 = vpop.f32.mrf.mxu0 }
 0x24e   : > { %v1871_v48 = vpop.f32.mrf.mxu3  ;;  %2083 = vst.msk [vmem:[%s3688_s12 + $0xc8] sm:$0xf] %vm2032_vm0, %v2018_v45  ;;  %v1703_v49 = vadd.f32 %v1702_v47, %v1534_v46  ;;  %v1536_v51 = vpop.f32.mrf.mxu1  ;;  %v1368_v52 = vadd.f32 %v3866_v60, %v1367_v50 }
 0x250   : > { %v1872_v53 = vadd.f32 %v1871_v48, %v1703_v49  ;;  %v1537_v55 = vadd.f32 %v1536_v51, %v1368_v52 }
 0x252   : > { %v1955_v54 = vmax.f32 %v1872_v53, 0.0 }
 0x254   : > { %v2019_v56 = vpack.c.bf16 %v1955_v54, %v1955_v54 }
 0x255   : > { %v1705_v0 = vpop.f32.mrf.mxu2  ;;  %v1369_v59 = vpop.f32.mrf.mxu0 }
 0x256   : > { %v1874_v57 = vpop.f32.mrf.mxu3  ;;  %2084 = vst.msk [vmem:[%s3688_s12 + $0xcc] sm:$0xf] %vm2032_vm0, %v2019_v56  ;;  %v1706_v58 = vadd.f32 %v1705_v0, %v1537_v55  ;;  %v1538_v61 = vpop.f32.mrf.mxu1  ;;  %v1370_v63 = vadd.f32 %v3866_v60, %v1369_v59  ;;  %v3356_v59 = vld [vmem:[%s4203_s2] ss:$0 sm:$0xff] }
 0x258   : > { %v1875_v62 = vadd.f32 %v1874_v57, %v1706_v58  ;;  %v1539_v3 = vadd.f32 %v1538_v61, %v1370_v63 }
 0x25a   : > { %v1956_v1 = vmax.f32 %v1875_v62, 0.0 }
 0x25c   : > { %v2020_v2 = vpack.c.bf16 %v1956_v1, %v1956_v1 }
 0x25d   : > { %v1707_v4 = vpop.f32.mrf.mxu2  ;;  %v1372_v7 = vpop.f32.mrf.mxu0 }
 0x25e   : > { %v1876_v5 = vpop.f32.mrf.mxu3  ;;  %2085 = vst.msk [vmem:[%s3688_s12 + $0xd0] sm:$0xf] %vm2032_vm0, %v2020_v2  ;;  %v1708_v6 = vadd.f32 %v1707_v4, %v1539_v3  ;;  %v1541_v8 = vpop.f32.mrf.mxu1  ;;  %v1373_v9 = vadd.f32 %v3866_v60, %v1372_v7 }
 0x260   : > { %v1877_v10 = vadd.f32 %v1876_v5, %v1708_v6  ;;  %v1542_v12 = vadd.f32 %v1541_v8, %v1373_v9 }
 0x262   : > { %v1957_v11 = vmax.f32 %v1877_v10, 0.0 }
 0x264   : > { %v2021_v13 = vpack.c.bf16 %v1957_v11, %v1957_v11 }
 0x265   : > { %v1710_v14 = vpop.f32.mrf.mxu2  ;;  %v1374_v17 = vpop.f32.mrf.mxu0 }
 0x266   : > { %v1879_v15 = vpop.f32.mrf.mxu3  ;;  %2086 = vst.msk [vmem:[%s3688_s12 + $0xd4] sm:$0xf] %vm2032_vm0, %v2021_v13  ;;  %v1711_v16 = vadd.f32 %v1710_v14, %v1542_v12  ;;  %v1543_v18 = vpop.f32.mrf.mxu1  ;;  %v1375_v20 = vadd.f32 %v3866_v60, %v1374_v17 }
 0x268   : > { %v1880_v19 = vadd.f32 %v1879_v15, %v1711_v16  ;;  %v1544_v23 = vadd.f32 %v1543_v18, %v1375_v20 }
 0x26a   : > { %v1958_v21 = vmax.f32 %v1880_v19, 0.0 }
 0x26c   : > { %v2022_v22 = vpack.c.bf16 %v1958_v21, %v1958_v21 }
 0x26d   : > { %v1712_v24 = vpop.f32.mrf.mxu2  ;;  %v1377_v27 = vpop.f32.mrf.mxu0 }
 0x26e   : > { %v1881_v25 = vpop.f32.mrf.mxu3  ;;  %2087 = vst.msk [vmem:[%s3688_s12 + $0xd8] sm:$0xf] %vm2032_vm0, %v2022_v22  ;;  %v1713_v26 = vadd.f32 %v1712_v24, %v1544_v23  ;;  %v1546_v28 = vpop.f32.mrf.mxu1  ;;  %v1378_v29 = vadd.f32 %v3866_v60, %v1377_v27 }
 0x270   : > { %v1882_v30 = vadd.f32 %v1881_v25, %v1713_v26  ;;  %v1547_v32 = vadd.f32 %v1546_v28, %v1378_v29 }
 0x272   : > { %v1959_v31 = vmax.f32 %v1882_v30, 0.0 }
 0x274   : > { %v2023_v33 = vpack.c.bf16 %v1959_v31, %v1959_v31 }
 0x275   : > { %v1715_v34 = vpop.f32.mrf.mxu2  ;;  %v1379_v37 = vpop.f32.mrf.mxu0 }
 0x276   : > { %v1884_v35 = vpop.f32.mrf.mxu3  ;;  %2088 = vst.msk [vmem:[%s3688_s12 + $0xdc] sm:$0xf] %vm2032_vm0, %v2023_v33  ;;  %v1716_v36 = vadd.f32 %v1715_v34, %v1547_v32  ;;  %v1548_v38 = vpop.f32.mrf.mxu1  ;;  %v1380_v40 = vadd.f32 %v3866_v60, %v1379_v37 }
 0x278   : > { %v1885_v39 = vadd.f32 %v1884_v35, %v1716_v36  ;;  %v1549_v43 = vadd.f32 %v1548_v38, %v1380_v40 }
 0x27a   : > { %v1960_v41 = vmax.f32 %v1885_v39, 0.0 }
 0x27c   : > { %v2024_v42 = vpack.c.bf16 %v1960_v41, %v1960_v41 }
 0x27d   : > { %v1717_v44 = vpop.f32.mrf.mxu2  ;;  %v1382_v47 = vpop.f32.mrf.mxu0 }
 0x27e   : > { %v1886_v45 = vpop.f32.mrf.mxu3  ;;  %2089 = vst.msk [vmem:[%s3688_s12 + $0xe0] sm:$0xf] %vm2032_vm0, %v2024_v42  ;;  %v1718_v46 = vadd.f32 %v1717_v44, %v1549_v43  ;;  %v1551_v48 = vpop.f32.mrf.mxu1  ;;  %v1383_v49 = vadd.f32 %v3866_v60, %v1382_v47 }
 0x280   : > { %v1887_v50 = vadd.f32 %v1886_v45, %v1718_v46  ;;  %v1552_v52 = vadd.f32 %v1551_v48, %v1383_v49 }
 0x282   : > { %v1961_v51 = vmax.f32 %v1887_v50, 0.0 }
 0x284   : > { %v2025_v53 = vpack.c.bf16 %v1961_v51, %v1961_v51 }
 0x285   : > { %v1720_v54 = vpop.f32.mrf.mxu2  ;;  %v1384_v0 = vpop.f32.mrf.mxu0 }
 0x286   : > { %v1889_v55 = vpop.f32.mrf.mxu3  ;;  %2090 = vst.msk [vmem:[%s3688_s12 + $0xe4] sm:$0xf] %vm2032_vm0, %v2025_v53  ;;  %v1721_v56 = vadd.f32 %v1720_v54, %v1552_v52  ;;  %v1553_v57 = vpop.f32.mrf.mxu1  ;;  %v1385_v61 = vadd.f32 %v3356_v59, %v1384_v0 }
 0x288   : > { %v1890_v58 = vadd.f32 %v1889_v55, %v1721_v56  ;;  %v1554_v63 = vadd.f32 %v1553_v57, %v1385_v61 }
 0x28a   : > { %v1962_v62 = vmax.f32 %v1890_v58, 0.0 }
 0x28c   : > { %v2026_v60 = vpack.c.bf16 %v1962_v62, %v1962_v62 }
 0x28d   : > { %v1722_v1 = vpop.f32.mrf.mxu2  ;;  %v1387_v4 = vpop.f32.mrf.mxu0 }
 0x28e   : > { %v1891_v2 = vpop.f32.mrf.mxu3  ;;  %2091 = vst.msk [vmem:[%s3688_s12 + $0xe8] sm:$0xf] %vm2032_vm0, %v2026_v60  ;;  %v1723_v3 = vadd.f32 %v1722_v1, %v1554_v63  ;;  %v1556_v5 = vpop.f32.mrf.mxu1  ;;  %v1388_v6 = vadd.f32 %v3356_v59, %v1387_v4 }
 0x290   : > { %v1892_v7 = vadd.f32 %v1891_v2, %v1723_v3  ;;  %v1557_v9 = vadd.f32 %v1556_v5, %v1388_v6 }
 0x292   : > { %v1963_v8 = vmax.f32 %v1892_v7, 0.0 }
 0x294   : > { %v2027_v10 = vpack.c.bf16 %v1963_v8, %v1963_v8 }
 0x295   : > { %v1725_v11 = vpop.f32.mrf.mxu2  ;;  %v1389_v14 = vpop.f32.mrf.mxu0 }
 0x296   : > { %v1894_v12 = vpop.f32.mrf.mxu3  ;;  %2092 = vst.msk [vmem:[%s3688_s12 + $0xec] sm:$0xf] %vm2032_vm0, %v2027_v10  ;;  %v1726_v13 = vadd.f32 %v1725_v11, %v1557_v9  ;;  %v1558_v15 = vpop.f32.mrf.mxu1  ;;  %v1390_v17 = vadd.f32 %v3356_v59, %v1389_v14 }
 0x298   : > { %v1895_v16 = vadd.f32 %v1894_v12, %v1726_v13  ;;  %v1559_v20 = vadd.f32 %v1558_v15, %v1390_v17 }
 0x29a   : > { %v1964_v18 = vmax.f32 %v1895_v16, 0.0 }
 0x29c   : > { %v2028_v19 = vpack.c.bf16 %v1964_v18, %v1964_v18 }
 0x29d   : > { %v1727_v21 = vpop.f32.mrf.mxu2  ;;  %v1392_v24 = vpop.f32.mrf.mxu0 }
 0x29e   : > { %v1896_v22 = vpop.f32.mrf.mxu3  ;;  %2093 = vst.msk [vmem:[%s3688_s12 + $0xf0] sm:$0xf] %vm2032_vm0, %v2028_v19  ;;  %v1728_v23 = vadd.f32 %v1727_v21, %v1559_v20  ;;  %v1393_v25 = vadd.f32 %v3356_v59, %v1392_v24  ;;  %v1561_v27 = vpop.f32.mrf.mxu1 }
 0x2a0   : > { %v1897_v26 = vadd.f32 %v1896_v22, %v1728_v23  ;;  %v1562_v29 = vadd.f32 %v1561_v27, %v1393_v25 }
 0x2a2   : > { %v1965_v28 = vmax.f32 %v1897_v26, 0.0 }
 0x2a4   : > { %v2029_v30 = vpack.c.bf16 %v1965_v28, %v1965_v28 }
 0x2a5   : > { %v1730_v31 = vpop.f32.mrf.mxu2  ;;  %v1394_v34 = vpop.f32.mrf.mxu0 }
 0x2a6   : > { %v1899_v32 = vpop.f32.mrf.mxu3  ;;  %2094 = vst.msk [vmem:[%s3688_s12 + $0xf4] sm:$0xf] %vm2032_vm0, %v2029_v30  ;;  %v1731_v33 = vadd.f32 %v1730_v31, %v1562_v29  ;;  %v1395_v36 = vadd.f32 %v3356_v59, %v1394_v34  ;;  %v1563_v38 = vpop.f32.mrf.mxu1 }
 0x2a8   : > { %v1900_v35 = vadd.f32 %v1899_v32, %v1731_v33  ;;  %v1564_v40 = vadd.f32 %v1563_v38, %v1395_v36 }
 0x2aa   : > { %v1966_v37 = vmax.f32 %v1900_v35, 0.0 }
 0x2ac   : > { %v2030_v39 = vpack.c.bf16 %v1966_v37, %v1966_v37 }
 0x2ad   : > { %v1732_v41 = vpop.f32.mrf.mxu2 }
 0x2ae   : > { %2095 = vst.msk [vmem:[%s3688_s12 + $0xf8] sm:$0xf] %vm2032_vm0, %v2030_v39  ;;  %v1733_v42 = vadd.f32 %v1732_v41, %v1564_v40  ;;  %v1901_v43 = vpop.f32.mrf.mxu3 }
 0x2b0   : > { %v1902_v44 = vadd.f32 %v1901_v43, %v1733_v42 }
 0x2b2   : > { %v1967_v45 = vmax.f32 %v1902_v44, 0.0  ;;  %2103 = sbr.rel (!%p3490_p4) target bundleno = 759 (0x2f7), region = 36 }
 0x2b4   : > { %v2031_v46 = vpack.c.bf16 %v1967_v45, %v1967_v45 }
 0x2b6   : > { %2096 = vst.msk [vmem:[%s3688_s12 + $0xfc] sm:$0xf] %vm2032_vm0, %v2031_v46 }
 0x2b7   : > { %s4215_s11 = smov (!%p2106_p8, %s2105_s11), 64 }
 0x2b8   : > { %s3087_s22 = sshll.u32 %s4215_s11, 2 }
 0x2b9   : > { %p3090_p9 = scmp.eq.s32.totalorder %s3087_s22, 0 }
 0x2ba   : > { %s4072_s23 = sshrl.u32 (!%p3090_p9), %s4215_s11, 5 }
 0x2bb   : > { %2114 = sbr.rel (%p3090_p9) target bundleno = 759 (0x2f7), region = 40  ;;  %p3091_p10 = scmp.le.s32.totalorder (!%p3090_p9), %s4072_s23, 0 }
 0x2c0   : > { %2393 = sbr.rel (%p3091_p10) target bundleno = 742 (0x2e6), region = 112  ;;  %s4206_s15 = smov (!%p3091_p10), %s4066_s21 }
 0x2c1   : > { %s4207_s20 = smov (!%p3091_p10), %s3688_s12  ;;  %s4081_s24 = smov (!%p3091_p10), 0  }
 0x2c2   : > { %s4083_s25 = smov (!%p3091_p10), 0  }
 0x2c5 LB: >> { %v2131_v47 = vld [vmem:[%s3419_s20] sm:$0xf]  ;;  %v2133_v48 = vld [vmem:[%s3419_s20 + $0x4] sm:$0xf]  ;;  %v2135_v49 = vld [vmem:[%s3419_s20 + $0x8] sm:$0xf]  ;;  %s3427_s25 = sphi %s4083_s25, %s2125_s25   ;;  %s3423_s24 = sphi %s4081_s24, %s4210_s24   ;;  %s3419_s20 = sphi %s4207_s20, %s4209_s20   ;;  %s3415_s15 = sphi %s4206_s15, %s4208_s15  }
 0x2c6   : >> { %2132 = vst [vmem:[%s3415_s15] sm:$0xf] %v2131_v47  ;;  %v2137_v50 = vld [vmem:[%s3419_s20 + $0xc] sm:$0xf]  ;;  %v2139_v51 = vld [vmem:[%s3419_s20 + $0x10] sm:$0xf]  ;;  %s2195_s26 = sadd.s32 1, %s3423_s24 }
 0x2c7   : >> { %2134 = vst [vmem:[%s3415_s15 + $0x4] sm:$0xf] %v2133_v48  ;;  %v2141_v52 = vld [vmem:[%s3419_s20 + $0x14] sm:$0xf]  ;;  %v2143_v53 = vld [vmem:[%s3419_s20 + $0x18] sm:$0xf]  ;;  %p2196_p11 = scmp.ge.s32.totalorder %s2195_s26, %s4072_s23 }
 0x2c8   : >> { %2136 = vst [vmem:[%s3415_s15 + $0x8] sm:$0xf] %v2135_v49  ;;  %v2145_v54 = vld [vmem:[%s3419_s20 + $0x1c] sm:$0xf]  ;;  %v2147_v55 = vld [vmem:[%s3419_s20 + $0x20] sm:$0xf] }
 0x2c9   : >> { %2138 = vst [vmem:[%s3415_s15 + $0xc] sm:$0xf] %v2137_v50  ;;  %v2149_v56 = vld [vmem:[%s3419_s20 + $0x24] sm:$0xf]  ;;  %v2151_v0 = vld [vmem:[%s3419_s20 + $0x28] sm:$0xf] }
 0x2ca   : >> { %2140 = vst [vmem:[%s3415_s15 + $0x10] sm:$0xf] %v2139_v51  ;;  %v2153_v57 = vld [vmem:[%s3419_s20 + $0x2c] sm:$0xf]  ;;  %v2155_v58 = vld [vmem:[%s3419_s20 + $0x30] sm:$0xf] }
 0x2cb   : >> { %2142 = vst [vmem:[%s3415_s15 + $0x14] sm:$0xf] %v2141_v52  ;;  %v2157_v59 = vld [vmem:[%s3419_s20 + $0x34] sm:$0xf]  ;;  %v2159_v61 = vld [vmem:[%s3419_s20 + $0x38] sm:$0xf] }
 0x2cc   : >> { %2144 = vst [vmem:[%s3415_s15 + $0x18] sm:$0xf] %v2143_v53  ;;  %v2161_v62 = vld [vmem:[%s3419_s20 + $0x3c] sm:$0xf]  ;;  %v2163_v60 = vld [vmem:[%s3419_s20 + $0x40] sm:$0xf] }
 0x2cd   : >> { %2146 = vst [vmem:[%s3415_s15 + $0x1c] sm:$0xf] %v2145_v54  ;;  %v2165_v63 = vld [vmem:[%s3419_s20 + $0x44] sm:$0xf]  ;;  %s4217_s26 = smov (%p2196_p11, %s2195_s26), 0  ;;  %s2125_s25 = sadd.s32 1, %s3427_s25  }
 0x2ce   : >> { %2148 = vst [vmem:[%s3415_s15 + $0x20] sm:$0xf] %v2147_v55  ;;  %v2167_v1 = vld [vmem:[%s3419_s20 + $0x48] sm:$0xf]  ;;  %v2169_v2 = vld [vmem:[%s3419_s20 + $0x4c] sm:$0xf]  ;;  %p2124_p12 = scmp.ge.s32.totalorder %s2125_s25, %s4072_s23  ;;  %s4210_s24 = smov %s4217_s26 }
 0x2cf   : >> { %2150 = vst [vmem:[%s3415_s15 + $0x24] sm:$0xf] %v2149_v56  ;;  %s3092_s27 = sshll.u32 %s4217_s26, 7  ;;  %v2171_v3 = vld [vmem:[%s3419_s20 + $0x50] sm:$0xf] }
 0x2d0   : >> { %2152 = vst [vmem:[%s3415_s15 + $0x28] sm:$0xf] %v2151_v0  ;;  %s4142_s28 = scalar_lea.vmem %s3688_s12, %s3092_s27 [#allocation2]   ;;  %s2201_s29 = scalar_lea.vmem %s4066_s21, %s3092_s27   ;;  %v2173_v4 = vld [vmem:[%s3419_s20 + $0x54] sm:$0xf]  ;;  %v2175_v5 = vld [vmem:[%s3419_s20 + $0x58] sm:$0xf] }
 0x2d1   : >> { %2154 = vst [vmem:[%s3415_s15 + $0x2c] sm:$0xf] %v2153_v57  ;;  %v2177_v6 = vld [vmem:[%s3419_s20 + $0x5c] sm:$0xf]  ;;  %v2179_v7 = vld [vmem:[%s3419_s20 + $0x60] sm:$0xf] }
 0x2d2   : >> { %2156 = vst [vmem:[%s3415_s15 + $0x30] sm:$0xf] %v2155_v58  ;;  %v2181_v8 = vld [vmem:[%s3419_s20 + $0x64] sm:$0xf]  ;;  %v2183_v9 = vld [vmem:[%s3419_s20 + $0x68] sm:$0xf] }
 0x2d3   : >> { %2158 = vst [vmem:[%s3415_s15 + $0x34] sm:$0xf] %v2157_v59  ;;  %v2185_v10 = vld [vmem:[%s3419_s20 + $0x6c] sm:$0xf]  ;;  %v2187_v11 = vld [vmem:[%s3419_s20 + $0x70] sm:$0xf] }
 0x2d4   : >> { %2160 = vst [vmem:[%s3415_s15 + $0x38] sm:$0xf] %v2159_v61  ;;  %v2189_v12 = vld [vmem:[%s3419_s20 + $0x74] sm:$0xf]  ;;  %v2191_v13 = vld [vmem:[%s3419_s20 + $0x78] sm:$0xf] }
 0x2d5   : >> { %2162 = vst [vmem:[%s3415_s15 + $0x3c] sm:$0xf] %v2161_v62  ;;  %v2193_v14 = vld [vmem:[%s3419_s20 + $0x7c] sm:$0xf]  ;;  %s4209_s20 = smov %s4142_s28 }
 0x2d6   : >> { %2164 = vst [vmem:[%s3415_s15 + $0x40] sm:$0xf] %v2163_v60 }
 0x2d7   : >> { %2166 = vst [vmem:[%s3415_s15 + $0x44] sm:$0xf] %v2165_v63 }
 0x2d8   : >> { %2168 = vst [vmem:[%s3415_s15 + $0x48] sm:$0xf] %v2167_v1 }
 0x2d9   : >> { %2170 = vst [vmem:[%s3415_s15 + $0x4c] sm:$0xf] %v2169_v2 }
 0x2da   : >> { %2172 = vst [vmem:[%s3415_s15 + $0x50] sm:$0xf] %v2171_v3 }
 0x2db   : >> { %2174 = vst [vmem:[%s3415_s15 + $0x54] sm:$0xf] %v2173_v4 }
 0x2dc   : >> { %2176 = vst [vmem:[%s3415_s15 + $0x58] sm:$0xf] %v2175_v5 }
 0x2dd   : >> { %2178 = vst [vmem:[%s3415_s15 + $0x5c] sm:$0xf] %v2177_v6 }
 0x2de   : >> { %2180 = vst [vmem:[%s3415_s15 + $0x60] sm:$0xf] %v2179_v7 }
 0x2df   : >> { %2182 = vst [vmem:[%s3415_s15 + $0x64] sm:$0xf] %v2181_v8 }
 0x2e0   : >> { %2184 = vst [vmem:[%s3415_s15 + $0x68] sm:$0xf] %v2183_v9 }
 0x2e1   : >> { %2186 = vst [vmem:[%s3415_s15 + $0x6c] sm:$0xf] %v2185_v10  ;;  %2127 = sbr.rel (!%p2124_p12) target bundleno = 709 (0x2c5), region = 118 }
 0x2e2   : >> { %2188 = vst [vmem:[%s3415_s15 + $0x70] sm:$0xf] %v2187_v11 }
 0x2e3   : >> { %2190 = vst [vmem:[%s3415_s15 + $0x74] sm:$0xf] %v2189_v12 }
 0x2e4   : >> { %2192 = vst [vmem:[%s3415_s15 + $0x78] sm:$0xf] %v2191_v13 }
 0x2e5   : >> { %2194 = vst [vmem:[%s3415_s15 + $0x7c] sm:$0xf] %v2193_v14  ;;  %s4208_s15 = smov %s2201_s29 }
 0x2e6 PF: > { %s4183_s30 = sand.u32 31, %s4215_s11   ;;  %s3264_s4 = sshll.u32 %s4072_s23, 7 }
 0x2e7   : > { %s2206_s5 = scalar_lea.vmem %s3688_s12, %s3264_s4 [#allocation2]   ;;  %s2208_s6 = scalar_lea.vmem %s4066_s21, %s3264_s4  }
 0x2e8   : > { %p3097_p13 = scmp.le.s32.totalorder %s4183_s30, 0 }
 0x2e9   : > { %s3429_s7 = smov (!%p3097_p13), %s2208_s6   ;;  %s3433_s8 = smov (!%p3097_p13), %s2206_s5  }
 0x2ea   : > { %2407 = sbr.rel (%p3097_p13) target bundleno = 759 (0x2f7), region = 123  ;;  %s3437_s9 = smov (!%p3097_p13), 0  }
 0x2eb   : > { %s3441_s10 = smov (!%p3097_p13), 0  }
 0x2ef LB: >> { %v2218_v15 = vld [vmem:[%s3435_s8] sm:$0xf]  ;;  %s2220_s11 = sadd.s32 1, %s3439_s9  ;;  %s2212_s10 = sadd.s32 1, %s3443_s10   ;;  %s3443_s10 = sphi %s3441_s10, %s2212_s10   ;;  %s3439_s9 = sphi %s3437_s9, %s3438_s9   ;;  %s3435_s8 = sphi %s3433_s8, %s2225_s8   ;;  %s3431_s7 = sphi %s3429_s7, %s2226_s7  }
 0x2f0   : >> { %2219 = vst [vmem:[%s3431_s7] sm:$0xf] %v2218_v15  ;;  %p2221_p0 = scmp.ge.s32.totalorder %s2220_s11, %s4183_s30  ;;  %p2211_p1 = scmp.ge.s32.totalorder %s2212_s10, %s4183_s30 }
 0x2f2   : >> { %s4219_s11 = smov (%p2221_p0, %s2220_s11), 0  ;;  %2214 = sbr.rel (!%p2211_p1) target bundleno = 751 (0x2ef), region = 129 }
 0x2f3   : >> { %s3098_s12 = sshll.u32 %s4219_s11, 2  ;;  %s3438_s9 = smov %s4219_s11  }
 0x2f4   : >> { %s2225_s8 = scalar_lea.vmem %s2206_s5, %s3098_s12 [#allocation2]   ;;  %s2226_s7 = scalar_lea.vmem %s2208_s6, %s3098_s12  }
 0x2f7 PF: > { %p10_p2 = scmp.ge.s32.totalorder %s3480_s16, 4   ;;  %s4211_s12 = smov %s3407_s13 }
 0x2f8   : > { %s4212_s13 = smov %s3488_s19  ;;  %s4213_s14 = smov %s3480_s16 }
 0x2f9   :  { %12 = sbr.rel (!%p10_p2) target bundleno = 2 (0x2), region = 140 }

// kernel: network_forward.6
= control target key start
LH: loop header
LB: loop body
LE: loop exit
PB: predicated region body
PF: predicated region fallthrough
CT: control target
= control target key end

     0   :  { %s4223_s12 = smov 0   ;;  %s4225_s13 = smov 0   ;;  %s5266_s0 = inlined_call_operand.vmem [shape: bf16[704,576], index: 0, kind: input, shape index: {}]   ;;  %s5267_s1 = inlined_call_operand.vmem [shape: bf16[576,64], index: 1, kind: input, shape index: {}]   ;;  %s5268_s2 = inlined_call_operand.vmem [shape: f32[1,64], index: 2, kind: input, shape index: {}]   ;;  %s5269_s3 = inlined_call_operand.vmem [shape: bf16[704,64], index: 3, kind: output, shape index: {}]  }
   0x1   :  { %s4227_s14 = smov 0  }
   0x2 LB: > { %s4236_s15 = sadd.s32 4294967295, %s4169_s14   ;;  %s4238_s16 = sadd.s32 1, %s4169_s14   ;;  %s4169_s14 = sphi %s4227_s14, %s5324_s14   ;;  %s4165_s13 = sphi %s4225_s13, %s5323_s13   ;;  %s4161_s12 = sphi %s4223_s12, %s5322_s12  }
   0x3   : > { %s85_s17 = ssub.s32 %s4169_s14, %s4238_s16  ;;  %s88_s18 = sadd.s32 1, %s4165_s13 }
   0x4   : > { %p86_p0 = scmp.eq.s32.totalorder %s85_s17, 0  ;;  %p98_p1 = scmp.ne.s32.totalorder %s4165_s13, %s4161_s12 }
   0x5   : > { %p99_p2 = scmp.eq.s32.totalorder %s4236_s15, 1  ;;  %p2963_p3 = scmp.ge.s32.totalorder %s4169_s14, 1 }
   0x6   : > { %s4246_s19 = scalar_select %p86_p0, %s4165_s13, %s88_s18  }
   0x7   : > { %p4248_p4 = por %p99_p2, %p98_p1  ;;  %p149_p5 = scmp.lt.s32.totalorder %s4169_s14, 3 }
   0x9   : > { %p150_p6 = pnand %p2963_p3, %p149_p5 }
   0xb   : > { %153 = sbr.rel (%p150_p6) target bundleno = 887 (0x377), region = 32 }
  0x10   : > { %v3967_v0 = vld [vmem:[%s5267_s1 + $0x38] sm:$0xff]  ;;  %v3966_v1 = vld [vmem:[%s5267_s1 + $0x30] sm:$0xff]  ;;  %v3965_v2 = vld [vmem:[%s5267_s1 + $0x28] sm:$0xff]  ;;  %s4262_s27 = sshll.u32 %s4236_s15, 6  ;;  %vm1485_vm0 = vcmask 523264   ;;  %s175_s23 = sand.u32 1, %s4161_s12  }
  0x11   : > { %3999 = vmatpush.bf16.msra.mxu1 %v3967_v0  ;;  %4000 = vmatpush.bf16.msra.mxu2 %v3967_v0  ;;  %v3964_v3 = vld [vmem:[%s5267_s1 + $0x20] sm:$0xff]  ;;  %p184_p7 = scmp.lt.s32.totalorder %s4262_s27, 87  ;;  %v3963_v4 = vld [vmem:[%s5267_s1 + $0x18] sm:$0xff]  ;;  %v3962_v5 = vld [vmem:[%s5267_s1 + $0x10] sm:$0xff]  ;;  %s2964_s24 = sshll.u32 %s175_s23, 8  ;;  %vm2555_vm1 = vcmask 519168  }
  0x12   : > { %4001 = vmatpush.bf16.msra.mxu3 %v3967_v0  ;;  %1582 = vmatpush.bf16.msra.mxu0 %v3967_v0  ;;  %v3961_v6 = vld [vmem:[%s5267_s1 + $0x8] sm:$0xff]  ;;  %v3960_v7 = vld [vmem:[%s5267_s1] sm:$0xff]  ;;  %v3983_v16 = vld [vmem:[%s5267_s1 + $0xb8] sm:$0xff]  ;;  %s4661_s12 = scalar_lea.vmem [#allocation2], %s2964_s24   ;;  %s2628_s29 = ssub.s32 (%p4248_p4), 88, %s4262_s27 }
  0x13   : > { %s185_s5 = scalar_select %p184_p7, %s4262_s27, 87  ;;  %v3991_v17 = vld [vmem:[%s5267_s1 + $0xf8] sm:$0xff]  ;;  %v3982_v24 = vld [vmem:[%s5267_s1 + $0xb0] sm:$0xff]  ;;  %v3981_v28 = vld [vmem:[%s5267_s1 + $0xa8] sm:$0xff] }
  0x14   : > { %v3975_v22 = vld [vmem:[%s5267_s1 + $0x78] sm:$0xff]  ;;  %v3990_v25 = vld [vmem:[%s5267_s1 + $0xf0] sm:$0xff]  ;;  %v3989_v29 = vld [vmem:[%s5267_s1 + $0xe8] sm:$0xff]  ;;  %s3996_s30 = sshll.u32 (%p4248_p4), %s4236_s15, 8  ;;  %p2629_p8 = scmp.lt.s32.totalorder (%p4248_p4), %s2628_s29, 64 }
  0x15   : > { %4002 = vmatpush.bf16.msra.mxu1 %v3966_v1  ;;  %4003 = vmatpush.bf16.msra.mxu2 %v3966_v1  ;;  %s4023_s8 = smul.u32 20, %s185_s5  ;;  %v3995_v23 = vld [vmem:[%s5267_s1 + $0x118] sm:$0xff]  ;;  %v3974_v26 = vld [vmem:[%s5267_s1 + $0x70] sm:$0xff]  ;;  %v3973_v30 = vld [vmem:[%s5267_s1 + $0x68] sm:$0xff]  ;;  %s5131_s6 = scalar_lea.vmem (%p4248_p4), %s5269_s3, %s3996_s30  }
  0x16   : > { %4004 = vmatpush.bf16.msra.mxu3 %v3966_v1  ;;  %1583 = vmatpush.bf16.msra.mxu0 %v3966_v1  ;;  %v3994_v27 = vld [vmem:[%s5267_s1 + $0x110] sm:$0xff]  ;;  %v3980_v43 = vld [vmem:[%s5267_s1 + $0xa0] sm:$0xff]  ;;  %v3979_v58 = vld [vmem:[%s5267_s1 + $0x98] sm:$0xff] }
  0x17   : > { %s4281_s17 = scalar_lea.vmem %s5266_s0, %s4023_s8  ;;  %v3988_v44 = vld [vmem:[%s5267_s1 + $0xe0] sm:$0xff]  ;;  %v3987_v59 = vld [vmem:[%s5267_s1 + $0xd8] sm:$0xff]  ;;  %v3993_v61 = vld [vmem:[%s5267_s1 + $0x108] sm:$0xff] }
  0x18   : > { %v3129_v8 = vld [vmem:[%s4281_s17 + $0x140] sm:$0xf]  ;;  %v3842_v9 = vld [vmem:[%s4281_s17 + $0x150] sm:$0xf0]  ;;  %v3149_v31 = vld [vmem:[%s4281_s17 + $0x168] sm:$0xf] }
  0x19   : > { %4005 = vmatpush.bf16.msra.mxu1 %v3965_v2  ;;  %4006 = vmatpush.bf16.msra.mxu2 %v3965_v2  ;;  %v3289_v10 = vld [vmem:[%s4281_s17 + $0x280] sm:$0xf]  ;;  %v3882_v11 = vld [vmem:[%s4281_s17 + $0x290] sm:$0xf0]  ;;  %v3130_v18 = vor.u32 %v3842_v9, %v3129_v8  ;;  %v3847_v32 = vld [vmem:[%s4281_s17 + $0x178] sm:$0xf0] }
  0x1a   : > { %4007 = vmatpush.bf16.msra.mxu3 %v3965_v2  ;;  %1584 = vmatpush.bf16.msra.mxu0 %v3965_v2  ;;  %v3449_v12 = vld [vmem:[%s4281_s17 + $0x3c0] sm:$0xf]  ;;  %v3922_v13 = vld [vmem:[%s4281_s17 + $0x3d0] sm:$0xf0]  ;;  %v3290_v19 = vor.u32 %v3882_v11, %v3289_v10  ;;  %v3309_v33 = vld [vmem:[%s4281_s17 + $0x2a8] sm:$0xf]  ;;  %v3150_v39 = vor.u32 %v3847_v32, %v3149_v31 }
  0x1b   : > { %v2969_v14 = vld [vmem:[%s4281_s17] sm:$0xf]  ;;  %v3802_v15 = vld [vmem:[%s4281_s17 + $0x10] sm:$0xf0]  ;;  %v3450_v20 = vor.u32 %v3922_v13, %v3449_v12  ;;  %v3887_v34 = vld [vmem:[%s4281_s17 + $0x2b8] sm:$0xf0] }
  0x1c   : > { %v2970_v21 = vor.u32 %v3802_v15, %v2969_v14  ;;  %v3469_v35 = vld [vmem:[%s4281_s17 + $0x3e8] sm:$0xf]  ;;  %v3927_v36 = vld [vmem:[%s4281_s17 + $0x3f8] sm:$0xf0]  ;;  %v3310_v40 = vor.u32 %v3887_v34, %v3309_v33  ;;  %v3972_v45 = vld [vmem:[%s5267_s1 + $0x60] sm:$0xff] }
  0x1d   : > { %4008 = vmatpush.bf16.msra.mxu1 %v3964_v3  ;;  %4009 = vmatpush.bf16.msra.mxu2 %v3964_v3  ;;  %v2989_v37 = vld [vmem:[%s4281_s17 + $0x28] sm:$0xf]  ;;  %v3807_v38 = vld [vmem:[%s4281_s17 + $0x38] sm:$0xf0]  ;;  %v3470_v41 = vor.u32 %v3927_v36, %v3469_v35  ;;  %v3169_v46 = vld [vmem:[%s4281_s17 + $0x190] sm:$0xf] }
  0x1e   : > { %4010 = vmatpush.bf16.msra.mxu3 %v3964_v3  ;;  %1585 = vmatpush.bf16.msra.mxu0 %v3964_v3  ;;  %v2990_v42 = vor.u32 %v3807_v38, %v2989_v37  ;;  %v3852_v47 = vld [vmem:[%s4281_s17 + $0x1a0] sm:$0xf0]  ;;  %v3329_v48 = vld [vmem:[%s4281_s17 + $0x2d0] sm:$0xf]  ;;  %v3971_v60 = vld [vmem:[%s5267_s1 + $0x58] sm:$0xff] }
  0x1f   : > { %v3892_v49 = vld [vmem:[%s4281_s17 + $0x2e0] sm:$0xf0]  ;;  %v3489_v50 = vld [vmem:[%s4281_s17 + $0x410] sm:$0xf]  ;;  %v3170_v54 = vor.u32 %v3852_v47, %v3169_v46  ;;  %v3189_v62 = vld [vmem:[%s4281_s17 + $0x1b8] sm:$0xf] }
  0x20   : > { %v3932_v51 = vld [vmem:[%s4281_s17 + $0x420] sm:$0xf0]  ;;  %v3009_v52 = vld [vmem:[%s4281_s17 + $0x50] sm:$0xf]  ;;  %v3330_v55 = vor.u32 %v3892_v49, %v3329_v48  ;;  %v3857_v63 = vld [vmem:[%s4281_s17 + $0x1c8] sm:$0xf0] }
  0x21   : > { %4011 = vmatpush.bf16.msra.mxu1 %v3963_v4  ;;  %4012 = vmatpush.bf16.msra.mxu2 %v3963_v4  ;;  %v3812_v53 = vld [vmem:[%s4281_s17 + $0x60] sm:$0xf0]  ;;  %v3490_v56 = vor.u32 %v3932_v51, %v3489_v50  ;;  %v3349_v0 = vld [vmem:[%s4281_s17 + $0x2f8] sm:$0xf]  ;;  %v3897_v1 = vld [vmem:[%s4281_s17 + $0x308] sm:$0xf0] }
  0x22   : > { %4013 = vmatpush.bf16.msra.mxu3 %v3963_v4  ;;  %1586 = vmatpush.bf16.msra.mxu0 %v3963_v4  ;;  %v3010_v57 = vor.u32 %v3812_v53, %v3009_v52  ;;  %v3509_v2 = vld [vmem:[%s4281_s17 + $0x438] sm:$0xf]  ;;  %v3937_v3 = vld [vmem:[%s4281_s17 + $0x448] sm:$0xf0]  ;;  %v3978_v10 = vld [vmem:[%s5267_s1 + $0x90] sm:$0xff] }
  0x23   : > { %v3029_v4 = vld [vmem:[%s4281_s17 + $0x78] sm:$0xf]  ;;  %v3510_v8 = vor.u32 %v3937_v3, %v3509_v2  ;;  %v3986_v11 = vld [vmem:[%s5267_s1 + $0xd0] sm:$0xff]  ;;  %v3209_v13 = vld [vmem:[%s4281_s17 + $0x1e0] sm:$0xf] }
  0x24   : > { %v3970_v12 = vld [vmem:[%s5267_s1 + $0x50] sm:$0xff]  ;;  %v3369_v15 = vld [vmem:[%s4281_s17 + $0x320] sm:$0xf]  ;;  %v3389_v31 = vld [vmem:[%s4281_s17 + $0x348] sm:$0xf] }
  0x25   : > { %4014 = vmatpush.bf16.msra.mxu1 %v3962_v5  ;;  %4015 = vmatpush.bf16.msra.mxu2 %v3962_v5  ;;  %v3862_v14 = vld [vmem:[%s4281_s17 + $0x1f0] sm:$0xf0]  ;;  %v3907_v32 = vld [vmem:[%s4281_s17 + $0x358] sm:$0xf0]  ;;  %v3549_v33 = vld [vmem:[%s4281_s17 + $0x488] sm:$0xf] }
  0x26   : > { %4016 = vmatpush.bf16.msra.mxu3 %v3962_v5  ;;  %1587 = vmatpush.bf16.msra.mxu0 %v3962_v5  ;;  %v3817_v5 = vld [vmem:[%s4281_s17 + $0x88] sm:$0xf0]  ;;  %v3947_v34 = vld [vmem:[%s4281_s17 + $0x498] sm:$0xf0]  ;;  %v3069_v35 = vld [vmem:[%s4281_s17 + $0xc8] sm:$0xf]  ;;  %v3390_v38 = vor.u32 %v3907_v32, %v3389_v31 }
  0x27   : > { %v3030_v9 = vor.u32 %v3817_v5, %v3029_v4  ;;  %v3827_v36 = vld [vmem:[%s4281_s17 + $0xd8] sm:$0xf0]  ;;  %v3409_v46 = vld [vmem:[%s4281_s17 + $0x370] sm:$0xf]  ;;  %v3912_v47 = vld [vmem:[%s4281_s17 + $0x380] sm:$0xf0] }
  0x28   : > { %v3569_v48 = vld [vmem:[%s4281_s17 + $0x4b0] sm:$0xf]  ;;  %v3952_v49 = vld [vmem:[%s4281_s17 + $0x4c0] sm:$0xf0]  ;;  %v3410_v53 = vor.u32 %v3912_v47, %v3409_v46  ;;  %v2971_v5 = vld [vmem:[%s4281_s17 + $0x14] sm:$0xf0] }
  0x29   : > { %4017 = vmatpush.bf16.msra.mxu1 %v3961_v6  ;;  %4018 = vmatpush.bf16.msra.mxu2 %v3961_v6  ;;  %v3089_v50 = vld [vmem:[%s4281_s17 + $0xf0] sm:$0xf]  ;;  %v3832_v51 = vld [vmem:[%s4281_s17 + $0x100] sm:$0xf0]  ;;  %v3811_v46 = vld [vmem:[%s4281_s17 + $0x5c] sm:$0xf] }
  0x2a   : > { %4019 = vmatpush.bf16.msra.mxu3 %v3961_v6  ;;  %1588 = vmatpush.bf16.msra.mxu0 %v3961_v6  ;;  %v3190_v6 = vor.u32 %v3857_v63, %v3189_v62  ;;  %v3109_v62 = vld [vmem:[%s4281_s17 + $0x118] sm:$0xf]  ;;  %v3837_v63 = vld [vmem:[%s4281_s17 + $0x128] sm:$0xf0]  ;;  %v3800_v4 = vld [vmem:[%s4281_s17 + $0x4] sm:$0xf] }
  0x2b   : > { %v3110_v3 = vor.u32 %v3837_v63, %v3109_v62  ;;  %v3019_v47 = vld [vmem:[%s4281_s17 + $0x6c] sm:$0xf0]  ;;  %v3815_v62 = vld [vmem:[%s4281_s17 + $0x7c] sm:$0xf] }
  0x2c   : > { %v3031_v63 = vld [vmem:[%s4281_s17 + $0x8c] sm:$0xf0] }
  0x2d   : > { %4020 = vmatpush.bf16.msra.mxu1 %v3960_v7  ;;  %4021 = vmatpush.bf16.msra.mxu2 %v3960_v7 }
  0x2e   : > { %4022 = vmatpush.bf16.msra.mxu3 %v3960_v7  ;;  %1589 = vmatpush.bf16.msra.mxu0 %v3960_v7  ;;  %v3350_v7 = vor.u32 %v3897_v1, %v3349_v0 }
  0x30   : > { %1630 = vmatmul.bf16.vlgmr.msra.gmra.mxu1 %v3130_v18  ;;  %1670 = vmatmul.bf16.vlgmr.msra.gmra.mxu2 %v3290_v19  ;;  %v3942_v18 = vld [vmem:[%s4281_s17 + $0x470] sm:$0xf0]  ;;  %v3049_v19 = vld [vmem:[%s4281_s17 + $0xa0] sm:$0xf] }
  0x31   : > { %1920 = vmatpush.bf16.msrb.mxu2 %v3983_v16  ;;  %1710 = vmatmul.bf16.vlgmr.msra.gmra.mxu3 %v3450_v20  ;;  %v3902_v16 = vld [vmem:[%s4281_s17 + $0x330] sm:$0xf0] }
  0x32   : > { %2089 = vmatpush.bf16.msrb.mxu3 %v3991_v17  ;;  %1590 = vmatmul.bf16.vlgmr.msra.gmra.mxu0 %v2970_v21  ;;  %v3529_v17 = vld [vmem:[%s4281_s17 + $0x460] sm:$0xf]  ;;  %v3822_v20 = vld [vmem:[%s4281_s17 + $0xb0] sm:$0xf0]  ;;  %v3210_v21 = vor.u32 %v3862_v14, %v3209_v13 }
  0x33   : > { %1751 = vmatpush.bf16.msrb.mxu1 %v3975_v22  ;;  %2262 = vmatpush.bf16.msrb.mxu0 %v3995_v23  ;;  %v3370_v22 = vor.u32 %v3902_v16, %v3369_v15  ;;  %v3530_v23 = vor.u32 %v3942_v18, %v3529_v17 }
  0x35   : > { %1921 = vmatpush.bf16.msrb.mxu2 %v3982_v24  ;;  %v3050_v24 = vor.u32 %v3822_v20, %v3049_v19 }
  0x36   : > { %2090 = vmatpush.bf16.msrb.mxu3 %v3990_v25  ;;  %v3977_v25 = vld [vmem:[%s5267_s1 + $0x88] sm:$0xff] }
  0x37   : > { %1752 = vmatpush.bf16.msrb.mxu1 %v3974_v26  ;;  %2263 = vmatpush.bf16.msrb.mxu0 %v3994_v27  ;;  %v3985_v26 = vld [vmem:[%s5267_s1 + $0xc8] sm:$0xff] }
  0x38   : > { %v3969_v27 = vld [vmem:[%s5267_s1 + $0x48] sm:$0xff] }
  0x39   : > { %1922 = vmatpush.bf16.msrb.mxu2 %v3981_v28  ;;  %v3992_v28 = vld [vmem:[%s5267_s1 + $0x100] sm:$0xff] }
  0x3a   : > { %2091 = vmatpush.bf16.msrb.mxu3 %v3989_v29  ;;  %v3229_v29 = vld [vmem:[%s4281_s17 + $0x208] sm:$0xf] }
  0x3b   : > { %1753 = vmatpush.bf16.msrb.mxu1 %v3973_v30  ;;  %2264 = vmatpush.bf16.msrb.mxu0 %v3993_v61  ;;  %v3867_v30 = vld [vmem:[%s4281_s17 + $0x218] sm:$0xf0]  ;;  %v3957_v61 = vld [vmem:[%s4281_s17 + $0x4e8] sm:$0xf0] }
  0x3c   : > { %v3230_v37 = vor.u32 %v3867_v30, %v3229_v29  ;;  %v3809_v29 = vld [vmem:[%s4281_s17 + $0x48] sm:$0xf0] }
  0x3d   : > { %1923 = vmatpush.bf16.msrb.mxu2 %v3980_v43  ;;  %v3968_v43 = vld [vmem:[%s5267_s1 + $0x40] sm:$0xff] }
  0x3e   : > { %2092 = vmatpush.bf16.msrb.mxu3 %v3988_v44  ;;  %v3249_v44 = vld [vmem:[%s4281_s17 + $0x230] sm:$0xf] }
  0x3f   : > { %1754 = vmatpush.bf16.msrb.mxu1 %v3972_v45  ;;  %2265 = vmatpush.bf16.msrb.mxu0 %v3992_v28  ;;  %v3872_v45 = vld [vmem:[%s4281_s17 + $0x240] sm:$0xf0]  ;;  %v3005_v28 = vld [vmem:[%s4281_s17 + $0x38] sm:$0xf] }
  0x40   : > { %1635 = vmatmul.bf16.gmra.mxu1 %v3150_v39  ;;  %1675 = vmatmul.bf16.gmra.mxu2 %v3310_v40  ;;  %v3550_v39 = vor.u32 %v3947_v34, %v3549_v33  ;;  %v3070_v40 = vor.u32 %v3827_v36, %v3069_v35  ;;  %v3250_v52 = vor.u32 %v3872_v45, %v3249_v44  ;;  %v3017_v44 = vld [vmem:[%s4281_s17 + $0x58] sm:$0xf]  ;;  %v3813_v45 = vld [vmem:[%s4281_s17 + $0x68] sm:$0xf0] }
  0x41   : > { %1715 = vmatmul.bf16.gmra.mxu3 %v3470_v41  ;;  %1924 = vmatpush.bf16.msrb.mxu2 %v3979_v58  ;;  %v3976_v41 = vld [vmem:[%s5267_s1 + $0x80] sm:$0xff]  ;;  %v3429_v58 = vld [vmem:[%s4281_s17 + $0x398] sm:$0xf]  ;;  %v3006_v36 = vor.u32 %v3809_v29, %v3005_v28  ;;  %v3821_v28 = vld [vmem:[%s4281_s17 + $0xac] sm:$0xf] }
  0x42   : > { %1595 = vmatmul.bf16.gmra.mxu0 %v2990_v42  ;;  %2093 = vmatpush.bf16.msrb.mxu3 %v3987_v59  ;;  %v3984_v42 = vld [vmem:[%s5267_s1 + $0xc0] sm:$0xff]  ;;  %v3917_v59 = vld [vmem:[%s4281_s17 + $0x3a8] sm:$0xf0] }
  0x43   : > { %1755 = vmatpush.bf16.msrb.mxu1 %v3971_v60  ;;  %v3589_v60 = vld [vmem:[%s4281_s17 + $0x4d8] sm:$0xf]  ;;  %v3430_v1 = vor.u32 %v3917_v59, %v3429_v58  ;;  %v3059_v29 = vld [vmem:[%s4281_s17 + $0xbc] sm:$0xf0] }
  0x44   : > { %v3590_v2 = vor.u32 %v3957_v61, %v3589_v60 }
  0x45   : > { %1925 = vmatpush.bf16.msrb.mxu2 %v3978_v10  ;;  %v2985_v10 = vld [vmem:[%s4281_s17 + $0x10] sm:$0xf] }
  0x46   : > { %2094 = vmatpush.bf16.msrb.mxu3 %v3986_v11  ;;  %v3804_v11 = vld [vmem:[%s4281_s17 + $0x20] sm:$0xf0] }
  0x47   : > { %1756 = vmatpush.bf16.msrb.mxu1 %v3970_v12  ;;  %v2974_v12 = vor.u32 %v3800_v4, %v2971_v5  ;;  %v2986_v16 = vor.u32 %v3804_v11, %v2985_v10  ;;  %v3045_v4 = vld [vmem:[%s4281_s17 + $0x88] sm:$0xf]  ;;  %v3819_v5 = vld [vmem:[%s4281_s17 + $0x98] sm:$0xf0] }
  0x49   : > { %1926 = vmatpush.bf16.msrb.mxu2 %v3977_v25  ;;  %v3808_v25 = vld [vmem:[%s4281_s17 + $0x40] sm:$0xf0] }
  0x4a   : > { %2095 = vmatpush.bf16.msrb.mxu3 %v3985_v26  ;;  %v3806_v26 = vld [vmem:[%s4281_s17 + $0x34] sm:$0xf] }
  0x4b   : > { %1757 = vmatpush.bf16.msrb.mxu1 %v3969_v27  ;;  %v2999_v27 = vld [vmem:[%s4281_s17 + $0x44] sm:$0xf0] }
  0x4c   : > { %v3002_v35 = vor.u32 %v3806_v26, %v2999_v27  ;;  %v3057_v26 = vld [vmem:[%s4281_s17 + $0xa8] sm:$0xf]  ;;  %v3823_v27 = vld [vmem:[%s4281_s17 + $0xb8] sm:$0xf0] }
  0x4d   : > { %1927 = vmatpush.bf16.msrb.mxu2 %v3976_v41 }
  0x4e   : > { %2096 = vmatpush.bf16.msrb.mxu3 %v3984_v42  ;;  %v3810_v42 = vld [vmem:[%s4281_s17 + $0x54] sm:$0xf] }
  0x4f   : > { %1758 = vmatpush.bf16.msrb.mxu1 %v3968_v43  ;;  %v3011_v43 = vld [vmem:[%s4281_s17 + $0x64] sm:$0xf0] }
  0x50   : > { %1640 = vmatmul.bf16.gmra.mxu1 %v3170_v54  ;;  %1680 = vmatmul.bf16.gmra.mxu2 %v3330_v55  ;;  %v3570_v54 = vor.u32 %v3952_v49, %v3569_v48  ;;  %v3090_v55 = vor.u32 %v3832_v51, %v3089_v50  ;;  %v3025_v48 = vld [vmem:[%s4281_s17 + $0x60] sm:$0xf]  ;;  %v3814_v49 = vld [vmem:[%s4281_s17 + $0x70] sm:$0xf0] }
  0x51   : > { %1720 = vmatmul.bf16.gmra.mxu3 %v3490_v56  ;;  %v3269_v56 = vld [vmem:[%s4281_s17 + $0x258] sm:$0xf] }
  0x52   : > { %1600 = vmatmul.bf16.gmra.mxu0 %v3010_v57  ;;  %v3877_v57 = vld [vmem:[%s4281_s17 + $0x268] sm:$0xf0] }
  0x53   : > { %v3270_v0 = vor.u32 %v3877_v57, %v3269_v56  ;;  %v3026_v56 = vor.u32 %v3814_v49, %v3025_v48 }
  0x60   : > { %1645 = vmatmul.bf16.gmra.mxu1 %v3190_v6  ;;  %1685 = vmatmul.bf16.gmra.mxu2 %v3350_v7  ;;  %v2977_v6 = vld [vmem:[%s4281_s17 + $0x8] sm:$0xf]  ;;  %v3803_v7 = vld [vmem:[%s4281_s17 + $0x18] sm:$0xf0] }
  0x61   : > { %1725 = vmatmul.bf16.gmra.mxu3 %v3510_v8  ;;  %v3801_v8 = vld [vmem:[%s4281_s17 + $0xc] sm:$0xf]  ;;  %v2978_v13 = vor.u32 %v3803_v7, %v2977_v6 }
  0x62   : > { %1605 = vmatmul.bf16.gmra.mxu0 %v3030_v9  ;;  %v2979_v9 = vld [vmem:[%s4281_s17 + $0x1c] sm:$0xf0] }
  0x63   : > { %v2982_v15 = vor.u32 %v3801_v8, %v2979_v9  ;;  %v3034_v8 = vor.u32 %v3815_v62, %v3031_v63  ;;  %v3077_v62 = vld [vmem:[%s4281_s17 + $0xd0] sm:$0xf]  ;;  %v3828_v63 = vld [vmem:[%s4281_s17 + $0xe0] sm:$0xf0] }
  0x70   : > { %1650 = vmatmul.bf16.gmra.mxu1 %v3210_v21  ;;  %1690 = vmatmul.bf16.gmra.mxu2 %v3370_v22  ;;  %v3805_v22 = vld [vmem:[%s4281_s17 + $0x2c] sm:$0xf] }
  0x71   : > { %1730 = vmatmul.bf16.gmra.mxu3 %v3530_v23  ;;  %v2991_v23 = vld [vmem:[%s4281_s17 + $0x3c] sm:$0xf0] }
  0x72   : > { %1610 = vmatmul.bf16.gmra.mxu0 %v3050_v24  ;;  %v2997_v24 = vld [vmem:[%s4281_s17 + $0x30] sm:$0xf]  ;;  %v2994_v32 = vor.u32 %v3805_v22, %v2991_v23 }
  0x73   : > { %v2998_v33 = vor.u32 %v3808_v25, %v2997_v24  ;;  %v3820_v24 = vld [vmem:[%s4281_s17 + $0xa4] sm:$0xf]  ;;  %v3051_v25 = vld [vmem:[%s4281_s17 + $0xb4] sm:$0xf0] }
  0x80   : > { %1655 = vmatmul.bf16.gmra.mxu1 %v3230_v37  ;;  %1695 = vmatmul.bf16.gmra.mxu2 %v3390_v38 }
  0x81   : > { %1735 = vmatmul.bf16.gmra.mxu3 %v3550_v39 }
  0x82   : > { %1615 = vmatmul.bf16.gmra.mxu0 %v3070_v40 }
  0x90   : > { %1660 = vmatmul.bf16.gmra.mxu1 %v3250_v52  ;;  %1700 = vmatmul.bf16.gmra.mxu2 %v3410_v53  ;;  %v3014_v52 = vor.u32 %v3810_v42, %v3011_v43  ;;  %v3018_v53 = vor.u32 %v3813_v45, %v3017_v44  ;;  %v3054_v42 = vor.u32 %v3820_v24, %v3051_v25 }
  0x91   : > { %1740 = vmatmul.bf16.gmra.mxu3 %v3570_v54  ;;  %v3058_v43 = vor.u32 %v3823_v27, %v3057_v26  ;;  %v3062_v45 = vor.u32 %v3821_v28, %v3059_v29 }
  0x92   : > { %1620 = vmatmul.bf16.gmra.mxu0 %v3090_v55  ;;  %v3022_v55 = vor.u32 %v3811_v46, %v3019_v47 }
  0xa0   : > { %1665 = vmatmul.bf16.gmra.mxu1 %v3270_v0  ;;  %1705 = vmatmul.bf16.gmra.mxu2 %v3430_v1  ;;  %v3037_v0 = vld [vmem:[%s4281_s17 + $0x80] sm:$0xf]  ;;  %v3818_v1 = vld [vmem:[%s4281_s17 + $0x90] sm:$0xf0] }
  0xa1   : > { %1745 = vmatmul.bf16.gmra.mxu3 %v3590_v2  ;;  %v3816_v2 = vld [vmem:[%s4281_s17 + $0x84] sm:$0xf]  ;;  %v3038_v9 = vor.u32 %v3818_v1, %v3037_v0  ;;  %v3826_v0 = vld [vmem:[%s4281_s17 + $0xd4] sm:$0xf]  ;;  %v3079_v1 = vld [vmem:[%s4281_s17 + $0xe4] sm:$0xf0] }
  0xa2   : > { %1625 = vmatmul.bf16.gmra.mxu0 %v3110_v3  ;;  %v3039_v3 = vld [vmem:[%s4281_s17 + $0x94] sm:$0xf0] }
  0xa3   : > { %v3042_v11 = vor.u32 %v3816_v2, %v3039_v3  ;;  %v3085_v2 = vld [vmem:[%s4281_s17 + $0xd8] sm:$0xf]  ;;  %v3829_v3 = vld [vmem:[%s4281_s17 + $0xe8] sm:$0xf0] }
  0xa4   : > { %v3086_v24 = vor.u32 %v3829_v3, %v3085_v2 }
  0xad   : > { %v4442_v14 = vpop.f32.mrf.mxu1 }
  0xaf   : > { %v4444_v17 = vpop.f32.mrf.mxu0 }
  0xb0   : > { %1759 = vmatmul.bf16.vlgmr.msrb.gmra.mxu1 %v2974_v12  ;;  %1928 = vmatmul.bf16.vlgmr.msrb.gmra.mxu2 %v2978_v13  ;;  %v3046_v12 = vor.u32 %v3819_v5, %v3045_v4 }
  0xb1   : > { %2097 = vmatmul.bf16.vlgmr.msrb.gmra.mxu3 %v2982_v15 }
  0xb2   : > { %3751 = vmatmul.msk.bf16.vlgmr.msrb.gmra.mxu0 %vm1485_vm0, %v2986_v16 }
  0xb3   : > { %v4447_v18 = vpop.f32.mrf.mxu2 }
  0xb4   : > { %v4449_v19 = vpop.f32.mrf.mxu3 }
  0xb5   : > { %5271 = vst [vmem:[#allocation3_spill] sm:$0xff] %v4449_v19  ;;  %v4451_v20 = vpop.f32.mrf.mxu1 }
  0xb7   : > { %v4453_v21 = vpop.f32.mrf.mxu0 }
  0xbb   : > { %v4463_v30 = vpop.f32.mrf.mxu2 }
  0xbc   : > { %v4465_v31 = vpop.f32.mrf.mxu3 }
  0xbd   : > { %5272 = vst [vmem:[#allocation4_spill] sm:$0xff] %v4465_v31  ;;  %v4467_v34 = vpop.f32.mrf.mxu1  ;;  %v4645_v31 = vld [vmem:[%s5268_s2] ss:$0 sm:$0xff] }
  0xbf   : > { %v4469_v37 = vpop.f32.mrf.mxu0 }
  0xc0   : > { %1764 = vmatmul.bf16.gmra.mxu1 %v2994_v32  ;;  %1933 = vmatmul.bf16.gmra.mxu2 %v2998_v33  ;;  %v3065_v32 = vld [vmem:[%s4281_s17 + $0xb0] sm:$0xf]  ;;  %v3824_v33 = vld [vmem:[%s4281_s17 + $0xc0] sm:$0xf0] }
  0xc1   : > { %2102 = vmatmul.bf16.gmra.mxu3 %v3002_v35  ;;  %v3066_v46 = vor.u32 %v3824_v33, %v3065_v32  ;;  %v3830_v32 = vld [vmem:[%s4281_s17 + $0xf4] sm:$0xf]  ;;  %v3091_v33 = vld [vmem:[%s4281_s17 + $0x104] sm:$0xf0] }
  0xc2   : > { %3752 = vmatmul.msk.bf16.gmra.mxu0 %vm1485_vm0, %v3006_v36 }
  0xc3   : > { %v4472_v38 = vpop.f32.mrf.mxu2 }
  0xc4   : > { %v4474_v39 = vpop.f32.mrf.mxu3 }
  0xc5   : > { %5273 = vst [vmem:[#allocation5_spill] sm:$0xff] %v4474_v39  ;;  %v4476_v40 = vpop.f32.mrf.mxu1 }
  0xc7   : > { %v4478_v41 = vpop.f32.mrf.mxu0 }
  0xcb   : > { %v4488_v50 = vpop.f32.mrf.mxu2 }
  0xcc   : > { %v4490_v51 = vpop.f32.mrf.mxu3 }
  0xcd   : > { %5274 = vst [vmem:[#allocation6_spill] sm:$0xff] %v4490_v51  ;;  %v4492_v54 = vpop.f32.mrf.mxu1 }
  0xcf   : > { %v4494_v57 = vpop.f32.mrf.mxu0 }
  0xd0   : > { %1769 = vmatmul.bf16.gmra.mxu1 %v3014_v52  ;;  %1938 = vmatmul.bf16.gmra.mxu2 %v3018_v53 }
  0xd1   : > { %2107 = vmatmul.bf16.gmra.mxu3 %v3022_v55  ;;  %v3825_v55 = vld [vmem:[%s4281_s17 + $0xcc] sm:$0xf] }
  0xd2   : > { %3753 = vmatmul.msk.bf16.gmra.mxu0 %vm1485_vm0, %v3026_v56  ;;  %v3071_v56 = vld [vmem:[%s4281_s17 + $0xdc] sm:$0xf0] }
  0xd3   : > { %v4497_v58 = vpop.f32.mrf.mxu2 }
  0xd4   : > { %v4499_v59 = vpop.f32.mrf.mxu3 }
  0xd5   : > { %5275 = vst [vmem:[#allocation7_spill] sm:$0xff] %v4499_v59  ;;  %v4501_v60 = vpop.f32.mrf.mxu1 }
  0xd7   : > { %v4503_v61 = vpop.f32.mrf.mxu0 }
  0xdb   : > { %v4513_v6 = vpop.f32.mrf.mxu2 }
  0xdc   : > { %v4515_v7 = vpop.f32.mrf.mxu3 }
  0xdd   : > { %5276 = vst [vmem:[#allocation8_spill] sm:$0xff] %v4515_v7  ;;  %v4517_v10 = vpop.f32.mrf.mxu1  ;;  %v3145_v7 = vld [vmem:[%s4281_s17 + $0x150] sm:$0xf] }
  0xdf   : > { %v4519_v13 = vpop.f32.mrf.mxu0 }
  0xe0   : > { %1774 = vmatmul.bf16.gmra.mxu1 %v3034_v8  ;;  %1943 = vmatmul.bf16.gmra.mxu2 %v3038_v9  ;;  %v3074_v8 = vor.u32 %v3825_v55, %v3071_v56  ;;  %v3078_v9 = vor.u32 %v3828_v63, %v3077_v62  ;;  %v3105_v55 = vld [vmem:[%s4281_s17 + $0x100] sm:$0xf]  ;;  %v3834_v56 = vld [vmem:[%s4281_s17 + $0x110] sm:$0xf0] }
  0xe1   : > { %2112 = vmatmul.bf16.gmra.mxu3 %v3042_v11 }
  0xe2   : > { %3754 = vmatmul.msk.bf16.gmra.mxu0 %vm1485_vm0, %v3046_v12  ;;  %v3082_v12 = vor.u32 %v3826_v0, %v3079_v1  ;;  %v3094_v0 = vor.u32 %v3830_v32, %v3091_v33 }
  0xe3   : > { %v4522_v15 = vpop.f32.mrf.mxu2 }
  0xe4   : > { %v4524_v16 = vpop.f32.mrf.mxu3 }
  0xe5   : > { %5277 = vst [vmem:[#allocation9_spill] sm:$0xff] %v4524_v16  ;;  %v4526_v22 = vpop.f32.mrf.mxu1  ;;  %v3139_v16 = vld [vmem:[%s4281_s17 + $0x15c] sm:$0xf0] }
  0xe7   : > { %v4528_v23 = vpop.f32.mrf.mxu0 }
  0xeb   : > { %v4538_v35 = vpop.f32.mrf.mxu2 }
  0xec   : > { %v4540_v36 = vpop.f32.mrf.mxu3 }
  0xed   : > { %5278 = vst [vmem:[#allocation10_spill] sm:$0xff] %v4540_v36  ;;  %v4542_v44 = vpop.f32.mrf.mxu1 }
  0xef   : > { %v4544_v47 = vpop.f32.mrf.mxu0 }
  0xf0   : > { %1779 = vmatmul.bf16.gmra.mxu1 %v3054_v42  ;;  %1948 = vmatmul.bf16.gmra.mxu2 %v3058_v43  ;;  %v3097_v42 = vld [vmem:[%s4281_s17 + $0xf8] sm:$0xf]  ;;  %v3833_v43 = vld [vmem:[%s4281_s17 + $0x108] sm:$0xf0] }
  0xf1   : > { %2117 = vmatmul.bf16.gmra.mxu3 %v3062_v45  ;;  %v3831_v45 = vld [vmem:[%s4281_s17 + $0xfc] sm:$0xf]  ;;  %v3098_v1 = vor.u32 %v3833_v43, %v3097_v42  ;;  %v3111_v43 = vld [vmem:[%s4281_s17 + $0x12c] sm:$0xf0] }
  0xf2   : > { %3755 = vmatmul.msk.bf16.gmra.mxu0 %vm1485_vm0, %v3066_v46  ;;  %v3099_v46 = vld [vmem:[%s4281_s17 + $0x10c] sm:$0xf0]  ;;  %v3835_v42 = vld [vmem:[%s4281_s17 + $0x11c] sm:$0xf] }
  0xf3   : > { %v4547_v48 = vpop.f32.mrf.mxu2  ;;  %v3102_v3 = vor.u32 %v3831_v45, %v3099_v46  ;;  %v3117_v45 = vld [vmem:[%s4281_s17 + $0x120] sm:$0xf]  ;;  %v3838_v46 = vld [vmem:[%s4281_s17 + $0x130] sm:$0xf0] }
  0xf4   : > { %v4549_v49 = vpop.f32.mrf.mxu3 }
  0xf5   : > { %5279 = vst [vmem:[#allocation11_spill] sm:$0xff] %v4549_v49  ;;  %v4551_v52 = vpop.f32.mrf.mxu1 }
  0xf7   : > { %v4553_v53 = vpop.f32.mrf.mxu0 }
  0xfb   : > { %v4563_v4 = vpop.f32.mrf.mxu2 }
  0xfc   : > { %5280 = vst [vmem:[#allocation12_spill] sm:$0xff] %v4563_v4  ;;  %v4565_v5 = vpop.f32.mrf.mxu3 }
  0xfd   : > { %5281 = vst [vmem:[#allocation13_spill] sm:$0xff] %v4565_v5  ;;  %v4567_v11 = vpop.f32.mrf.mxu1 }
  0xff   : > { %v4569_v25 = vpop.f32.mrf.mxu0 }
 0x100   : > { %1784 = vmatmul.bf16.gmra.mxu1 %v3074_v8  ;;  %1953 = vmatmul.bf16.gmra.mxu2 %v3078_v9  ;;  %v3106_v8 = vor.u32 %v3834_v56, %v3105_v55  ;;  %v3836_v55 = vld [vmem:[%s4281_s17 + $0x124] sm:$0xf]  ;;  %v3119_v56 = vld [vmem:[%s4281_s17 + $0x134] sm:$0xf0] }
 0x101   : > { %2122 = vmatmul.bf16.gmra.mxu3 %v3082_v12  ;;  %v3122_v5 = vor.u32 %v3836_v55, %v3119_v56  ;;  %v3131_v55 = vld [vmem:[%s4281_s17 + $0x154] sm:$0xf0]  ;;  %v3843_v56 = vld [vmem:[%s4281_s17 + $0x158] sm:$0xf0] }
 0x102   : > { %3756 = vmatmul.msk.bf16.gmra.mxu0 %vm1485_vm0, %v3086_v24 }
 0x103   : > { %v4572_v26 = vpop.f32.mrf.mxu2 }
 0x104   : > { %5282 = vst [vmem:[#allocation14_spill] sm:$0xff] %v4572_v26  ;;  %v4574_v27 = vpop.f32.mrf.mxu3 }
 0x105   : > { %5283 = vst [vmem:[#allocation15_spill] sm:$0xff] %v4574_v27  ;;  %v4576_v28 = vpop.f32.mrf.mxu1 }
 0x107   : > { %v4578_v29 = vpop.f32.mrf.mxu0 }
 0x10b   : > { %v4588_v62 = vpop.f32.mrf.mxu2 }
 0x10c   : > { %5284 = vst [vmem:[#allocation16_spill] sm:$0xff] %v4588_v62  ;;  %v4590_v63 = vpop.f32.mrf.mxu3 }
 0x10d   : > { %5285 = vst [vmem:[#allocation17_spill] sm:$0xff] %v4590_v63  ;;  %v4592_v2 = vpop.f32.mrf.mxu1  ;;  %v3125_v63 = vld [vmem:[%s4281_s17 + $0x128] sm:$0xf] }
 0x10f   : > { %v4594_v9 = vpop.f32.mrf.mxu0 }
 0x110   : > { %1789 = vmatmul.bf16.gmra.mxu1 %v3094_v0  ;;  %1958 = vmatmul.bf16.gmra.mxu2 %v3098_v1  ;;  %v3839_v0 = vld [vmem:[%s4281_s17 + $0x138] sm:$0xf0] }
 0x111   : > { %2127 = vmatmul.bf16.gmra.mxu3 %v3102_v3  ;;  %v3126_v49 = vor.u32 %v3839_v0, %v3125_v63  ;;  %v3137_v63 = vld [vmem:[%s4281_s17 + $0x148] sm:$0xf]  ;;  %v3841_v0 = vld [vmem:[%s4281_s17 + $0x14c] sm:$0xf] }
 0x112   : > { %3757 = vmatmul.msk.bf16.gmra.mxu0 %vm1485_vm0, %v3106_v8  ;;  %v3114_v8 = vor.u32 %v3835_v42, %v3111_v43  ;;  %v3138_v59 = vor.u32 %v3843_v56, %v3137_v63  ;;  %v3142_v51 = vor.u32 %v3841_v0, %v3139_v16  ;;  %v3845_v0 = vld [vmem:[%s4281_s17 + $0x16c] sm:$0xf] }
 0x113   : > { %v4597_v12 = vpop.f32.mrf.mxu2 }
 0x114   : > { %5286 = vst [vmem:[#allocation18_spill] sm:$0xff] %v4597_v12  ;;  %v4599_v24 = vpop.f32.mrf.mxu3 }
 0x115   : > { %5287 = vst [vmem:[#allocation19_spill] sm:$0xff] %v4599_v24  ;;  %v4601_v32 = vpop.f32.mrf.mxu1  ;;  %v3118_v24 = vor.u32 %v3838_v46, %v3117_v45  ;;  %v3840_v46 = vld [vmem:[%s4281_s17 + $0x144] sm:$0xf] }
 0x117   : > { %v4603_v33 = vpop.f32.mrf.mxu0 }
 0x11b   : > { %v4613_v1 = vpop.f32.mrf.mxu2 }
 0x11c   : > { %5288 = vst [vmem:[#allocation20_spill] sm:$0xff] %v4613_v1  ;;  %v4615_v3 = vpop.f32.mrf.mxu3 }
 0x11d   : > { %5289 = vst [vmem:[#allocation21_spill] sm:$0xff] %v4615_v3  ;;  %v4617_v27 = vpop.f32.mrf.mxu1 }
 0x11f   : > { %v4619_v36 = vpop.f32.mrf.mxu0 }
 0x120   : > { %1794 = vmatmul.bf16.gmra.mxu1 %v3114_v8  ;;  %1963 = vmatmul.bf16.gmra.mxu2 %v3118_v24  ;;  %v3844_v8 = vld [vmem:[%s4281_s17 + $0x160] sm:$0xf0] }
 0x121   : > { %2132 = vmatmul.bf16.gmra.mxu3 %v3122_v5  ;;  %v3146_v39 = vor.u32 %v3844_v8, %v3145_v7  ;;  %v3151_v8 = vld [vmem:[%s4281_s17 + $0x17c] sm:$0xf0] }
 0x122   : > { %3758 = vmatmul.msk.bf16.gmra.mxu0 %vm1485_vm0, %v3126_v49  ;;  %v3134_v49 = vor.u32 %v3840_v46, %v3131_v55  ;;  %v3154_v62 = vor.u32 %v3845_v0, %v3151_v8 }
 0x123   : > { %v4622_v3 = vpop.f32.mrf.mxu2 }
 0x124   : > { %5290 = vst [vmem:[#allocation22_spill] sm:$0xff] %v4622_v3  ;;  %v4624_v42 = vpop.f32.mrf.mxu3  ;;  %v1592_v3 = vadd.f32 %v4645_v31, %v4444_v17 }
 0x125   : > { %5291 = vst [vmem:[#allocation23_spill] sm:$0xff] %v4624_v42  ;;  %v4626_v43 = vpop.f32.mrf.mxu1 }
 0x127   : > { %v4628_v45 = vpop.f32.mrf.mxu0 }
 0x12b   : > { %v4638_v24 = vpop.f32.mrf.mxu2 }
 0x12c   : > { %5292 = vst [vmem:[#allocation24_spill] sm:$0xff] %v4638_v24  ;;  %v4640_v5 = vpop.f32.mrf.mxu3  ;;  %v3849_v24 = vld [vmem:[%s4281_s17 + $0x188] sm:$0xf0] }
 0x12d   : > { %5293 = vst [vmem:[#allocation25_spill] sm:$0xff] %v4640_v5  ;;  %v1760_v42 = vpop.f32.mrf.mxu1 }
 0x12e   : > { %v1761_v7 = vadd.f32 %v1760_v42, %v1592_v3  ;;  %v3846_v3 = vld [vmem:[%s4281_s17 + $0x174] sm:$0xf]  ;;  %v3159_v42 = vld [vmem:[%s4281_s17 + $0x184] sm:$0xf0] }
 0x12f   : > { %v2267_v19 = vpop.f32.mrf.mxu0 }
 0x130   : > { %1799 = vmatmul.bf16.gmra.mxu1 %v3134_v49  ;;  %1968 = vmatmul.bf16.gmra.mxu2 %v3138_v59  ;;  %v1594_v59 = vadd.f32 %v4645_v31, %v4453_v21  ;;  %v3848_v49 = vld [vmem:[%s4281_s17 + $0x180] sm:$0xf0]  ;;  %v3162_v21 = vor.u32 %v3846_v3, %v3159_v42  ;;  %v3171_v3 = vld [vmem:[%s4281_s17 + $0x1a4] sm:$0xf0]  ;;  %v3177_v42 = vld [vmem:[%s4281_s17 + $0x198] sm:$0xf] }
 0x131   : > { %2137 = vmatmul.bf16.gmra.mxu3 %v3142_v51 }
 0x132   : > { %3759 = vmatmul.msk.bf16.gmra.mxu0 %vm1485_vm0, %v3146_v39  ;;  %v3157_v39 = vld [vmem:[%s4281_s17 + $0x170] sm:$0xf] }
 0x133   : > { %v1929_v16 = vpop.f32.mrf.mxu2  ;;  %v3158_v26 = vor.u32 %v3848_v49, %v3157_v39  ;;  %v3850_v49 = vld [vmem:[%s4281_s17 + $0x194] sm:$0xf] }
 0x134   : > { %v1930_v46 = vadd.f32 %v1929_v16, %v1761_v7  ;;  %v2098_v55 = vpop.f32.mrf.mxu3  ;;  %v3165_v16 = vld [vmem:[%s4281_s17 + $0x178] sm:$0xf] }
 0x135   : > { %v1762_v63 = vpop.f32.mrf.mxu1 }
 0x136   : > { %v2099_v17 = vadd.f32 %v2098_v55, %v1930_v46  ;;  %v1763_v7 = vadd.f32 %v1762_v63, %v1594_v59  ;;  %v1597_v59 = vadd.f32 %v4645_v31, %v4469_v37 }
 0x137   : > { %v2269_v56 = vpop.f32.mrf.mxu0 }
 0x138   : > { %v2268_v51 = vadd.f32 %v2267_v19, %v2099_v17  ;;  %v3166_v19 = vor.u32 %v3849_v24, %v3165_v16  ;;  %v3179_v16 = vld [vmem:[%s4281_s17 + $0x1ac] sm:$0xf0] }
 0x13a   : > { %v2427_v5 = vmax.f32 %v2268_v51, 0.0 }
 0x13b   : > { %v1931_v1 = vpop.f32.mrf.mxu2 }
 0x13c   : > { %v2491_v12 = vpack.c.bf16 %v2427_v5, %v2427_v5  ;;  %v1932_v46 = vadd.f32 %v1931_v1, %v1763_v7  ;;  %v2100_v55 = vpop.f32.mrf.mxu3  ;;  %v3851_v7 = vld [vmem:[%s4281_s17 + $0x19c] sm:$0xf] }
 0x13d   : > { %v1765_v4 = vpop.f32.mrf.mxu1 }
 0x13e   : > { %2556 = vst.msk [vmem:[%s4661_s12] sm:$0xf] %vm2555_vm1, %v2491_v12  ;;  %v2101_v17 = vadd.f32 %v2100_v55, %v1932_v46  ;;  %v1766_v24 = vadd.f32 %v1765_v4, %v1597_v59  ;;  %v3853_v4 = vld [vmem:[%s4281_s17 + $0x1a8] sm:$0xf0] }
 0x13f   : > { %v2272_v63 = vpop.f32.mrf.mxu0 }
 0x140   : > { %v2270_v51 = vadd.f32 %v2269_v56, %v2101_v17  ;;  %1804 = vmatmul.bf16.gmra.mxu1 %v3154_v62  ;;  %1973 = vmatmul.bf16.gmra.mxu2 %v3158_v26  ;;  %v1599_v56 = vadd.f32 %v4645_v31, %v4478_v41  ;;  %v3182_v41 = vor.u32 %v3851_v7, %v3179_v16 }
 0x141   : > { %2142 = vmatmul.bf16.gmra.mxu3 %v3162_v21  ;;  %v3185_v21 = vld [vmem:[%s4281_s17 + $0x1a0] sm:$0xf]  ;;  %v1604_v16 = vadd.f32 %v4645_v31, %v4503_v61 }
 0x142   : > { %3760 = vmatmul.msk.bf16.gmra.mxu0 %vm1485_vm0, %v3166_v19  ;;  %v2428_v1 = vmax.f32 %v2270_v51, 0.0  ;;  %v3854_v19 = vld [vmem:[%s4281_s17 + $0x1b0] sm:$0xf0] }
 0x143   : > { %v1934_v12 = vpop.f32.mrf.mxu2 }
 0x144   : > { %v2492_v5 = vpack.c.bf16 %v2428_v1, %v2428_v1  ;;  %v1935_v0 = vadd.f32 %v1934_v12, %v1766_v24  ;;  %v2103_v8 = vpop.f32.mrf.mxu3  ;;  %v3174_v24 = vor.u32 %v3850_v49, %v3171_v3  ;;  %v3178_v12 = vor.u32 %v3853_v4, %v3177_v42 }
 0x145   : > { %v1767_v37 = vpop.f32.mrf.mxu1 }
 0x146   : > { %2557 = vst.msk [vmem:[%s4661_s12 + $0x4] sm:$0xf] %vm2555_vm1, %v2492_v5  ;;  %v2104_v26 = vadd.f32 %v2103_v8, %v1935_v0  ;;  %v1768_v55 = vadd.f32 %v1767_v37, %v1599_v56 }
 0x147   : > { %v2274_v62 = vpop.f32.mrf.mxu0 }
 0x148   : > { %v2273_v39 = vadd.f32 %v2272_v63, %v2104_v26  ;;  %v3186_v63 = vor.u32 %v3854_v19, %v3185_v21  ;;  %v1602_v26 = vadd.f32 %v4645_v31, %v4494_v57  ;;  %v3191_v21 = vld [vmem:[%s4281_s17 + $0x1cc] sm:$0xf0]  ;;  %v3197_v19 = vld [vmem:[%s4281_s17 + $0x1c0] sm:$0xf] }
 0x14a   : > { %v2429_v46 = vmax.f32 %v2273_v39, 0.0 }
 0x14b   : > { %v1936_v17 = vpop.f32.mrf.mxu2 }
 0x14c   : > { %v2493_v59 = vpack.c.bf16 %v2429_v46, %v2429_v46  ;;  %v1937_v51 = vadd.f32 %v1936_v17, %v1768_v55  ;;  %v2105_v1 = vpop.f32.mrf.mxu3  ;;  %v3855_v55 = vld [vmem:[%s4281_s17 + $0x1bc] sm:$0xf]  ;;  %v3858_v17 = vld [vmem:[%s4281_s17 + $0x1d0] sm:$0xf0] }
 0x14d   : > { %v1770_v5 = vpop.f32.mrf.mxu1 }
 0x14e   : > { %2558 = vst.msk [vmem:[%s4661_s12 + $0x8] sm:$0xf] %vm2555_vm1, %v2493_v59  ;;  %v2106_v0 = vadd.f32 %v2105_v1, %v1937_v51  ;;  %v1771_v39 = vadd.f32 %v1770_v5, %v1602_v26  ;;  %v3856_v59 = vld [vmem:[%s4281_s17 + $0x1c4] sm:$0xf]  ;;  %v3199_v51 = vld [vmem:[%s4281_s17 + $0x1d4] sm:$0xf0] }
 0x14f   : > { %v2277_v8 = vpop.f32.mrf.mxu0  ;;  %v3859_v5 = vld [vmem:[%s4281_s17 + $0x1d8] sm:$0xf0]  ;;  %v3202_v61 = vor.u32 %v3856_v59, %v3199_v51  ;;  %v3860_v51 = vld [vmem:[%s4281_s17 + $0x1e4] sm:$0xf] }
 0x150   : > { %v2275_v37 = vadd.f32 %v2274_v62, %v2106_v0  ;;  %1809 = vmatmul.bf16.gmra.mxu1 %v3174_v24  ;;  %1978 = vmatmul.bf16.gmra.mxu2 %v3178_v12  ;;  %v3205_v12 = vld [vmem:[%s4281_s17 + $0x1c8] sm:$0xf] }
 0x151   : > { %2147 = vmatmul.bf16.gmra.mxu3 %v3182_v41 }
 0x152   : > { %3761 = vmatmul.msk.bf16.gmra.mxu0 %vm1485_vm0, %v3186_v63  ;;  %v2430_v56 = vmax.f32 %v2275_v37, 0.0  ;;  %v3194_v37 = vor.u32 %v3855_v55, %v3191_v21 }
 0x153   : > { %v1939_v49 = vpop.f32.mrf.mxu2 }
 0x154   : > { %v2494_v3 = vpack.c.bf16 %v2430_v56, %v2430_v56  ;;  %v1940_v42 = vadd.f32 %v1939_v49, %v1771_v39  ;;  %v2108_v4 = vpop.f32.mrf.mxu3  ;;  %v3198_v56 = vor.u32 %v3858_v17, %v3197_v19  ;;  %v1609_v17 = vadd.f32 %v4645_v31, %v4528_v23 }
 0x155   : > { %v1772_v57 = vpop.f32.mrf.mxu1 }
 0x156   : > { %2559 = vst.msk [vmem:[%s4661_s12 + $0xc] sm:$0xf] %vm2555_vm1, %v2494_v3  ;;  %v2109_v62 = vadd.f32 %v2108_v4, %v1940_v42  ;;  %v1773_v24 = vadd.f32 %v1772_v57, %v1604_v16  ;;  %v1607_v42 = vadd.f32 %v4645_v31, %v4519_v13 }
 0x157   : > { %v2279_v7 = vpop.f32.mrf.mxu0 }
 0x158   : > { %v2278_v46 = vadd.f32 %v2277_v8, %v2109_v62  ;;  %v3206_v8 = vor.u32 %v3859_v5, %v3205_v12  ;;  %v3863_v12 = vld [vmem:[%s4281_s17 + $0x1f8] sm:$0xf0]  ;;  %v3861_v5 = vld [vmem:[%s4281_s17 + $0x1ec] sm:$0xf] }
 0x15a   : > { %v2431_v1 = vmax.f32 %v2278_v46, 0.0 }
 0x15b   : > { %v1941_v41 = vpop.f32.mrf.mxu2 }
 0x15c   : > { %v2495_v63 = vpack.c.bf16 %v2431_v1, %v2431_v1  ;;  %v1942_v0 = vadd.f32 %v1941_v41, %v1773_v24  ;;  %v2110_v26 = vpop.f32.mrf.mxu3  ;;  %v3211_v1 = vld [vmem:[%s4281_s17 + $0x1f4] sm:$0xf0]  ;;  %v3217_v24 = vld [vmem:[%s4281_s17 + $0x1e8] sm:$0xf]  ;;  %v3219_v41 = vld [vmem:[%s4281_s17 + $0x1fc] sm:$0xf0] }
 0x15d   : > { %v1775_v39 = vpop.f32.mrf.mxu1  ;;  %v3222_v23 = vor.u32 %v3861_v5, %v3219_v41  ;;  %v3231_v5 = vld [vmem:[%s4281_s17 + $0x21c] sm:$0xf0]  ;;  %v3237_v41 = vld [vmem:[%s4281_s17 + $0x210] sm:$0xf] }
 0x15e   : > { %2560 = vst.msk [vmem:[%s4661_s12 + $0x10] sm:$0xf] %vm2555_vm1, %v2495_v63  ;;  %v2111_v49 = vadd.f32 %v2110_v26, %v1942_v0  ;;  %v1776_v62 = vadd.f32 %v1775_v39, %v1607_v42  ;;  %v3225_v26 = vld [vmem:[%s4281_s17 + $0x1f0] sm:$0xf]  ;;  %v3218_v42 = vor.u32 %v3863_v12, %v3217_v24  ;;  %v3865_v12 = vld [vmem:[%s4281_s17 + $0x20c] sm:$0xf] }
 0x15f   : > { %v2282_v3 = vpop.f32.mrf.mxu0 }
 0x160   : > { %v2280_v4 = vadd.f32 %v2279_v7, %v2111_v49  ;;  %1814 = vmatmul.bf16.gmra.mxu1 %v3194_v37  ;;  %1983 = vmatmul.bf16.gmra.mxu2 %v3198_v56  ;;  %v3864_v37 = vld [vmem:[%s4281_s17 + $0x200] sm:$0xf0]  ;;  %v3214_v49 = vor.u32 %v3860_v51, %v3211_v1  ;;  %v1614_v1 = vadd.f32 %v4645_v31, %v4553_v53 }
 0x161   : > { %2152 = vmatmul.bf16.gmra.mxu3 %v3202_v61 }
 0x162   : > { %3762 = vmatmul.msk.bf16.gmra.mxu0 %vm1485_vm0, %v3206_v8  ;;  %v2432_v57 = vmax.f32 %v2280_v4, 0.0 }
 0x163   : > { %v1944_v16 = vpop.f32.mrf.mxu2 }
 0x164   : > { %v2496_v46 = vpack.c.bf16 %v2432_v57, %v2432_v57  ;;  %v1945_v55 = vadd.f32 %v1944_v16, %v1776_v62  ;;  %v2113_v21 = vpop.f32.mrf.mxu3  ;;  %v1612_v16 = vadd.f32 %v4645_v31, %v4544_v47 }
 0x165   : > { %v1777_v13 = vpop.f32.mrf.mxu1 }
 0x166   : > { %2561 = vst.msk [vmem:[%s4661_s12 + $0x14] sm:$0xf] %vm2555_vm1, %v2496_v46  ;;  %v2114_v7 = vadd.f32 %v2113_v21, %v1945_v55  ;;  %v1778_v0 = vadd.f32 %v1777_v13, %v1609_v17 }
 0x167   : > { %v2284_v19 = vpop.f32.mrf.mxu0 }
 0x168   : > { %v2283_v59 = vadd.f32 %v2282_v3, %v2114_v7  ;;  %v3226_v3 = vor.u32 %v3864_v37, %v3225_v26  ;;  %v3239_v26 = vld [vmem:[%s4281_s17 + $0x224] sm:$0xf0] }
 0x16a   : > { %v2433_v63 = vmax.f32 %v2283_v59, 0.0 }
 0x16b   : > { %v1946_v56 = vpop.f32.mrf.mxu2 }
 0x16c   : > { %v2497_v39 = vpack.c.bf16 %v2433_v63, %v2433_v63  ;;  %v1947_v61 = vadd.f32 %v1946_v56, %v1778_v0  ;;  %v2115_v8 = vpop.f32.mrf.mxu3  ;;  %v3868_v63 = vld [vmem:[%s4281_s17 + $0x220] sm:$0xf0]  ;;  %v3866_v0 = vld [vmem:[%s4281_s17 + $0x214] sm:$0xf] }
 0x16d   : > { %v1780_v4 = vpop.f32.mrf.mxu1  ;;  %v3242_v53 = vor.u32 %v3866_v0, %v3239_v26  ;;  %v3873_v0 = vld [vmem:[%s4281_s17 + $0x248] sm:$0xf0]  ;;  %v3871_v26 = vld [vmem:[%s4281_s17 + $0x23c] sm:$0xf] }
 0x16e   : > { %2562 = vst.msk [vmem:[%s4661_s12 + $0x18] sm:$0xf] %vm2555_vm1, %v2497_v39  ;;  %v2116_v57 = vadd.f32 %v2115_v8, %v1947_v61  ;;  %v1781_v21 = vadd.f32 %v1780_v4, %v1612_v16  ;;  %v3245_v39 = vld [vmem:[%s4281_s17 + $0x218] sm:$0xf]  ;;  %v3869_v61 = vld [vmem:[%s4281_s17 + $0x228] sm:$0xf0] }
 0x16f   : > { %v2287_v62 = vpop.f32.mrf.mxu0 }
 0x170   : > { %v2285_v46 = vadd.f32 %v2284_v19, %v2116_v57  ;;  %1819 = vmatmul.bf16.gmra.mxu1 %v3214_v49  ;;  %1988 = vmatmul.bf16.gmra.mxu2 %v3218_v42 }
 0x171   : > { %2157 = vmatmul.bf16.gmra.mxu3 %v3222_v23  ;;  %v3234_v23 = vor.u32 %v3865_v12, %v3231_v5  ;;  %v3870_v5 = vld [vmem:[%s4281_s17 + $0x234] sm:$0xf] }
 0x172   : > { %3763 = vmatmul.msk.bf16.gmra.mxu0 %vm1485_vm0, %v3226_v3  ;;  %v2434_v55 = vmax.f32 %v2285_v46, 0.0  ;;  %v3238_v3 = vor.u32 %v3868_v63, %v3237_v41  ;;  %v3251_v41 = vld [vmem:[%s4281_s17 + $0x244] sm:$0xf0]  ;;  %v3257_v63 = vld [vmem:[%s4281_s17 + $0x238] sm:$0xf] }
 0x173   : > { %v1949_v13 = vpop.f32.mrf.mxu2 }
 0x174   : > { %v2498_v7 = vpack.c.bf16 %v2434_v55, %v2434_v55  ;;  %v1950_v17 = vadd.f32 %v1949_v13, %v1781_v21  ;;  %v2118_v59 = vpop.f32.mrf.mxu3  ;;  %v1617_v55 = vadd.f32 %v4645_v31, %v4569_v25 }
 0x175   : > { %v1782_v47 = vpop.f32.mrf.mxu1 }
 0x176   : > { %2563 = vst.msk [vmem:[%s4661_s12 + $0x1c] sm:$0xf] %vm2555_vm1, %v2498_v7  ;;  %v2119_v19 = vadd.f32 %v2118_v59, %v1950_v17  ;;  %v1783_v56 = vadd.f32 %v1782_v47, %v1614_v1 }
 0x177   : > { %v2289_v51 = vpop.f32.mrf.mxu0 }
 0x178   : > { %v2288_v24 = vadd.f32 %v2287_v62, %v2119_v19  ;;  %v3246_v62 = vor.u32 %v3869_v61, %v3245_v39  ;;  %v3265_v61 = vld [vmem:[%s4281_s17 + $0x240] sm:$0xf] }
 0x17a   : > { %v2435_v37 = vmax.f32 %v2288_v24, 0.0  ;;  %v1619_v24 = vadd.f32 %v4645_v31, %v4578_v29 }
 0x17b   : > { %v1951_v8 = vpop.f32.mrf.mxu2 }
 0x17c   : > { %v2499_v49 = vpack.c.bf16 %v2435_v37, %v2435_v37  ;;  %v1952_v42 = vadd.f32 %v1951_v8, %v1783_v56  ;;  %v2120_v4 = vpop.f32.mrf.mxu3  ;;  %v3259_v37 = vld [vmem:[%s4281_s17 + $0x24c] sm:$0xf0]  ;;  %v3874_v8 = vld [vmem:[%s4281_s17 + $0x250] sm:$0xf0] }
 0x17d   : > { %v1785_v57 = vpop.f32.mrf.mxu1  ;;  %v3262_v29 = vor.u32 %v3871_v26, %v3259_v37  ;;  %v3279_v26 = vld [vmem:[%s4281_s17 + $0x274] sm:$0xf0] }
 0x17e   : > { %2564 = vst.msk [vmem:[%s4661_s12 + $0x20] sm:$0xf] %vm2555_vm1, %v2499_v49  ;;  %v2121_v16 = vadd.f32 %v2120_v4, %v1952_v42  ;;  %v1786_v7 = vadd.f32 %v1785_v57, %v1617_v55  ;;  %v3258_v57 = vor.u32 %v3873_v0, %v3257_v63  ;;  %v1622_v55 = vadd.f32 %v4645_v31, %v4594_v9  ;;  %v3878_v63 = vld [vmem:[%s4281_s17 + $0x270] sm:$0xf0]  ;;  %v3876_v0 = vld [vmem:[%s4281_s17 + $0x264] sm:$0xf] }
 0x17f   : > { %v2292_v46 = vpop.f32.mrf.mxu0 }
 0x180   : > { %v2290_v21 = vadd.f32 %v2289_v51, %v2121_v16  ;;  %1824 = vmatmul.bf16.gmra.mxu1 %v3234_v23  ;;  %1993 = vmatmul.bf16.gmra.mxu2 %v3238_v3  ;;  %v3254_v3 = vor.u32 %v3870_v5, %v3251_v41  ;;  %v3271_v5 = vld [vmem:[%s4281_s17 + $0x26c] sm:$0xf0]  ;;  %v3277_v41 = vld [vmem:[%s4281_s17 + $0x260] sm:$0xf] }
 0x181   : > { %2162 = vmatmul.bf16.gmra.mxu3 %v3242_v53 }
 0x182   : > { %3764 = vmatmul.msk.bf16.gmra.mxu0 %vm1485_vm0, %v3246_v62  ;;  %v2436_v13 = vmax.f32 %v2290_v21, 0.0  ;;  %v3266_v62 = vor.u32 %v3874_v8, %v3265_v61  ;;  %v3879_v61 = vld [vmem:[%s4281_s17 + $0x278] sm:$0xf0] }
 0x183   : > { %v1954_v17 = vpop.f32.mrf.mxu2 }
 0x184   : > { %v2500_v59 = vpack.c.bf16 %v2436_v13, %v2436_v13  ;;  %v1955_v47 = vadd.f32 %v1954_v17, %v1786_v7  ;;  %v2123_v19 = vpop.f32.mrf.mxu3 }
 0x185   : > { %v1787_v25 = vpop.f32.mrf.mxu1 }
 0x186   : > { %2565 = vst.msk [vmem:[%s4661_s12 + $0x24] sm:$0xf] %vm2555_vm1, %v2500_v59  ;;  %v2124_v51 = vadd.f32 %v2123_v19, %v1955_v47  ;;  %v1788_v39 = vadd.f32 %v1787_v25, %v1619_v24 }
 0x187   : > { %v2294_v1 = vpop.f32.mrf.mxu0 }
 0x188   : > { %v2293_v12 = vadd.f32 %v2292_v46, %v2124_v51 }
 0x18a   : > { %v2437_v56 = vmax.f32 %v2293_v12, 0.0  ;;  %v3875_v12 = vld [vmem:[%s4281_s17 + $0x25c] sm:$0xf] }
 0x18b   : > { %v1956_v49 = vpop.f32.mrf.mxu2 }
 0x18c   : > { %v2501_v42 = vpack.c.bf16 %v2437_v56, %v2437_v56  ;;  %v1957_v4 = vadd.f32 %v1956_v49, %v1788_v39  ;;  %v2125_v23 = vpop.f32.mrf.mxu3  ;;  %v3285_v39 = vld [vmem:[%s4281_s17 + $0x268] sm:$0xf] }
 0x18d   : > { %v1790_v53 = vpop.f32.mrf.mxu1 }
 0x18e   : > { %2566 = vst.msk [vmem:[%s4661_s12 + $0x28] sm:$0xf] %vm2555_vm1, %v2501_v42  ;;  %v2126_v16 = vadd.f32 %v2125_v23, %v1957_v4  ;;  %v1791_v7 = vadd.f32 %v1790_v53, %v1622_v55  ;;  %v3274_v23 = vor.u32 %v3875_v12, %v3271_v5  ;;  %v3286_v53 = vor.u32 %v3879_v61, %v3285_v39  ;;  %v3883_v12 = vld [vmem:[%s4281_s17 + $0x298] sm:$0xf0]  ;;  %v3881_v5 = vld [vmem:[%s4281_s17 + $0x28c] sm:$0xf] }
 0x18f   : > { %v2297_v46 = vpop.f32.mrf.mxu0 }
 0x190   : > { %v2295_v21 = vadd.f32 %v2294_v1, %v2126_v16  ;;  %1829 = vmatmul.bf16.gmra.mxu1 %v3254_v3  ;;  %1998 = vmatmul.bf16.gmra.mxu2 %v3258_v57  ;;  %v1624_v1 = vadd.f32 %v4645_v31, %v4603_v33  ;;  %v3278_v3 = vor.u32 %v3878_v63, %v3277_v41  ;;  %v3299_v41 = vld [vmem:[%s4281_s17 + $0x29c] sm:$0xf0] }
 0x191   : > { %2167 = vmatmul.bf16.gmra.mxu3 %v3262_v29  ;;  %v3282_v33 = vor.u32 %v3876_v0, %v3279_v26  ;;  %v1627_v16 = vadd.f32 %v4645_v31, %v4619_v36  ;;  %v3305_v26 = vld [vmem:[%s4281_s17 + $0x290] sm:$0xf] }
 0x192   : > { %3765 = vmatmul.msk.bf16.gmra.mxu0 %vm1485_vm0, %v3266_v62  ;;  %v2438_v13 = vmax.f32 %v2295_v21, 0.0 }
 0x193   : > { %v1959_v17 = vpop.f32.mrf.mxu2 }
 0x194   : > { %v2502_v59 = vpack.c.bf16 %v2438_v13, %v2438_v13  ;;  %v1960_v47 = vadd.f32 %v1959_v17, %v1791_v7  ;;  %v2128_v19 = vpop.f32.mrf.mxu3 }
 0x195   : > { %v1792_v9 = vpop.f32.mrf.mxu1 }
 0x196   : > { %2567 = vst.msk [vmem:[%s4661_s12 + $0x2c] sm:$0xf] %vm2555_vm1, %v2502_v59  ;;  %v2129_v25 = vadd.f32 %v2128_v19, %v1960_v47  ;;  %v1793_v56 = vadd.f32 %v1792_v9, %v1624_v1  ;;  %v1629_v9 = vadd.f32 %v4645_v31, %v4628_v45  ;;  %v3291_v1 = vld [vmem:[%s4281_s17 + $0x294] sm:$0xf0]  ;;  %v3302_v45 = vor.u32 %v3881_v5, %v3299_v41  ;;  %v3889_v5 = vld [vmem:[%s4281_s17 + $0x2c8] sm:$0xf0] }
 0x197   : > { %v2299_v51 = vpop.f32.mrf.mxu0 }
 0x198   : > { %v2298_v24 = vadd.f32 %v2297_v46, %v2129_v25 }
 0x19a   : > { %v2439_v37 = vmax.f32 %v2298_v24, 0.0  ;;  %v3297_v24 = vld [vmem:[%s4281_s17 + $0x288] sm:$0xf] }
 0x19b   : > { %v1961_v8 = vpop.f32.mrf.mxu2 }
 0x19c   : > { %v2503_v49 = vpack.c.bf16 %v2439_v37, %v2439_v37  ;;  %v1962_v42 = vadd.f32 %v1961_v8, %v1793_v56  ;;  %v2130_v4 = vpop.f32.mrf.mxu3  ;;  %v3884_v37 = vld [vmem:[%s4281_s17 + $0x2a0] sm:$0xf0] }
 0x19d   : > { %v1795_v57 = vpop.f32.mrf.mxu1 }
 0x19e   : > { %2568 = vst.msk [vmem:[%s4661_s12 + $0x30] sm:$0xf] %vm2555_vm1, %v2503_v49  ;;  %v2131_v29 = vadd.f32 %v2130_v4, %v1962_v42  ;;  %v1796_v21 = vadd.f32 %v1795_v57, %v1627_v16  ;;  %v3298_v42 = vor.u32 %v3883_v12, %v3297_v24  ;;  %v3325_v12 = vld [vmem:[%s4281_s17 + $0x2b8] sm:$0xf] }
 0x19f   : > { %v2302_v62 = vpop.f32.mrf.mxu0 }
 0x1a0   : > { %v2300_v46 = vadd.f32 %v2299_v51, %v2131_v29  ;;  %1834 = vmatmul.bf16.gmra.mxu1 %v3274_v23  ;;  %2003 = vmatmul.bf16.gmra.mxu2 %v3278_v3  ;;  %v3880_v51 = vld [vmem:[%s4281_s17 + $0x284] sm:$0xf]  ;;  %v3306_v23 = vor.u32 %v3884_v37, %v3305_v26 }
 0x1a1   : > { %2172 = vmatmul.bf16.gmra.mxu3 %v3282_v33  ;;  %v3294_v49 = vor.u32 %v3880_v51, %v3291_v1  ;;  %v1632_v33 = vadd.f32 %v4645_v31, %v4442_v14  ;;  %v3319_v51 = vld [vmem:[%s4281_s17 + $0x2c4] sm:$0xf0] }
 0x1a2   : > { %3766 = vmatmul.msk.bf16.gmra.mxu0 %vm1485_vm0, %v3286_v53  ;;  %v2440_v55 = vmax.f32 %v2300_v46, 0.0 }
 0x1a3   : > { %v1964_v13 = vpop.f32.mrf.mxu2 }
 0x1a4   : > { %v2504_v7 = vpack.c.bf16 %v2440_v55, %v2440_v55  ;;  %v1965_v17 = vadd.f32 %v1964_v13, %v1796_v21  ;;  %v2133_v59 = vpop.f32.mrf.mxu3 }
 0x1a5   : > { %v1797_v36 = vpop.f32.mrf.mxu1 }
 0x1a6   : > { %2569 = vst.msk [vmem:[%s4661_s12 + $0x34] sm:$0xf] %vm2555_vm1, %v2504_v7  ;;  %v2134_v47 = vadd.f32 %v2133_v59, %v1965_v17  ;;  %v1798_v0 = vadd.f32 %v1797_v36, %v1629_v9  ;;  %v1634_v17 = vadd.f32 %v4645_v31, %v4451_v20  ;;  %v3885_v36 = vld [vmem:[%s4281_s17 + $0x2ac] sm:$0xf]  ;;  %v3888_v9 = vld [vmem:[%s4281_s17 + $0x2c0] sm:$0xf0] }
 0x1a7   : > { %v2304_v19 = vpop.f32.mrf.mxu0 }
 0x1a8   : > { %v2303_v25 = vadd.f32 %v2302_v62, %v2134_v47  ;;  %v3311_v47 = vld [vmem:[%s4281_s17 + $0x2bc] sm:$0xf0] }
 0x1a9   : > { %v3314_v37 = vor.u32 %v3885_v36, %v3311_v47  ;;  %v3345_v47 = vld [vmem:[%s4281_s17 + $0x2e0] sm:$0xf] }
 0x1aa   : > { %v2441_v63 = vmax.f32 %v2303_v25, 0.0  ;;  %v3886_v25 = vld [vmem:[%s4281_s17 + $0x2b4] sm:$0xf] }
 0x1ab   : > { %v1966_v56 = vpop.f32.mrf.mxu2  ;;  %v3322_v20 = vor.u32 %v3886_v25, %v3319_v51 }
 0x1ac   : > { %v2505_v39 = vpack.c.bf16 %v2441_v63, %v2441_v63  ;;  %v1967_v61 = vadd.f32 %v1966_v56, %v1798_v0  ;;  %v2135_v8 = vpop.f32.mrf.mxu3 }
 0x1ad   : > { %v1800_v4 = vpop.f32.mrf.mxu1 }
 0x1ae   : > { %2570 = vst.msk [vmem:[%s4661_s12 + $0x38] sm:$0xf] %vm2555_vm1, %v2505_v39  ;;  %v2136_v3 = vadd.f32 %v2135_v8, %v1967_v61  ;;  %v1801_v62 = vadd.f32 %v1800_v4, %v1632_v33  ;;  %v3326_v61 = vor.u32 %v3889_v5, %v3325_v12 }
 0x1af   : > { %v2307_v57 = vpop.f32.mrf.mxu0 }
 0x1b0   : > { %v2305_v53 = vadd.f32 %v2304_v19, %v2136_v3  ;;  %1839 = vmatmul.bf16.gmra.mxu1 %v3294_v49  ;;  %2008 = vmatmul.bf16.gmra.mxu2 %v3298_v42  ;;  %v3317_v19 = vld [vmem:[%s4281_s17 + $0x2b0] sm:$0xf]  ;;  %v1637_v42 = vadd.f32 %v4645_v31, %v4467_v34 }
 0x1b1   : > { %2177 = vmatmul.bf16.gmra.mxu3 %v3302_v45  ;;  %v3318_v56 = vor.u32 %v3888_v9, %v3317_v19  ;;  %v3894_v19 = vld [vmem:[%s4281_s17 + $0x2f0] sm:$0xf0] }
 0x1b2   : > { %3767 = vmatmul.msk.bf16.gmra.mxu0 %vm1485_vm0, %v3306_v23  ;;  %v2442_v29 = vmax.f32 %v2305_v53, 0.0 }
 0x1b3   : > { %v1969_v16 = vpop.f32.mrf.mxu2 }
 0x1b4   : > { %v2506_v46 = vpack.c.bf16 %v2442_v29, %v2442_v29  ;;  %v1970_v55 = vadd.f32 %v1969_v16, %v1801_v62  ;;  %v2138_v21 = vpop.f32.mrf.mxu3  ;;  %v1639_v16 = vadd.f32 %v4645_v31, %v4476_v40 }
 0x1b5   : > { %v1802_v14 = vpop.f32.mrf.mxu1 }
 0x1b6   : > { %2571 = vst.msk [vmem:[%s4661_s12 + $0x3c] sm:$0xf] %vm2555_vm1, %v2506_v46  ;;  %v2139_v13 = vadd.f32 %v2138_v21, %v1970_v55  ;;  %v1803_v24 = vadd.f32 %v1802_v14, %v1634_v17  ;;  %v3890_v55 = vld [vmem:[%s4281_s17 + $0x2d4] sm:$0xf]  ;;  %v3331_v21 = vld [vmem:[%s4281_s17 + $0x2e4] sm:$0xf0] }
 0x1b7   : > { %v2309_v7 = vpop.f32.mrf.mxu0  ;;  %v3337_v14 = vld [vmem:[%s4281_s17 + $0x2d8] sm:$0xf]  ;;  %v3339_v17 = vld [vmem:[%s4281_s17 + $0x2ec] sm:$0xf0] }
 0x1b8   : > { %v2308_v59 = vadd.f32 %v2307_v57, %v2139_v13  ;;  %v3893_v13 = vld [vmem:[%s4281_s17 + $0x2e8] sm:$0xf0] }
 0x1b9   : > { %v3338_v12 = vor.u32 %v3893_v13, %v3337_v14 }
 0x1ba   : > { %v2443_v1 = vmax.f32 %v2308_v59, 0.0 }
 0x1bb   : > { %v1971_v41 = vpop.f32.mrf.mxu2 }
 0x1bc   : > { %v2507_v63 = vpack.c.bf16 %v2443_v1, %v2443_v1  ;;  %v1972_v0 = vadd.f32 %v1971_v41, %v1803_v24  ;;  %v2140_v26 = vpop.f32.mrf.mxu3  ;;  %v3334_v24 = vor.u32 %v3890_v55, %v3331_v21  ;;  %v3346_v41 = vor.u32 %v3894_v19, %v3345_v47  ;;  %v3899_v55 = vld [vmem:[%s4281_s17 + $0x318] sm:$0xf0] }
 0x1bd   : > { %v1805_v39 = vpop.f32.mrf.mxu1 }
 0x1be   : > { %2572 = vst.msk [vmem:[%s4661_s12 + $0x40] sm:$0xf] %vm2555_vm1, %v2507_v63  ;;  %v2141_v8 = vadd.f32 %v2140_v26, %v1972_v0  ;;  %v1806_v23 = vadd.f32 %v1805_v39, %v1637_v42  ;;  %v1642_v26 = vadd.f32 %v4645_v31, %v4492_v54 }
 0x1bf   : > { %v2312_v49 = vpop.f32.mrf.mxu0 }
 0x1c0   : > { %v2310_v4 = vadd.f32 %v2309_v7, %v2141_v8  ;;  %1844 = vmatmul.bf16.gmra.mxu1 %v3314_v37  ;;  %2013 = vmatmul.bf16.gmra.mxu2 %v3318_v56  ;;  %v3891_v7 = vld [vmem:[%s4281_s17 + $0x2dc] sm:$0xf] }
 0x1c1   : > { %2182 = vmatmul.bf16.gmra.mxu3 %v3322_v20  ;;  %v3342_v40 = vor.u32 %v3891_v7, %v3339_v17 }
 0x1c2   : > { %3768 = vmatmul.msk.bf16.gmra.mxu0 %vm1485_vm0, %v3326_v61  ;;  %v2444_v45 = vmax.f32 %v2310_v4, 0.0 }
 0x1c3   : > { %v1974_v3 = vpop.f32.mrf.mxu2 }
 0x1c4   : > { %v2508_v57 = vpack.c.bf16 %v2444_v45, %v2444_v45  ;;  %v1975_v33 = vadd.f32 %v1974_v3, %v1806_v23  ;;  %v2143_v53 = vpop.f32.mrf.mxu3  ;;  %v1644_v45 = vadd.f32 %v4645_v31, %v4501_v60  ;;  %v3895_v3 = vld [vmem:[%s4281_s17 + $0x2fc] sm:$0xf] }
 0x1c5   : > { %v1807_v34 = vpop.f32.mrf.mxu1 }
 0x1c6   : > { %2573 = vst.msk [vmem:[%s4661_s12 + $0x44] sm:$0xf] %vm2555_vm1, %v2508_v57  ;;  %v2144_v29 = vadd.f32 %v2143_v53, %v1975_v33  ;;  %v1808_v36 = vadd.f32 %v1807_v34, %v1639_v16  ;;  %v3351_v57 = vld [vmem:[%s4281_s17 + $0x30c] sm:$0xf0]  ;;  %v3357_v33 = vld [vmem:[%s4281_s17 + $0x300] sm:$0xf] }
 0x1c7   : > { %v2314_v62 = vpop.f32.mrf.mxu0  ;;  %v3898_v53 = vld [vmem:[%s4281_s17 + $0x310] sm:$0xf0]  ;;  %v3896_v34 = vld [vmem:[%s4281_s17 + $0x304] sm:$0xf]  ;;  %v3354_v17 = vor.u32 %v3895_v3, %v3351_v57 }
 0x1c8   : > { %v2313_v46 = vadd.f32 %v2312_v49, %v2144_v29  ;;  %v3359_v29 = vld [vmem:[%s4281_s17 + $0x314] sm:$0xf0] }
 0x1c9   : > { %v3362_v60 = vor.u32 %v3896_v34, %v3359_v29 }
 0x1ca   : > { %v2445_v59 = vmax.f32 %v2313_v46, 0.0  ;;  %v3365_v46 = vld [vmem:[%s4281_s17 + $0x308] sm:$0xf] }
 0x1cb   : > { %v1976_v9 = vpop.f32.mrf.mxu2  ;;  %v3366_v47 = vor.u32 %v3899_v55, %v3365_v46  ;;  %v1652_v55 = vadd.f32 %v4645_v31, %v4542_v44 }
 0x1cc   : > { %v2509_v25 = vpack.c.bf16 %v2445_v59, %v2445_v59  ;;  %v1977_v51 = vadd.f32 %v1976_v9, %v1808_v36  ;;  %v2145_v1 = vpop.f32.mrf.mxu3  ;;  %v3358_v59 = vor.u32 %v3898_v53, %v3357_v33 }
 0x1cd   : > { %v1810_v5 = vpop.f32.mrf.mxu1 }
 0x1ce   : > { %2574 = vst.msk [vmem:[%s4661_s12 + $0x48] sm:$0xf] %vm2555_vm1, %v2509_v25  ;;  %v2146_v63 = vadd.f32 %v2145_v1, %v1977_v51  ;;  %v1811_v39 = vadd.f32 %v1810_v5, %v1642_v26  ;;  %v1647_v25 = vadd.f32 %v4645_v31, %v4517_v10  ;;  %v1649_v26 = vadd.f32 %v4645_v31, %v4526_v22 }
 0x1cf   : > { %v2317_v0 = vpop.f32.mrf.mxu0 }
 0x1d0   : > { %v2315_v37 = vadd.f32 %v2314_v62, %v2146_v63  ;;  %1849 = vmatmul.bf16.gmra.mxu1 %v3334_v24  ;;  %2018 = vmatmul.bf16.gmra.mxu2 %v3338_v12 }
 0x1d1   : > { %2187 = vmatmul.bf16.gmra.mxu3 %v3342_v40 }
 0x1d2   : > { %3769 = vmatmul.msk.bf16.gmra.mxu0 %vm1485_vm0, %v3346_v41  ;;  %v2446_v56 = vmax.f32 %v2315_v37, 0.0 }
 0x1d3   : > { %v1979_v20 = vpop.f32.mrf.mxu2 }
 0x1d4   : > { %v2510_v61 = vpack.c.bf16 %v2446_v56, %v2446_v56  ;;  %v1980_v8 = vadd.f32 %v1979_v20, %v1811_v39  ;;  %v2148_v49 = vpop.f32.mrf.mxu3  ;;  %v3900_v56 = vld [vmem:[%s4281_s17 + $0x324] sm:$0xf]  ;;  %v3371_v39 = vld [vmem:[%s4281_s17 + $0x334] sm:$0xf0]  ;;  %v3377_v20 = vld [vmem:[%s4281_s17 + $0x328] sm:$0xf] }
 0x1d5   : > { %v1812_v54 = vpop.f32.mrf.mxu1  ;;  %v3374_v53 = vor.u32 %v3900_v56, %v3371_v39 }
 0x1d6   : > { %2575 = vst.msk [vmem:[%s4661_s12 + $0x4c] sm:$0xf] %vm2555_vm1, %v2510_v61  ;;  %v2149_v42 = vadd.f32 %v2148_v49, %v1980_v8  ;;  %v1813_v16 = vadd.f32 %v1812_v54, %v1644_v45  ;;  %v3903_v61 = vld [vmem:[%s4281_s17 + $0x338] sm:$0xf0]  ;;  %v3901_v8 = vld [vmem:[%s4281_s17 + $0x32c] sm:$0xf] }
 0x1d7   : > { %v2319_v4 = vpop.f32.mrf.mxu0  ;;  %v3379_v49 = vld [vmem:[%s4281_s17 + $0x33c] sm:$0xf0]  ;;  %v3904_v45 = vld [vmem:[%s4281_s17 + $0x340] sm:$0xf0]  ;;  %v3378_v34 = vor.u32 %v3903_v61, %v3377_v20 }
 0x1d8   : > { %v2318_v23 = vadd.f32 %v2317_v0, %v2149_v42  ;;  %v3382_v22 = vor.u32 %v3901_v8, %v3379_v49 }
 0x1da   : > { %v2447_v62 = vmax.f32 %v2318_v23, 0.0 }
 0x1db   : > { %v1981_v21 = vpop.f32.mrf.mxu2 }
 0x1dc   : > { %v2511_v14 = vpack.c.bf16 %v2447_v62, %v2447_v62  ;;  %v1982_v13 = vadd.f32 %v1981_v21, %v1813_v16  ;;  %v2150_v7 = vpop.f32.mrf.mxu3 }
 0x1dd   : > { %v1815_v36 = vpop.f32.mrf.mxu1 }
 0x1de   : > { %2576 = vst.msk [vmem:[%s4661_s12 + $0x50] sm:$0xf] %vm2555_vm1, %v2511_v14  ;;  %v2151_v19 = vadd.f32 %v2150_v7, %v1982_v13  ;;  %v1816_v24 = vadd.f32 %v1815_v36, %v1647_v25  ;;  %v3905_v25 = vld [vmem:[%s4281_s17 + $0x34c] sm:$0xf] }
 0x1df   : > { %v2322_v9 = vpop.f32.mrf.mxu0 }
 0x1e0   : > { %v2320_v51 = vadd.f32 %v2319_v4, %v2151_v19  ;;  %1854 = vmatmul.bf16.gmra.mxu1 %v3354_v17  ;;  %2023 = vmatmul.bf16.gmra.mxu2 %v3358_v59  ;;  %v3385_v4 = vld [vmem:[%s4281_s17 + $0x330] sm:$0xf]  ;;  %v1654_v19 = vadd.f32 %v4645_v31, %v4551_v52 }
 0x1e1   : > { %2192 = vmatmul.bf16.gmra.mxu3 %v3362_v60  ;;  %v3386_v62 = vor.u32 %v3904_v45, %v3385_v4 }
 0x1e2   : > { %3770 = vmatmul.msk.bf16.gmra.mxu0 %vm1485_vm0, %v3366_v47  ;;  %v2448_v1 = vmax.f32 %v2320_v51, 0.0  ;;  %v3391_v51 = vld [vmem:[%s4281_s17 + $0x35c] sm:$0xf0] }
 0x1e3   : > { %v1984_v12 = vpop.f32.mrf.mxu2  ;;  %v3394_v39 = vor.u32 %v3905_v25, %v3391_v51 }
 0x1e4   : > { %v2512_v5 = vpack.c.bf16 %v2448_v1, %v2448_v1  ;;  %v1985_v40 = vadd.f32 %v1984_v12, %v1816_v24  ;;  %v2153_v41 = vpop.f32.mrf.mxu3  ;;  %v3397_v1 = vld [vmem:[%s4281_s17 + $0x350] sm:$0xf]  ;;  %v3908_v24 = vld [vmem:[%s4281_s17 + $0x360] sm:$0xf0]  ;;  %v3906_v12 = vld [vmem:[%s4281_s17 + $0x354] sm:$0xf] }
 0x1e5   : > { %v1817_v10 = vpop.f32.mrf.mxu1  ;;  %v3398_v20 = vor.u32 %v3908_v24, %v3397_v1 }
 0x1e6   : > { %2577 = vst.msk [vmem:[%s4661_s12 + $0x54] sm:$0xf] %vm2555_vm1, %v2512_v5  ;;  %v2154_v63 = vadd.f32 %v2153_v41, %v1985_v40  ;;  %v1818_v42 = vadd.f32 %v1817_v10, %v1649_v26  ;;  %v3399_v5 = vld [vmem:[%s4281_s17 + $0x364] sm:$0xf0]  ;;  %v3405_v10 = vld [vmem:[%s4281_s17 + $0x358] sm:$0xf] }
 0x1e7   : > { %v2324_v0 = vpop.f32.mrf.mxu0  ;;  %v3402_v31 = vor.u32 %v3906_v12, %v3399_v5 }
 0x1e8   : > { %v2323_v37 = vadd.f32 %v2322_v9, %v2154_v63  ;;  %v3909_v63 = vld [vmem:[%s4281_s17 + $0x368] sm:$0xf0] }
 0x1e9   : > { %v3406_v52 = vor.u32 %v3909_v63, %v3405_v10 }
 0x1ea   : > { %v2449_v54 = vmax.f32 %v2323_v37, 0.0 }
 0x1eb   : > { %v1986_v23 = vpop.f32.mrf.mxu2 }
 0x1ec   : > { %v2513_v3 = vpack.c.bf16 %v2449_v54, %v2449_v54  ;;  %v1987_v57 = vadd.f32 %v1986_v23, %v1818_v42  ;;  %v2155_v33 = vpop.f32.mrf.mxu3  ;;  %v4872_v54 = vld [vmem:[%s5268_s2] ss:$0 sm:$0xff] }
 0x1ed   : > { %v1820_v29 = vpop.f32.mrf.mxu1  ;;  %v1657_v42 = vadd.f32 %v4872_v54, %v4567_v11  ;;  %v1662_v5 = vadd.f32 %v4872_v54, %v4592_v2 }
 0x1ee   : > { %2578 = vst.msk [vmem:[%s4661_s12 + $0x58] sm:$0xf] %vm2555_vm1, %v2513_v3  ;;  %v2156_v16 = vadd.f32 %v2155_v33, %v1987_v57  ;;  %v1821_v13 = vadd.f32 %v1820_v29, %v1652_v55  ;;  %v3417_v55 = vld [vmem:[%s4281_s17 + $0x378] sm:$0xf] }
 0x1ef   : > { %v2327_v46 = vpop.f32.mrf.mxu0 }
 0x1f0   : > { %v2325_v21 = vadd.f32 %v2324_v0, %v2156_v16  ;;  %1859 = vmatmul.bf16.gmra.mxu1 %v3374_v53  ;;  %2028 = vmatmul.bf16.gmra.mxu2 %v3378_v34  ;;  %v3910_v16 = vld [vmem:[%s4281_s17 + $0x374] sm:$0xf] }
 0x1f1   : > { %2197 = vmatmul.bf16.gmra.mxu3 %v3382_v22  ;;  %v1659_v22 = vadd.f32 %v4872_v54, %v4576_v28 }
 0x1f2   : > { %3771 = vmatmul.msk.bf16.gmra.mxu0 %vm1485_vm0, %v3386_v62  ;;  %v2450_v14 = vmax.f32 %v2325_v21, 0.0  ;;  %v3913_v21 = vld [vmem:[%s4281_s17 + $0x388] sm:$0xf0] }
 0x1f3   : > { %v1989_v7 = vpop.f32.mrf.mxu2  ;;  %v3418_v25 = vor.u32 %v3913_v21, %v3417_v55  ;;  %v1667_v21 = vadd.f32 %v4872_v54, %v4617_v27 }
 0x1f4   : > { %v2514_v17 = vpack.c.bf16 %v2450_v14, %v2450_v14  ;;  %v1990_v59 = vadd.f32 %v1989_v7, %v1821_v13  ;;  %v2158_v36 = vpop.f32.mrf.mxu3  ;;  %v3911_v14 = vld [vmem:[%s4281_s17 + $0x37c] sm:$0xf]  ;;  %v3419_v13 = vld [vmem:[%s4281_s17 + $0x38c] sm:$0xf0] }
 0x1f5   : > { %v1822_v44 = vpop.f32.mrf.mxu1  ;;  %v3422_v28 = vor.u32 %v3911_v14, %v3419_v13 }
 0x1f6   : > { %2579 = vst.msk [vmem:[%s4661_s12 + $0x5c] sm:$0xf] %vm2555_vm1, %v2514_v17  ;;  %v2159_v60 = vadd.f32 %v2158_v36, %v1990_v59  ;;  %v1823_v41 = vadd.f32 %v1822_v44, %v1654_v19  ;;  %v3425_v59 = vld [vmem:[%s4281_s17 + $0x380] sm:$0xf]  ;;  %v3914_v36 = vld [vmem:[%s4281_s17 + $0x390] sm:$0xf0] }
 0x1f7   : > { %v2329_v47 = vpop.f32.mrf.mxu0  ;;  %v3426_v1 = vor.u32 %v3914_v36, %v3425_v59 }
 0x1f8   : > { %v2328_v9 = vadd.f32 %v2327_v46, %v2159_v60  ;;  %v3411_v46 = vld [vmem:[%s4281_s17 + $0x384] sm:$0xf0] }
 0x1fa   : > { %v2451_v40 = vmax.f32 %v2328_v9, 0.0  ;;  %v3414_v9 = vor.u32 %v3910_v16, %v3411_v46 }
 0x1fb   : > { %v1991_v0 = vpop.f32.mrf.mxu2 }
 0x1fc   : > { %v2515_v26 = vpack.c.bf16 %v2451_v40, %v2451_v40  ;;  %v1992_v37 = vadd.f32 %v1991_v0, %v1823_v41  ;;  %v2160_v56 = vpop.f32.mrf.mxu3 }
 0x1fd   : > { %v1825_v61 = vpop.f32.mrf.mxu1 }
 0x1fe   : > { %2580 = vst.msk [vmem:[%s4661_s12 + $0x60] sm:$0xf] %vm2555_vm1, %v2515_v26  ;;  %v2161_v8 = vadd.f32 %v2160_v56, %v1992_v37  ;;  %v1826_v23 = vadd.f32 %v1825_v61, %v1657_v42  ;;  %v3916_v42 = vld [vmem:[%s4281_s17 + $0x3a4] sm:$0xf] }
 0x1ff   : > { %v2332_v49 = vpop.f32.mrf.mxu0 }
 0x200   : > { %v2330_v4 = vadd.f32 %v2329_v47, %v2161_v8  ;;  %1864 = vmatmul.bf16.gmra.mxu1 %v3394_v39  ;;  %2033 = vmatmul.bf16.gmra.mxu2 %v3398_v20  ;;  %v1664_v20 = vadd.f32 %v4872_v54, %v4601_v32  ;;  %v3437_v8 = vld [vmem:[%s4281_s17 + $0x3a0] sm:$0xf] }
 0x201   : > { %2202 = vmatmul.bf16.gmra.mxu3 %v3402_v31  ;;  %v3915_v31 = vld [vmem:[%s4281_s17 + $0x39c] sm:$0xf] }
 0x202   : > { %3772 = vmatmul.msk.bf16.gmra.mxu0 %vm1485_vm0, %v3406_v52  ;;  %v2452_v45 = vmax.f32 %v2330_v4, 0.0  ;;  %v3431_v52 = vld [vmem:[%s4281_s17 + $0x3ac] sm:$0xf0]  ;;  %v3439_v4 = vld [vmem:[%s4281_s17 + $0x3b4] sm:$0xf0] }
 0x203   : > { %v1994_v3 = vpop.f32.mrf.mxu2  ;;  %v3442_v32 = vor.u32 %v3916_v42, %v3439_v4 }
 0x204   : > { %v2516_v57 = vpack.c.bf16 %v2452_v45, %v2452_v45  ;;  %v1995_v33 = vadd.f32 %v1994_v3, %v1826_v23  ;;  %v2163_v53 = vpop.f32.mrf.mxu3  ;;  %v3445_v3 = vld [vmem:[%s4281_s17 + $0x3a8] sm:$0xf] }
 0x205   : > { %v1827_v11 = vpop.f32.mrf.mxu1 }
 0x206   : > { %2581 = vst.msk [vmem:[%s4661_s12 + $0x64] sm:$0xf] %vm2555_vm1, %v2516_v57  ;;  %v2164_v34 = vadd.f32 %v2163_v53, %v1995_v33  ;;  %v1828_v17 = vadd.f32 %v1827_v11, %v1659_v22  ;;  %v3919_v57 = vld [vmem:[%s4281_s17 + $0x3b8] sm:$0xf0] }
 0x207   : > { %v2334_v29 = vpop.f32.mrf.mxu0  ;;  %v3446_v16 = vor.u32 %v3919_v57, %v3445_v3 }
 0x208   : > { %v2333_v62 = vadd.f32 %v2332_v49, %v2164_v34  ;;  %v3918_v49 = vld [vmem:[%s4281_s17 + $0x3b0] sm:$0xf0] }
 0x209   : > { %v3438_v22 = vor.u32 %v3918_v49, %v3437_v8 }
 0x20a   : > { %v2453_v7 = vmax.f32 %v2333_v62, 0.0 }
 0x20b   : > { %v1996_v44 = vpop.f32.mrf.mxu2 }
 0x20c   : > { %v2517_v60 = vpack.c.bf16 %v2453_v7, %v2453_v7  ;;  %v1997_v47 = vadd.f32 %v1996_v44, %v1828_v17  ;;  %v2165_v19 = vpop.f32.mrf.mxu3 }
 0x20d   : > { %v1830_v51 = vpop.f32.mrf.mxu1 }
 0x20e   : > { %2582 = vst.msk [vmem:[%s4661_s12 + $0x68] sm:$0xf] %vm2555_vm1, %v2517_v60  ;;  %v2166_v24 = vadd.f32 %v2165_v19, %v1997_v47  ;;  %v1831_v10 = vadd.f32 %v1830_v51, %v1662_v5  ;;  %v1669_v19 = vadd.f32 %v4872_v54, %v4626_v43  ;;  %v3451_v51 = vld [vmem:[%s4281_s17 + $0x3d4] sm:$0xf0] }
 0x20f   : > { %v2337_v12 = vpop.f32.mrf.mxu0 }
 0x210   : > { %v2335_v40 = vadd.f32 %v2334_v29, %v2166_v24  ;;  %1869 = vmatmul.bf16.gmra.mxu1 %v3414_v9  ;;  %2038 = vmatmul.bf16.gmra.mxu2 %v3418_v25  ;;  %v3434_v29 = vor.u32 %v3915_v31, %v3431_v52  ;;  %v3920_v25 = vld [vmem:[%s4281_s17 + $0x3c4] sm:$0xf]  ;;  %v3921_v24 = vld [vmem:[%s4281_s17 + $0x3cc] sm:$0xf]  ;;  %v1672_v52 = vadd.f32 %v4872_v54, %v4447_v18 }
 0x211   : > { %2207 = vmatmul.bf16.gmra.mxu3 %v3422_v28  ;;  %v3457_v28 = vld [vmem:[%s4281_s17 + $0x3c8] sm:$0xf] }
 0x212   : > { %3773 = vmatmul.msk.bf16.gmra.mxu0 %vm1485_vm0, %v3426_v1  ;;  %v2454_v41 = vmax.f32 %v2335_v40, 0.0  ;;  %v3923_v1 = vld [vmem:[%s4281_s17 + $0x3d8] sm:$0xf0] }
 0x213   : > { %v1999_v63 = vpop.f32.mrf.mxu2 }
 0x214   : > { %v2518_v0 = vpack.c.bf16 %v2454_v41, %v2454_v41  ;;  %v2000_v26 = vadd.f32 %v1999_v63, %v1831_v10  ;;  %v2168_v37 = vpop.f32.mrf.mxu3  ;;  %v3465_v41 = vld [vmem:[%s4281_s17 + $0x3d0] sm:$0xf]  ;;  %v3924_v10 = vld [vmem:[%s4281_s17 + $0x3e0] sm:$0xf0] }
 0x215   : > { %v1832_v2 = vpop.f32.mrf.mxu1 }
 0x216   : > { %2583 = vst.msk [vmem:[%s4661_s12 + $0x6c] sm:$0xf] %vm2555_vm1, %v2518_v0  ;;  %v2169_v56 = vadd.f32 %v2168_v37, %v2000_v26  ;;  %v1833_v23 = vadd.f32 %v1832_v2, %v1664_v20  ;;  %v3454_v2 = vor.u32 %v3920_v25, %v3451_v51  ;;  %v3466_v20 = vor.u32 %v3924_v10, %v3465_v41 }
 0x217   : > { %v2339_v39 = vpop.f32.mrf.mxu0  ;;  %v1679_v10 = vadd.f32 %v4872_v54, %v4488_v50 }
 0x218   : > { %v2338_v61 = vadd.f32 %v2337_v12, %v2169_v56  ;;  %v3459_v12 = vld [vmem:[%s4281_s17 + $0x3dc] sm:$0xf0]  ;;  %v3458_v56 = vor.u32 %v3923_v1, %v3457_v28 }
 0x219   : > { %v3462_v43 = vor.u32 %v3921_v24, %v3459_v12 }
 0x21a   : > { %v2455_v45 = vmax.f32 %v2338_v61, 0.0 }
 0x21b   : > { %v2001_v33 = vpop.f32.mrf.mxu2 }
 0x21c   : > { %v2519_v53 = vpack.c.bf16 %v2455_v45, %v2455_v45  ;;  %v2002_v11 = vadd.f32 %v2001_v33, %v1833_v23  ;;  %v2170_v34 = vpop.f32.mrf.mxu3 }
 0x21d   : > { %v1835_v62 = vpop.f32.mrf.mxu1 }
 0x21e   : > { %2584 = vst.msk [vmem:[%s4661_s12 + $0x70] sm:$0xf] %vm2555_vm1, %v2519_v53  ;;  %v2171_v46 = vadd.f32 %v2170_v34, %v2002_v11  ;;  %v1836_v7 = vadd.f32 %v1835_v62, %v1667_v21  ;;  %v1674_v53 = vadd.f32 %v4872_v54, %v4463_v30  ;;  %v3925_v34 = vld [vmem:[%s4281_s17 + $0x3ec] sm:$0xf]  ;;  %v3928_v62 = vld [vmem:[%s4281_s17 + $0x400] sm:$0xf0] }
 0x21f   : > { %v2342_v55 = vpop.f32.mrf.mxu0  ;;  %v3485_v21 = vld [vmem:[%s4281_s17 + $0x3f8] sm:$0xf] }
 0x220   : > { %v2340_v14 = vadd.f32 %v2339_v39, %v2171_v46  ;;  %1874 = vmatmul.bf16.gmra.mxu1 %v3434_v29  ;;  %2043 = vmatmul.bf16.gmra.mxu2 %v3438_v22  ;;  %v3471_v29 = vld [vmem:[%s4281_s17 + $0x3fc] sm:$0xf0]  ;;  %v3477_v22 = vld [vmem:[%s4281_s17 + $0x3f0] sm:$0xf] }
 0x221   : > { %2212 = vmatmul.bf16.gmra.mxu3 %v3442_v32  ;;  %v3926_v32 = vld [vmem:[%s4281_s17 + $0x3f4] sm:$0xf] }
 0x222   : > { %3774 = vmatmul.msk.bf16.gmra.mxu0 %vm1485_vm0, %v3446_v16  ;;  %v2456_v13 = vmax.f32 %v2340_v14, 0.0  ;;  %v3479_v16 = vld [vmem:[%s4281_s17 + $0x404] sm:$0xf0]  ;;  %v3929_v14 = vld [vmem:[%s4281_s17 + $0x408] sm:$0xf0] }
 0x223   : > { %v2004_v17 = vpop.f32.mrf.mxu2  ;;  %v3482_v30 = vor.u32 %v3926_v32, %v3479_v16 }
 0x224   : > { %v2520_v59 = vpack.c.bf16 %v2456_v13, %v2456_v13  ;;  %v2005_v36 = vadd.f32 %v2004_v17, %v1836_v7  ;;  %v2173_v44 = vpop.f32.mrf.mxu3 }
 0x225   : > { %v1837_v27 = vpop.f32.mrf.mxu1 }
 0x226   : > { %2585 = vst.msk [vmem:[%s4661_s12 + $0x74] sm:$0xf] %vm2555_vm1, %v2520_v59  ;;  %v2174_v60 = vadd.f32 %v2173_v44, %v2005_v36  ;;  %v1838_v40 = vadd.f32 %v1837_v27, %v1669_v19  ;;  %v3474_v36 = vor.u32 %v3925_v34, %v3471_v29  ;;  %v3478_v44 = vor.u32 %v3928_v62, %v3477_v22 }
 0x227   : > { %v2344_v47 = vpop.f32.mrf.mxu0 }
 0x228   : > { %v2343_v9 = vadd.f32 %v2342_v55, %v2174_v60  ;;  %v3486_v60 = vor.u32 %v3929_v14, %v3485_v21  ;;  %v3935_v14 = vld [vmem:[%s4281_s17 + $0x43c] sm:$0xf] }
 0x22a   : > { %v2457_v5 = vmax.f32 %v2343_v9, 0.0  ;;  %v1677_v9 = vadd.f32 %v4872_v54, %v4472_v38 }
 0x22b   : > { %v2006_v63 = vpop.f32.mrf.mxu2 }
 0x22c   : > { %v2521_v0 = vpack.c.bf16 %v2457_v5, %v2457_v5  ;;  %v2007_v26 = vadd.f32 %v2006_v63, %v1838_v40  ;;  %v2175_v37 = vpop.f32.mrf.mxu3 }
 0x22d   : > { %v1840_v39 = vpop.f32.mrf.mxu1 }
 0x22e   : > { %2586 = vst.msk [vmem:[%s4661_s12 + $0x78] sm:$0xf] %vm2555_vm1, %v2521_v0  ;;  %v2176_v61 = vadd.f32 %v2175_v37, %v2007_v26  ;;  %v1841_v42 = vadd.f32 %v1840_v39, %v1672_v52  ;;  %v3930_v0 = vld [vmem:[%s4281_s17 + $0x414] sm:$0xf]  ;;  %v3491_v26 = vld [vmem:[%s4281_s17 + $0x424] sm:$0xf0] }
 0x22f   : > { %v2347_v31 = vpop.f32.mrf.mxu0  ;;  %v3497_v37 = vld [vmem:[%s4281_s17 + $0x418] sm:$0xf]  ;;  %v3499_v39 = vld [vmem:[%s4281_s17 + $0x42c] sm:$0xf0] }
 0x230   : > { %v2345_v8 = vadd.f32 %v2344_v47, %v2176_v61  ;;  %1879 = vmatmul.bf16.gmra.mxu1 %v3454_v2  ;;  %2048 = vmatmul.bf16.gmra.mxu2 %v3458_v56  ;;  %v3933_v2 = vld [vmem:[%s4281_s17 + $0x428] sm:$0xf0]  ;;  %v3931_v56 = vld [vmem:[%s4281_s17 + $0x41c] sm:$0xf]  ;;  %v3505_v61 = vld [vmem:[%s4281_s17 + $0x420] sm:$0xf] }
 0x231   : > { %2217 = vmatmul.bf16.gmra.mxu3 %v3462_v43  ;;  %v3502_v50 = vor.u32 %v3931_v56, %v3499_v39  ;;  %v1689_v39 = vadd.f32 %v4872_v54, %v4538_v35 }
 0x232   : > { %3775 = vmatmul.msk.bf16.gmra.mxu0 %vm1485_vm0, %v3466_v20  ;;  %v2458_v49 = vmax.f32 %v2345_v8, 0.0 }
 0x233   : > { %v2009_v4 = vpop.f32.mrf.mxu2 }
 0x234   : > { %v2522_v45 = vpack.c.bf16 %v2458_v49, %v2458_v49  ;;  %v2010_v23 = vadd.f32 %v2009_v4, %v1841_v42  ;;  %v2178_v3 = vpop.f32.mrf.mxu3  ;;  %v3494_v4 = vor.u32 %v3930_v0, %v3491_v26 }
 0x235   : > { %v1842_v18 = vpop.f32.mrf.mxu1 }
 0x236   : > { %2587 = vst.msk [vmem:[%s4661_s12 + $0x7c] sm:$0xf] %vm2555_vm1, %v2522_v45  ;;  %v2179_v57 = vadd.f32 %v2178_v3, %v2010_v23  ;;  %v1843_v55 = vadd.f32 %v1842_v18, %v1674_v53  ;;  %v3498_v45 = vor.u32 %v3933_v2, %v3497_v37 }
 0x237   : > { %v2349_v33 = vpop.f32.mrf.mxu0 }
 0x238   : > { %v2348_v11 = vadd.f32 %v2347_v31, %v2179_v57  ;;  %v3934_v31 = vld [vmem:[%s4281_s17 + $0x430] sm:$0xf0] }
 0x239   : > { %v3506_v3 = vor.u32 %v3934_v31, %v3505_v61  ;;  %v3531_v61 = vld [vmem:[%s4281_s17 + $0x474] sm:$0xf0]  ;;  %v3537_v31 = vld [vmem:[%s4281_s17 + $0x468] sm:$0xf] }
 0x23a   : > { %v2459_v46 = vmax.f32 %v2348_v11, 0.0 }
 0x23b   : > { %v2011_v13 = vpop.f32.mrf.mxu2 }
 0x23c   : > { %v2523_v7 = vpack.c.bf16 %v2459_v46, %v2459_v46  ;;  %v2012_v17 = vadd.f32 %v2011_v13, %v1843_v55  ;;  %v2180_v59 = vpop.f32.mrf.mxu3  ;;  %v1684_v55 = vadd.f32 %v4872_v54, %v4513_v6  ;;  %v3511_v13 = vld [vmem:[%s4281_s17 + $0x44c] sm:$0xf0] }
 0x23d   : > { %v1845_v27 = vpop.f32.mrf.mxu1 }
 0x23e   : > { %2588 = vst.msk [vmem:[%s4661_s12 + $0x80] sm:$0xf] %vm2555_vm1, %v2523_v7  ;;  %v2181_v47 = vadd.f32 %v2180_v59, %v2012_v17  ;;  %v1846_v28 = vadd.f32 %v1845_v27, %v1677_v9  ;;  %v3517_v7 = vld [vmem:[%s4281_s17 + $0x440] sm:$0xf]  ;;  %v3938_v17 = vld [vmem:[%s4281_s17 + $0x450] sm:$0xf0] }
 0x23f   : > { %v2352_v19 = vpop.f32.mrf.mxu0  ;;  %v3936_v59 = vld [vmem:[%s4281_s17 + $0x444] sm:$0xf] }
 0x240   : > { %v2350_v25 = vadd.f32 %v2349_v33, %v2181_v47  ;;  %1884 = vmatmul.bf16.gmra.mxu1 %v3474_v36  ;;  %2053 = vmatmul.bf16.gmra.mxu2 %v3478_v44  ;;  %v1682_v33 = vadd.f32 %v4872_v54, %v4497_v58  ;;  %v3519_v36 = vld [vmem:[%s4281_s17 + $0x454] sm:$0xf0] }
 0x241   : > { %2222 = vmatmul.bf16.gmra.mxu3 %v3482_v30  ;;  %v3525_v30 = vld [vmem:[%s4281_s17 + $0x448] sm:$0xf]  ;;  %v3522_v6 = vor.u32 %v3936_v59, %v3519_v36 }
 0x242   : > { %3776 = vmatmul.msk.bf16.gmra.mxu0 %vm1485_vm0, %v3486_v60  ;;  %v2460_v51 = vmax.f32 %v2350_v25, 0.0  ;;  %v3939_v60 = vld [vmem:[%s4281_s17 + $0x458] sm:$0xf0] }
 0x243   : > { %v2014_v1 = vpop.f32.mrf.mxu2 }
 0x244   : > { %v2524_v24 = vpack.c.bf16 %v2460_v51, %v2460_v51  ;;  %v2015_v12 = vadd.f32 %v2014_v1, %v1846_v28  ;;  %v2183_v5 = vpop.f32.mrf.mxu3  ;;  %v3514_v51 = vor.u32 %v3935_v14, %v3511_v13  ;;  %v3518_v28 = vor.u32 %v3938_v17, %v3517_v7  ;;  %v5294_v17 = vld [vmem:[#allocation12_spill] sm:$0xff] }
 0x245   : > { %v1847_v38 = vpop.f32.mrf.mxu1  ;;  %v1694_v59 = vadd.f32 %v4872_v54, %v5294_v17 }
 0x246   : > { %2589 = vst.msk [vmem:[%s4661_s12 + $0x84] sm:$0xf] %vm2555_vm1, %v2524_v24  ;;  %v2184_v40 = vadd.f32 %v2183_v5, %v2015_v12  ;;  %v1848_v20 = vadd.f32 %v1847_v38, %v1679_v10  ;;  %v3526_v24 = vor.u32 %v3939_v60, %v3525_v30  ;;  %v1687_v38 = vadd.f32 %v4872_v54, %v4522_v15  ;;  %v3557_v30 = vld [vmem:[%s4281_s17 + $0x490] sm:$0xf]  ;;  %v3948_v60 = vld [vmem:[%s4281_s17 + $0x4a0] sm:$0xf0] }
 0x247   : > { %v2354_v41 = vpop.f32.mrf.mxu0 }
 0x248   : > { %v2353_v63 = vadd.f32 %v2352_v19, %v2184_v40 }
 0x24a   : > { %v2461_v43 = vmax.f32 %v2353_v63, 0.0 }
 0x24b   : > { %v2016_v52 = vpop.f32.mrf.mxu2 }
 0x24c   : > { %v2525_v8 = vpack.c.bf16 %v2461_v43, %v2461_v43  ;;  %v2017_v49 = vadd.f32 %v2016_v52, %v1848_v20  ;;  %v2185_v42 = vpop.f32.mrf.mxu3  ;;  %v3940_v20 = vld [vmem:[%s4281_s17 + $0x464] sm:$0xf]  ;;  %v3943_v52 = vld [vmem:[%s4281_s17 + $0x478] sm:$0xf0] }
 0x24d   : > { %v1850_v23 = vpop.f32.mrf.mxu1 }
 0x24e   : > { %2590 = vst.msk [vmem:[%s4661_s12 + $0x88] sm:$0xf] %vm2555_vm1, %v2525_v8  ;;  %v2186_v18 = vadd.f32 %v2185_v42, %v2017_v49  ;;  %v1851_v34 = vadd.f32 %v1850_v23, %v1682_v33  ;;  %v3941_v8 = vld [vmem:[%s4281_s17 + $0x46c] sm:$0xf]  ;;  %v3539_v49 = vld [vmem:[%s4281_s17 + $0x47c] sm:$0xf0]  ;;  %v3534_v33 = vor.u32 %v3940_v20, %v3531_v61 }
 0x24f   : > { %v2357_v57 = vpop.f32.mrf.mxu0  ;;  %v3944_v23 = vld [vmem:[%s4281_s17 + $0x480] sm:$0xf0]  ;;  %v3542_v35 = vor.u32 %v3941_v8, %v3539_v49  ;;  %v5296_v49 = vld [vmem:[#allocation16_spill] sm:$0xff] }
 0x250   : > { %v2355_v53 = vadd.f32 %v2354_v41, %v2186_v18  ;;  %1889 = vmatmul.bf16.gmra.mxu1 %v3494_v4  ;;  %2058 = vmatmul.bf16.gmra.mxu2 %v3498_v45  ;;  %v3545_v45 = vld [vmem:[%s4281_s17 + $0x470] sm:$0xf] }
 0x251   : > { %2227 = vmatmul.bf16.gmra.mxu3 %v3502_v50 }
 0x252   : > { %3777 = vmatmul.msk.bf16.gmra.mxu0 %vm1485_vm0, %v3506_v3  ;;  %v2462_v11 = vmax.f32 %v2355_v53, 0.0  ;;  %v3538_v53 = vor.u32 %v3943_v52, %v3537_v31 }
 0x253   : > { %v2019_v29 = vpop.f32.mrf.mxu2 }
 0x254   : > { %v2526_v22 = vpack.c.bf16 %v2462_v11, %v2462_v11  ;;  %v2020_v62 = vadd.f32 %v2019_v29, %v1851_v34  ;;  %v2188_v32 = vpop.f32.mrf.mxu3  ;;  %v3546_v34 = vor.u32 %v3944_v23, %v3545_v45  ;;  %v3950_v45 = vld [vmem:[%s4281_s17 + $0x4b4] sm:$0xf]  ;;  %v3571_v23 = vld [vmem:[%s4281_s17 + $0x4c4] sm:$0xf0] }
 0x255   : > { %v1852_v58 = vpop.f32.mrf.mxu1 }
 0x256   : > { %2591 = vst.msk [vmem:[%s4661_s12 + $0x8c] sm:$0xf] %vm2555_vm1, %v2526_v22  ;;  %v2189_v16 = vadd.f32 %v2188_v32, %v2020_v62  ;;  %v1853_v27 = vadd.f32 %v1852_v58, %v1684_v55  ;;  %v1692_v62 = vadd.f32 %v4872_v54, %v4547_v48 }
 0x257   : > { %v2359_v46 = vpop.f32.mrf.mxu0 }
 0x258   : > { %v2358_v21 = vadd.f32 %v2357_v57, %v2189_v16 }
 0x25a   : > { %v2463_v44 = vmax.f32 %v2358_v21, 0.0 }
 0x25b   : > { %v2021_v47 = vpop.f32.mrf.mxu2 }
 0x25c   : > { %v2527_v19 = vpack.c.bf16 %v2463_v44, %v2463_v44  ;;  %v2022_v9 = vadd.f32 %v2021_v47, %v1853_v27  ;;  %v2190_v25 = vpop.f32.mrf.mxu3  ;;  %v3945_v44 = vld [vmem:[%s4281_s17 + $0x48c] sm:$0xf]  ;;  %v3551_v27 = vld [vmem:[%s4281_s17 + $0x49c] sm:$0xf0]  ;;  %v3946_v47 = vld [vmem:[%s4281_s17 + $0x494] sm:$0xf] }
 0x25d   : > { %v1855_v1 = vpop.f32.mrf.mxu1 }
 0x25e   : > { %2592 = vst.msk [vmem:[%s4661_s12 + $0x90] sm:$0xf] %vm2555_vm1, %v2527_v19  ;;  %v2191_v12 = vadd.f32 %v2190_v25, %v2022_v9  ;;  %v1856_v10 = vadd.f32 %v1855_v1, %v1687_v38  ;;  %v3559_v19 = vld [vmem:[%s4281_s17 + $0x4a4] sm:$0xf0]  ;;  %v3558_v38 = vor.u32 %v3948_v60, %v3557_v30 }
 0x25f   : > { %v2362_v5 = vpop.f32.mrf.mxu0 }
 0x260   : > { %v2360_v40 = vadd.f32 %v2359_v46, %v2191_v12  ;;  %1894 = vmatmul.bf16.gmra.mxu1 %v3514_v51  ;;  %2063 = vmatmul.bf16.gmra.mxu2 %v3518_v28  ;;  %v3565_v51 = vld [vmem:[%s4281_s17 + $0x498] sm:$0xf]  ;;  %v3949_v28 = vld [vmem:[%s4281_s17 + $0x4a8] sm:$0xf0] }
 0x261   : > { %2232 = vmatmul.bf16.gmra.mxu3 %v3522_v6 }
 0x262   : > { %3778 = vmatmul.msk.bf16.gmra.mxu0 %vm1485_vm0, %v3526_v24  ;;  %v2464_v41 = vmax.f32 %v2360_v40, 0.0 }
 0x263   : > { %v2024_v63 = vpop.f32.mrf.mxu2 }
 0x264   : > { %v2528_v0 = vpack.c.bf16 %v2464_v41, %v2464_v41  ;;  %v2025_v26 = vadd.f32 %v2024_v63, %v1856_v10  ;;  %v2193_v37 = vpop.f32.mrf.mxu3  ;;  %v3562_v41 = vor.u32 %v3946_v47, %v3559_v19  ;;  %v3566_v10 = vor.u32 %v3949_v28, %v3565_v51  ;;  %v3955_v28 = vld [vmem:[%s4281_s17 + $0x4dc] sm:$0xf] }
 0x265   : > { %v1857_v15 = vpop.f32.mrf.mxu1 }
 0x266   : > { %2593 = vst.msk [vmem:[%s4661_s12 + $0x94] sm:$0xf] %vm2555_vm1, %v2528_v0  ;;  %v2194_v2 = vadd.f32 %v2193_v37, %v2025_v26  ;;  %v1858_v4 = vadd.f32 %v1857_v15, %v1689_v39  ;;  %v5295_v26 = vld [vmem:[#allocation14_spill] sm:$0xff] }
 0x267   : > { %v2364_v56 = vpop.f32.mrf.mxu0  ;;  %v1697_v37 = vadd.f32 %v4872_v54, %v5295_v26 }
 0x268   : > { %v2363_v43 = vadd.f32 %v2362_v5, %v2194_v2  ;;  %v3554_v5 = vor.u32 %v3945_v44, %v3551_v27 }
 0x26a   : > { %v2465_v42 = vmax.f32 %v2363_v43, 0.0 }
 0x26b   : > { %v2026_v50 = vpop.f32.mrf.mxu2 }
 0x26c   : > { %v2529_v3 = vpack.c.bf16 %v2465_v42, %v2465_v42  ;;  %v2027_v18 = vadd.f32 %v2026_v50, %v1858_v4  ;;  %v2195_v57 = vpop.f32.mrf.mxu3  ;;  %v1699_v42 = vadd.f32 %v4872_v54, %v5296_v49  ;;  %v3577_v50 = vld [vmem:[%s4281_s17 + $0x4b8] sm:$0xf] }
 0x26d   : > { %v1860_v11 = vpop.f32.mrf.mxu1 }
 0x26e   : > { %2594 = vst.msk [vmem:[%s4661_s12 + $0x98] sm:$0xf] %vm2555_vm1, %v2529_v3  ;;  %v2196_v29 = vadd.f32 %v2195_v57, %v2027_v18  ;;  %v1861_v16 = vadd.f32 %v1860_v11, %v1692_v62  ;;  %v3953_v3 = vld [vmem:[%s4281_s17 + $0x4c8] sm:$0xf0]  ;;  %v3951_v18 = vld [vmem:[%s4281_s17 + $0x4bc] sm:$0xf] }
 0x26f   : > { %v2367_v22 = vpop.f32.mrf.mxu0  ;;  %v3579_v57 = vld [vmem:[%s4281_s17 + $0x4cc] sm:$0xf0]  ;;  %v3585_v11 = vld [vmem:[%s4281_s17 + $0x4c0] sm:$0xf] }
 0x270   : > { %v2365_v32 = vadd.f32 %v2364_v56, %v2196_v29  ;;  %1899 = vmatmul.bf16.gmra.mxu1 %v3534_v33  ;;  %2068 = vmatmul.bf16.gmra.mxu2 %v3538_v53 }
 0x271   : > { %2237 = vmatmul.bf16.gmra.mxu3 %v3542_v35  ;;  %v3954_v35 = vld [vmem:[%s4281_s17 + $0x4d0] sm:$0xf0] }
 0x272   : > { %3779 = vmatmul.msk.bf16.gmra.mxu0 %vm1485_vm0, %v3546_v34  ;;  %v2466_v58 = vmax.f32 %v2365_v32, 0.0  ;;  %v3574_v32 = vor.u32 %v3950_v45, %v3571_v23 }
 0x273   : > { %v2029_v46 = vpop.f32.mrf.mxu2 }
 0x274   : > { %v2530_v55 = vpack.c.bf16 %v2466_v58, %v2466_v58  ;;  %v2030_v21 = vadd.f32 %v2029_v46, %v1861_v16  ;;  %v2198_v14 = vpop.f32.mrf.mxu3  ;;  %v3578_v58 = vor.u32 %v3953_v3, %v3577_v50  ;;  %v3582_v46 = vor.u32 %v3951_v18, %v3579_v57 }
 0x275   : > { %v1862_v48 = vpop.f32.mrf.mxu1 }
 0x276   : > { %2595 = vst.msk [vmem:[%s4661_s12 + $0x9c] sm:$0xf] %vm2555_vm1, %v2530_v55  ;;  %v2199_v13 = vadd.f32 %v2198_v14, %v2030_v21  ;;  %v1863_v25 = vadd.f32 %v1862_v48, %v1694_v59  ;;  %v3586_v55 = vor.u32 %v3954_v35, %v3585_v11  ;;  %v5297_v48 = vld [vmem:[#allocation18_spill] sm:$0xff] }
 0x277   : > { %v2369_v7 = vpop.f32.mrf.mxu0 }
 0x278   : > { %v2368_v36 = vadd.f32 %v2367_v22, %v2199_v13  ;;  %v1702_v13 = vadd.f32 %v4872_v54, %v5297_v48 }
 0x27a   : > { %v2467_v9 = vmax.f32 %v2368_v36, 0.0 }
 0x27b   : > { %v2031_v1 = vpop.f32.mrf.mxu2 }
 0x27c   : > { %v2531_v6 = vpack.c.bf16 %v2467_v9, %v2467_v9  ;;  %v2032_v24 = vadd.f32 %v2031_v1, %v1863_v25  ;;  %v2200_v12 = vpop.f32.mrf.mxu3  ;;  %v5298_v9 = vld [vmem:[#allocation20_spill] sm:$0xff]  ;;  %v3591_v1 = vld [vmem:[%s4281_s17 + $0x4ec] sm:$0xf0] }
 0x27d   : > { %v1865_v40 = vpop.f32.mrf.mxu1  ;;  %v1704_v25 = vadd.f32 %v4872_v54, %v5298_v9 }
 0x27e   : > { %2596 = vst.msk [vmem:[%s4661_s12 + $0xa0] sm:$0xf] %vm2555_vm1, %v2531_v6  ;;  %v2201_v63 = vadd.f32 %v2200_v12, %v2032_v24  ;;  %v1866_v56 = vadd.f32 %v1865_v40, %v1697_v37  ;;  %v3597_v6 = vld [vmem:[%s4281_s17 + $0x4e0] sm:$0xf]  ;;  %v3958_v24 = vld [vmem:[%s4281_s17 + $0x4f0] sm:$0xf0] }
 0x27f   : > { %v2372_v0 = vpop.f32.mrf.mxu0  ;;  %v3956_v12 = vld [vmem:[%s4281_s17 + $0x4e4] sm:$0xf] }
 0x280   : > { %v2370_v15 = vadd.f32 %v2369_v7, %v2201_v63  ;;  %1904 = vmatmul.bf16.gmra.mxu1 %v3554_v5  ;;  %2073 = vmatmul.bf16.gmra.mxu2 %v3558_v38  ;;  %v3599_v5 = vld [vmem:[%s4281_s17 + $0x4f4] sm:$0xf0] }
 0x281   : > { %2242 = vmatmul.bf16.gmra.mxu3 %v3562_v41  ;;  %v3605_v41 = vld [vmem:[%s4281_s17 + $0x4e8] sm:$0xf] }
 0x282   : > { %3780 = vmatmul.msk.bf16.gmra.mxu0 %vm1485_vm0, %v3566_v10  ;;  %v2468_v2 = vmax.f32 %v2370_v15, 0.0  ;;  %v3959_v10 = vld [vmem:[%s4281_s17 + $0x4f8] sm:$0xf0]  ;;  %v3594_v15 = vor.u32 %v3955_v28, %v3591_v1 }
 0x283   : > { %v2034_v39 = vpop.f32.mrf.mxu2 }
 0x284   : > { %v2532_v43 = vpack.c.bf16 %v2468_v2, %v2468_v2  ;;  %v2035_v20 = vadd.f32 %v2034_v39, %v1866_v56  ;;  %v2203_v61 = vpop.f32.mrf.mxu3  ;;  %v3598_v2 = vor.u32 %v3958_v24, %v3597_v6  ;;  %v3602_v39 = vor.u32 %v3956_v12, %v3599_v5 }
 0x285   : > { %v1867_v31 = vpop.f32.mrf.mxu1 }
 0x286   : > { %2597 = vst.msk [vmem:[%s4661_s12 + $0xa4] sm:$0xf] %vm2555_vm1, %v2532_v43  ;;  %v2204_v52 = vadd.f32 %v2203_v61, %v2035_v20  ;;  %v1868_v53 = vadd.f32 %v1867_v31, %v1699_v42  ;;  %v3606_v43 = vor.u32 %v3959_v10, %v3605_v41  ;;  %v5299_v31 = vld [vmem:[#allocation22_spill] sm:$0xff] }
 0x287   : > { %v2374_v8 = vpop.f32.mrf.mxu0 }
 0x288   : > { %v2373_v4 = vadd.f32 %v2372_v0, %v2204_v52  ;;  %v1707_v52 = vadd.f32 %v4872_v54, %v5299_v31 }
 0x28a   : > { %v2469_v33 = vmax.f32 %v2373_v4, 0.0 }
 0x28b   : > { %v2036_v34 = vpop.f32.mrf.mxu2 }
 0x28c   : > { %v2533_v29 = vpack.c.bf16 %v2469_v33, %v2469_v33  ;;  %v2037_v22 = vadd.f32 %v2036_v34, %v1868_v53  ;;  %v2205_v62 = vpop.f32.mrf.mxu3  ;;  %v5300_v33 = vld [vmem:[#allocation24_spill] sm:$0xff] }
 0x28d   : > { %v1870_v16 = vpop.f32.mrf.mxu1  ;;  %v1709_v53 = vadd.f32 %v4872_v54, %v5300_v33 }
 0x28e   : > { %2598 = vst.msk [vmem:[%s4661_s12 + $0xa8] sm:$0xf] %vm2555_vm1, %v2533_v29  ;;  %v2206_v21 = vadd.f32 %v2205_v62, %v2037_v22  ;;  %v1871_v59 = vadd.f32 %v1870_v16, %v1702_v13 }
 0x28f   : > { %v2377_v14 = vpop.f32.mrf.mxu0 }
 0x290   : > { %v2375_v7 = vadd.f32 %v2374_v8, %v2206_v21  ;;  %1909 = vmatmul.bf16.gmra.mxu1 %v3574_v32  ;;  %2078 = vmatmul.bf16.gmra.mxu2 %v3578_v58 }
 0x291   : > { %2247 = vmatmul.bf16.gmra.mxu3 %v3582_v46 }
 0x292   : > { %3781 = vmatmul.msk.bf16.gmra.mxu0 %vm1485_vm0, %v3586_v55  ;;  %v2470_v17 = vmax.f32 %v2375_v7, 0.0  ;;  %v5301_v55 = vld [vmem:[#allocation3_spill] sm:$0xff] }
 0x293   : > { %v2039_v36 = vpop.f32.mrf.mxu2  ;;  %v1712_v21 = vadd.f32 %v4872_v54, %v5301_v55 }
 0x294   : > { %v2534_v44 = vpack.c.bf16 %v2470_v17, %v2470_v17  ;;  %v2040_v27 = vadd.f32 %v2039_v36, %v1871_v59  ;;  %v2208_v30 = vpop.f32.mrf.mxu3 }
 0x295   : > { %v1872_v60 = vpop.f32.mrf.mxu1 }
 0x296   : > { %2599 = vst.msk [vmem:[%s4661_s12 + $0xac] sm:$0xf] %vm2555_vm1, %v2534_v44  ;;  %v2209_v47 = vadd.f32 %v2208_v30, %v2040_v27  ;;  %v1873_v40 = vadd.f32 %v1872_v60, %v1704_v25  ;;  %v5302_v60 = vld [vmem:[#allocation4_spill] sm:$0xff] }
 0x297   : > { %v2379_v19 = vpop.f32.mrf.mxu0 }
 0x298   : > { %v2378_v51 = vadd.f32 %v2377_v14, %v2209_v47  ;;  %v1714_v47 = vadd.f32 %v4872_v54, %v5302_v60 }
 0x29a   : > { %v2471_v38 = vmax.f32 %v2378_v51, 0.0 }
 0x29b   : > { %v2041_v63 = vpop.f32.mrf.mxu2 }
 0x29c   : > { %v2535_v0 = vpack.c.bf16 %v2471_v38, %v2471_v38  ;;  %v2042_v26 = vadd.f32 %v2041_v63, %v1873_v40  ;;  %v2210_v37 = vpop.f32.mrf.mxu3  ;;  %v5303_v38 = vld [vmem:[#allocation5_spill] sm:$0xff] }
 0x29d   : > { %v1875_v56 = vpop.f32.mrf.mxu1  ;;  %v1717_v40 = vadd.f32 %v4872_v54, %v5303_v38 }
 0x29e   : > { %2600 = vst.msk [vmem:[%s4661_s12 + $0xb0] sm:$0xf] %vm2555_vm1, %v2535_v0  ;;  %v2211_v20 = vadd.f32 %v2210_v37, %v2042_v26  ;;  %v1876_v42 = vadd.f32 %v1875_v56, %v1707_v52 }
 0x29f   : > { %v2382_v61 = vpop.f32.mrf.mxu0 }
 0x2a0   : > { %v2380_v8 = vadd.f32 %v2379_v19, %v2211_v20  ;;  %1914 = vmatmul.bf16.gmra.mxu1 %v3594_v15  ;;  %2083 = vmatmul.bf16.gmra.mxu2 %v3598_v2 }
 0x2a1   : > { %2252 = vmatmul.bf16.gmra.mxu3 %v3602_v39 }
 0x2a2   : > { %3782 = vmatmul.msk.bf16.gmra.mxu0 %vm1485_vm0, %v3606_v43  ;;  %v2472_v49 = vmax.f32 %v2380_v8, 0.0  ;;  %v5304_v43 = vld [vmem:[#allocation6_spill] sm:$0xff] }
 0x2a3   : > { %v2044_v4 = vpop.f32.mrf.mxu2  ;;  %v1719_v20 = vadd.f32 %v4872_v54, %v5304_v43 }
 0x2a4   : > { %v2536_v45 = vpack.c.bf16 %v2472_v49, %v2472_v49  ;;  %v2045_v23 = vadd.f32 %v2044_v4, %v1876_v42  ;;  %v2213_v50 = vpop.f32.mrf.mxu3 }
 0x2a5   : > { %v1877_v3 = vpop.f32.mrf.mxu1 }
 0x2a6   : > { %2601 = vst.msk [vmem:[%s4661_s12 + $0xb4] sm:$0xf] %vm2555_vm1, %v2536_v45  ;;  %v2214_v18 = vadd.f32 %v2213_v50, %v2045_v23  ;;  %v1878_v34 = vadd.f32 %v1877_v3, %v1709_v53  ;;  %v5305_v3 = vld [vmem:[#allocation7_spill] sm:$0xff] }
 0x2a7   : > { %v2384_v57 = vpop.f32.mrf.mxu0 }
 0x2a8   : > { %v2383_v11 = vadd.f32 %v2382_v61, %v2214_v18  ;;  %v1722_v18 = vadd.f32 %v4872_v54, %v5305_v3 }
 0x2aa   : > { %v2473_v35 = vmax.f32 %v2383_v11, 0.0 }
 0x2ab   : > { %v2046_v29 = vpop.f32.mrf.mxu2 }
 0x2ac   : > { %v2537_v22 = vpack.c.bf16 %v2473_v35, %v2473_v35  ;;  %v2047_v62 = vadd.f32 %v2046_v29, %v1878_v34  ;;  %v2215_v32 = vpop.f32.mrf.mxu3 }
 0x2ad   : > { %v1880_v58 = vpop.f32.mrf.mxu1 }
 0x2ae   : > { %2602 = vst.msk [vmem:[%s4661_s12 + $0xb8] sm:$0xf] %vm2555_vm1, %v2537_v22  ;;  %v2216_v16 = vadd.f32 %v2215_v32, %v2047_v62  ;;  %v1881_v13 = vadd.f32 %v1880_v58, %v1712_v21  ;;  %v5306_v58 = vld [vmem:[#allocation8_spill] sm:$0xff] }
 0x2af   : > { %v2387_v46 = vpop.f32.mrf.mxu0 }
 0x2b0   : > { %v2385_v14 = vadd.f32 %v2384_v57, %v2216_v16  ;;  %v1724_v16 = vadd.f32 %v4872_v54, %v5306_v58 }
 0x2b2   : > { %v2474_v48 = vmax.f32 %v2385_v14, 0.0 }
 0x2b3   : > { %v2049_v7 = vpop.f32.mrf.mxu2 }
 0x2b4   : > { %v2538_v17 = vpack.c.bf16 %v2474_v48, %v2474_v48  ;;  %v2050_v59 = vadd.f32 %v2049_v7, %v1881_v13  ;;  %v2218_v36 = vpop.f32.mrf.mxu3 }
 0x2b5   : > { %v1882_v44 = vpop.f32.mrf.mxu1 }
 0x2b6   : > { %2603 = vst.msk [vmem:[%s4661_s12 + $0xbc] sm:$0xf] %vm2555_vm1, %v2538_v17  ;;  %v2219_v27 = vadd.f32 %v2218_v36, %v2050_v59  ;;  %v1883_v25 = vadd.f32 %v1882_v44, %v1714_v47  ;;  %v5307_v44 = vld [vmem:[#allocation9_spill] sm:$0xff] }
 0x2b7   : > { %v2389_v30 = vpop.f32.mrf.mxu0 }
 0x2b8   : > { %v2388_v19 = vadd.f32 %v2387_v46, %v2219_v27  ;;  %v1727_v27 = vadd.f32 %v4872_v54, %v5307_v44 }
 0x2ba   : > { %v2475_v9 = vmax.f32 %v2388_v19, 0.0 }
 0x2bb   : > { %v2051_v51 = vpop.f32.mrf.mxu2 }
 0x2bc   : > { %v2539_v28 = vpack.c.bf16 %v2475_v9, %v2475_v9  ;;  %v2052_v1 = vadd.f32 %v2051_v51, %v1883_v25  ;;  %v2220_v6 = vpop.f32.mrf.mxu3 }
 0x2bd   : > { %v1885_v24 = vpop.f32.mrf.mxu1 }
 0x2be   : > { %2604 = vst.msk [vmem:[%s4661_s12 + $0xc0] sm:$0xf] %vm2555_vm1, %v2539_v28  ;;  %v2221_v12 = vadd.f32 %v2220_v6, %v2052_v1  ;;  %v1886_v63 = vadd.f32 %v1885_v24, %v1717_v40  ;;  %v5084_v24 = vld [vmem:[%s5268_s2] ss:$0 sm:$0xff] }
 0x2bf   : > { %v2392_v5 = vpop.f32.mrf.mxu0 }
 0x2c0   : > { %v2390_v41 = vadd.f32 %v2389_v30, %v2221_v12  ;;  %v5308_v12 = vld [vmem:[#allocation10_spill] sm:$0xff] }
 0x2c1   : > { %v1729_v54 = vadd.f32 %v5084_v24, %v5308_v12 }
 0x2c2   : > { %v2476_v10 = vmax.f32 %v2390_v41, 0.0 }
 0x2c3   : > { %v2054_v0 = vpop.f32.mrf.mxu2 }
 0x2c4   : > { %v2540_v26 = vpack.c.bf16 %v2476_v10, %v2476_v10  ;;  %v2055_v37 = vadd.f32 %v2054_v0, %v1886_v63  ;;  %v2223_v15 = vpop.f32.mrf.mxu3 }
 0x2c5   : > { %v1887_v2 = vpop.f32.mrf.mxu1 }
 0x2c6   : > { %2605 = vst.msk [vmem:[%s4661_s12 + $0xc4] sm:$0xf] %vm2555_vm1, %v2540_v26  ;;  %v2224_v56 = vadd.f32 %v2223_v15, %v2055_v37  ;;  %v1888_v52 = vadd.f32 %v1887_v2, %v1719_v20  ;;  %v5309_v2 = vld [vmem:[#allocation11_spill] sm:$0xff] }
 0x2c7   : > { %v2394_v39 = vpop.f32.mrf.mxu0 }
 0x2c8   : > { %v2393_v61 = vadd.f32 %v2392_v5, %v2224_v56  ;;  %v1732_v56 = vadd.f32 %v5084_v24, %v5309_v2 }
 0x2ca   : > { %v2477_v31 = vmax.f32 %v2393_v61, 0.0 }
 0x2cb   : > { %v2056_v8 = vpop.f32.mrf.mxu2 }
 0x2cc   : > { %v2541_v49 = vpack.c.bf16 %v2477_v31, %v2477_v31  ;;  %v2057_v42 = vadd.f32 %v2056_v8, %v1888_v52  ;;  %v2225_v4 = vpop.f32.mrf.mxu3 }
 0x2cd   : > { %v1890_v45 = vpop.f32.mrf.mxu1 }
 0x2ce   : > { %2606 = vst.msk [vmem:[%s4661_s12 + $0xc8] sm:$0xf] %vm2555_vm1, %v2541_v49  ;;  %v2226_v23 = vadd.f32 %v2225_v4, %v2057_v42  ;;  %v1891_v53 = vadd.f32 %v1890_v45, %v1722_v18  ;;  %v5310_v45 = vld [vmem:[#allocation13_spill] sm:$0xff] }
 0x2cf   : > { %v2397_v50 = vpop.f32.mrf.mxu0 }
 0x2d0   : > { %v2395_v57 = vadd.f32 %v2394_v39, %v2226_v23  ;;  %v1734_v23 = vadd.f32 %v5084_v24, %v5310_v45 }
 0x2d2   : > { %v2478_v33 = vmax.f32 %v2395_v57, 0.0 }
 0x2d3   : > { %v2059_v11 = vpop.f32.mrf.mxu2 }
 0x2d4   : > { %v2542_v35 = vpack.c.bf16 %v2478_v33, %v2478_v33  ;;  %v2060_v34 = vadd.f32 %v2059_v11, %v1891_v53  ;;  %v2228_v29 = vpop.f32.mrf.mxu3 }
 0x2d5   : > { %v1892_v22 = vpop.f32.mrf.mxu1 }
 0x2d6   : > { %2607 = vst.msk [vmem:[%s4661_s12 + $0xcc] sm:$0xf] %vm2555_vm1, %v2542_v35  ;;  %v2229_v62 = vadd.f32 %v2228_v29, %v2060_v34  ;;  %v1893_v21 = vadd.f32 %v1892_v22, %v1724_v16  ;;  %v5311_v22 = vld [vmem:[#allocation15_spill] sm:$0xff] }
 0x2d7   : > { %v2399_v32 = vpop.f32.mrf.mxu0 }
 0x2d8   : > { %v2398_v46 = vadd.f32 %v2397_v50, %v2229_v62  ;;  %v1737_v62 = vadd.f32 %v5084_v24, %v5311_v22 }
 0x2da   : > { %v2479_v55 = vmax.f32 %v2398_v46, 0.0 }
 0x2db   : > { %v2061_v14 = vpop.f32.mrf.mxu2 }
 0x2dc   : > { %v2543_v48 = vpack.c.bf16 %v2479_v55, %v2479_v55  ;;  %v2062_v13 = vadd.f32 %v2061_v14, %v1893_v21  ;;  %v2230_v7 = vpop.f32.mrf.mxu3 }
 0x2dd   : > { %v1895_v17 = vpop.f32.mrf.mxu1 }
 0x2de   : > { %2608 = vst.msk [vmem:[%s4661_s12 + $0xd0] sm:$0xf] %vm2555_vm1, %v2543_v48  ;;  %v2231_v59 = vadd.f32 %v2230_v7, %v2062_v13  ;;  %v1896_v47 = vadd.f32 %v1895_v17, %v1727_v27  ;;  %v5312_v17 = vld [vmem:[#allocation17_spill] sm:$0xff] }
 0x2df   : > { %v2402_v36 = vpop.f32.mrf.mxu0 }
 0x2e0   : > { %v2400_v30 = vadd.f32 %v2399_v32, %v2231_v59  ;;  %v1739_v59 = vadd.f32 %v5084_v24, %v5312_v17 }
 0x2e2   : > { %v2480_v60 = vmax.f32 %v2400_v30, 0.0 }
 0x2e3   : > { %v2064_v19 = vpop.f32.mrf.mxu2 }
 0x2e4   : > { %v2544_v9 = vpack.c.bf16 %v2480_v60, %v2480_v60  ;;  %v2065_v25 = vadd.f32 %v2064_v19, %v1896_v47  ;;  %v2233_v51 = vpop.f32.mrf.mxu3 }
 0x2e5   : > { %v1897_v28 = vpop.f32.mrf.mxu1 }
 0x2e6   : > { %2609 = vst.msk [vmem:[%s4661_s12 + $0xd4] sm:$0xf] %vm2555_vm1, %v2544_v9  ;;  %v2234_v1 = vadd.f32 %v2233_v51, %v2065_v25  ;;  %v1898_v40 = vadd.f32 %v1897_v28, %v1729_v54  ;;  %v5313_v51 = vld [vmem:[#allocation19_spill] sm:$0xff] }
 0x2e7   : > { %v2404_v6 = vpop.f32.mrf.mxu0  ;;  %v1742_v28 = vadd.f32 %v5084_v24, %v5313_v51 }
 0x2e8   : > { %v2403_v5 = vadd.f32 %v2402_v36, %v2234_v1 }
 0x2ea   : > { %v2481_v38 = vmax.f32 %v2403_v5, 0.0 }
 0x2eb   : > { %v2066_v41 = vpop.f32.mrf.mxu2 }
 0x2ec   : > { %v2545_v10 = vpack.c.bf16 %v2481_v38, %v2481_v38  ;;  %v2067_v63 = vadd.f32 %v2066_v41, %v1898_v40  ;;  %v2235_v0 = vpop.f32.mrf.mxu3 }
 0x2ed   : > { %v1900_v26 = vpop.f32.mrf.mxu1 }
 0x2ee   : > { %2610 = vst.msk [vmem:[%s4661_s12 + $0xd8] sm:$0xf] %vm2555_vm1, %v2545_v10  ;;  %v2236_v37 = vadd.f32 %v2235_v0, %v2067_v63  ;;  %v1901_v20 = vadd.f32 %v1900_v26, %v1732_v56  ;;  %v5314_v0 = vld [vmem:[#allocation21_spill] sm:$0xff] }
 0x2ef   : > { %v2407_v15 = vpop.f32.mrf.mxu0  ;;  %v1744_v26 = vadd.f32 %v5084_v24, %v5314_v0 }
 0x2f0   : > { %v2405_v39 = vadd.f32 %v2404_v6, %v2236_v37 }
 0x2f2   : > { %v2482_v43 = vmax.f32 %v2405_v39, 0.0 }
 0x2f3   : > { %v2069_v61 = vpop.f32.mrf.mxu2 }
 0x2f4   : > { %v2546_v31 = vpack.c.bf16 %v2482_v43, %v2482_v43  ;;  %v2070_v52 = vadd.f32 %v2069_v61, %v1901_v20  ;;  %v2238_v8 = vpop.f32.mrf.mxu3 }
 0x2f5   : > { %v1902_v49 = vpop.f32.mrf.mxu1 }
 0x2f6   : > { %2611 = vst.msk [vmem:[%s4661_s12 + $0xdc] sm:$0xf] %vm2555_vm1, %v2546_v31  ;;  %v2239_v42 = vadd.f32 %v2238_v8, %v2070_v52  ;;  %v1903_v18 = vadd.f32 %v1902_v49, %v1734_v23  ;;  %v5315_v8 = vld [vmem:[#allocation23_spill] sm:$0xff] }
 0x2f7   : > { %v2409_v4 = vpop.f32.mrf.mxu0  ;;  %v1747_v49 = vadd.f32 %v5084_v24, %v5315_v8 }
 0x2f8   : > { %v2408_v50 = vadd.f32 %v2407_v15, %v2239_v42 }
 0x2fa   : > { %v2483_v3 = vmax.f32 %v2408_v50, 0.0 }
 0x2fb   : > { %v2071_v57 = vpop.f32.mrf.mxu2 }
 0x2fc   : > { %v2547_v33 = vpack.c.bf16 %v2483_v3, %v2483_v3  ;;  %v2072_v53 = vadd.f32 %v2071_v57, %v1903_v18  ;;  %v2240_v11 = vpop.f32.mrf.mxu3 }
 0x2fd   : > { %v1905_v35 = vpop.f32.mrf.mxu1 }
 0x2fe   : > { %2612 = vst.msk [vmem:[%s4661_s12 + $0xe0] sm:$0xf] %vm2555_vm1, %v2547_v33  ;;  %v2241_v34 = vadd.f32 %v2240_v11, %v2072_v53  ;;  %v1906_v16 = vadd.f32 %v1905_v35, %v1737_v62  ;;  %v5316_v11 = vld [vmem:[#allocation25_spill] sm:$0xff] }
 0x2ff   : > { %v2412_v29 = vpop.f32.mrf.mxu0  ;;  %v1749_v35 = vadd.f32 %v5084_v24, %v5316_v11 }
 0x300   : > { %v2410_v32 = vadd.f32 %v2409_v4, %v2241_v34 }
 0x302   : > { %v2484_v58 = vmax.f32 %v2410_v32, 0.0 }
 0x303   : > { %v2074_v46 = vpop.f32.mrf.mxu2 }
 0x304   : > { %v2548_v55 = vpack.c.bf16 %v2484_v58, %v2484_v58  ;;  %v2075_v21 = vadd.f32 %v2074_v46, %v1906_v16  ;;  %v2243_v14 = vpop.f32.mrf.mxu3 }
 0x305   : > { %v1907_v48 = vpop.f32.mrf.mxu1 }
 0x306   : > { %2613 = vst.msk [vmem:[%s4661_s12 + $0xe4] sm:$0xf] %vm2555_vm1, %v2548_v55  ;;  %v2244_v13 = vadd.f32 %v2243_v14, %v2075_v21  ;;  %v1908_v27 = vadd.f32 %v1907_v48, %v1739_v59 }
 0x307   : > { %v2414_v7 = vpop.f32.mrf.mxu0 }
 0x308   : > { %v2413_v36 = vadd.f32 %v2412_v29, %v2244_v13 }
 0x30a   : > { %v2485_v44 = vmax.f32 %v2413_v36, 0.0 }
 0x30b   : > { %v2076_v30 = vpop.f32.mrf.mxu2 }
 0x30c   : > { %v2549_v60 = vpack.c.bf16 %v2485_v44, %v2485_v44  ;;  %v2077_v47 = vadd.f32 %v2076_v30, %v1908_v27  ;;  %v2245_v19 = vpop.f32.mrf.mxu3 }
 0x30d   : > { %v1910_v9 = vpop.f32.mrf.mxu1 }
 0x30e   : > { %2614 = vst.msk [vmem:[%s4661_s12 + $0xe8] sm:$0xf] %vm2555_vm1, %v2549_v60  ;;  %v2246_v25 = vadd.f32 %v2245_v19, %v2077_v47  ;;  %v1911_v54 = vadd.f32 %v1910_v9, %v1742_v28 }
 0x30f   : > { %v2417_v6 = vpop.f32.mrf.mxu0 }
 0x310   : > { %v2415_v1 = vadd.f32 %v2414_v7, %v2246_v25 }
 0x312   : > { %v2486_v12 = vmax.f32 %v2415_v1, 0.0 }
 0x313   : > { %v2079_v5 = vpop.f32.mrf.mxu2 }
 0x314   : > { %v2550_v38 = vpack.c.bf16 %v2486_v12, %v2486_v12  ;;  %v2080_v40 = vadd.f32 %v2079_v5, %v1911_v54  ;;  %v2248_v41 = vpop.f32.mrf.mxu3 }
 0x315   : > { %v1912_v10 = vpop.f32.mrf.mxu1 }
 0x316   : > { %2615 = vst.msk [vmem:[%s4661_s12 + $0xec] sm:$0xf] %vm2555_vm1, %v2550_v38  ;;  %v2249_v63 = vadd.f32 %v2248_v41, %v2080_v40  ;;  %v1913_v2 = vadd.f32 %v1912_v10, %v1744_v26 }
 0x317   : > { %v2419_v56 = vpop.f32.mrf.mxu0 }
 0x318   : > { %v2418_v37 = vadd.f32 %v2417_v6, %v2249_v63 }
 0x31a   : > { %v2487_v15 = vmax.f32 %v2418_v37, 0.0 }
 0x31b   : > { %v2081_v39 = vpop.f32.mrf.mxu2 }
 0x31c   : > { %v2551_v43 = vpack.c.bf16 %v2487_v15, %v2487_v15  ;;  %v2082_v20 = vadd.f32 %v2081_v39, %v1913_v2  ;;  %v2250_v61 = vpop.f32.mrf.mxu3 }
 0x31d   : > { %v1915_v31 = vpop.f32.mrf.mxu1 }
 0x31e   : > { %2616 = vst.msk [vmem:[%s4661_s12 + $0xf0] sm:$0xf] %vm2555_vm1, %v2551_v43  ;;  %v2251_v52 = vadd.f32 %v2250_v61, %v2082_v20  ;;  %v1916_v45 = vadd.f32 %v1915_v31, %v1747_v49 }
 0x31f   : > { %v2422_v57 = vpop.f32.mrf.mxu0 }
 0x320   : > { %v2420_v42 = vadd.f32 %v2419_v56, %v2251_v52 }
 0x322   : > { %v2488_v4 = vmax.f32 %v2420_v42, 0.0 }
 0x323   : > { %v2084_v23 = vpop.f32.mrf.mxu2 }
 0x324   : > { %v2552_v50 = vpack.c.bf16 %v2488_v4, %v2488_v4  ;;  %v2085_v3 = vadd.f32 %v2084_v23, %v1916_v45  ;;  %v2253_v18 = vpop.f32.mrf.mxu3 }
 0x325   : > { %v1917_v53 = vpop.f32.mrf.mxu1 }
 0x326   : > { %2617 = vst.msk [vmem:[%s4661_s12 + $0xf4] sm:$0xf] %vm2555_vm1, %v2552_v50  ;;  %v2254_v33 = vadd.f32 %v2253_v18, %v2085_v3  ;;  %v1918_v22 = vadd.f32 %v1917_v53, %v1749_v35 }
 0x327   : > { %v2424_v55 = vpop.f32.mrf.mxu0 }
 0x328   : > { %v2423_v34 = vadd.f32 %v2422_v57, %v2254_v33 }
 0x32a   : > { %v2489_v29 = vmax.f32 %v2423_v34, 0.0 }
 0x32b   : > { %v2086_v62 = vpop.f32.mrf.mxu2 }
 0x32c   : > { %v2553_v32 = vpack.c.bf16 %v2489_v29, %v2489_v29  ;;  %v2087_v58 = vadd.f32 %v2086_v62, %v1918_v22  ;;  %v2255_v16 = vpop.f32.mrf.mxu3 }
 0x32e   : > { %2618 = vst.msk [vmem:[%s4661_s12 + $0xf8] sm:$0xf] %vm2555_vm1, %v2553_v32  ;;  %v2256_v46 = vadd.f32 %v2255_v16, %v2087_v58 }
 0x330   : > { %v2425_v21 = vadd.f32 %v2424_v55, %v2256_v46 }
 0x332   : > { %v2490_v14 = vmax.f32 %v2425_v21, 0.0  ;;  %2626 = sbr.rel (!%p4248_p4) target bundleno = 887 (0x377), region = 36 }
 0x334   : > { %v2554_v48 = vpack.c.bf16 %v2490_v14, %v2490_v14 }
 0x336   : > { %2619 = vst.msk [vmem:[%s4661_s12 + $0xfc] sm:$0xf] %vm2555_vm1, %v2554_v48 }
 0x337   : > { %s5326_s29 = smov (!%p2629_p8, %s2628_s29), 64 }
 0x338   : > { %s3785_s7 = sshll.u32 %s5326_s29, 2 }
 0x339   : > { %p3788_p9 = scmp.eq.s32.totalorder %s3785_s7, 0 }
 0x33a   : > { %s5137_s8 = sshrl.u32 (!%p3788_p9), %s5326_s29, 5 }
 0x33b   : > { %2637 = sbr.rel (%p3788_p9) target bundleno = 887 (0x377), region = 40  ;;  %p3789_p10 = scmp.le.s32.totalorder (!%p3788_p9), %s5137_s8, 0 }
 0x340   : > { %2916 = sbr.rel (%p3789_p10) target bundleno = 870 (0x366), region = 112  ;;  %s5317_s15 = smov (!%p3789_p10), %s5131_s6 }
 0x341   : > { %s5318_s20 = smov (!%p3789_p10), %s4661_s12  ;;  %s5146_s27 = smov (!%p3789_p10), 0  }
 0x342   : > { %s5148_s9 = smov (!%p3789_p10), 0  }
 0x345 LB: >> { %v2654_v24 = vld [vmem:[%s4177_s20] sm:$0xf]  ;;  %v2656_v13 = vld [vmem:[%s4177_s20 + $0x4] sm:$0xf]  ;;  %v2658_v7 = vld [vmem:[%s4177_s20 + $0x8] sm:$0xf]  ;;  %s4185_s9 = sphi %s5148_s9, %s2648_s9   ;;  %s4181_s27 = sphi %s5146_s27, %s5321_s27   ;;  %s4177_s20 = sphi %s5318_s20, %s5320_s20   ;;  %s4173_s15 = sphi %s5317_s15, %s5319_s15  }
 0x346   : >> { %2655 = vst [vmem:[%s4173_s15] sm:$0xf] %v2654_v24  ;;  %v2660_v17 = vld [vmem:[%s4177_s20 + $0xc] sm:$0xf]  ;;  %v2662_v59 = vld [vmem:[%s4177_s20 + $0x10] sm:$0xf]  ;;  %s2718_s10 = sadd.s32 1, %s4181_s27 }
 0x347   : >> { %2657 = vst [vmem:[%s4173_s15 + $0x4] sm:$0xf] %v2656_v13  ;;  %v2664_v36 = vld [vmem:[%s4177_s20 + $0x14] sm:$0xf]  ;;  %v2666_v44 = vld [vmem:[%s4177_s20 + $0x18] sm:$0xf]  ;;  %p2719_p11 = scmp.ge.s32.totalorder %s2718_s10, %s5137_s8 }
 0x348   : >> { %2659 = vst [vmem:[%s4173_s15 + $0x8] sm:$0xf] %v2658_v7  ;;  %v2668_v27 = vld [vmem:[%s4177_s20 + $0x1c] sm:$0xf]  ;;  %v2670_v30 = vld [vmem:[%s4177_s20 + $0x20] sm:$0xf] }
 0x349   : >> { %2661 = vst [vmem:[%s4173_s15 + $0xc] sm:$0xf] %v2660_v17  ;;  %v2672_v60 = vld [vmem:[%s4177_s20 + $0x24] sm:$0xf]  ;;  %v2674_v47 = vld [vmem:[%s4177_s20 + $0x28] sm:$0xf] }
 0x34a   : >> { %2663 = vst [vmem:[%s4173_s15 + $0x10] sm:$0xf] %v2662_v59  ;;  %v2676_v19 = vld [vmem:[%s4177_s20 + $0x2c] sm:$0xf]  ;;  %v2678_v9 = vld [vmem:[%s4177_s20 + $0x30] sm:$0xf] }
 0x34b   : >> { %2665 = vst [vmem:[%s4173_s15 + $0x14] sm:$0xf] %v2664_v36  ;;  %v2680_v25 = vld [vmem:[%s4177_s20 + $0x34] sm:$0xf]  ;;  %v2682_v51 = vld [vmem:[%s4177_s20 + $0x38] sm:$0xf] }
 0x34c   : >> { %2667 = vst [vmem:[%s4173_s15 + $0x18] sm:$0xf] %v2666_v44  ;;  %v2684_v28 = vld [vmem:[%s4177_s20 + $0x3c] sm:$0xf]  ;;  %v2686_v1 = vld [vmem:[%s4177_s20 + $0x40] sm:$0xf] }
 0x34d   : >> { %2669 = vst [vmem:[%s4173_s15 + $0x1c] sm:$0xf] %v2668_v27  ;;  %v2688_v6 = vld [vmem:[%s4177_s20 + $0x44] sm:$0xf]  ;;  %s5328_s10 = smov (%p2719_p11, %s2718_s10), 0  ;;  %s2648_s9 = sadd.s32 1, %s4185_s9  }
 0x34e   : >> { %2671 = vst [vmem:[%s4173_s15 + $0x20] sm:$0xf] %v2670_v30  ;;  %v2690_v12 = vld [vmem:[%s4177_s20 + $0x48] sm:$0xf]  ;;  %v2692_v54 = vld [vmem:[%s4177_s20 + $0x4c] sm:$0xf]  ;;  %p2647_p12 = scmp.ge.s32.totalorder %s2648_s9, %s5137_s8  ;;  %s5321_s27 = smov %s5328_s10 }
 0x34f   : >> { %2673 = vst [vmem:[%s4173_s15 + $0x24] sm:$0xf] %v2672_v60  ;;  %s3790_s11 = sshll.u32 %s5328_s10, 7  ;;  %v2694_v5 = vld [vmem:[%s4177_s20 + $0x50] sm:$0xf] }
 0x350   : >> { %2675 = vst [vmem:[%s4173_s15 + $0x28] sm:$0xf] %v2674_v47  ;;  %s5207_s14 = scalar_lea.vmem %s4661_s12, %s3790_s11 [#allocation2]   ;;  %s2724_s18 = scalar_lea.vmem %s5131_s6, %s3790_s11   ;;  %v2696_v38 = vld [vmem:[%s4177_s20 + $0x54] sm:$0xf]  ;;  %v2698_v40 = vld [vmem:[%s4177_s20 + $0x58] sm:$0xf] }
 0x351   : >> { %2677 = vst [vmem:[%s4173_s15 + $0x2c] sm:$0xf] %v2676_v19  ;;  %v2700_v41 = vld [vmem:[%s4177_s20 + $0x5c] sm:$0xf]  ;;  %v2702_v10 = vld [vmem:[%s4177_s20 + $0x60] sm:$0xf] }
 0x352   : >> { %2679 = vst [vmem:[%s4173_s15 + $0x30] sm:$0xf] %v2678_v9  ;;  %v2704_v63 = vld [vmem:[%s4177_s20 + $0x64] sm:$0xf]  ;;  %v2706_v0 = vld [vmem:[%s4177_s20 + $0x68] sm:$0xf] }
 0x353   : >> { %2681 = vst [vmem:[%s4173_s15 + $0x34] sm:$0xf] %v2680_v25  ;;  %v2708_v26 = vld [vmem:[%s4177_s20 + $0x6c] sm:$0xf]  ;;  %v2710_v37 = vld [vmem:[%s4177_s20 + $0x70] sm:$0xf] }
 0x354   : >> { %2683 = vst [vmem:[%s4173_s15 + $0x38] sm:$0xf] %v2682_v51  ;;  %v2712_v15 = vld [vmem:[%s4177_s20 + $0x74] sm:$0xf]  ;;  %v2714_v2 = vld [vmem:[%s4177_s20 + $0x78] sm:$0xf] }
 0x355   : >> { %2685 = vst [vmem:[%s4173_s15 + $0x3c] sm:$0xf] %v2684_v28  ;;  %v2716_v56 = vld [vmem:[%s4177_s20 + $0x7c] sm:$0xf]  ;;  %s5320_s20 = smov %s5207_s14 }
 0x356   : >> { %2687 = vst [vmem:[%s4173_s15 + $0x40] sm:$0xf] %v2686_v1 }
 0x357   : >> { %2689 = vst [vmem:[%s4173_s15 + $0x44] sm:$0xf] %v2688_v6 }
 0x358   : >> { %2691 = vst [vmem:[%s4173_s15 + $0x48] sm:$0xf] %v2690_v12 }
 0x359   : >> { %2693 = vst [vmem:[%s4173_s15 + $0x4c] sm:$0xf] %v2692_v54 }
 0x35a   : >> { %2695 = vst [vmem:[%s4173_s15 + $0x50] sm:$0xf] %v2694_v5 }
 0x35b   : >> { %2697 = vst [vmem:[%s4173_s15 + $0x54] sm:$0xf] %v2696_v38 }
 0x35c   : >> { %2699 = vst [vmem:[%s4173_s15 + $0x58] sm:$0xf] %v2698_v40 }
 0x35d   : >> { %2701 = vst [vmem:[%s4173_s15 + $0x5c] sm:$0xf] %v2700_v41 }
 0x35e   : >> { %2703 = vst [vmem:[%s4173_s15 + $0x60] sm:$0xf] %v2702_v10 }
 0x35f   : >> { %2705 = vst [vmem:[%s4173_s15 + $0x64] sm:$0xf] %v2704_v63 }
 0x360   : >> { %2707 = vst [vmem:[%s4173_s15 + $0x68] sm:$0xf] %v2706_v0 }
 0x361   : >> { %2709 = vst [vmem:[%s4173_s15 + $0x6c] sm:$0xf] %v2708_v26  ;;  %2650 = sbr.rel (!%p2647_p12) target bundleno = 837 (0x345), region = 118 }
 0x362   : >> { %2711 = vst [vmem:[%s4173_s15 + $0x70] sm:$0xf] %v2710_v37 }
 0x363   : >> { %2713 = vst [vmem:[%s4173_s15 + $0x74] sm:$0xf] %v2712_v15 }
 0x364   : >> { %2715 = vst [vmem:[%s4173_s15 + $0x78] sm:$0xf] %v2714_v2 }
 0x365   : >> { %2717 = vst [vmem:[%s4173_s15 + $0x7c] sm:$0xf] %v2716_v56  ;;  %s5319_s15 = smov %s2724_s18 }
 0x366 PF: > { %s5248_s21 = sand.u32 31, %s5326_s29   ;;  %s3997_s22 = sshll.u32 %s5137_s8, 7 }
 0x367   : > { %s2729_s23 = scalar_lea.vmem %s4661_s12, %s3997_s22 [#allocation2]   ;;  %s2731_s24 = scalar_lea.vmem %s5131_s6, %s3997_s22  }
 0x368   : > { %p3795_p13 = scmp.le.s32.totalorder %s5248_s21, 0 }
 0x369   : > { %s4187_s25 = smov (!%p3795_p13), %s2731_s24   ;;  %s4191_s26 = smov (!%p3795_p13), %s2729_s23  }
 0x36a   : > { %2930 = sbr.rel (%p3795_p13) target bundleno = 887 (0x377), region = 123  ;;  %s4195_s17 = smov (!%p3795_p13), 0  }
 0x36b   : > { %s4199_s28 = smov (!%p3795_p13), 0  }
 0x36f LB: >> { %v2741_v39 = vld [vmem:[%s4193_s26] sm:$0xf]  ;;  %s2743_s29 = sadd.s32 1, %s4197_s17  ;;  %s2735_s28 = sadd.s32 1, %s4201_s28   ;;  %s4201_s28 = sphi %s4199_s28, %s2735_s28   ;;  %s4197_s17 = sphi %s4195_s17, %s4196_s17   ;;  %s4193_s26 = sphi %s4191_s26, %s2748_s26   ;;  %s4189_s25 = sphi %s4187_s25, %s2749_s25  }
 0x370   : >> { %2742 = vst [vmem:[%s4189_s25] sm:$0xf] %v2741_v39  ;;  %p2744_p0 = scmp.ge.s32.totalorder %s2743_s29, %s5248_s21  ;;  %p2734_p1 = scmp.ge.s32.totalorder %s2735_s28, %s5248_s21 }
 0x372   : >> { %s5330_s29 = smov (%p2744_p0, %s2743_s29), 0  ;;  %2737 = sbr.rel (!%p2734_p1) target bundleno = 879 (0x36f), region = 129 }
 0x373   : >> { %s3796_s12 = sshll.u32 %s5330_s29, 2  ;;  %s4196_s17 = smov %s5330_s29  }
 0x374   : >> { %s2748_s26 = scalar_lea.vmem %s2729_s23, %s3796_s12 [#allocation2]   ;;  %s2749_s25 = scalar_lea.vmem %s2731_s24, %s3796_s12  }
 0x377 PF: > { %p10_p2 = scmp.ge.s32.totalorder %s4238_s16, 4   ;;  %s5322_s12 = smov %s4165_s13 }
 0x378   : > { %s5323_s13 = smov %s4246_s19  ;;  %s5324_s14 = smov %s4238_s16 }
 0x379   :  { %12 = sbr.rel (!%p10_p2) target bundleno = 2 (0x2), region = 140 }

// kernel: network_forward.7
= control target key start
LH: loop header
LB: loop body
LE: loop exit
PB: predicated region body
PF: predicated region fallthrough
CT: control target
= control target key end

     0   :  { %10 = vsyncpa [#allocation4], 0  ;;  %s7124_s18 = smov 0   ;;  %s8463_s0 = inlined_call_operand.vmem [shape: bf16[2,22528], index: 0, kind: input, shape index: {}]   ;;  %s8464_s1 = inlined_call_operand.vmem [shape: bf16[22528,512], index: 1, kind: input, shape index: {}]   ;;  %s8465_s2 = inlined_call_operand.vmem [shape: f32[1,512], index: 2, kind: input, shape index: {}]   ;;  %s8466_s3 = inlined_call_operand.vmem [shape: f32[512,6], index: 3, kind: input, shape index: {}]   ;;  %s8467_s4 = inlined_call_operand.vmem [shape: f32[1,6], index: 4, kind: input, shape index: {}]   ;;  %s8468_s5 = inlined_call_operand.hbm [shape: f32[2,6], index: 5, kind: output, shape index: {}]  }
   0x1 LB: > { %s7130_s19 = sadd.s32 4294967295, %s7090_s18   ;;  %p4439_p0 = scmp.ge.s32.totalorder %s7090_s18, 1  ;;  %s7090_s18 = sphi %s7124_s18, %s16_s18  }
   0x2   : > { %p195_p1 = scmp.lt.s32.totalorder %s7090_s18, 12 }
   0x4   : > { %p196_p2 = pnand %p4439_p0, %p195_p1 }
   0x5   : > { %s4440_s20 = sshll.u32 (!%p196_p2), %s7130_s19, 4  ;;  %s4441_s21 = sshll.u32 (!%p196_p2), %s7130_s19, 8 }
   0x6   : > { %199 = sbr.rel (%p196_p2) target bundleno = 861 (0x35d), region = 40  ;;  %p224_p3 = scmp.lt.s32.totalorder (!%p196_p2), %s4440_s20, 175 }
   0x7   : > { %p229_p4 = scmp.lt.s32.totalorder (!%p196_p2), %s4441_s21, 2815  ;;  %p4444_p5 = scmp.ne.s32.totalorder (!%p196_p2), %s7130_s19, 0 }
   0xb   : > { %s8470_s20 = smov (!%p224_p3, %s4440_s20), 175  ;;  %s8472_s21 = smov (!%p229_p4, %s4441_s21), 2815 }
   0xc   : > { %s7139_s24 = scalar_lea.vmem %s8463_s0, %s8470_s20  ;;  %s6498_s25 = sshll.u32 %s8472_s21, 4 }
   0xd   : > { %s7144_s28 = scalar_lea.vmem %s8464_s1, %s6498_s25  ;;  %238 = sbr.rel (%p4444_p5) target bundleno = 20 (0x14), region = 44 }
  0x12   : > { %v7092_v0 = vmov 0.0  }
  0x13   : > { %239 = vst [vmem:[#allocation2] sm:$0xff] %v7092_v0 }
  0x14 PF: > { %v4559_v1 = vld [vmem:[%s7144_s28 + $0xe0] sm:$0xf]  ;;  %v6529_v2 = vld [vmem:[%s7144_s28 + $0xec] sm:$0xf0]  ;;  %vm4190_vm0 = vcmask 1041408   ;;  %vm4192_vm1 = vcmask 1045508  }
  0x15   : > { %v4687_v3 = vld [vmem:[%s7144_s28 + $0x1e0] sm:$0xf]  ;;  %v4560_v4 = vor.u32 %v6529_v2, %v4559_v1  ;;  %v6561_v5 = vld [vmem:[%s7144_s28 + $0x1ec] sm:$0xf0]  ;;  %vm4194_vm2 = vcmask 1043456   ;;  %p6493_p6 = scmp.ne.s32.totalorder %s7130_s19, 10 }
  0x16   : > { %v4815_v6 = vld [vmem:[%s7144_s28 + $0x2e0] sm:$0xf]  ;;  %v6593_v7 = vld [vmem:[%s7144_s28 + $0x2ec] sm:$0xf0]  ;;  %v4688_v8 = vor.u32 %v6561_v5, %v4687_v3 }
  0x17   : > { %v4816_v9 = vor.u32 %v6593_v7, %v4815_v6  ;;  %v4943_v10 = vld [vmem:[%s7144_s28 + $0x3e0] sm:$0xf]  ;;  %v6625_v11 = vld [vmem:[%s7144_s28 + $0x3ec] sm:$0xf0]  ;;  %3351 = vmatpush.bf16.msra.mxu0 %v4560_v4 }
  0x18   : > { %v4543_v12 = vld [vmem:[%s7144_s28 + $0xc0] sm:$0xf]  ;;  %v4944_v13 = vor.u32 %v6625_v11, %v4943_v10  ;;  %v6525_v14 = vld [vmem:[%s7144_s28 + $0xcc] sm:$0xf0]  ;;  %3364 = vmatpush.bf16.msra.mxu1 %v4688_v8 }
  0x19   : > { %v4671_v15 = vld [vmem:[%s7144_s28 + $0x1c0] sm:$0xf]  ;;  %v6557_v16 = vld [vmem:[%s7144_s28 + $0x1cc] sm:$0xf0]  ;;  %3377 = vmatpush.bf16.msra.mxu2 %v4816_v9  ;;  %v4544_v17 = vor.u32 %v6525_v14, %v4543_v12 }
  0x1a   : > { %v4672_v18 = vor.u32 %v6557_v16, %v4671_v15  ;;  %v4799_v19 = vld [vmem:[%s7144_s28 + $0x2c0] sm:$0xf]  ;;  %v6589_v20 = vld [vmem:[%s7144_s28 + $0x2cc] sm:$0xf0]  ;;  %3390 = vmatpush.bf16.msra.mxu3 %v4944_v13 }
  0x1b   : > { %v4927_v21 = vld [vmem:[%s7144_s28 + $0x3c0] sm:$0xf]  ;;  %v4800_v22 = vor.u32 %v6589_v20, %v4799_v19  ;;  %v6621_v23 = vld [vmem:[%s7144_s28 + $0x3cc] sm:$0xf0]  ;;  %3352 = vmatpush.bf16.msra.mxu0 %v4544_v17 }
  0x1c   : > { %v4527_v24 = vld [vmem:[%s7144_s28 + $0xa0] sm:$0xf]  ;;  %v6521_v25 = vld [vmem:[%s7144_s28 + $0xac] sm:$0xf0]  ;;  %v4928_v26 = vor.u32 %v6621_v23, %v4927_v21  ;;  %3365 = vmatpush.bf16.msra.mxu1 %v4672_v18 }
  0x1d   : > { %v4655_v27 = vld [vmem:[%s7144_s28 + $0x1a0] sm:$0xf]  ;;  %v6553_v28 = vld [vmem:[%s7144_s28 + $0x1ac] sm:$0xf0]  ;;  %v4528_v30 = vor.u32 %v6521_v25, %v4527_v24  ;;  %3378 = vmatpush.bf16.msra.mxu2 %v4800_v22 }
  0x1e   : > { %v4783_v29 = vld [vmem:[%s7144_s28 + $0x2a0] sm:$0xf]  ;;  %v6585_v31 = vld [vmem:[%s7144_s28 + $0x2ac] sm:$0xf0]  ;;  %v4656_v34 = vor.u32 %v6553_v28, %v4655_v27  ;;  %3391 = vmatpush.bf16.msra.mxu3 %v4928_v26 }
  0x1f   : > { %v4911_v32 = vld [vmem:[%s7144_s28 + $0x3a0] sm:$0xf]  ;;  %v6617_v33 = vld [vmem:[%s7144_s28 + $0x3ac] sm:$0xf0]  ;;  %v4784_v35 = vor.u32 %v6585_v31, %v4783_v29  ;;  %3353 = vmatpush.bf16.msra.mxu0 %v4528_v30 }
  0x20   : > { %v4511_v36 = vld [vmem:[%s7144_s28 + $0x80] sm:$0xf]  ;;  %v6517_v37 = vld [vmem:[%s7144_s28 + $0x8c] sm:$0xf0]  ;;  %v4912_v39 = vor.u32 %v6617_v33, %v4911_v32  ;;  %3366 = vmatpush.bf16.msra.mxu1 %v4656_v34 }
  0x21   : > { %v4639_v38 = vld [vmem:[%s7144_s28 + $0x180] sm:$0xf]  ;;  %v6549_v40 = vld [vmem:[%s7144_s28 + $0x18c] sm:$0xf0]  ;;  %v4512_v45 = vor.u32 %v6517_v37, %v4511_v36  ;;  %3379 = vmatpush.bf16.msra.mxu2 %v4784_v35 }
  0x22   : > { %v4767_v41 = vld [vmem:[%s7144_s28 + $0x280] sm:$0xf]  ;;  %v6581_v42 = vld [vmem:[%s7144_s28 + $0x28c] sm:$0xf0]  ;;  %v4640_v46 = vor.u32 %v6549_v40, %v4639_v38  ;;  %3392 = vmatpush.bf16.msra.mxu3 %v4912_v39 }
  0x23   : > { %v4895_v43 = vld [vmem:[%s7144_s28 + $0x380] sm:$0xf]  ;;  %v6613_v44 = vld [vmem:[%s7144_s28 + $0x38c] sm:$0xf0]  ;;  %v4768_v47 = vor.u32 %v6581_v42, %v4767_v41  ;;  %3354 = vmatpush.bf16.msra.mxu0 %v4512_v45 }
  0x24   : > { %v4495_v48 = vld [vmem:[%s7144_s28 + $0x60] sm:$0xf]  ;;  %v6513_v49 = vld [vmem:[%s7144_s28 + $0x6c] sm:$0xf0]  ;;  %v4896_v51 = vor.u32 %v6613_v44, %v4895_v43  ;;  %3367 = vmatpush.bf16.msra.mxu1 %v4640_v46 }
  0x25   : > { %v4623_v50 = vld [vmem:[%s7144_s28 + $0x160] sm:$0xf]  ;;  %v6545_v52 = vld [vmem:[%s7144_s28 + $0x16c] sm:$0xf0]  ;;  %v4496_v57 = vor.u32 %v6513_v49, %v4495_v48  ;;  %3380 = vmatpush.bf16.msra.mxu2 %v4768_v47 }
  0x26   : > { %v4751_v53 = vld [vmem:[%s7144_s28 + $0x260] sm:$0xf]  ;;  %v6577_v54 = vld [vmem:[%s7144_s28 + $0x26c] sm:$0xf0]  ;;  %v4624_v58 = vor.u32 %v6545_v52, %v4623_v50  ;;  %3393 = vmatpush.bf16.msra.mxu3 %v4896_v51 }
  0x27   : > { %v4879_v55 = vld [vmem:[%s7144_s28 + $0x360] sm:$0xf]  ;;  %v6609_v56 = vld [vmem:[%s7144_s28 + $0x36c] sm:$0xf0]  ;;  %v4752_v59 = vor.u32 %v6577_v54, %v4751_v53  ;;  %3355 = vmatpush.bf16.msra.mxu0 %v4496_v57 }
  0x28   : > { %v4479_v60 = vld [vmem:[%s7144_s28 + $0x40] sm:$0xf]  ;;  %v6509_v61 = vld [vmem:[%s7144_s28 + $0x4c] sm:$0xf0]  ;;  %v4880_v63 = vor.u32 %v6609_v56, %v4879_v55  ;;  %3368 = vmatpush.bf16.msra.mxu1 %v4624_v58 }
  0x29   : > { %v4607_v62 = vld [vmem:[%s7144_s28 + $0x140] sm:$0xf]  ;;  %v6541_v0 = vld [vmem:[%s7144_s28 + $0x14c] sm:$0xf0]  ;;  %v4480_v5 = vor.u32 %v6509_v61, %v4479_v60  ;;  %3381 = vmatpush.bf16.msra.mxu2 %v4752_v59 }
  0x2a   : > { %v4735_v1 = vld [vmem:[%s7144_s28 + $0x240] sm:$0xf]  ;;  %v6573_v2 = vld [vmem:[%s7144_s28 + $0x24c] sm:$0xf0]  ;;  %v4608_v6 = vor.u32 %v6541_v0, %v4607_v62  ;;  %3394 = vmatpush.bf16.msra.mxu3 %v4880_v63 }
  0x2b   : > { %v4863_v3 = vld [vmem:[%s7144_s28 + $0x340] sm:$0xf]  ;;  %v6605_v4 = vld [vmem:[%s7144_s28 + $0x34c] sm:$0xf0]  ;;  %v4736_v7 = vor.u32 %v6573_v2, %v4735_v1  ;;  %3356 = vmatpush.bf16.msra.mxu0 %v4480_v5 }
  0x2c   : > { %v4463_v8 = vld [vmem:[%s7144_s28 + $0x20] sm:$0xf]  ;;  %v6505_v9 = vld [vmem:[%s7144_s28 + $0x2c] sm:$0xf0]  ;;  %v4864_v11 = vor.u32 %v6605_v4, %v4863_v3  ;;  %3369 = vmatpush.bf16.msra.mxu1 %v4608_v6 }
  0x2d   : > { %v4591_v10 = vld [vmem:[%s7144_s28 + $0x120] sm:$0xf]  ;;  %v6537_v12 = vld [vmem:[%s7144_s28 + $0x12c] sm:$0xf0]  ;;  %v4464_v17 = vor.u32 %v6505_v9, %v4463_v8  ;;  %3382 = vmatpush.bf16.msra.mxu2 %v4736_v7 }
  0x2e   : > { %v4719_v13 = vld [vmem:[%s7144_s28 + $0x220] sm:$0xf]  ;;  %v6569_v14 = vld [vmem:[%s7144_s28 + $0x22c] sm:$0xf0]  ;;  %v4592_v20 = vor.u32 %v6537_v12, %v4591_v10  ;;  %3395 = vmatpush.bf16.msra.mxu3 %v4864_v11 }
  0x2f   : > { %v4847_v15 = vld [vmem:[%s7144_s28 + $0x320] sm:$0xf]  ;;  %v6601_v16 = vld [vmem:[%s7144_s28 + $0x32c] sm:$0xf0]  ;;  %v4720_v21 = vor.u32 %v6569_v14, %v4719_v13  ;;  %3357 = vmatpush.bf16.msra.mxu0 %v4464_v17 }
  0x30   : > { %v4447_v18 = vld [vmem:[%s7144_s28] sm:$0xf]  ;;  %v6501_v19 = vld [vmem:[%s7144_s28 + $0xc] sm:$0xf0]  ;;  %v4848_v25 = vor.u32 %v6601_v16, %v4847_v15  ;;  %3370 = vmatpush.bf16.msra.mxu1 %v4592_v20 }
  0x31   : > { %v4575_v22 = vld [vmem:[%s7144_s28 + $0x100] sm:$0xf]  ;;  %v6533_v23 = vld [vmem:[%s7144_s28 + $0x10c] sm:$0xf0]  ;;  %v4448_v32 = vor.u32 %v6501_v19, %v4447_v18  ;;  %3383 = vmatpush.bf16.msra.mxu2 %v4720_v21 }
  0x32   : > { %v4703_v24 = vld [vmem:[%s7144_s28 + $0x200] sm:$0xf]  ;;  %v6565_v26 = vld [vmem:[%s7144_s28 + $0x20c] sm:$0xf0]  ;;  %v4576_v36 = vor.u32 %v6533_v23, %v4575_v22  ;;  %3396 = vmatpush.bf16.msra.mxu3 %v4848_v25 }
  0x33   : > { %v4831_v27 = vld [vmem:[%s7144_s28 + $0x300] sm:$0xf]  ;;  %v6597_v28 = vld [vmem:[%s7144_s28 + $0x30c] sm:$0xf0]  ;;  %v4704_v37 = vor.u32 %v6565_v26, %v4703_v24  ;;  %3358 = vmatpush.bf16.msra.mxu0 %v4448_v32 }
  0x34   : > { %v5071_v29 = vld [vmem:[%s7144_s28 + $0x4e0] sm:$0xf]  ;;  %v6657_v30 = vld [vmem:[%s7144_s28 + $0x4ec] sm:$0xf0]  ;;  %v4832_v40 = vor.u32 %v6597_v28, %v4831_v27  ;;  %3371 = vmatpush.bf16.msra.mxu1 %v4576_v36 }
  0x35   : > { %v5199_v31 = vld [vmem:[%s7144_s28 + $0x5e0] sm:$0xf]  ;;  %v6689_v33 = vld [vmem:[%s7144_s28 + $0x5ec] sm:$0xf0]  ;;  %v5072_v41 = vor.u32 %v6657_v30, %v5071_v29  ;;  %3384 = vmatpush.bf16.msra.mxu2 %v4704_v37 }
  0x36   : > { %v5327_v34 = vld [vmem:[%s7144_s28 + $0x6e0] sm:$0xf]  ;;  %v6721_v35 = vld [vmem:[%s7144_s28 + $0x6ec] sm:$0xf0]  ;;  %v5200_v42 = vor.u32 %v6689_v33, %v5199_v31  ;;  %3397 = vmatpush.bf16.msra.mxu3 %v4832_v40 }
  0x37   : > { %v5455_v38 = vld [vmem:[%s7144_s28 + $0x7e0] sm:$0xf]  ;;  %v6753_v39 = vld [vmem:[%s7144_s28 + $0x7ec] sm:$0xf0]  ;;  %v5328_v43 = vor.u32 %v6721_v35, %v5327_v34  ;;  %3403 = vmatpush.bf16.msrb.mxu0 %v5072_v41 }
  0x38   : > { %v5055_v44 = vld [vmem:[%s7144_s28 + $0x4c0] sm:$0xf]  ;;  %v6653_v45 = vld [vmem:[%s7144_s28 + $0x4cc] sm:$0xf0]  ;;  %v5456_v47 = vor.u32 %v6753_v39, %v5455_v38  ;;  %3416 = vmatpush.bf16.msrb.mxu1 %v5200_v42 }
  0x39   : > { %v5183_v46 = vld [vmem:[%s7144_s28 + $0x5c0] sm:$0xf]  ;;  %v6685_v48 = vld [vmem:[%s7144_s28 + $0x5cc] sm:$0xf0]  ;;  %v5056_v53 = vor.u32 %v6653_v45, %v5055_v44  ;;  %3429 = vmatpush.bf16.msrb.mxu2 %v5328_v43 }
  0x3a   : > { %v5311_v49 = vld [vmem:[%s7144_s28 + $0x6c0] sm:$0xf]  ;;  %v6717_v50 = vld [vmem:[%s7144_s28 + $0x6cc] sm:$0xf0]  ;;  %v5184_v56 = vor.u32 %v6685_v48, %v5183_v46  ;;  %3442 = vmatpush.bf16.msrb.mxu3 %v5456_v47 }
  0x3b   : > { %v5439_v51 = vld [vmem:[%s7144_s28 + $0x7c0] sm:$0xf]  ;;  %v6749_v52 = vld [vmem:[%s7144_s28 + $0x7cc] sm:$0xf0]  ;;  %v5312_v57 = vor.u32 %v6717_v50, %v5311_v49  ;;  %3404 = vmatpush.bf16.msrb.mxu0 %v5056_v53 }
  0x3c   : > { %v5039_v54 = vld [vmem:[%s7144_s28 + $0x4a0] sm:$0xf]  ;;  %v6649_v55 = vld [vmem:[%s7144_s28 + $0x4ac] sm:$0xf0]  ;;  %v5440_v61 = vor.u32 %v6749_v52, %v5439_v51  ;;  %3417 = vmatpush.bf16.msrb.mxu1 %v5184_v56 }
  0x3d   : > { %v5167_v58 = vld [vmem:[%s7144_s28 + $0x5a0] sm:$0xf]  ;;  %v6681_v59 = vld [vmem:[%s7144_s28 + $0x5ac] sm:$0xf0]  ;;  %v5040_v2 = vor.u32 %v6649_v55, %v5039_v54  ;;  %3430 = vmatpush.bf16.msrb.mxu2 %v5312_v57 }
  0x3e   : > { %v241_v60 = vld [vmem:[%s7139_s24] sm:$0xff]  ;;  %v6713_v63 = vld [vmem:[%s7144_s28 + $0x6ac] sm:$0xf0]  ;;  %v5168_v3 = vor.u32 %v6681_v59, %v5167_v58  ;;  %3443 = vmatpush.bf16.msrb.mxu3 %v5440_v61 }
  0x3f   : > { %v5295_v62 = vld [vmem:[%s7144_s28 + $0x6a0] sm:$0xf]  ;;  %756 = vst [vmem:[#allocation1] ss:$9 sm:$0xff] %v241_v60  ;;  %v6745_v1 = vld [vmem:[%s7144_s28 + $0x7ac] sm:$0xf0]  ;;  %3405 = vmatpush.bf16.msrb.mxu0 %v5040_v2 }
  0x40   : > { %v5423_v0 = vld [vmem:[%s7144_s28 + $0x7a0] sm:$0xf]  ;;  %v5296_v4 = vor.u32 %v6713_v63, %v5295_v62  ;;  %v6645_v6 = vld [vmem:[%s7144_s28 + $0x48c] sm:$0xf0]  ;;  %3418 = vmatpush.bf16.msrb.mxu1 %v5168_v3  ;;  %v242_v62 = vld [vmem:[%s7139_s24 + $0x8] sm:$0xff] }
  0x41   : > { %v5023_v5 = vld [vmem:[%s7144_s28 + $0x480] sm:$0xf]  ;;  %v5424_v8 = vor.u32 %v6745_v1, %v5423_v0  ;;  %v6677_v9 = vld [vmem:[%s7144_s28 + $0x58c] sm:$0xf0] }
  0x42   : > { %v5151_v7 = vld [vmem:[%s7144_s28 + $0x580] sm:$0xf]  ;;  %v6709_v11 = vld [vmem:[%s7144_s28 + $0x68c] sm:$0xf0]  ;;  %v5024_v15 = vor.u32 %v6645_v6, %v5023_v5  ;;  %3431 = vmatpush.bf16.msrb.mxu2 %v5296_v4 }
  0x43   : > { %v5279_v10 = vld [vmem:[%s7144_s28 + $0x680] sm:$0xf]  ;;  %v6741_v13 = vld [vmem:[%s7144_s28 + $0x78c] sm:$0xf0]  ;;  %v5152_v19 = vor.u32 %v6677_v9, %v5151_v7  ;;  %3444 = vmatpush.bf16.msrb.mxu3 %v5424_v8 }
  0x44   : > { %v5407_v12 = vld [vmem:[%s7144_s28 + $0x780] sm:$0xf]  ;;  %v6641_v16 = vld [vmem:[%s7144_s28 + $0x46c] sm:$0xf0]  ;;  %v5280_v20 = vor.u32 %v6709_v11, %v5279_v10  ;;  %3406 = vmatpush.bf16.msrb.mxu0 %v5024_v15 }
  0x45   : > { %v5007_v14 = vld [vmem:[%s7144_s28 + $0x460] sm:$0xf]  ;;  %v6673_v18 = vld [vmem:[%s7144_s28 + $0x56c] sm:$0xf0]  ;;  %v5408_v24 = vor.u32 %v6741_v13, %v5407_v12  ;;  %3419 = vmatpush.bf16.msrb.mxu1 %v5152_v19 }
  0x46   : > { %v5135_v17 = vld [vmem:[%s7144_s28 + $0x560] sm:$0xf]  ;;  %v7248_v21 = vld [vmem:[#allocation1 + $0x12] sm:$0xff]  ;;  %v7257_v27 = vld [vmem:[#allocation1 + $0x9] sm:$0xff]  ;;  %v5008_v30 = vor.u32 %v6641_v16, %v5007_v14  ;;  %3432 = vmatpush.bf16.msrb.mxu2 %v5280_v20 }
  0x47   : > { %v7250_v22 = vld [vmem:[#allocation1] sm:$0xff]  ;;  %v6705_v26 = vld [vmem:[%s7144_s28 + $0x66c] sm:$0xf0]  ;;  %3385 = vmatmul.bf16.vlgmr.msra.gmra.mxu2 %v7248_v21  ;;  %3372 = vmatmul.bf16.vlgmr.msra.gmra.mxu1 %v7257_v27  ;;  %v5136_v31 = vor.u32 %v6673_v18, %v5135_v17  ;;  %v7286_v61 = vld [vmem:[#allocation1 + $0x36] sm:$0xff] }
  0x48   : > { %v7252_v23 = vld [vmem:[#allocation1 + $0x1b] sm:$0xff]  ;;  %v6737_v29 = vld [vmem:[%s7144_s28 + $0x76c] sm:$0xf0]  ;;  %3359 = vmatmul.bf16.vlgmr.msra.gmra.mxu0 %v7250_v22  ;;  %3445 = vmatpush.bf16.msrb.mxu3 %v5408_v24  ;;  %v7289_v1 = vld [vmem:[#allocation1 + $0x24] sm:$0xff] }
  0x49   : > { %v5263_v25 = vld [vmem:[%s7144_s28 + $0x660] sm:$0xf]  ;;  %3398 = vmatmul.bf16.vlgmr.msra.gmra.mxu3 %v7252_v23  ;;  %v6637_v34 = vld [vmem:[%s7144_s28 + $0x44c] sm:$0xf0]  ;;  %3407 = vmatpush.bf16.msrb.mxu0 %v5008_v30 }
  0x4a   : > { %v5391_v28 = vld [vmem:[%s7144_s28 + $0x760] sm:$0xf]  ;;  %v5264_v32 = vor.u32 %v6705_v26, %v5263_v25  ;;  %v6669_v37 = vld [vmem:[%s7144_s28 + $0x54c] sm:$0xf0]  ;;  %3420 = vmatpush.bf16.msrb.mxu1 %v5136_v31 }
  0x4b   : > { %v4991_v33 = vld [vmem:[%s7144_s28 + $0x440] sm:$0xf]  ;;  %v5392_v36 = vor.u32 %v6737_v29, %v5391_v28  ;;  %v6701_v39 = vld [vmem:[%s7144_s28 + $0x64c] sm:$0xf0] }
  0x4c   : > { %v5119_v35 = vld [vmem:[%s7144_s28 + $0x540] sm:$0xf]  ;;  %v6733_v41 = vld [vmem:[%s7144_s28 + $0x74c] sm:$0xf0]  ;;  %v4992_v42 = vor.u32 %v6637_v34, %v4991_v33  ;;  %3433 = vmatpush.bf16.msrb.mxu2 %v5264_v32 }
  0x4d   : > { %v5247_v38 = vld [vmem:[%s7144_s28 + $0x640] sm:$0xf]  ;;  %v5120_v44 = vor.u32 %v6669_v37, %v5119_v35  ;;  %v6633_v46 = vld [vmem:[%s7144_s28 + $0x42c] sm:$0xf0]  ;;  %3446 = vmatpush.bf16.msrb.mxu3 %v5392_v36 }
  0x4e   : > { %v5375_v40 = vld [vmem:[%s7144_s28 + $0x740] sm:$0xf]  ;;  %v5248_v45 = vor.u32 %v6701_v39, %v5247_v38  ;;  %v6665_v48 = vld [vmem:[%s7144_s28 + $0x52c] sm:$0xf0]  ;;  %3408 = vmatpush.bf16.msrb.mxu0 %v4992_v42 }
  0x4f   : > { %v4975_v43 = vld [vmem:[%s7144_s28 + $0x420] sm:$0xf]  ;;  %v5376_v49 = vor.u32 %v6733_v41, %v5375_v40  ;;  %v6697_v51 = vld [vmem:[%s7144_s28 + $0x62c] sm:$0xf0]  ;;  %3421 = vmatpush.bf16.msrb.mxu1 %v5120_v44 }
  0x50   : > { %v5103_v47 = vld [vmem:[%s7144_s28 + $0x520] sm:$0xf]  ;;  %v6729_v53 = vld [vmem:[%s7144_s28 + $0x72c] sm:$0xf0]  ;;  %v4976_v56 = vor.u32 %v6633_v46, %v4975_v43  ;;  %3434 = vmatpush.bf16.msrb.mxu2 %v5248_v45 }
  0x51   : > { %v5231_v50 = vld [vmem:[%s7144_s28 + $0x620] sm:$0xf]  ;;  %v6629_v55 = vld [vmem:[%s7144_s28 + $0x40c] sm:$0xf0]  ;;  %v5104_v63 = vor.u32 %v6665_v48, %v5103_v47  ;;  %3447 = vmatpush.bf16.msrb.mxu3 %v5376_v49 }
  0x52   : > { %v5359_v52 = vld [vmem:[%s7144_s28 + $0x720] sm:$0xf]  ;;  %v6661_v58 = vld [vmem:[%s7144_s28 + $0x50c] sm:$0xf0]  ;;  %v5232_v0 = vor.u32 %v6697_v51, %v5231_v50  ;;  %3409 = vmatpush.bf16.msrb.mxu0 %v4976_v56 }
  0x53   : > { %v4959_v54 = vld [vmem:[%s7144_s28 + $0x400] sm:$0xf]  ;;  %v6693_v60 = vld [vmem:[%s7144_s28 + $0x60c] sm:$0xf0]  ;;  %v5360_v4 = vor.u32 %v6729_v53, %v5359_v52  ;;  %3422 = vmatpush.bf16.msrb.mxu1 %v5104_v63 }
  0x54   : > { %v5087_v57 = vld [vmem:[%s7144_s28 + $0x500] sm:$0xf]  ;;  %v7293_v3 = vld [vmem:[#allocation1 + $0x2d] sm:$0xff]  ;;  %v4960_v10 = vor.u32 %v6629_v55, %v4959_v54  ;;  %3435 = vmatpush.bf16.msrb.mxu2 %v5232_v0 }
  0x55   : > { %v5215_v59 = vld [vmem:[%s7144_s28 + $0x600] sm:$0xf]  ;;  %v6725_v6 = vld [vmem:[%s7144_s28 + $0x70c] sm:$0xf0]  ;;  %v5088_v14 = vor.u32 %v6661_v58, %v5087_v57  ;;  %3448 = vmatpush.bf16.msrb.mxu3 %v5360_v4 }
  0x56   : > { %v7291_v2 = vld [vmem:[#allocation1 + $0x3f] sm:$0xff]  ;;  %v6785_v8 = vld [vmem:[%s7144_s28 + $0x8ec] sm:$0xf0]  ;;  %v5216_v15 = vor.u32 %v6693_v60, %v5215_v59  ;;  %3410 = vmatpush.bf16.msrb.mxu0 %v4960_v10 }
  0x57   : > { %v5343_v5 = vld [vmem:[%s7144_s28 + $0x700] sm:$0xf]  ;;  %766 = vst [vmem:[#allocation1] ss:$9 sm:$0xff] %v242_v62  ;;  %v6817_v11 = vld [vmem:[%s7144_s28 + $0x9ec] sm:$0xf0]  ;;  %3423 = vmatpush.bf16.msrb.mxu1 %v5088_v14 }
  0x58   : > { %v5583_v7 = vld [vmem:[%s7144_s28 + $0x8e0] sm:$0xf]  ;;  %v6849_v13 = vld [vmem:[%s7144_s28 + $0xaec] sm:$0xf0]  ;;  %v5344_v18 = vor.u32 %v6725_v6, %v5343_v5  ;;  %3436 = vmatpush.bf16.msrb.mxu2 %v5216_v15 }
  0x59   : > { %v5711_v9 = vld [vmem:[%s7144_s28 + $0x9e0] sm:$0xf]  ;;  %v6881_v17 = vld [vmem:[%s7144_s28 + $0xbec] sm:$0xf0]  ;;  %v5584_v19 = vor.u32 %v6785_v8, %v5583_v7  ;;  %3411 = vmatmul.bf16.vlgmr.msrb.gmra.mxu0 %v7289_v1 }
  0x5a   : > { %v5839_v12 = vld [vmem:[%s7144_s28 + $0xae0] sm:$0xf]  ;;  %v5712_v20 = vor.u32 %v6817_v11, %v5711_v9  ;;  %v6781_v26 = vld [vmem:[%s7144_s28 + $0x8cc] sm:$0xf0]  ;;  %3449 = vmatpush.bf16.msrb.mxu3 %v5344_v18  ;;  %3424 = vmatmul.bf16.vlgmr.msrb.gmra.mxu1 %v7293_v3 }
  0x5b   : > { %v5967_v16 = vld [vmem:[%s7144_s28 + $0xbe0] sm:$0xf]  ;;  %v5840_v24 = vor.u32 %v6849_v13, %v5839_v12  ;;  %v6813_v30 = vld [vmem:[%s7144_s28 + $0x9cc] sm:$0xf0]  ;;  %3455 = vmatpush.bf16.msra.mxu0 %v5584_v19  ;;  %3437 = vmatmul.bf16.vlgmr.msrb.gmra.mxu2 %v7286_v61 }
  0x5c   : > { %v5567_v25 = vld [vmem:[%s7144_s28 + $0x8c0] sm:$0xf]  ;;  %v5968_v29 = vor.u32 %v6881_v17, %v5967_v16  ;;  %v6845_v32 = vld [vmem:[%s7144_s28 + $0xacc] sm:$0xf0]  ;;  %3468 = vmatpush.bf16.msra.mxu1 %v5712_v20 }
  0x5d   : > { %v5695_v28 = vld [vmem:[%s7144_s28 + $0x9c0] sm:$0xf]  ;;  %v6877_v34 = vld [vmem:[%s7144_s28 + $0xbcc] sm:$0xf0]  ;;  %v5568_v35 = vor.u32 %v6781_v26, %v5567_v25  ;;  %3481 = vmatpush.bf16.msra.mxu2 %v5840_v24  ;;  %3450 = vmatmul.bf16.vlgmr.msrb.gmra.mxu3 %v7291_v2 }
  0x5e   : > { %v5823_v31 = vld [vmem:[%s7144_s28 + $0xac0] sm:$0xf]  ;;  %v5696_v36 = vor.u32 %v6813_v30, %v5695_v28  ;;  %v6777_v39 = vld [vmem:[%s7144_s28 + $0x8ac] sm:$0xf0]  ;;  %3494 = vmatpush.bf16.msra.mxu3 %v5968_v29 }
  0x5f   : > { %v5951_v33 = vld [vmem:[%s7144_s28 + $0xbc0] sm:$0xf]  ;;  %v5824_v37 = vor.u32 %v6845_v32, %v5823_v31  ;;  %v6809_v42 = vld [vmem:[%s7144_s28 + $0x9ac] sm:$0xf0]  ;;  %3456 = vmatpush.bf16.msra.mxu0 %v5568_v35 }
  0x60   : > { %v5551_v38 = vld [vmem:[%s7144_s28 + $0x8a0] sm:$0xf]  ;;  %v5952_v41 = vor.u32 %v6877_v34, %v5951_v33  ;;  %v6841_v44 = vld [vmem:[%s7144_s28 + $0xaac] sm:$0xf0]  ;;  %3469 = vmatpush.bf16.msra.mxu1 %v5696_v36 }
  0x61   : > { %v5679_v40 = vld [vmem:[%s7144_s28 + $0x9a0] sm:$0xf]  ;;  %v6873_v46 = vld [vmem:[%s7144_s28 + $0xbac] sm:$0xf0]  ;;  %v5552_v47 = vor.u32 %v6777_v39, %v5551_v38  ;;  %3482 = vmatpush.bf16.msra.mxu2 %v5824_v37 }
  0x62   : > { %v5807_v43 = vld [vmem:[%s7144_s28 + $0xaa0] sm:$0xf]  ;;  %v5680_v48 = vor.u32 %v6809_v42, %v5679_v40  ;;  %v6773_v51 = vld [vmem:[%s7144_s28 + $0x88c] sm:$0xf0]  ;;  %3495 = vmatpush.bf16.msra.mxu3 %v5952_v41 }
  0x63   : > { %v5935_v45 = vld [vmem:[%s7144_s28 + $0xba0] sm:$0xf]  ;;  %v5808_v49 = vor.u32 %v6841_v44, %v5807_v43  ;;  %v6805_v54 = vld [vmem:[%s7144_s28 + $0x98c] sm:$0xf0]  ;;  %3457 = vmatpush.bf16.msra.mxu0 %v5552_v47 }
  0x64   : > { %v5535_v50 = vld [vmem:[%s7144_s28 + $0x880] sm:$0xf]  ;;  %v5936_v53 = vor.u32 %v6873_v46, %v5935_v45  ;;  %v6837_v56 = vld [vmem:[%s7144_s28 + $0xa8c] sm:$0xf0]  ;;  %3470 = vmatpush.bf16.msra.mxu1 %v5680_v48 }
  0x65   : > { %v5663_v52 = vld [vmem:[%s7144_s28 + $0x980] sm:$0xf]  ;;  %v6869_v58 = vld [vmem:[%s7144_s28 + $0xb8c] sm:$0xf0]  ;;  %v5536_v59 = vor.u32 %v6773_v51, %v5535_v50  ;;  %3483 = vmatpush.bf16.msra.mxu2 %v5808_v49 }
  0x66   : > { %v5791_v55 = vld [vmem:[%s7144_s28 + $0xa80] sm:$0xf]  ;;  %v5664_v60 = vor.u32 %v6805_v54, %v5663_v52  ;;  %v6769_v0 = vld [vmem:[%s7144_s28 + $0x86c] sm:$0xf0]  ;;  %3496 = vmatpush.bf16.msra.mxu3 %v5936_v53 }
  0x67   : > { %v5919_v57 = vld [vmem:[%s7144_s28 + $0xb80] sm:$0xf]  ;;  %v5792_v62 = vor.u32 %v6837_v56, %v5791_v55  ;;  %v6801_v6 = vld [vmem:[%s7144_s28 + $0x96c] sm:$0xf0]  ;;  %3458 = vmatpush.bf16.msra.mxu0 %v5536_v59 }
  0x68   : > { %v5519_v63 = vld [vmem:[%s7144_s28 + $0x860] sm:$0xf]  ;;  %v5920_v5 = vor.u32 %v6869_v58, %v5919_v57  ;;  %v6833_v8 = vld [vmem:[%s7144_s28 + $0xa6c] sm:$0xf0]  ;;  %3471 = vmatpush.bf16.msra.mxu1 %v5664_v60 }
  0x69   : > { %v5647_v4 = vld [vmem:[%s7144_s28 + $0x960] sm:$0xf]  ;;  %v6865_v10 = vld [vmem:[%s7144_s28 + $0xb6c] sm:$0xf0]  ;;  %v5520_v11 = vor.u32 %v6769_v0, %v5519_v63  ;;  %3484 = vmatpush.bf16.msra.mxu2 %v5792_v62 }
  0x6a   : > { %v5775_v7 = vld [vmem:[%s7144_s28 + $0xa60] sm:$0xf]  ;;  %v5648_v12 = vor.u32 %v6801_v6, %v5647_v4  ;;  %v6765_v15 = vld [vmem:[%s7144_s28 + $0x84c] sm:$0xf0]  ;;  %3497 = vmatpush.bf16.msra.mxu3 %v5920_v5 }
  0x6b   : > { %v5903_v9 = vld [vmem:[%s7144_s28 + $0xb60] sm:$0xf]  ;;  %v5776_v13 = vor.u32 %v6833_v8, %v5775_v7  ;;  %v6797_v18 = vld [vmem:[%s7144_s28 + $0x94c] sm:$0xf0]  ;;  %3459 = vmatpush.bf16.msra.mxu0 %v5520_v11 }
  0x6c   : > { %v5503_v14 = vld [vmem:[%s7144_s28 + $0x840] sm:$0xf]  ;;  %v5904_v17 = vor.u32 %v6865_v10, %v5903_v9  ;;  %v6829_v20 = vld [vmem:[%s7144_s28 + $0xa4c] sm:$0xf0]  ;;  %3472 = vmatpush.bf16.msra.mxu1 %v5648_v12 }
  0x6d   : > { %v5631_v16 = vld [vmem:[%s7144_s28 + $0x940] sm:$0xf]  ;;  %v6861_v25 = vld [vmem:[%s7144_s28 + $0xb4c] sm:$0xf0]  ;;  %v5504_v26 = vor.u32 %v6765_v15, %v5503_v14  ;;  %3485 = vmatpush.bf16.msra.mxu2 %v5776_v13 }
  0x6e   : > { %v5759_v19 = vld [vmem:[%s7144_s28 + $0xa40] sm:$0xf]  ;;  %v5632_v28 = vor.u32 %v6797_v18, %v5631_v16  ;;  %v6761_v31 = vld [vmem:[%s7144_s28 + $0x82c] sm:$0xf0]  ;;  %3498 = vmatpush.bf16.msra.mxu3 %v5904_v17 }
  0x6f   : > { %v5887_v24 = vld [vmem:[%s7144_s28 + $0xb40] sm:$0xf]  ;;  %v5760_v29 = vor.u32 %v6829_v20, %v5759_v19  ;;  %v6793_v34 = vld [vmem:[%s7144_s28 + $0x92c] sm:$0xf0]  ;;  %3460 = vmatpush.bf16.msra.mxu0 %v5504_v26 }
  0x70   : > { %v5487_v30 = vld [vmem:[%s7144_s28 + $0x820] sm:$0xf]  ;;  %v5888_v33 = vor.u32 %v6861_v25, %v5887_v24  ;;  %v6825_v36 = vld [vmem:[%s7144_s28 + $0xa2c] sm:$0xf0]  ;;  %3473 = vmatpush.bf16.msra.mxu1 %v5632_v28 }
  0x71   : > { %v5615_v32 = vld [vmem:[%s7144_s28 + $0x920] sm:$0xf]  ;;  %v6857_v38 = vld [vmem:[%s7144_s28 + $0xb2c] sm:$0xf0]  ;;  %v5488_v39 = vor.u32 %v6761_v31, %v5487_v30  ;;  %3486 = vmatpush.bf16.msra.mxu2 %v5760_v29 }
  0x72   : > { %v5743_v35 = vld [vmem:[%s7144_s28 + $0xa20] sm:$0xf]  ;;  %v6757_v41 = vld [vmem:[%s7144_s28 + $0x80c] sm:$0xf0]  ;;  %v5616_v42 = vor.u32 %v6793_v34, %v5615_v32  ;;  %3499 = vmatpush.bf16.msra.mxu3 %v5888_v33 }
  0x73   : > { %v5871_v37 = vld [vmem:[%s7144_s28 + $0xb20] sm:$0xf]  ;;  %v5744_v43 = vor.u32 %v6825_v36, %v5743_v35  ;;  %v6789_v45 = vld [vmem:[%s7144_s28 + $0x90c] sm:$0xf0]  ;;  %3461 = vmatpush.bf16.msra.mxu0 %v5488_v39 }
  0x74   : > { %v5471_v40 = vld [vmem:[%s7144_s28 + $0x800] sm:$0xf]  ;;  %v5872_v47 = vor.u32 %v6857_v38, %v5871_v37  ;;  %v6821_v48 = vld [vmem:[%s7144_s28 + $0xa0c] sm:$0xf0]  ;;  %3474 = vmatpush.bf16.msra.mxu1 %v5616_v42 }
  0x75   : > { %v5599_v44 = vld [vmem:[%s7144_s28 + $0x900] sm:$0xf]  ;;  %v6853_v50 = vld [vmem:[%s7144_s28 + $0xb0c] sm:$0xf0]  ;;  %v5472_v54 = vor.u32 %v6757_v41, %v5471_v40  ;;  %3487 = vmatpush.bf16.msra.mxu2 %v5744_v43 }
  0x76   : > { %v5727_v46 = vld [vmem:[%s7144_s28 + $0xa00] sm:$0xf]  ;;  %v6913_v52 = vld [vmem:[%s7144_s28 + $0xcec] sm:$0xf0]  ;;  %v5600_v58 = vor.u32 %v6789_v45, %v5599_v44  ;;  %3500 = vmatpush.bf16.msra.mxu3 %v5872_v47 }
  0x77   : > { %v5855_v49 = vld [vmem:[%s7144_s28 + $0xb00] sm:$0xf]  ;;  %v6945_v55 = vld [vmem:[%s7144_s28 + $0xdec] sm:$0xf0]  ;;  %v5728_v59 = vor.u32 %v6821_v48, %v5727_v46  ;;  %3462 = vmatpush.bf16.msra.mxu0 %v5472_v54 }
  0x78   : > { %v6095_v51 = vld [vmem:[%s7144_s28 + $0xce0] sm:$0xf]  ;;  %v6977_v57 = vld [vmem:[%s7144_s28 + $0xeec] sm:$0xf0]  ;;  %v5856_v63 = vor.u32 %v6853_v50, %v5855_v49  ;;  %3475 = vmatpush.bf16.msra.mxu1 %v5600_v58 }
  0x79   : > { %v6223_v53 = vld [vmem:[%s7144_s28 + $0xde0] sm:$0xf]  ;;  %v7009_v62 = vld [vmem:[%s7144_s28 + $0xfec] sm:$0xf0]  ;;  %v6096_v0 = vor.u32 %v6913_v52, %v6095_v51  ;;  %3488 = vmatpush.bf16.msra.mxu2 %v5728_v59 }
  0x7a   : > { %v6351_v56 = vld [vmem:[%s7144_s28 + $0xee0] sm:$0xf]  ;;  %v6224_v4 = vor.u32 %v6945_v55, %v6223_v53  ;;  %v6909_v7 = vld [vmem:[%s7144_s28 + $0xccc] sm:$0xf0]  ;;  %3501 = vmatpush.bf16.msra.mxu3 %v5856_v63 }
  0x7b   : > { %v6479_v60 = vld [vmem:[%s7144_s28 + $0xfe0] sm:$0xf]  ;;  %v6352_v5 = vor.u32 %v6977_v57, %v6351_v56  ;;  %v6941_v10 = vld [vmem:[%s7144_s28 + $0xdcc] sm:$0xf0]  ;;  %3507 = vmatpush.bf16.msrb.mxu0 %v6096_v0 }
  0x7c   : > { %v6079_v6 = vld [vmem:[%s7144_s28 + $0xcc0] sm:$0xf]  ;;  %v6480_v9 = vor.u32 %v7009_v62, %v6479_v60  ;;  %v6973_v12 = vld [vmem:[%s7144_s28 + $0xecc] sm:$0xf0]  ;;  %3520 = vmatpush.bf16.msrb.mxu1 %v6224_v4 }
  0x7d   : > { %v6207_v8 = vld [vmem:[%s7144_s28 + $0xdc0] sm:$0xf]  ;;  %v7005_v15 = vld [vmem:[%s7144_s28 + $0xfcc] sm:$0xf0]  ;;  %v6080_v19 = vor.u32 %v6909_v7, %v6079_v6  ;;  %3533 = vmatpush.bf16.msrb.mxu2 %v6352_v5 }
  0x7e   : > { %v6335_v11 = vld [vmem:[%s7144_s28 + $0xec0] sm:$0xf]  ;;  %v769_v16 = vld [vmem:[#allocation1 + $0x12] sm:$0xff]  ;;  %v768_v17 = vld [vmem:[#allocation1 + $0x9] sm:$0xff]  ;;  %v6208_v20 = vor.u32 %v6941_v10, %v6207_v8  ;;  %3546 = vmatpush.bf16.msrb.mxu3 %v6480_v9 }
  0x7f   : > { %v767_v13 = vld [vmem:[#allocation1] sm:$0xff]  ;;  %v6336_v24 = vor.u32 %v6973_v12, %v6335_v11  ;;  %v6905_v26 = vld [vmem:[%s7144_s28 + $0xcac] sm:$0xf0]  ;;  %3489 = vmatmul.bf16.vlgmr.msra.gmra.mxu2 %v769_v16  ;;  %3476 = vmatmul.bf16.vlgmr.msra.gmra.mxu1 %v768_v17 }
  0x80   : > { %v6463_v14 = vld [vmem:[%s7144_s28 + $0xfc0] sm:$0xf]  ;;  %3463 = vmatmul.bf16.vlgmr.msra.gmra.mxu0 %v767_v13  ;;  %v6937_v30 = vld [vmem:[%s7144_s28 + $0xdac] sm:$0xf0]  ;;  %3521 = vmatpush.bf16.msrb.mxu1 %v6208_v20 }
  0x81   : > { %v770_v18 = vld [vmem:[#allocation1 + $0x1b] sm:$0xff]  ;;  %v6464_v29 = vor.u32 %v7005_v15, %v6463_v14  ;;  %v6969_v32 = vld [vmem:[%s7144_s28 + $0xeac] sm:$0xf0]  ;;  %3508 = vmatpush.bf16.msrb.mxu0 %v6080_v19  ;;  %3534 = vmatpush.bf16.msrb.mxu2 %v6336_v24 }
  0x82   : > { %v6063_v25 = vld [vmem:[%s7144_s28 + $0xca0] sm:$0xf]  ;;  %v7001_v34 = vld [vmem:[%s7144_s28 + $0xfac] sm:$0xf0]  ;;  %3502 = vmatmul.bf16.vlgmr.msra.gmra.mxu3 %v770_v18 }
  0x83   : > { %v6191_v28 = vld [vmem:[%s7144_s28 + $0xda0] sm:$0xf]  ;;  %v6064_v35 = vor.u32 %v6905_v26, %v6063_v25  ;;  %v6901_v39 = vld [vmem:[%s7144_s28 + $0xc8c] sm:$0xf0]  ;;  %3547 = vmatpush.bf16.msrb.mxu3 %v6464_v29 }
  0x84   : > { %v6319_v31 = vld [vmem:[%s7144_s28 + $0xea0] sm:$0xf]  ;;  %v6192_v36 = vor.u32 %v6937_v30, %v6191_v28  ;;  %v6933_v42 = vld [vmem:[%s7144_s28 + $0xd8c] sm:$0xf0] }
  0x85   : > { %v6447_v33 = vld [vmem:[%s7144_s28 + $0xfa0] sm:$0xf]  ;;  %v6320_v37 = vor.u32 %v6969_v32, %v6319_v31  ;;  %v6965_v44 = vld [vmem:[%s7144_s28 + $0xe8c] sm:$0xf0]  ;;  %3509 = vmatpush.bf16.msrb.mxu0 %v6064_v35 }
  0x86   : > { %v6047_v38 = vld [vmem:[%s7144_s28 + $0xc80] sm:$0xf]  ;;  %v6448_v41 = vor.u32 %v7001_v34, %v6447_v33  ;;  %v6997_v46 = vld [vmem:[%s7144_s28 + $0xf8c] sm:$0xf0]  ;;  %3522 = vmatpush.bf16.msrb.mxu1 %v6192_v36 }
  0x87   : > { %v6175_v40 = vld [vmem:[%s7144_s28 + $0xd80] sm:$0xf]  ;;  %v6048_v47 = vor.u32 %v6901_v39, %v6047_v38  ;;  %3535 = vmatpush.bf16.msrb.mxu2 %v6320_v37  ;;  %v6897_v51 = vld [vmem:[%s7144_s28 + $0xc6c] sm:$0xf0]  ;;  %v6527_v39 = vld [vmem:[%s7144_s28 + $0xe4] sm:$0xf] }
  0x88   : > { %v6303_v43 = vld [vmem:[%s7144_s28 + $0xe80] sm:$0xf]  ;;  %v6176_v48 = vor.u32 %v6933_v42, %v6175_v40  ;;  %3548 = vmatpush.bf16.msrb.mxu3 %v6448_v41  ;;  %v6929_v54 = vld [vmem:[%s7144_s28 + $0xd6c] sm:$0xf0]  ;;  %v4561_v40 = vld [vmem:[%s7144_s28 + $0xf0] sm:$0xf0] }
  0x89   : > { %v6431_v45 = vld [vmem:[%s7144_s28 + $0xf80] sm:$0xf]  ;;  %v6304_v49 = vor.u32 %v6965_v44, %v6303_v43  ;;  %v6961_v56 = vld [vmem:[%s7144_s28 + $0xe6c] sm:$0xf0]  ;;  %3510 = vmatpush.bf16.msrb.mxu0 %v6048_v47  ;;  %v6559_v41 = vld [vmem:[%s7144_s28 + $0x1e4] sm:$0xf] }
  0x8a   : > { %v6031_v50 = vld [vmem:[%s7144_s28 + $0xc60] sm:$0xf]  ;;  %v6432_v53 = vor.u32 %v6997_v46, %v6431_v45  ;;  %v6993_v58 = vld [vmem:[%s7144_s28 + $0xf6c] sm:$0xf0]  ;;  %3523 = vmatpush.bf16.msrb.mxu1 %v6176_v48  ;;  %v4689_v43 = vld [vmem:[%s7144_s28 + $0x1f0] sm:$0xf0] }
  0x8b   : > { %v6159_v52 = vld [vmem:[%s7144_s28 + $0xd60] sm:$0xf]  ;;  %v6032_v59 = vor.u32 %v6897_v51, %v6031_v50  ;;  %3536 = vmatpush.bf16.msrb.mxu2 %v6304_v49  ;;  %v6893_v0 = vld [vmem:[%s7144_s28 + $0xc4c] sm:$0xf0]  ;;  %v6591_v44 = vld [vmem:[%s7144_s28 + $0x2e4] sm:$0xf]  ;;  %v4564_v51 = vor.u32 %v6527_v39, %v4561_v40 }
  0x8c   : > { %v6287_v55 = vld [vmem:[%s7144_s28 + $0xe60] sm:$0xf]  ;;  %v6160_v60 = vor.u32 %v6929_v54, %v6159_v52  ;;  %3549 = vmatpush.bf16.msrb.mxu3 %v6432_v53  ;;  %v6925_v6 = vld [vmem:[%s7144_s28 + $0xd4c] sm:$0xf0]  ;;  %v4817_v45 = vld [vmem:[%s7144_s28 + $0x2f0] sm:$0xf0]  ;;  %v4692_v52 = vor.u32 %v6559_v41, %v4689_v43 }
  0x8d   : > { %v6415_v57 = vld [vmem:[%s7144_s28 + $0xf60] sm:$0xf]  ;;  %v6288_v62 = vor.u32 %v6961_v56, %v6287_v55  ;;  %v6957_v8 = vld [vmem:[%s7144_s28 + $0xe4c] sm:$0xf0]  ;;  %3511 = vmatpush.bf16.msrb.mxu0 %v6032_v59  ;;  %v6623_v48 = vld [vmem:[%s7144_s28 + $0x3e4] sm:$0xf]  ;;  %v4820_v53 = vor.u32 %v6591_v44, %v4817_v45 }
  0x8e   : > { %v6015_v63 = vld [vmem:[%s7144_s28 + $0xc40] sm:$0xf]  ;;  %v6416_v5 = vor.u32 %v6993_v58, %v6415_v57  ;;  %v6989_v10 = vld [vmem:[%s7144_s28 + $0xf4c] sm:$0xf0]  ;;  %3524 = vmatpush.bf16.msrb.mxu1 %v6160_v60  ;;  %v4945_v49 = vld [vmem:[%s7144_s28 + $0x3f0] sm:$0xf0] }
  0x8f   : > { %v6143_v4 = vld [vmem:[%s7144_s28 + $0xd40] sm:$0xf]  ;;  %v6016_v11 = vor.u32 %v6893_v0, %v6015_v63  ;;  %3537 = vmatpush.bf16.msrb.mxu2 %v6288_v62  ;;  %v6889_v15 = vld [vmem:[%s7144_s28 + $0xc2c] sm:$0xf0]  ;;  %v6523_v54 = vld [vmem:[%s7144_s28 + $0xc4] sm:$0xf]  ;;  %v4948_v57 = vor.u32 %v6623_v48, %v4945_v49 }
  0x90   : > { %v6271_v7 = vld [vmem:[%s7144_s28 + $0xe40] sm:$0xf]  ;;  %v6144_v12 = vor.u32 %v6925_v6, %v6143_v4  ;;  %3550 = vmatpush.bf16.msrb.mxu3 %v6416_v5  ;;  %v6921_v18 = vld [vmem:[%s7144_s28 + $0xd2c] sm:$0xf0]  ;;  %v4545_v55 = vld [vmem:[%s7144_s28 + $0xd0] sm:$0xf0] }
  0x91   : > { %v6399_v9 = vld [vmem:[%s7144_s28 + $0xf40] sm:$0xf]  ;;  %v6272_v13 = vor.u32 %v6957_v8, %v6271_v7  ;;  %v6953_v20 = vld [vmem:[%s7144_s28 + $0xe2c] sm:$0xf0]  ;;  %3512 = vmatpush.bf16.msrb.mxu0 %v6016_v11  ;;  %v6555_v56 = vld [vmem:[%s7144_s28 + $0x1c4] sm:$0xf]  ;;  %v4548_v7 = vor.u32 %v6523_v54, %v4545_v55 }
  0x92   : > { %v5999_v14 = vld [vmem:[%s7144_s28 + $0xc20] sm:$0xf]  ;;  %v6400_v17 = vor.u32 %v6989_v10, %v6399_v9  ;;  %v6985_v25 = vld [vmem:[%s7144_s28 + $0xf2c] sm:$0xf0]  ;;  %3525 = vmatpush.bf16.msrb.mxu1 %v6144_v12  ;;  %v4673_v58 = vld [vmem:[%s7144_s28 + $0x1d0] sm:$0xf0] }
  0x93   : > { %v6127_v16 = vld [vmem:[%s7144_s28 + $0xd20] sm:$0xf]  ;;  %v6000_v26 = vor.u32 %v6889_v15, %v5999_v14  ;;  %v6885_v29 = vld [vmem:[%s7144_s28 + $0xc0c] sm:$0xf0]  ;;  %3538 = vmatpush.bf16.msrb.mxu2 %v6272_v13  ;;  %v6587_v59 = vld [vmem:[%s7144_s28 + $0x2c4] sm:$0xf]  ;;  %v4676_v8 = vor.u32 %v6555_v56, %v4673_v58 }
  0x94   : > { %v6255_v19 = vld [vmem:[%s7144_s28 + $0xe20] sm:$0xf]  ;;  %v6128_v30 = vor.u32 %v6921_v18, %v6127_v16  ;;  %v6917_v33 = vld [vmem:[%s7144_s28 + $0xd0c] sm:$0xf0]  ;;  %3551 = vmatpush.bf16.msrb.mxu3 %v6400_v17  ;;  %v4801_v60 = vld [vmem:[%s7144_s28 + $0x2d0] sm:$0xf0] }
  0x95   : > { %v6383_v24 = vld [vmem:[%s7144_s28 + $0xf20] sm:$0xf]  ;;  %v6256_v31 = vor.u32 %v6953_v20, %v6255_v19  ;;  %v6949_v36 = vld [vmem:[%s7144_s28 + $0xe0c] sm:$0xf0]  ;;  %3513 = vmatpush.bf16.msrb.mxu0 %v6000_v26  ;;  %v771_v62 = vld [vmem:[#allocation1 + $0x24] sm:$0xff]  ;;  %v4804_v9 = vor.u32 %v6587_v59, %v4801_v60 }
  0x96   : > { %v5983_v28 = vld [vmem:[%s7144_s28 + $0xc00] sm:$0xf]  ;;  %v6384_v35 = vor.u32 %v6985_v25, %v6383_v24  ;;  %v6981_v38 = vld [vmem:[%s7144_s28 + $0xf0c] sm:$0xf0]  ;;  %3526 = vmatpush.bf16.msrb.mxu1 %v6128_v30  ;;  %v6619_v63 = vld [vmem:[%s7144_s28 + $0x3c4] sm:$0xf] }
  0x97   : > { %v6111_v32 = vld [vmem:[%s7144_s28 + $0xd00] sm:$0xf]  ;;  %v5984_v42 = vor.u32 %v6885_v29, %v5983_v28  ;;  %3539 = vmatpush.bf16.msrb.mxu2 %v6256_v31  ;;  %v4929_v0 = vld [vmem:[%s7144_s28 + $0x3d0] sm:$0xf0]  ;;  %v6519_v10 = vld [vmem:[%s7144_s28 + $0xa4] sm:$0xf] }
  0x98   : > { %v6239_v34 = vld [vmem:[%s7144_s28 + $0xe00] sm:$0xf]  ;;  %v6112_v46 = vor.u32 %v6917_v33, %v6111_v32  ;;  %3552 = vmatpush.bf16.msrb.mxu3 %v6384_v35  ;;  %v773_v4 = vld [vmem:[#allocation1 + $0x36] sm:$0xff]  ;;  %v772_v5 = vld [vmem:[#allocation1 + $0x2d] sm:$0xff]  ;;  %v4932_v13 = vor.u32 %v6619_v63, %v4929_v0 }
  0x99   : > { %v6367_v37 = vld [vmem:[%s7144_s28 + $0xf00] sm:$0xf]  ;;  %v6240_v47 = vor.u32 %v6949_v36, %v6239_v34  ;;  %3514 = vmatpush.bf16.msrb.mxu0 %v5984_v42  ;;  %v4529_v11 = vld [vmem:[%s7144_s28 + $0xb0] sm:$0xf0]  ;;  %v6551_v12 = vld [vmem:[%s7144_s28 + $0x1a4] sm:$0xf] }
  0x9a   : > { %v6368_v50 = vor.u32 %v6981_v38, %v6367_v37  ;;  %3527 = vmatpush.bf16.msrb.mxu1 %v6112_v46  ;;  %v774_v6 = vld [vmem:[#allocation1 + $0x3f] sm:$0xff]  ;;  %v4657_v14 = vld [vmem:[%s7144_s28 + $0x1b0] sm:$0xf0]  ;;  %v4532_v19 = vor.u32 %v6519_v10, %v4529_v11 }
  0x9b   : > { %3540 = vmatpush.bf16.msrb.mxu2 %v6240_v47  ;;  %v6583_v15 = vld [vmem:[%s7144_s28 + $0x2a4] sm:$0xf]  ;;  %v4785_v16 = vld [vmem:[%s7144_s28 + $0x2b0] sm:$0xf0]  ;;  %v4660_v20 = vor.u32 %v6551_v12, %v4657_v14 }
  0x9c   : > { %3553 = vmatpush.bf16.msrb.mxu3 %v6368_v50  ;;  %3515 = vmatmul.bf16.vlgmr.msrb.gmra.mxu0 %v771_v62  ;;  %v6615_v17 = vld [vmem:[%s7144_s28 + $0x3a4] sm:$0xf]  ;;  %v4913_v18 = vld [vmem:[%s7144_s28 + $0x3b0] sm:$0xf0]  ;;  %v4788_v24 = vor.u32 %v6583_v15, %v4785_v16 }
  0x9d   : > { %3559 = vmatpush.bf16.msra.mxu0 %v4564_v51  ;;  %3528 = vmatmul.bf16.vlgmr.msrb.gmra.mxu1 %v772_v5  ;;  %v6515_v25 = vld [vmem:[%s7144_s28 + $0x84] sm:$0xf]  ;;  %v4513_v26 = vld [vmem:[%s7144_s28 + $0x90] sm:$0xf0]  ;;  %v4916_v29 = vor.u32 %v6615_v17, %v4913_v18 }
  0x9e   : > { %3572 = vmatpush.bf16.msra.mxu1 %v4692_v52  ;;  %3541 = vmatmul.bf16.vlgmr.msrb.gmra.mxu2 %v773_v4  ;;  %v6547_v28 = vld [vmem:[%s7144_s28 + $0x184] sm:$0xf]  ;;  %v4641_v30 = vld [vmem:[%s7144_s28 + $0x190] sm:$0xf0]  ;;  %v4516_v35 = vor.u32 %v6515_v25, %v4513_v26 }
  0x9f   : > { %3585 = vmatpush.bf16.msra.mxu2 %v4820_v53  ;;  %3554 = vmatmul.bf16.vlgmr.msrb.gmra.mxu3 %v774_v6  ;;  %v6579_v31 = vld [vmem:[%s7144_s28 + $0x284] sm:$0xf]  ;;  %v4769_v32 = vld [vmem:[%s7144_s28 + $0x290] sm:$0xf0]  ;;  %v4644_v36 = vor.u32 %v6547_v28, %v4641_v30 }
  0xa0   : > { %3598 = vmatpush.bf16.msra.mxu3 %v4948_v57  ;;  %v6611_v33 = vld [vmem:[%s7144_s28 + $0x384] sm:$0xf]  ;;  %v4897_v34 = vld [vmem:[%s7144_s28 + $0x390] sm:$0xf0]  ;;  %v4772_v37 = vor.u32 %v6579_v31, %v4769_v32 }
  0xa1   : > { %3560 = vmatpush.bf16.msra.mxu0 %v4548_v7  ;;  %v6511_v38 = vld [vmem:[%s7144_s28 + $0x64] sm:$0xf]  ;;  %v4497_v39 = vld [vmem:[%s7144_s28 + $0x70] sm:$0xf0]  ;;  %v4900_v41 = vor.u32 %v6611_v33, %v4897_v34 }
  0xa2   : > { %3573 = vmatpush.bf16.msra.mxu1 %v4676_v8  ;;  %v6543_v40 = vld [vmem:[%s7144_s28 + $0x164] sm:$0xf]  ;;  %v4625_v42 = vld [vmem:[%s7144_s28 + $0x170] sm:$0xf0]  ;;  %v4500_v47 = vor.u32 %v6511_v38, %v4497_v39 }
  0xa3   : > { %3586 = vmatpush.bf16.msra.mxu2 %v4804_v9  ;;  %v6575_v43 = vld [vmem:[%s7144_s28 + $0x264] sm:$0xf]  ;;  %v4753_v44 = vld [vmem:[%s7144_s28 + $0x270] sm:$0xf0]  ;;  %v4628_v48 = vor.u32 %v6543_v40, %v4625_v42 }
  0xa4   : > { %3599 = vmatpush.bf16.msra.mxu3 %v4932_v13  ;;  %v6607_v45 = vld [vmem:[%s7144_s28 + $0x364] sm:$0xf]  ;;  %v4881_v46 = vld [vmem:[%s7144_s28 + $0x370] sm:$0xf0]  ;;  %v4756_v49 = vor.u32 %v6575_v43, %v4753_v44 }
  0xa5   : > { %3561 = vmatpush.bf16.msra.mxu0 %v4532_v19  ;;  %v6507_v50 = vld [vmem:[%s7144_s28 + $0x44] sm:$0xf]  ;;  %v4481_v51 = vld [vmem:[%s7144_s28 + $0x50] sm:$0xf0]  ;;  %v4884_v53 = vor.u32 %v6607_v45, %v4881_v46 }
  0xa6   : > { %3574 = vmatpush.bf16.msra.mxu1 %v4660_v20  ;;  %v6539_v52 = vld [vmem:[%s7144_s28 + $0x144] sm:$0xf]  ;;  %v4609_v54 = vld [vmem:[%s7144_s28 + $0x150] sm:$0xf0]  ;;  %v4484_v59 = vor.u32 %v6507_v50, %v4481_v51 }
  0xa7   : > { %3587 = vmatpush.bf16.msra.mxu2 %v4788_v24  ;;  %v6571_v55 = vld [vmem:[%s7144_s28 + $0x244] sm:$0xf]  ;;  %v4737_v56 = vld [vmem:[%s7144_s28 + $0x250] sm:$0xf0]  ;;  %v4612_v60 = vor.u32 %v6539_v52, %v4609_v54 }
  0xa8   : > { %3600 = vmatpush.bf16.msra.mxu3 %v4916_v29  ;;  %v6603_v57 = vld [vmem:[%s7144_s28 + $0x344] sm:$0xf]  ;;  %v4865_v58 = vld [vmem:[%s7144_s28 + $0x350] sm:$0xf0]  ;;  %v4740_v62 = vor.u32 %v6571_v55, %v4737_v56 }
  0xa9   : > { %3562 = vmatpush.bf16.msra.mxu0 %v4516_v35  ;;  %v6503_v63 = vld [vmem:[%s7144_s28 + $0x24] sm:$0xf]  ;;  %v4465_v0 = vld [vmem:[%s7144_s28 + $0x30] sm:$0xf0]  ;;  %v4868_v5 = vor.u32 %v6603_v57, %v4865_v58 }
  0xaa   : > { %3575 = vmatpush.bf16.msra.mxu1 %v4644_v36  ;;  %v6535_v4 = vld [vmem:[%s7144_s28 + $0x124] sm:$0xf]  ;;  %v4593_v6 = vld [vmem:[%s7144_s28 + $0x130] sm:$0xf0]  ;;  %v4468_v11 = vor.u32 %v6503_v63, %v4465_v0 }
  0xab   : > { %3588 = vmatpush.bf16.msra.mxu2 %v4772_v37  ;;  %v6567_v7 = vld [vmem:[%s7144_s28 + $0x224] sm:$0xf]  ;;  %v4721_v8 = vld [vmem:[%s7144_s28 + $0x230] sm:$0xf0]  ;;  %v4596_v14 = vor.u32 %v6535_v4, %v4593_v6 }
  0xac   : > { %3601 = vmatpush.bf16.msra.mxu3 %v4900_v41  ;;  %v6599_v9 = vld [vmem:[%s7144_s28 + $0x324] sm:$0xf]  ;;  %v4849_v10 = vld [vmem:[%s7144_s28 + $0x330] sm:$0xf0]  ;;  %v4724_v15 = vor.u32 %v6567_v7, %v4721_v8 }
  0xad   : > { %3563 = vmatpush.bf16.msra.mxu0 %v4500_v47  ;;  %v6499_v12 = vld [vmem:[%s7144_s28 + $0x4] sm:$0xf]  ;;  %v4449_v13 = vld [vmem:[%s7144_s28 + $0x10] sm:$0xf0]  ;;  %v4852_v19 = vor.u32 %v6599_v9, %v4849_v10 }
  0xae   : > { %3576 = vmatpush.bf16.msra.mxu1 %v4628_v48  ;;  %v6531_v16 = vld [vmem:[%s7144_s28 + $0x104] sm:$0xf]  ;;  %v4577_v17 = vld [vmem:[%s7144_s28 + $0x110] sm:$0xf0]  ;;  %v4452_v30 = vor.u32 %v6499_v12, %v4449_v13 }
  0xaf   : > { %3589 = vmatpush.bf16.msra.mxu2 %v4756_v49  ;;  %v6563_v18 = vld [vmem:[%s7144_s28 + $0x204] sm:$0xf]  ;;  %v4705_v20 = vld [vmem:[%s7144_s28 + $0x210] sm:$0xf0]  ;;  %v4580_v34 = vor.u32 %v6531_v16, %v4577_v17 }
  0xb0   : > { %3602 = vmatpush.bf16.msra.mxu3 %v4884_v53  ;;  %v6595_v24 = vld [vmem:[%s7144_s28 + $0x304] sm:$0xf]  ;;  %v4833_v25 = vld [vmem:[%s7144_s28 + $0x310] sm:$0xf0]  ;;  %v4708_v35 = vor.u32 %v6563_v18, %v4705_v20 }
  0xb1   : > { %3564 = vmatpush.bf16.msra.mxu0 %v4484_v59  ;;  %v6655_v26 = vld [vmem:[%s7144_s28 + $0x4e4] sm:$0xf]  ;;  %v5073_v28 = vld [vmem:[%s7144_s28 + $0x4f0] sm:$0xf0]  ;;  %v4836_v38 = vor.u32 %v6595_v24, %v4833_v25 }
  0xb2   : > { %3577 = vmatpush.bf16.msra.mxu1 %v4612_v60  ;;  %v6687_v29 = vld [vmem:[%s7144_s28 + $0x5e4] sm:$0xf]  ;;  %v5201_v31 = vld [vmem:[%s7144_s28 + $0x5f0] sm:$0xf0]  ;;  %v5076_v39 = vor.u32 %v6655_v26, %v5073_v28 }
  0xb3   : > { %3590 = vmatpush.bf16.msra.mxu2 %v4740_v62  ;;  %v6719_v32 = vld [vmem:[%s7144_s28 + $0x6e4] sm:$0xf]  ;;  %v5329_v33 = vld [vmem:[%s7144_s28 + $0x6f0] sm:$0xf0]  ;;  %v5204_v40 = vor.u32 %v6687_v29, %v5201_v31 }
  0xb4   : > { %3603 = vmatpush.bf16.msra.mxu3 %v4868_v5  ;;  %v6751_v36 = vld [vmem:[%s7144_s28 + $0x7e4] sm:$0xf]  ;;  %v5457_v37 = vld [vmem:[%s7144_s28 + $0x7f0] sm:$0xf0]  ;;  %v5332_v41 = vor.u32 %v6719_v32, %v5329_v33 }
  0xb5   : > { %3565 = vmatpush.bf16.msra.mxu0 %v4468_v11  ;;  %v6651_v42 = vld [vmem:[%s7144_s28 + $0x4c4] sm:$0xf]  ;;  %v5057_v43 = vld [vmem:[%s7144_s28 + $0x4d0] sm:$0xf0]  ;;  %v5460_v45 = vor.u32 %v6751_v36, %v5457_v37 }
  0xb6   : > { %3578 = vmatpush.bf16.msra.mxu1 %v4596_v14  ;;  %v6683_v44 = vld [vmem:[%s7144_s28 + $0x5c4] sm:$0xf]  ;;  %v5185_v46 = vld [vmem:[%s7144_s28 + $0x5d0] sm:$0xf0]  ;;  %v5060_v51 = vor.u32 %v6651_v42, %v5057_v43 }
  0xb7   : > { %3591 = vmatpush.bf16.msra.mxu2 %v4724_v15  ;;  %v6715_v47 = vld [vmem:[%s7144_s28 + $0x6c4] sm:$0xf]  ;;  %v5313_v48 = vld [vmem:[%s7144_s28 + $0x6d0] sm:$0xf0]  ;;  %v5188_v52 = vor.u32 %v6683_v44, %v5185_v46 }
  0xb8   : > { %3604 = vmatpush.bf16.msra.mxu3 %v4852_v19  ;;  %v6747_v49 = vld [vmem:[%s7144_s28 + $0x7c4] sm:$0xf]  ;;  %v5441_v50 = vld [vmem:[%s7144_s28 + $0x7d0] sm:$0xf0]  ;;  %v5316_v53 = vor.u32 %v6715_v47, %v5313_v48 }
  0xb9   : > { %3566 = vmatpush.bf16.msra.mxu0 %v4452_v30  ;;  %v6647_v54 = vld [vmem:[%s7144_s28 + $0x4a4] sm:$0xf]  ;;  %v5041_v55 = vld [vmem:[%s7144_s28 + $0x4b0] sm:$0xf0]  ;;  %v5444_v57 = vor.u32 %v6747_v49, %v5441_v50 }
  0xba   : > { %3579 = vmatpush.bf16.msra.mxu1 %v4580_v34  ;;  %v6679_v56 = vld [vmem:[%s7144_s28 + $0x5a4] sm:$0xf]  ;;  %v5169_v58 = vld [vmem:[%s7144_s28 + $0x5b0] sm:$0xf0]  ;;  %v5044_v0 = vor.u32 %v6647_v54, %v5041_v55 }
  0xbb   : > { %3592 = vmatpush.bf16.msra.mxu2 %v4708_v35  ;;  %v6711_v59 = vld [vmem:[%s7144_s28 + $0x6a4] sm:$0xf]  ;;  %v5297_v60 = vld [vmem:[%s7144_s28 + $0x6b0] sm:$0xf0]  ;;  %v5172_v4 = vor.u32 %v6679_v56, %v5169_v58 }
  0xbc   : > { %3605 = vmatpush.bf16.msra.mxu3 %v4836_v38  ;;  %v6743_v62 = vld [vmem:[%s7144_s28 + $0x7a4] sm:$0xf]  ;;  %v5425_v63 = vld [vmem:[%s7144_s28 + $0x7b0] sm:$0xf0]  ;;  %3567 = vmatmul.bf16.vlgmr.msra.gmra.mxu0 %v7250_v22  ;;  %v5300_v5 = vor.u32 %v6711_v59, %v5297_v60 }
  0xbd   : > { %3611 = vmatpush.bf16.msrb.mxu0 %v5076_v39  ;;  %3580 = vmatmul.bf16.vlgmr.msra.gmra.mxu1 %v7257_v27  ;;  %v6643_v6 = vld [vmem:[%s7144_s28 + $0x484] sm:$0xf]  ;;  %v5025_v7 = vld [vmem:[%s7144_s28 + $0x490] sm:$0xf0]  ;;  %v5428_v9 = vor.u32 %v6743_v62, %v5425_v63 }
  0xbe   : > { %3624 = vmatpush.bf16.msrb.mxu1 %v5204_v40  ;;  %3593 = vmatmul.bf16.vlgmr.msra.gmra.mxu2 %v7248_v21  ;;  %v6675_v8 = vld [vmem:[%s7144_s28 + $0x584] sm:$0xf]  ;;  %v5153_v10 = vld [vmem:[%s7144_s28 + $0x590] sm:$0xf0]  ;;  %v5028_v15 = vor.u32 %v6643_v6, %v5025_v7 }
  0xbf   : > { %3637 = vmatpush.bf16.msrb.mxu2 %v5332_v41  ;;  %3606 = vmatmul.bf16.vlgmr.msra.gmra.mxu3 %v7252_v23  ;;  %v6707_v11 = vld [vmem:[%s7144_s28 + $0x684] sm:$0xf]  ;;  %v5281_v12 = vld [vmem:[%s7144_s28 + $0x690] sm:$0xf0]  ;;  %v5156_v16 = vor.u32 %v6675_v8, %v5153_v10 }
  0xc0   : > { %3650 = vmatpush.bf16.msrb.mxu3 %v5460_v45  ;;  %v6739_v13 = vld [vmem:[%s7144_s28 + $0x784] sm:$0xf]  ;;  %v5409_v14 = vld [vmem:[%s7144_s28 + $0x790] sm:$0xf0]  ;;  %v5284_v17 = vor.u32 %v6707_v11, %v5281_v12 }
  0xc1   : > { %3612 = vmatpush.bf16.msrb.mxu0 %v5060_v51  ;;  %v6639_v18 = vld [vmem:[%s7144_s28 + $0x464] sm:$0xf]  ;;  %v5009_v19 = vld [vmem:[%s7144_s28 + $0x470] sm:$0xf0]  ;;  %v5412_v24 = vor.u32 %v6739_v13, %v5409_v14 }
  0xc2   : > { %3625 = vmatpush.bf16.msrb.mxu1 %v5188_v52  ;;  %v6671_v20 = vld [vmem:[%s7144_s28 + $0x564] sm:$0xf]  ;;  %v5137_v25 = vld [vmem:[%s7144_s28 + $0x570] sm:$0xf0]  ;;  %v5012_v31 = vor.u32 %v6639_v18, %v5009_v19 }
  0xc3   : > { %3638 = vmatpush.bf16.msrb.mxu2 %v5316_v53  ;;  %v6703_v26 = vld [vmem:[%s7144_s28 + $0x664] sm:$0xf]  ;;  %v5265_v28 = vld [vmem:[%s7144_s28 + $0x670] sm:$0xf0]  ;;  %v5140_v32 = vor.u32 %v6671_v20, %v5137_v25 }
  0xc4   : > { %3651 = vmatpush.bf16.msrb.mxu3 %v5444_v57  ;;  %v6735_v29 = vld [vmem:[%s7144_s28 + $0x764] sm:$0xf]  ;;  %v5393_v30 = vld [vmem:[%s7144_s28 + $0x770] sm:$0xf0]  ;;  %v5268_v33 = vor.u32 %v6703_v26, %v5265_v28  ;;  %v3373_v50 = vpop.f32.mrf.mxu1 }
  0xc5   : > { %3613 = vmatpush.bf16.msrb.mxu0 %v5044_v0  ;;  %v6635_v34 = vld [vmem:[%s7144_s28 + $0x444] sm:$0xf]  ;;  %v4993_v35 = vld [vmem:[%s7144_s28 + $0x450] sm:$0xf0]  ;;  %v5396_v37 = vor.u32 %v6735_v29, %v5393_v30  ;;  %v3360_v44 = vpop.f32.mrf.mxu0 }
  0xc6   : > { %3626 = vmatpush.bf16.msrb.mxu1 %v5172_v4  ;;  %v6667_v36 = vld [vmem:[%s7144_s28 + $0x544] sm:$0xf]  ;;  %v5121_v38 = vld [vmem:[%s7144_s28 + $0x550] sm:$0xf0]  ;;  %v4996_v43 = vor.u32 %v6635_v34, %v4993_v35  ;;  %v3374_v55 = vadd.f32 %v3373_v50, %v3360_v44 }
  0xc7   : > { %3639 = vmatpush.bf16.msrb.mxu2 %v5300_v5  ;;  %v6699_v39 = vld [vmem:[%s7144_s28 + $0x644] sm:$0xf]  ;;  %v5249_v40 = vld [vmem:[%s7144_s28 + $0x650] sm:$0xf0]  ;;  %v5124_v45 = vor.u32 %v6667_v36, %v5121_v38 }
  0xc8   : > { %3652 = vmatpush.bf16.msrb.mxu3 %v5428_v9  ;;  %v6731_v41 = vld [vmem:[%s7144_s28 + $0x744] sm:$0xf]  ;;  %v5377_v42 = vld [vmem:[%s7144_s28 + $0x750] sm:$0xf0]  ;;  %v5252_v46 = vor.u32 %v6699_v39, %v5249_v40 }
  0xc9   : > { %3614 = vmatpush.bf16.msrb.mxu0 %v5028_v15  ;;  %v6631_v47 = vld [vmem:[%s7144_s28 + $0x424] sm:$0xf]  ;;  %v4977_v48 = vld [vmem:[%s7144_s28 + $0x430] sm:$0xf0]  ;;  %v5380_v51 = vor.u32 %v6731_v41, %v5377_v42 }
  0xca   : > { %3627 = vmatpush.bf16.msrb.mxu1 %v5156_v16  ;;  %v6663_v49 = vld [vmem:[%s7144_s28 + $0x524] sm:$0xf]  ;;  %v5105_v52 = vld [vmem:[%s7144_s28 + $0x530] sm:$0xf0]  ;;  %v4980_v58 = vor.u32 %v6631_v47, %v4977_v48  ;;  %v3386_v6 = vpop.f32.mrf.mxu2 }
  0xcb   : > { %3640 = vmatpush.bf16.msrb.mxu2 %v5284_v17  ;;  %v6695_v53 = vld [vmem:[%s7144_s28 + $0x624] sm:$0xf]  ;;  %v5233_v54 = vld [vmem:[%s7144_s28 + $0x630] sm:$0xf0]  ;;  %v5108_v62 = vor.u32 %v6663_v49, %v5105_v52  ;;  %v3387_v11 = vadd.f32 %v3386_v6, %v3374_v55 }
  0xcc   : > { %3653 = vmatpush.bf16.msrb.mxu3 %v5412_v24  ;;  %v6727_v56 = vld [vmem:[%s7144_s28 + $0x724] sm:$0xf]  ;;  %v5361_v57 = vld [vmem:[%s7144_s28 + $0x730] sm:$0xf0]  ;;  %v5236_v63 = vor.u32 %v6695_v53, %v5233_v54  ;;  %v3399_v12 = vpop.f32.mrf.mxu3  ;;  %v3375_v30 = vpop.f32.mrf.mxu1 }
  0xcd   : > { %3615 = vmatpush.bf16.msrb.mxu0 %v5012_v31  ;;  %v6627_v59 = vld [vmem:[%s7144_s28 + $0x404] sm:$0xf]  ;;  %v4961_v60 = vld [vmem:[%s7144_s28 + $0x410] sm:$0xf0]  ;;  %v5364_v7 = vor.u32 %v6727_v56, %v5361_v57  ;;  %v7567_v20 = vadd.f32 %v3399_v12, %v3387_v11  ;;  %v3362_v24 = vpop.f32.mrf.mxu0 }
  0xce   : > { %3628 = vmatpush.bf16.msrb.mxu1 %v5140_v32  ;;  %v6659_v0 = vld [vmem:[%s7144_s28 + $0x504] sm:$0xf]  ;;  %v5089_v4 = vld [vmem:[%s7144_s28 + $0x510] sm:$0xf0]  ;;  %v4964_v16 = vor.u32 %v6627_v59, %v4961_v60 }
  0xcf   : > { %3641 = vmatpush.bf16.msrb.mxu2 %v5268_v33  ;;  %v6691_v5 = vld [vmem:[%s7144_s28 + $0x604] sm:$0xf]  ;;  %v5217_v8 = vld [vmem:[%s7144_s28 + $0x610] sm:$0xf0]  ;;  %v5092_v25 = vor.u32 %v6659_v0, %v5089_v4 }
  0xd0   : > { %3654 = vmatpush.bf16.msrb.mxu3 %v5396_v37  ;;  %v6723_v9 = vld [vmem:[%s7144_s28 + $0x704] sm:$0xf]  ;;  %v5345_v10 = vld [vmem:[%s7144_s28 + $0x710] sm:$0xf0]  ;;  %v5220_v26 = vor.u32 %v6691_v5, %v5217_v8 }
  0xd1   : > { %3616 = vmatpush.bf16.msrb.mxu0 %v4996_v43  ;;  %v6783_v13 = vld [vmem:[%s7144_s28 + $0x8e4] sm:$0xf]  ;;  %v5585_v14 = vld [vmem:[%s7144_s28 + $0x8f0] sm:$0xf0]  ;;  %v5348_v31 = vor.u32 %v6723_v9, %v5345_v10 }
  0xd2   : > { %3629 = vmatpush.bf16.msrb.mxu1 %v5124_v45  ;;  %v6815_v15 = vld [vmem:[%s7144_s28 + $0x9e4] sm:$0xf]  ;;  %v5713_v17 = vld [vmem:[%s7144_s28 + $0x9f0] sm:$0xf0]  ;;  %v5588_v32 = vor.u32 %v6783_v13, %v5585_v14  ;;  %v3388_v44 = vpop.f32.mrf.mxu2 }
  0xd3   : > { %3642 = vmatpush.bf16.msrb.mxu2 %v5252_v46  ;;  %v6847_v18 = vld [vmem:[%s7144_s28 + $0xae4] sm:$0xf]  ;;  %v5841_v19 = vld [vmem:[%s7144_s28 + $0xaf0] sm:$0xf0]  ;;  %v5716_v33 = vor.u32 %v6815_v15, %v5713_v17 }
  0xd4   : > { %3655 = vmatpush.bf16.msrb.mxu3 %v5380_v51  ;;  %v6879_v28 = vld [vmem:[%s7144_s28 + $0xbe4] sm:$0xf]  ;;  %v5969_v29 = vld [vmem:[%s7144_s28 + $0xbf0] sm:$0xf0]  ;;  %v5844_v34 = vor.u32 %v6847_v18, %v5841_v19  ;;  %v3401_v46 = vpop.f32.mrf.mxu3 }
  0xd5   : > { %3617 = vmatpush.bf16.msrb.mxu0 %v4980_v58  ;;  %v6779_v35 = vld [vmem:[%s7144_s28 + $0x8c4] sm:$0xf]  ;;  %v5569_v36 = vld [vmem:[%s7144_s28 + $0x8d0] sm:$0xf0]  ;;  %v5972_v38 = vor.u32 %v6879_v28, %v5969_v29 }
  0xd6   : > { %3630 = vmatpush.bf16.msrb.mxu1 %v5108_v62  ;;  %v6811_v37 = vld [vmem:[%s7144_s28 + $0x9c4] sm:$0xf]  ;;  %v5697_v39 = vld [vmem:[%s7144_s28 + $0x9d0] sm:$0xf0]  ;;  %v5572_v45 = vor.u32 %v6779_v35, %v5569_v36  ;;  %v3412_v11 = vpop.f32.mrf.mxu0 }
  0xd7   : > { %3643 = vmatpush.bf16.msrb.mxu2 %v5236_v63  ;;  %v6843_v40 = vld [vmem:[%s7144_s28 + $0xac4] sm:$0xf]  ;;  %v5825_v41 = vld [vmem:[%s7144_s28 + $0xad0] sm:$0xf0]  ;;  %v5700_v47 = vor.u32 %v6811_v37, %v5697_v39  ;;  %v3413_v17 = vadd.f32 %v3412_v11, %v7567_v20  ;;  %v3425_v18 = vpop.f32.mrf.mxu1 }
  0xd8   : > { %3656 = vmatpush.bf16.msrb.mxu3 %v5364_v7  ;;  %v6875_v42 = vld [vmem:[%s7144_s28 + $0xbc4] sm:$0xf]  ;;  %v5953_v43 = vld [vmem:[%s7144_s28 + $0xbd0] sm:$0xf0]  ;;  %v5828_v48 = vor.u32 %v6843_v40, %v5825_v41 }
  0xd9   : > { %3618 = vmatpush.bf16.msrb.mxu0 %v4964_v16  ;;  %v6775_v49 = vld [vmem:[%s7144_s28 + $0x8a4] sm:$0xf]  ;;  %v5553_v50 = vld [vmem:[%s7144_s28 + $0x8b0] sm:$0xf0]  ;;  %v5956_v52 = vor.u32 %v6875_v42, %v5953_v43  ;;  %v3426_v30 = vadd.f32 %v3425_v18, %v3413_v17 }
  0xda   : > { %3631 = vmatpush.bf16.msrb.mxu1 %v5092_v25  ;;  %v6807_v51 = vld [vmem:[%s7144_s28 + $0x9a4] sm:$0xf]  ;;  %v5681_v53 = vld [vmem:[%s7144_s28 + $0x9b0] sm:$0xf0]  ;;  %v5556_v58 = vor.u32 %v6775_v49, %v5553_v50 }
  0xdb   : > { %3644 = vmatpush.bf16.msrb.mxu2 %v5220_v26  ;;  %v6839_v54 = vld [vmem:[%s7144_s28 + $0xaa4] sm:$0xf]  ;;  %v5809_v55 = vld [vmem:[%s7144_s28 + $0xab0] sm:$0xf0]  ;;  %v5684_v59 = vor.u32 %v6807_v51, %v5681_v53 }
  0xdc   : > { %3657 = vmatpush.bf16.msrb.mxu3 %v5348_v31  ;;  %3619 = vmatmul.bf16.vlgmr.msrb.gmra.mxu0 %v7289_v1  ;;  %v6871_v56 = vld [vmem:[%s7144_s28 + $0xba4] sm:$0xf]  ;;  %v5937_v57 = vld [vmem:[%s7144_s28 + $0xbb0] sm:$0xf0]  ;;  %v5812_v60 = vor.u32 %v6839_v54, %v5809_v55 }
  0xdd   : > { %3663 = vmatpush.bf16.msra.mxu0 %v5588_v32  ;;  %3632 = vmatmul.bf16.vlgmr.msrb.gmra.mxu1 %v7293_v3  ;;  %v6771_v62 = vld [vmem:[%s7144_s28 + $0x884] sm:$0xf]  ;;  %v5537_v63 = vld [vmem:[%s7144_s28 + $0x890] sm:$0xf0]  ;;  %v5940_v4 = vor.u32 %v6871_v56, %v5937_v57 }
  0xde   : > { %3676 = vmatpush.bf16.msra.mxu1 %v5716_v33  ;;  %3645 = vmatmul.bf16.vlgmr.msrb.gmra.mxu2 %v7286_v61  ;;  %v6803_v0 = vld [vmem:[%s7144_s28 + $0x984] sm:$0xf]  ;;  %v5665_v5 = vld [vmem:[%s7144_s28 + $0x990] sm:$0xf0]  ;;  %v5540_v10 = vor.u32 %v6771_v62, %v5537_v63  ;;  %v3438_v36 = vpop.f32.mrf.mxu2 }
  0xdf   : > { %3689 = vmatpush.bf16.msra.mxu2 %v5844_v34  ;;  %3658 = vmatmul.bf16.vlgmr.msrb.gmra.mxu3 %v7291_v2  ;;  %v6835_v6 = vld [vmem:[%s7144_s28 + $0xa84] sm:$0xf]  ;;  %v5793_v7 = vld [vmem:[%s7144_s28 + $0xa90] sm:$0xf0]  ;;  %v5668_v12 = vor.u32 %v6803_v0, %v5665_v5  ;;  %v3439_v41 = vadd.f32 %v3438_v36, %v3426_v30  ;;  %v3427_v53 = vpop.f32.mrf.mxu1 }
  0xe0   : > { %3702 = vmatpush.bf16.msra.mxu3 %v5972_v38  ;;  %v6867_v8 = vld [vmem:[%s7144_s28 + $0xb84] sm:$0xf]  ;;  %v5921_v9 = vld [vmem:[%s7144_s28 + $0xb90] sm:$0xf0]  ;;  %v5796_v13 = vor.u32 %v6835_v6, %v5793_v7  ;;  %v3451_v42 = vpop.f32.mrf.mxu3 }
  0xe1   : > { %3664 = vmatpush.bf16.msra.mxu0 %v5572_v45  ;;  %v6767_v14 = vld [vmem:[%s7144_s28 + $0x864] sm:$0xf]  ;;  %v5521_v15 = vld [vmem:[%s7144_s28 + $0x870] sm:$0xf0]  ;;  %v5924_v19 = vor.u32 %v6867_v8, %v5921_v9  ;;  %v7616_v46 = vadd.f32 %v3451_v42, %v3439_v41 }
  0xe2   : > { %3677 = vmatpush.bf16.msra.mxu1 %v5700_v47  ;;  %v6799_v16 = vld [vmem:[%s7144_s28 + $0x964] sm:$0xf]  ;;  %v5649_v24 = vld [vmem:[%s7144_s28 + $0x970] sm:$0xf0]  ;;  %v5524_v31 = vor.u32 %v6767_v14, %v5521_v15  ;;  %v3414_v47 = vpop.f32.mrf.mxu0 }
  0xe3   : > { %3690 = vmatpush.bf16.msra.mxu2 %v5828_v48  ;;  %v6831_v25 = vld [vmem:[%s7144_s28 + $0xa64] sm:$0xf]  ;;  %v5777_v26 = vld [vmem:[%s7144_s28 + $0xa70] sm:$0xf0]  ;;  %v5652_v20 = vor.u32 %v6799_v16, %v5649_v24 }
  0xe4   : > { %3703 = vmatpush.bf16.msra.mxu3 %v5956_v52  ;;  %v6863_v28 = vld [vmem:[%s7144_s28 + $0xb64] sm:$0xf]  ;;  %v5905_v29 = vld [vmem:[%s7144_s28 + $0xb70] sm:$0xf0]  ;;  %v5780_v32 = vor.u32 %v6831_v25, %v5777_v26 }
  0xe5   : > { %3665 = vmatpush.bf16.msra.mxu0 %v5556_v58  ;;  %v6763_v33 = vld [vmem:[%s7144_s28 + $0x844] sm:$0xf]  ;;  %v5505_v34 = vld [vmem:[%s7144_s28 + $0x850] sm:$0xf0]  ;;  %v5908_v37 = vor.u32 %v6863_v28, %v5905_v29 }
  0xe6   : > { %3678 = vmatpush.bf16.msra.mxu1 %v5684_v59  ;;  %v6795_v35 = vld [vmem:[%s7144_s28 + $0x944] sm:$0xf]  ;;  %v5633_v38 = vld [vmem:[%s7144_s28 + $0x950] sm:$0xf0]  ;;  %v5508_v45 = vor.u32 %v6763_v33, %v5505_v34  ;;  %v3440_v8 = vpop.f32.mrf.mxu2 }
  0xe7   : > { %3691 = vmatpush.bf16.msra.mxu2 %v5812_v60  ;;  %v6827_v39 = vld [vmem:[%s7144_s28 + $0xa44] sm:$0xf]  ;;  %v5761_v40 = vld [vmem:[%s7144_s28 + $0xa50] sm:$0xf0]  ;;  %v5636_v48 = vor.u32 %v6795_v35, %v5633_v38 }
  0xe8   : > { %3704 = vmatpush.bf16.msra.mxu3 %v5940_v4  ;;  %v6859_v43 = vld [vmem:[%s7144_s28 + $0xb44] sm:$0xf]  ;;  %v5889_v44 = vld [vmem:[%s7144_s28 + $0xb50] sm:$0xf0]  ;;  %v5764_v49 = vor.u32 %v6827_v39, %v5761_v40 }
  0xe9   : > { %3666 = vmatpush.bf16.msra.mxu0 %v5540_v10  ;;  %v6759_v50 = vld [vmem:[%s7144_s28 + $0x824] sm:$0xf]  ;;  %v5489_v51 = vld [vmem:[%s7144_s28 + $0x830] sm:$0xf0]  ;;  %v5892_v54 = vor.u32 %v6859_v43, %v5889_v44 }
  0xea   : > { %3679 = vmatpush.bf16.msra.mxu1 %v5668_v12  ;;  %v6791_v52 = vld [vmem:[%s7144_s28 + $0x924] sm:$0xf]  ;;  %v5617_v55 = vld [vmem:[%s7144_s28 + $0x930] sm:$0xf0]  ;;  %v5492_v60 = vor.u32 %v6759_v50, %v5489_v51 }
  0xeb   : > { %3692 = vmatpush.bf16.msra.mxu2 %v5796_v13  ;;  %v6823_v56 = vld [vmem:[%s7144_s28 + $0xa24] sm:$0xf]  ;;  %v5745_v57 = vld [vmem:[%s7144_s28 + $0xa30] sm:$0xf0]  ;;  %v5620_v0 = vor.u32 %v6791_v52, %v5617_v55  ;;  %v3453_v13 = vpop.f32.mrf.mxu3  ;;  %v7029_v55 = vld [vmem:[#allocation1 + $0x9] sm:$0xff] }
  0xec   : > { %3705 = vmatpush.bf16.msra.mxu3 %v5924_v19  ;;  %v6855_v58 = vld [vmem:[%s7144_s28 + $0xb24] sm:$0xf]  ;;  %v5873_v59 = vld [vmem:[%s7144_s28 + $0xb30] sm:$0xf0]  ;;  %v5748_v4 = vor.u32 %v6823_v56, %v5745_v57 }
  0xed   : > { %3667 = vmatpush.bf16.msra.mxu0 %v5524_v31  ;;  %v6755_v62 = vld [vmem:[%s7144_s28 + $0x804] sm:$0xf]  ;;  %v5473_v63 = vld [vmem:[%s7144_s28 + $0x810] sm:$0xf0]  ;;  %v5876_v9 = vor.u32 %v6855_v58, %v5873_v59  ;;  %v7030_v58 = vld [vmem:[#allocation1 + $0x1b] sm:$0xff] }
  0xee   : > { %3680 = vmatpush.bf16.msra.mxu1 %v5652_v20  ;;  %v6787_v5 = vld [vmem:[%s7144_s28 + $0x904] sm:$0xf]  ;;  %v5601_v6 = vld [vmem:[%s7144_s28 + $0x910] sm:$0xf0]  ;;  %v5476_v17 = vor.u32 %v6755_v62, %v5473_v63 }
  0xef   : > { %3693 = vmatpush.bf16.msra.mxu2 %v5780_v32  ;;  %v6819_v7 = vld [vmem:[%s7144_s28 + $0xa04] sm:$0xf]  ;;  %v5729_v10 = vld [vmem:[%s7144_s28 + $0xa10] sm:$0xf0]  ;;  %v5604_v25 = vor.u32 %v6787_v5, %v5601_v6 }
  0xf0   : > { %3706 = vmatpush.bf16.msra.mxu3 %v5908_v37  ;;  %v6851_v11 = vld [vmem:[%s7144_s28 + $0xb04] sm:$0xf]  ;;  %v5857_v12 = vld [vmem:[%s7144_s28 + $0xb10] sm:$0xf0]  ;;  %v5732_v26 = vor.u32 %v6819_v7, %v5729_v10 }
  0xf1   : > { %3668 = vmatpush.bf16.msra.mxu0 %v5508_v45  ;;  %v6911_v14 = vld [vmem:[%s7144_s28 + $0xce4] sm:$0xf]  ;;  %v6097_v15 = vld [vmem:[%s7144_s28 + $0xcf0] sm:$0xf0]  ;;  %v5860_v30 = vor.u32 %v6851_v11, %v5857_v12 }
  0xf2   : > { %3681 = vmatpush.bf16.msra.mxu1 %v5636_v48  ;;  %v6943_v16 = vld [vmem:[%s7144_s28 + $0xde4] sm:$0xf]  ;;  %v6225_v18 = vld [vmem:[%s7144_s28 + $0xdf0] sm:$0xf0]  ;;  %v6100_v31 = vor.u32 %v6911_v14, %v6097_v15 }
  0xf3   : > { %3694 = vmatpush.bf16.msra.mxu2 %v5764_v49  ;;  %v6975_v19 = vld [vmem:[%s7144_s28 + $0xee4] sm:$0xf]  ;;  %v6353_v24 = vld [vmem:[%s7144_s28 + $0xef0] sm:$0xf0]  ;;  %v6228_v20 = vor.u32 %v6943_v16, %v6225_v18 }
  0xf4   : > { %3707 = vmatpush.bf16.msra.mxu3 %v5892_v54  ;;  %v7007_v28 = vld [vmem:[%s7144_s28 + $0xfe4] sm:$0xf]  ;;  %v6481_v29 = vld [vmem:[%s7144_s28 + $0xff0] sm:$0xf0]  ;;  %v6356_v32 = vor.u32 %v6975_v19, %v6353_v24 }
  0xf5   : > { %3669 = vmatpush.bf16.msra.mxu0 %v5492_v60  ;;  %v6907_v33 = vld [vmem:[%s7144_s28 + $0xcc4] sm:$0xf]  ;;  %v6081_v34 = vld [vmem:[%s7144_s28 + $0xcd0] sm:$0xf0]  ;;  %v6484_v36 = vor.u32 %v7007_v28, %v6481_v29 }
  0xf6   : > { %3682 = vmatpush.bf16.msra.mxu1 %v5620_v0  ;;  %v6939_v35 = vld [vmem:[%s7144_s28 + $0xdc4] sm:$0xf]  ;;  %v6209_v37 = vld [vmem:[%s7144_s28 + $0xdd0] sm:$0xf0]  ;;  %v6084_v42 = vor.u32 %v6907_v33, %v6081_v34 }
  0xf7   : > { %3695 = vmatpush.bf16.msra.mxu2 %v5748_v4  ;;  %v6971_v38 = vld [vmem:[%s7144_s28 + $0xec4] sm:$0xf]  ;;  %v6337_v39 = vld [vmem:[%s7144_s28 + $0xed0] sm:$0xf0]  ;;  %v6212_v43 = vor.u32 %v6939_v35, %v6209_v37 }
  0xf8   : > { %3708 = vmatpush.bf16.msra.mxu3 %v5876_v9  ;;  %v7003_v40 = vld [vmem:[%s7144_s28 + $0xfc4] sm:$0xf]  ;;  %v6465_v41 = vld [vmem:[%s7144_s28 + $0xfd0] sm:$0xf0]  ;;  %v6340_v44 = vor.u32 %v6971_v38, %v6337_v39 }
  0xf9   : > { %3670 = vmatpush.bf16.msra.mxu0 %v5476_v17  ;;  %v6903_v45 = vld [vmem:[%s7144_s28 + $0xca4] sm:$0xf]  ;;  %v6065_v47 = vld [vmem:[%s7144_s28 + $0xcb0] sm:$0xf0]  ;;  %v6468_v50 = vor.u32 %v7003_v40, %v6465_v41 }
  0xfa   : > { %3683 = vmatpush.bf16.msra.mxu1 %v5604_v25  ;;  %v6935_v48 = vld [vmem:[%s7144_s28 + $0xda4] sm:$0xf]  ;;  %v6193_v51 = vld [vmem:[%s7144_s28 + $0xdb0] sm:$0xf0]  ;;  %v6068_v59 = vor.u32 %v6903_v45, %v6065_v47 }
  0xfb   : > { %3696 = vmatpush.bf16.msra.mxu2 %v5732_v26  ;;  %v7027_v49 = vld [vmem:[#allocation1] sm:$0xff]  ;;  %v6321_v53 = vld [vmem:[%s7144_s28 + $0xeb0] sm:$0xf0]  ;;  %v6196_v60 = vor.u32 %v6935_v48, %v6193_v51 }
  0xfc   : > { %3709 = vmatpush.bf16.msra.mxu3 %v5860_v30  ;;  %3671 = vmatmul.bf16.vlgmr.msra.gmra.mxu0 %v7027_v49  ;;  %v6967_v52 = vld [vmem:[%s7144_s28 + $0xea4] sm:$0xf]  ;;  %v7028_v54 = vld [vmem:[#allocation1 + $0x12] sm:$0xff]  ;;  %v3477_v14 = vpop.f32.mrf.mxu1 }
  0xfd   : > { %3715 = vmatpush.bf16.msrb.mxu0 %v6100_v31  ;;  %3684 = vmatmul.bf16.vlgmr.msra.gmra.mxu1 %v7029_v55  ;;  %v6999_v56 = vld [vmem:[%s7144_s28 + $0xfa4] sm:$0xf]  ;;  %v6449_v57 = vld [vmem:[%s7144_s28 + $0xfb0] sm:$0xf0]  ;;  %v6324_v62 = vor.u32 %v6967_v52, %v6321_v53  ;;  %v3464_v9 = vpop.f32.mrf.mxu0 }
  0xfe   : > { %3728 = vmatpush.bf16.msrb.mxu1 %v6228_v20  ;;  %3697 = vmatmul.bf16.vlgmr.msra.gmra.mxu2 %v7028_v54  ;;  %v6899_v63 = vld [vmem:[%s7144_s28 + $0xc84] sm:$0xf]  ;;  %v6049_v0 = vld [vmem:[%s7144_s28 + $0xc90] sm:$0xf0]  ;;  %v6452_v5 = vor.u32 %v6999_v56, %v6449_v57  ;;  %v3465_v12 = vadd.f32 %v3464_v9, %v7616_v46 }
  0xff   : > { %3741 = vmatpush.bf16.msrb.mxu2 %v6356_v32  ;;  %3710 = vmatmul.bf16.vlgmr.msra.gmra.mxu3 %v7030_v58  ;;  %v6931_v4 = vld [vmem:[%s7144_s28 + $0xd84] sm:$0xf]  ;;  %v6177_v6 = vld [vmem:[%s7144_s28 + $0xd90] sm:$0xf0]  ;;  %v6052_v13 = vor.u32 %v6899_v63, %v6049_v0 }
 0x100   : > { %3754 = vmatpush.bf16.msrb.mxu3 %v6484_v36  ;;  %v6963_v7 = vld [vmem:[%s7144_s28 + $0xe84] sm:$0xf]  ;;  %v6305_v8 = vld [vmem:[%s7144_s28 + $0xe90] sm:$0xf0]  ;;  %v6180_v15 = vor.u32 %v6931_v4, %v6177_v6  ;;  %v3478_v25 = vadd.f32 %v3477_v14, %v3465_v12  ;;  %v4567_v14 = vld [vmem:[%s7144_s28 + $0xe8] sm:$0xf] }
 0x101   : > { %3716 = vmatpush.bf16.msrb.mxu0 %v6084_v42  ;;  %v6995_v10 = vld [vmem:[%s7144_s28 + $0xf84] sm:$0xf]  ;;  %v6433_v11 = vld [vmem:[%s7144_s28 + $0xf90] sm:$0xf0]  ;;  %v6308_v16 = vor.u32 %v6963_v7, %v6305_v8 }
 0x102   : > { %3729 = vmatpush.bf16.msrb.mxu1 %v6212_v43  ;;  %v6895_v17 = vld [vmem:[%s7144_s28 + $0xc64] sm:$0xf]  ;;  %v6033_v18 = vld [vmem:[%s7144_s28 + $0xc70] sm:$0xf0]  ;;  %v6436_v24 = vor.u32 %v6995_v10, %v6433_v11  ;;  %v3490_v37 = vpop.f32.mrf.mxu2 }
 0x103   : > { %3742 = vmatpush.bf16.msrb.mxu2 %v6340_v44  ;;  %v6927_v19 = vld [vmem:[%s7144_s28 + $0xd64] sm:$0xf]  ;;  %v6161_v26 = vld [vmem:[%s7144_s28 + $0xd70] sm:$0xf0]  ;;  %v6036_v31 = vor.u32 %v6895_v17, %v6033_v18  ;;  %v3491_v41 = vadd.f32 %v3490_v37, %v3478_v25  ;;  %v6594_v25 = vld [vmem:[%s7144_s28 + $0x2f4] sm:$0xf0] }
 0x104   : > { %3755 = vmatpush.bf16.msrb.mxu3 %v6468_v50  ;;  %v6959_v28 = vld [vmem:[%s7144_s28 + $0xe64] sm:$0xf]  ;;  %v6289_v46 = vld [vmem:[%s7144_s28 + $0xe70] sm:$0xf0]  ;;  %v6164_v20 = vor.u32 %v6927_v19, %v6161_v26  ;;  %v3479_v48 = vpop.f32.mrf.mxu1  ;;  %v6562_v19 = vld [vmem:[%s7144_s28 + $0x1f4] sm:$0xf0] }
 0x105   : > { %3717 = vmatpush.bf16.msrb.mxu0 %v6068_v59  ;;  %v6991_v29 = vld [vmem:[%s7144_s28 + $0xf64] sm:$0xf]  ;;  %v6417_v30 = vld [vmem:[%s7144_s28 + $0xf70] sm:$0xf0]  ;;  %v6292_v32 = vor.u32 %v6959_v28, %v6289_v46  ;;  %v3503_v42 = vpop.f32.mrf.mxu3  ;;  %v3466_v45 = vpop.f32.mrf.mxu0  ;;  %v4951_v46 = vld [vmem:[%s7144_s28 + $0x3e8] sm:$0xf] }
 0x106   : > { %3730 = vmatpush.bf16.msrb.mxu1 %v6196_v60  ;;  %v6891_v33 = vld [vmem:[%s7144_s28 + $0xc44] sm:$0xf]  ;;  %v6017_v34 = vld [vmem:[%s7144_s28 + $0xc50] sm:$0xf0]  ;;  %v6420_v36 = vor.u32 %v6991_v29, %v6417_v30  ;;  %v7683_v49 = vadd.f32 %v3503_v42, %v3491_v41  ;;  %v6626_v29 = vld [vmem:[%s7144_s28 + $0x3f4] sm:$0xf0] }
 0x107   : > { %3743 = vmatpush.bf16.msrb.mxu2 %v6324_v62  ;;  %v6923_v35 = vld [vmem:[%s7144_s28 + $0xd44] sm:$0xf]  ;;  %v6145_v38 = vld [vmem:[%s7144_s28 + $0xd50] sm:$0xf0]  ;;  %v6020_v47 = vor.u32 %v6891_v33, %v6017_v34  ;;  %v4551_v33 = vld [vmem:[%s7144_s28 + $0xc8] sm:$0xf] }
 0x108   : > { %3756 = vmatpush.bf16.msrb.mxu3 %v6452_v5  ;;  %v6955_v39 = vld [vmem:[%s7144_s28 + $0xe44] sm:$0xf]  ;;  %v6273_v40 = vld [vmem:[%s7144_s28 + $0xe50] sm:$0xf0]  ;;  %v6148_v50 = vor.u32 %v6923_v35, %v6145_v38  ;;  %v6526_v34 = vld [vmem:[%s7144_s28 + $0xd4] sm:$0xf0] }
 0x109   : > { %3718 = vmatpush.bf16.msrb.mxu0 %v6052_v13  ;;  %v6987_v43 = vld [vmem:[%s7144_s28 + $0xf44] sm:$0xf]  ;;  %v6401_v44 = vld [vmem:[%s7144_s28 + $0xf50] sm:$0xf0]  ;;  %v6276_v51 = vor.u32 %v6955_v39, %v6273_v40  ;;  %v4679_v35 = vld [vmem:[%s7144_s28 + $0x1c8] sm:$0xf]  ;;  %v4552_v42 = vor.u32 %v6526_v34, %v4551_v33 }
 0x10a   : > { %3731 = vmatpush.bf16.msrb.mxu1 %v6180_v15  ;;  %v6887_v52 = vld [vmem:[%s7144_s28 + $0xc24] sm:$0xf]  ;;  %v6001_v53 = vld [vmem:[%s7144_s28 + $0xc30] sm:$0xf0]  ;;  %v6404_v55 = vor.u32 %v6987_v43, %v6401_v44  ;;  %v3492_v13 = vpop.f32.mrf.mxu2  ;;  %v6530_v15 = vld [vmem:[%s7144_s28 + $0xf4] sm:$0xf0] }
 0x10b   : > { %3744 = vmatpush.bf16.msrb.mxu2 %v6308_v16  ;;  %v6919_v54 = vld [vmem:[%s7144_s28 + $0xd24] sm:$0xf]  ;;  %v6129_v56 = vld [vmem:[%s7144_s28 + $0xd30] sm:$0xf0]  ;;  %v6004_v62 = vor.u32 %v6887_v52, %v6001_v53  ;;  %v4695_v16 = vld [vmem:[%s7144_s28 + $0x1e8] sm:$0xf] }
 0x10c   : > { %3757 = vmatpush.bf16.msrb.mxu3 %v6436_v24  ;;  %v6951_v57 = vld [vmem:[%s7144_s28 + $0xe24] sm:$0xf]  ;;  %v6257_v58 = vld [vmem:[%s7144_s28 + $0xe30] sm:$0xf0]  ;;  %v6132_v4 = vor.u32 %v6919_v54, %v6129_v56  ;;  %v4823_v24 = vld [vmem:[%s7144_s28 + $0x2e8] sm:$0xf] }
 0x10d   : > { %3719 = vmatpush.bf16.msrb.mxu0 %v6036_v31  ;;  %v6983_v59 = vld [vmem:[%s7144_s28 + $0xf24] sm:$0xf]  ;;  %v6385_v60 = vld [vmem:[%s7144_s28 + $0xf30] sm:$0xf0]  ;;  %v6260_v5 = vor.u32 %v6951_v57, %v6257_v58  ;;  %v3505_v17 = vpop.f32.mrf.mxu3  ;;  %v4568_v31 = vor.u32 %v6530_v15, %v4567_v14  ;;  %v6558_v37 = vld [vmem:[%s7144_s28 + $0x1d4] sm:$0xf0] }
 0x10e   : > { %3732 = vmatpush.bf16.msrb.mxu1 %v6164_v20  ;;  %v6883_v63 = vld [vmem:[%s7144_s28 + $0xc04] sm:$0xf]  ;;  %v5985_v0 = vld [vmem:[%s7144_s28 + $0xc10] sm:$0xf0]  ;;  %v6388_v9 = vor.u32 %v6983_v59, %v6385_v60  ;;  %v4696_v20 = vor.u32 %v6562_v19, %v4695_v16  ;;  %v4807_v38 = vld [vmem:[%s7144_s28 + $0x2c8] sm:$0xf]  ;;  %v4680_v43 = vor.u32 %v6558_v37, %v4679_v35 }
 0x10f   : > { %3745 = vmatpush.bf16.msrb.mxu2 %v6292_v32  ;;  %v6915_v6 = vld [vmem:[%s7144_s28 + $0xd04] sm:$0xf]  ;;  %v6113_v7 = vld [vmem:[%s7144_s28 + $0xd10] sm:$0xf0]  ;;  %v5988_v18 = vor.u32 %v6883_v63, %v5985_v0  ;;  %v4824_v32 = vor.u32 %v6594_v25, %v4823_v24  ;;  %v6590_v39 = vld [vmem:[%s7144_s28 + $0x2d4] sm:$0xf0] }
 0x110   : > { %3758 = vmatpush.bf16.msrb.mxu3 %v6420_v36  ;;  %v6947_v8 = vld [vmem:[%s7144_s28 + $0xe04] sm:$0xf]  ;;  %v6241_v10 = vld [vmem:[%s7144_s28 + $0xe10] sm:$0xf0]  ;;  %v6116_v26 = vor.u32 %v6915_v6, %v6113_v7  ;;  %v4952_v36 = vor.u32 %v6626_v29, %v4951_v46  ;;  %v4935_v40 = vld [vmem:[%s7144_s28 + $0x3c8] sm:$0xf]  ;;  %v4808_v44 = vor.u32 %v6590_v39, %v4807_v38 }
 0x111   : > { %3720 = vmatpush.bf16.msrb.mxu0 %v6020_v47  ;;  %v6979_v11 = vld [vmem:[%s7144_s28 + $0xf04] sm:$0xf]  ;;  %v6369_v12 = vld [vmem:[%s7144_s28 + $0xf10] sm:$0xf0]  ;;  %v6244_v28 = vor.u32 %v6947_v8, %v6241_v10  ;;  %v6622_v41 = vld [vmem:[%s7144_s28 + $0x3d4] sm:$0xf0] }
 0x112   : > { %3733 = vmatpush.bf16.msrb.mxu1 %v6148_v50  ;;  %v6372_v30 = vor.u32 %v6979_v11, %v6369_v12  ;;  %v4535_v45 = vld [vmem:[%s7144_s28 + $0xa8] sm:$0xf]  ;;  %v6522_v47 = vld [vmem:[%s7144_s28 + $0xb4] sm:$0xf0]  ;;  %v7033_v56 = vld [vmem:[#allocation1 + $0x2d] sm:$0xff] }
 0x113   : > { %3746 = vmatpush.bf16.msrb.mxu2 %v6276_v51  ;;  %v4663_v48 = vld [vmem:[%s7144_s28 + $0x1a8] sm:$0xf]  ;;  %v4936_v51 = vor.u32 %v6622_v41, %v4935_v40  ;;  %v6554_v52 = vld [vmem:[%s7144_s28 + $0x1b4] sm:$0xf0]  ;;  %v7034_v59 = vld [vmem:[#allocation1 + $0x3f] sm:$0xff]  ;;  %v4536_v60 = vor.u32 %v6522_v47, %v4535_v45 }
 0x114   : > { %3759 = vmatpush.bf16.msrb.mxu3 %v6404_v55  ;;  %v7031_v50 = vld [vmem:[#allocation1 + $0x24] sm:$0xff]  ;;  %v6586_v54 = vld [vmem:[%s7144_s28 + $0x2b4] sm:$0xf0] }
 0x115   : > { %3721 = vmatpush.bf16.msrb.mxu0 %v6004_v62  ;;  %v4791_v53 = vld [vmem:[%s7144_s28 + $0x2a8] sm:$0xf]  ;;  %v7032_v55 = vld [vmem:[#allocation1 + $0x36] sm:$0xff]  ;;  %v4664_v62 = vor.u32 %v6554_v52, %v4663_v48 }
 0x116   : > { %3734 = vmatpush.bf16.msrb.mxu1 %v6132_v4  ;;  %v4919_v57 = vld [vmem:[%s7144_s28 + $0x3a8] sm:$0xf]  ;;  %v6618_v58 = vld [vmem:[%s7144_s28 + $0x3b4] sm:$0xf0]  ;;  %v4792_v63 = vor.u32 %v6586_v54, %v4791_v53 }
 0x117   : > { %3747 = vmatpush.bf16.msrb.mxu2 %v6260_v5  ;;  %v4519_v0 = vld [vmem:[%s7144_s28 + $0x88] sm:$0xf]  ;;  %v6518_v4 = vld [vmem:[%s7144_s28 + $0x94] sm:$0xf0]  ;;  %v4920_v6 = vor.u32 %v6618_v58, %v4919_v57 }
 0x118   : > { %3760 = vmatpush.bf16.msrb.mxu3 %v6388_v9  ;;  %v4647_v5 = vld [vmem:[%s7144_s28 + $0x188] sm:$0xf]  ;;  %v6550_v7 = vld [vmem:[%s7144_s28 + $0x194] sm:$0xf0]  ;;  %v4520_v14 = vor.u32 %v6518_v4, %v4519_v0 }
 0x119   : > { %3722 = vmatpush.bf16.msrb.mxu0 %v5988_v18  ;;  %v4775_v8 = vld [vmem:[%s7144_s28 + $0x288] sm:$0xf]  ;;  %v6582_v9 = vld [vmem:[%s7144_s28 + $0x294] sm:$0xf0]  ;;  %v3516_v10 = vpop.f32.mrf.mxu0  ;;  %v4648_v16 = vor.u32 %v6550_v7, %v4647_v5 }
 0x11a   : > { %3735 = vmatpush.bf16.msrb.mxu1 %v6116_v26  ;;  %v4903_v11 = vld [vmem:[%s7144_s28 + $0x388] sm:$0xf]  ;;  %v6614_v12 = vld [vmem:[%s7144_s28 + $0x394] sm:$0xf0]  ;;  %v3517_v13 = vadd.f32 %v3516_v10, %v7683_v49  ;;  %v3529_v15 = vpop.f32.mrf.mxu1  ;;  %v4776_v17 = vor.u32 %v6582_v9, %v4775_v8 }
 0x11b   : > { %3748 = vmatpush.bf16.msrb.mxu2 %v6244_v28  ;;  %v4503_v18 = vld [vmem:[%s7144_s28 + $0x68] sm:$0xf]  ;;  %v6514_v19 = vld [vmem:[%s7144_s28 + $0x74] sm:$0xf0]  ;;  %v4904_v25 = vor.u32 %v6614_v12, %v4903_v11 }
 0x11c   : > { %3761 = vmatpush.bf16.msrb.mxu3 %v6372_v30  ;;  %3723 = vmatmul.bf16.vlgmr.msrb.gmra.mxu0 %v7031_v50  ;;  %v4631_v24 = vld [vmem:[%s7144_s28 + $0x168] sm:$0xf]  ;;  %v3530_v26 = vadd.f32 %v3529_v15, %v3517_v13  ;;  %v6546_v28 = vld [vmem:[%s7144_s28 + $0x174] sm:$0xf0] }
 0x11d   : > { %3767 = vmatpush.bf16.msra.mxu0 %v4568_v31  ;;  %3736 = vmatmul.bf16.vlgmr.msrb.gmra.mxu1 %v7033_v56  ;;  %v4759_v46 = vld [vmem:[%s7144_s28 + $0x268] sm:$0xf]  ;;  %v6578_v49 = vld [vmem:[%s7144_s28 + $0x274] sm:$0xf0]  ;;  %v4504_v31 = vor.u32 %v6514_v19, %v4503_v18 }
 0x11e   : > { %3780 = vmatpush.bf16.msra.mxu1 %v4696_v20  ;;  %3749 = vmatmul.bf16.vlgmr.msrb.gmra.mxu2 %v7032_v55  ;;  %v4887_v29 = vld [vmem:[%s7144_s28 + $0x368] sm:$0xf]  ;;  %v6610_v30 = vld [vmem:[%s7144_s28 + $0x374] sm:$0xf0]  ;;  %v4632_v20 = vor.u32 %v6546_v28, %v4631_v24 }
 0x11f   : > { %3793 = vmatpush.bf16.msra.mxu2 %v4824_v32  ;;  %3762 = vmatmul.bf16.vlgmr.msrb.gmra.mxu3 %v7034_v59  ;;  %v4760_v32 = vor.u32 %v6578_v49, %v4759_v46  ;;  %v4487_v33 = vld [vmem:[%s7144_s28 + $0x48] sm:$0xf]  ;;  %v6510_v34 = vld [vmem:[%s7144_s28 + $0x54] sm:$0xf0] }
 0x120   : > { %3806 = vmatpush.bf16.msra.mxu3 %v4952_v36  ;;  %v4615_v35 = vld [vmem:[%s7144_s28 + $0x148] sm:$0xf]  ;;  %v4888_v36 = vor.u32 %v6610_v30, %v4887_v29  ;;  %v6542_v38 = vld [vmem:[%s7144_s28 + $0x154] sm:$0xf0]  ;;  %v4488_v47 = vor.u32 %v6510_v34, %v4487_v33 }
 0x121   : > { %3768 = vmatpush.bf16.msra.mxu0 %v4552_v42  ;;  %v3542_v37 = vpop.f32.mrf.mxu2  ;;  %v4743_v39 = vld [vmem:[%s7144_s28 + $0x248] sm:$0xf]  ;;  %v6574_v40 = vld [vmem:[%s7144_s28 + $0x254] sm:$0xf0]  ;;  %v3518_v45 = vpop.f32.mrf.mxu0 }
 0x122   : > { %3781 = vmatpush.bf16.msra.mxu1 %v4680_v43  ;;  %v3543_v41 = vadd.f32 %v3542_v37, %v3530_v26  ;;  %v3555_v42 = vpop.f32.mrf.mxu3  ;;  %v4871_v43 = vld [vmem:[%s7144_s28 + $0x348] sm:$0xf]  ;;  %v3531_v48 = vpop.f32.mrf.mxu1  ;;  %v4744_v52 = vor.u32 %v6574_v40, %v4743_v39  ;;  %v6506_v54 = vld [vmem:[%s7144_s28 + $0x34] sm:$0xf0] }
 0x123   : > { %3794 = vmatpush.bf16.msra.mxu2 %v4808_v44  ;;  %v6606_v44 = vld [vmem:[%s7144_s28 + $0x354] sm:$0xf0]  ;;  %v4471_v53 = vld [vmem:[%s7144_s28 + $0x28] sm:$0xf] }
 0x124   : > { %3807 = vmatpush.bf16.msra.mxu3 %v4936_v51  ;;  %v7750_v50 = vadd.f32 %v3555_v42, %v3543_v41  ;;  %v4616_v51 = vor.u32 %v6542_v38, %v4615_v35  ;;  %v4599_v55 = vld [vmem:[%s7144_s28 + $0x128] sm:$0xf]  ;;  %v4872_v56 = vor.u32 %v6606_v44, %v4871_v43  ;;  %v6538_v57 = vld [vmem:[%s7144_s28 + $0x134] sm:$0xf0] }
 0x125   : > { %3769 = vmatpush.bf16.msra.mxu0 %v4536_v60  ;;  %v4727_v58 = vld [vmem:[%s7144_s28 + $0x228] sm:$0xf]  ;;  %v6570_v59 = vld [vmem:[%s7144_s28 + $0x234] sm:$0xf0]  ;;  %v4600_v5 = vor.u32 %v6538_v57, %v4599_v55 }
 0x126   : > { %3782 = vmatpush.bf16.msra.mxu1 %v4664_v62  ;;  %v4855_v60 = vld [vmem:[%s7144_s28 + $0x328] sm:$0xf]  ;;  %v6602_v62 = vld [vmem:[%s7144_s28 + $0x334] sm:$0xf0] }
 0x127   : > { %3795 = vmatpush.bf16.msra.mxu2 %v4792_v63  ;;  %v4472_v63 = vor.u32 %v6506_v54, %v4471_v53  ;;  %v4455_v0 = vld [vmem:[%s7144_s28 + $0x8] sm:$0xf]  ;;  %v6502_v4 = vld [vmem:[%s7144_s28 + $0x14] sm:$0xf0]  ;;  %v4856_v10 = vor.u32 %v6602_v62, %v4855_v60 }
 0x128   : > { %3808 = vmatpush.bf16.msra.mxu3 %v4920_v6  ;;  %v4728_v6 = vor.u32 %v6570_v59, %v4727_v58  ;;  %v4583_v7 = vld [vmem:[%s7144_s28 + $0x108] sm:$0xf]  ;;  %v6534_v8 = vld [vmem:[%s7144_s28 + $0x114] sm:$0xf0]  ;;  %v4456_v19 = vor.u32 %v6502_v4, %v4455_v0 }
 0x129   : > { %3770 = vmatpush.bf16.msra.mxu0 %v4520_v14  ;;  %v4711_v9 = vld [vmem:[%s7144_s28 + $0x208] sm:$0xf]  ;;  %v6566_v11 = vld [vmem:[%s7144_s28 + $0x214] sm:$0xf0]  ;;  %v3544_v14 = vpop.f32.mrf.mxu2  ;;  %v4584_v28 = vor.u32 %v6534_v8, %v4583_v7 }
 0x12a   : > { %3783 = vmatpush.bf16.msra.mxu1 %v4648_v16  ;;  %v4839_v12 = vld [vmem:[%s7144_s28 + $0x308] sm:$0xf]  ;;  %v6598_v13 = vld [vmem:[%s7144_s28 + $0x314] sm:$0xf0]  ;;  %v3557_v18 = vpop.f32.mrf.mxu3  ;;  %v4712_v46 = vor.u32 %v6566_v11, %v4711_v9 }
 0x12b   : > { %3796 = vmatpush.bf16.msra.mxu2 %v4776_v17  ;;  %v5079_v15 = vld [vmem:[%s7144_s28 + $0x4e8] sm:$0xf]  ;;  %v6658_v16 = vld [vmem:[%s7144_s28 + $0x4f4] sm:$0xf0]  ;;  %v4840_v30 = vor.u32 %v6598_v13, %v4839_v12 }
 0x12c   : > { %3809 = vmatpush.bf16.msra.mxu3 %v4904_v25  ;;  %v5207_v17 = vld [vmem:[%s7144_s28 + $0x5e8] sm:$0xf]  ;;  %v6690_v24 = vld [vmem:[%s7144_s28 + $0x5f4] sm:$0xf0] }
 0x12d   : > { %3771 = vmatpush.bf16.msra.mxu0 %v4504_v31  ;;  %v5335_v25 = vld [vmem:[%s7144_s28 + $0x6e8] sm:$0xf]  ;;  %v6722_v26 = vld [vmem:[%s7144_s28 + $0x6f4] sm:$0xf0]  ;;  %v5080_v31 = vor.u32 %v6658_v16, %v5079_v15 }
 0x12e   : > { %3784 = vmatpush.bf16.msra.mxu1 %v4632_v20  ;;  %v5463_v49 = vld [vmem:[%s7144_s28 + $0x7e8] sm:$0xf]  ;;  %v6754_v29 = vld [vmem:[%s7144_s28 + $0x7f4] sm:$0xf0]  ;;  %v5208_v20 = vor.u32 %v6690_v24, %v5207_v17 }
 0x12f   : > { %3797 = vmatpush.bf16.msra.mxu2 %v4760_v32  ;;  %v5336_v32 = vor.u32 %v6722_v26, %v5335_v25  ;;  %v5063_v33 = vld [vmem:[%s7144_s28 + $0x4c8] sm:$0xf]  ;;  %v6654_v34 = vld [vmem:[%s7144_s28 + $0x4d4] sm:$0xf0] }
 0x130   : > { %3810 = vmatpush.bf16.msra.mxu3 %v4888_v36  ;;  %v5191_v35 = vld [vmem:[%s7144_s28 + $0x5c8] sm:$0xf]  ;;  %v5464_v36 = vor.u32 %v6754_v29, %v5463_v49  ;;  %v6686_v37 = vld [vmem:[%s7144_s28 + $0x5d4] sm:$0xf0]  ;;  %v5064_v42 = vor.u32 %v6654_v34, %v5063_v33 }
 0x131   : > { %3772 = vmatpush.bf16.msra.mxu0 %v4488_v47  ;;  %v5319_v38 = vld [vmem:[%s7144_s28 + $0x6c8] sm:$0xf]  ;;  %v6718_v39 = vld [vmem:[%s7144_s28 + $0x6d4] sm:$0xf0]  ;;  %v5192_v43 = vor.u32 %v6686_v37, %v5191_v35 }
 0x132   : > { %3785 = vmatpush.bf16.msra.mxu1 %v4616_v51  ;;  %v5447_v40 = vld [vmem:[%s7144_s28 + $0x7c8] sm:$0xf]  ;;  %v6750_v41 = vld [vmem:[%s7144_s28 + $0x7d4] sm:$0xf0]  ;;  %v5320_v44 = vor.u32 %v6718_v39, %v5319_v38 }
 0x133   : > { %3798 = vmatpush.bf16.msra.mxu2 %v4744_v52  ;;  %v5047_v45 = vld [vmem:[%s7144_s28 + $0x4a8] sm:$0xf]  ;;  %v6650_v47 = vld [vmem:[%s7144_s28 + $0x4b4] sm:$0xf0]  ;;  %v5448_v51 = vor.u32 %v6750_v41, %v5447_v40 }
 0x134   : > { %3811 = vmatpush.bf16.msra.mxu3 %v4872_v56  ;;  %v5175_v48 = vld [vmem:[%s7144_s28 + $0x5a8] sm:$0xf]  ;;  %v6682_v52 = vld [vmem:[%s7144_s28 + $0x5b4] sm:$0xf0]  ;;  %v5048_v57 = vor.u32 %v6650_v47, %v5047_v45 }
 0x135   : > { %3773 = vmatpush.bf16.msra.mxu0 %v4472_v63  ;;  %v5303_v53 = vld [vmem:[%s7144_s28 + $0x6a8] sm:$0xf]  ;;  %v6714_v54 = vld [vmem:[%s7144_s28 + $0x6b4] sm:$0xf0]  ;;  %v5176_v58 = vor.u32 %v6682_v52, %v5175_v48 }
 0x136   : > { %3786 = vmatpush.bf16.msra.mxu1 %v4600_v5  ;;  %v5431_v55 = vld [vmem:[%s7144_s28 + $0x7a8] sm:$0xf]  ;;  %v6746_v56 = vld [vmem:[%s7144_s28 + $0x7b4] sm:$0xf0]  ;;  %v5304_v59 = vor.u32 %v6714_v54, %v5303_v53 }
 0x137   : > { %3799 = vmatpush.bf16.msra.mxu2 %v4728_v6  ;;  %v5031_v60 = vld [vmem:[%s7144_s28 + $0x488] sm:$0xf]  ;;  %v6646_v62 = vld [vmem:[%s7144_s28 + $0x494] sm:$0xf0]  ;;  %v5432_v0 = vor.u32 %v6746_v56, %v5431_v55 }
 0x138   : > { %3812 = vmatpush.bf16.msra.mxu3 %v4856_v10  ;;  %v5159_v63 = vld [vmem:[%s7144_s28 + $0x588] sm:$0xf]  ;;  %v6678_v4 = vld [vmem:[%s7144_s28 + $0x594] sm:$0xf0]  ;;  %v5032_v9 = vor.u32 %v6646_v62, %v5031_v60 }
 0x139   : > { %3774 = vmatpush.bf16.msra.mxu0 %v4456_v19  ;;  %v5287_v5 = vld [vmem:[%s7144_s28 + $0x688] sm:$0xf]  ;;  %v6710_v6 = vld [vmem:[%s7144_s28 + $0x694] sm:$0xf0]  ;;  %v3568_v10 = vpop.f32.mrf.mxu0  ;;  %v5160_v11 = vor.u32 %v6678_v4, %v5159_v63 }
 0x13a   : > { %3787 = vmatpush.bf16.msra.mxu1 %v4584_v28  ;;  %v5415_v7 = vld [vmem:[%s7144_s28 + $0x788] sm:$0xf]  ;;  %v6742_v8 = vld [vmem:[%s7144_s28 + $0x794] sm:$0xf0]  ;;  %v5288_v12 = vor.u32 %v6710_v6, %v5287_v5  ;;  %v3581_v16 = vpop.f32.mrf.mxu1 }
 0x13b   : > { %3800 = vmatpush.bf16.msra.mxu2 %v4712_v46  ;;  %v5015_v13 = vld [vmem:[%s7144_s28 + $0x468] sm:$0xf]  ;;  %v6642_v14 = vld [vmem:[%s7144_s28 + $0x474] sm:$0xf0]  ;;  %v5416_v17 = vor.u32 %v6742_v8, %v5415_v7  ;;  %v3582_v25 = vadd.f32 %v3581_v16, %v3568_v10 }
 0x13c   : > { %3813 = vmatpush.bf16.msra.mxu3 %v4840_v30  ;;  %3775 = vmatmul.bf16.vlgmr.msra.gmra.mxu0 %v7250_v22  ;;  %v5143_v15 = vld [vmem:[%s7144_s28 + $0x568] sm:$0xf]  ;;  %v6674_v18 = vld [vmem:[%s7144_s28 + $0x574] sm:$0xf0]  ;;  %v5016_v46 = vor.u32 %v6642_v14, %v5015_v13 }
 0x13d   : > { %3819 = vmatpush.bf16.msrb.mxu0 %v5080_v31  ;;  %3788 = vmatmul.bf16.vlgmr.msra.gmra.mxu1 %v7257_v27  ;;  %v5271_v19 = vld [vmem:[%s7144_s28 + $0x668] sm:$0xf]  ;;  %v6706_v24 = vld [vmem:[%s7144_s28 + $0x674] sm:$0xf0]  ;;  %v5144_v49 = vor.u32 %v6674_v18, %v5143_v15 }
 0x13e   : > { %3832 = vmatpush.bf16.msrb.mxu1 %v5208_v20  ;;  %3801 = vmatmul.bf16.vlgmr.msra.gmra.mxu2 %v7248_v21  ;;  %v5399_v26 = vld [vmem:[%s7144_s28 + $0x768] sm:$0xf]  ;;  %v6738_v28 = vld [vmem:[%s7144_s28 + $0x774] sm:$0xf0]  ;;  %v5272_v29 = vor.u32 %v6706_v24, %v5271_v19 }
 0x13f   : > { %3845 = vmatpush.bf16.msrb.mxu2 %v5336_v32  ;;  %3814 = vmatmul.bf16.vlgmr.msra.gmra.mxu3 %v7252_v23  ;;  %v4999_v30 = vld [vmem:[%s7144_s28 + $0x448] sm:$0xf]  ;;  %v6638_v31 = vld [vmem:[%s7144_s28 + $0x454] sm:$0xf0]  ;;  %v5400_v33 = vor.u32 %v6738_v28, %v5399_v26 }
 0x140   : > { %3858 = vmatpush.bf16.msrb.mxu3 %v5464_v36  ;;  %v5127_v20 = vld [vmem:[%s7144_s28 + $0x548] sm:$0xf]  ;;  %v6670_v34 = vld [vmem:[%s7144_s28 + $0x554] sm:$0xf0]  ;;  %v5000_v41 = vor.u32 %v6638_v31, %v4999_v30 }
 0x141   : > { %3820 = vmatpush.bf16.msrb.mxu0 %v5064_v42  ;;  %v3594_v32 = vpop.f32.mrf.mxu2  ;;  %v5255_v35 = vld [vmem:[%s7144_s28 + $0x648] sm:$0xf]  ;;  %v6702_v36 = vld [vmem:[%s7144_s28 + $0x654] sm:$0xf0] }
 0x142   : > { %3833 = vmatpush.bf16.msrb.mxu1 %v5192_v43  ;;  %v3595_v37 = vadd.f32 %v3594_v32, %v3582_v25  ;;  %v3607_v38 = vpop.f32.mrf.mxu3  ;;  %v5383_v39 = vld [vmem:[%s7144_s28 + $0x748] sm:$0xf]  ;;  %v6734_v40 = vld [vmem:[%s7144_s28 + $0x754] sm:$0xf0]  ;;  %v3570_v43 = vpop.f32.mrf.mxu0  ;;  %v5256_v45 = vor.u32 %v6702_v36, %v5255_v35 }
 0x143   : > { %3846 = vmatpush.bf16.msrb.mxu2 %v5320_v44  ;;  %v5128_v44 = vor.u32 %v6670_v34, %v5127_v20  ;;  %v4983_v47 = vld [vmem:[%s7144_s28 + $0x428] sm:$0xf]  ;;  %v6634_v48 = vld [vmem:[%s7144_s28 + $0x434] sm:$0xf0]  ;;  %v3583_v52 = vpop.f32.mrf.mxu1  ;;  %v5384_v53 = vor.u32 %v6734_v40, %v5383_v39 }
 0x144   : > { %3859 = vmatpush.bf16.msrb.mxu3 %v5448_v51  ;;  %v7820_v42 = vadd.f32 %v3607_v38, %v3595_v37  ;;  %v5111_v51 = vld [vmem:[%s7144_s28 + $0x528] sm:$0xf]  ;;  %v6666_v54 = vld [vmem:[%s7144_s28 + $0x534] sm:$0xf0] }
 0x145   : > { %3821 = vmatpush.bf16.msrb.mxu0 %v5048_v57  ;;  %v5239_v55 = vld [vmem:[%s7144_s28 + $0x628] sm:$0xf]  ;;  %v6698_v56 = vld [vmem:[%s7144_s28 + $0x634] sm:$0xf0]  ;;  %v5112_v63 = vor.u32 %v6666_v54, %v5111_v51 }
 0x146   : > { %3834 = vmatpush.bf16.msrb.mxu1 %v5176_v58  ;;  %v5367_v57 = vld [vmem:[%s7144_s28 + $0x728] sm:$0xf]  ;;  %v6730_v58 = vld [vmem:[%s7144_s28 + $0x734] sm:$0xf0] }
 0x147   : > { %3847 = vmatpush.bf16.msrb.mxu2 %v5304_v59  ;;  %v4984_v59 = vor.u32 %v6634_v48, %v4983_v47  ;;  %v4967_v60 = vld [vmem:[%s7144_s28 + $0x408] sm:$0xf]  ;;  %v6630_v62 = vld [vmem:[%s7144_s28 + $0x414] sm:$0xf0]  ;;  %v5368_v8 = vor.u32 %v6730_v58, %v5367_v57 }
 0x148   : > { %3860 = vmatpush.bf16.msrb.mxu3 %v5432_v0  ;;  %v5240_v0 = vor.u32 %v6698_v56, %v5239_v55  ;;  %v5095_v4 = vld [vmem:[%s7144_s28 + $0x508] sm:$0xf]  ;;  %v6662_v5 = vld [vmem:[%s7144_s28 + $0x514] sm:$0xf0]  ;;  %v4968_v16 = vor.u32 %v6630_v62, %v4967_v60 }
 0x149   : > { %3822 = vmatpush.bf16.msrb.mxu0 %v5032_v9  ;;  %v5223_v6 = vld [vmem:[%s7144_s28 + $0x608] sm:$0xf]  ;;  %v3596_v7 = vpop.f32.mrf.mxu2  ;;  %v6694_v9 = vld [vmem:[%s7144_s28 + $0x614] sm:$0xf0]  ;;  %v5096_v24 = vor.u32 %v6662_v5, %v5095_v4 }
 0x14a   : > { %3835 = vmatpush.bf16.msrb.mxu1 %v5160_v11  ;;  %v5351_v10 = vld [vmem:[%s7144_s28 + $0x708] sm:$0xf]  ;;  %v6726_v11 = vld [vmem:[%s7144_s28 + $0x714] sm:$0xf0]  ;;  %v5224_v25 = vor.u32 %v6694_v9, %v5223_v6 }
 0x14b   : > { %3848 = vmatpush.bf16.msrb.mxu2 %v5288_v12  ;;  %v3609_v12 = vpop.f32.mrf.mxu3  ;;  %v5591_v13 = vld [vmem:[%s7144_s28 + $0x8e8] sm:$0xf]  ;;  %v6786_v14 = vld [vmem:[%s7144_s28 + $0x8f4] sm:$0xf0] }
 0x14c   : > { %3861 = vmatpush.bf16.msrb.mxu3 %v5416_v17  ;;  %v5719_v15 = vld [vmem:[%s7144_s28 + $0x9e8] sm:$0xf]  ;;  %v6818_v17 = vld [vmem:[%s7144_s28 + $0x9f4] sm:$0xf0] }
 0x14d   : > { %3823 = vmatpush.bf16.msrb.mxu0 %v5016_v46  ;;  %v5847_v18 = vld [vmem:[%s7144_s28 + $0xae8] sm:$0xf]  ;;  %v6850_v19 = vld [vmem:[%s7144_s28 + $0xaf4] sm:$0xf0]  ;;  %v5352_v46 = vor.u32 %v6726_v11, %v5351_v10 }
 0x14e   : > { %3836 = vmatpush.bf16.msrb.mxu1 %v5144_v49  ;;  %v5975_v26 = vld [vmem:[%s7144_s28 + $0xbe8] sm:$0xf]  ;;  %v6882_v28 = vld [vmem:[%s7144_s28 + $0xbf4] sm:$0xf0]  ;;  %v5592_v49 = vor.u32 %v6786_v14, %v5591_v13  ;;  %v5848_v30 = vor.u32 %v6850_v19, %v5847_v18 }
 0x14f   : > { %3849 = vmatpush.bf16.msrb.mxu2 %v5272_v29  ;;  %v5720_v29 = vor.u32 %v6818_v17, %v5719_v15  ;;  %v5575_v31 = vld [vmem:[%s7144_s28 + $0x8c8] sm:$0xf]  ;;  %v6782_v20 = vld [vmem:[%s7144_s28 + $0x8d4] sm:$0xf0] }
 0x150   : > { %3862 = vmatpush.bf16.msrb.mxu3 %v5400_v33  ;;  %v5703_v32 = vld [vmem:[%s7144_s28 + $0x9c8] sm:$0xf]  ;;  %v5976_v33 = vor.u32 %v6882_v28, %v5975_v26  ;;  %v6814_v34 = vld [vmem:[%s7144_s28 + $0x9d4] sm:$0xf0]  ;;  %v5576_v39 = vor.u32 %v6782_v20, %v5575_v31 }
 0x151   : > { %3824 = vmatpush.bf16.msrb.mxu0 %v5000_v41  ;;  %v5831_v35 = vld [vmem:[%s7144_s28 + $0xac8] sm:$0xf]  ;;  %v6846_v36 = vld [vmem:[%s7144_s28 + $0xad4] sm:$0xf0]  ;;  %v5704_v40 = vor.u32 %v6814_v34, %v5703_v32 }
 0x152   : > { %3837 = vmatpush.bf16.msrb.mxu1 %v5128_v44  ;;  %v5959_v37 = vld [vmem:[%s7144_s28 + $0xbc8] sm:$0xf]  ;;  %v6878_v38 = vld [vmem:[%s7144_s28 + $0xbd4] sm:$0xf0]  ;;  %v5832_v41 = vor.u32 %v6846_v36, %v5831_v35 }
 0x153   : > { %3850 = vmatpush.bf16.msrb.mxu2 %v5256_v45  ;;  %v5559_v43 = vld [vmem:[%s7144_s28 + $0x8a8] sm:$0xf]  ;;  %v6778_v44 = vld [vmem:[%s7144_s28 + $0x8b4] sm:$0xf0]  ;;  %v5960_v47 = vor.u32 %v6878_v38, %v5959_v37 }
 0x154   : > { %3863 = vmatpush.bf16.msrb.mxu3 %v5384_v53  ;;  %v5687_v45 = vld [vmem:[%s7144_s28 + $0x9a8] sm:$0xf]  ;;  %v6810_v48 = vld [vmem:[%s7144_s28 + $0x9b4] sm:$0xf0]  ;;  %v5560_v55 = vor.u32 %v6778_v44, %v5559_v43 }
 0x155   : > { %3825 = vmatpush.bf16.msrb.mxu0 %v4984_v59  ;;  %v5815_v51 = vld [vmem:[%s7144_s28 + $0xaa8] sm:$0xf]  ;;  %v6842_v52 = vld [vmem:[%s7144_s28 + $0xab4] sm:$0xf0]  ;;  %v5688_v56 = vor.u32 %v6810_v48, %v5687_v45 }
 0x156   : > { %3838 = vmatpush.bf16.msrb.mxu1 %v5112_v63  ;;  %v5943_v53 = vld [vmem:[%s7144_s28 + $0xba8] sm:$0xf]  ;;  %v6874_v54 = vld [vmem:[%s7144_s28 + $0xbb4] sm:$0xf0]  ;;  %v5816_v57 = vor.u32 %v6842_v52, %v5815_v51 }
 0x157   : > { %3851 = vmatpush.bf16.msrb.mxu2 %v5240_v0  ;;  %v5543_v58 = vld [vmem:[%s7144_s28 + $0x888] sm:$0xf]  ;;  %v6774_v59 = vld [vmem:[%s7144_s28 + $0x894] sm:$0xf0]  ;;  %v5944_v62 = vor.u32 %v6874_v54, %v5943_v53 }
 0x158   : > { %3864 = vmatpush.bf16.msrb.mxu3 %v5368_v8  ;;  %v5671_v60 = vld [vmem:[%s7144_s28 + $0x988] sm:$0xf]  ;;  %v6806_v63 = vld [vmem:[%s7144_s28 + $0x994] sm:$0xf0]  ;;  %v5544_v7 = vor.u32 %v6774_v59, %v5543_v58 }
 0x159   : > { %3826 = vmatpush.bf16.msrb.mxu0 %v4968_v16  ;;  %v5799_v0 = vld [vmem:[%s7144_s28 + $0xa88] sm:$0xf]  ;;  %v6838_v4 = vld [vmem:[%s7144_s28 + $0xa94] sm:$0xf0]  ;;  %v3620_v8 = vpop.f32.mrf.mxu0  ;;  %v5672_v9 = vor.u32 %v6806_v63, %v5671_v60 }
 0x15a   : > { %3839 = vmatpush.bf16.msrb.mxu1 %v5096_v24  ;;  %v5927_v5 = vld [vmem:[%s7144_s28 + $0xb88] sm:$0xf]  ;;  %v6870_v6 = vld [vmem:[%s7144_s28 + $0xb94] sm:$0xf0]  ;;  %v5800_v10 = vor.u32 %v6838_v4, %v5799_v0  ;;  %v3621_v14 = vadd.f32 %v3620_v8, %v7820_v42  ;;  %v3633_v15 = vpop.f32.mrf.mxu1 }
 0x15b   : > { %3852 = vmatpush.bf16.msrb.mxu2 %v5224_v25  ;;  %v5527_v11 = vld [vmem:[%s7144_s28 + $0x868] sm:$0xf]  ;;  %v6770_v12 = vld [vmem:[%s7144_s28 + $0x874] sm:$0xf0]  ;;  %v5928_v16 = vor.u32 %v6870_v6, %v5927_v5 }
 0x15c   : > { %3865 = vmatpush.bf16.msrb.mxu3 %v5352_v46  ;;  %3827 = vmatmul.bf16.vlgmr.msrb.gmra.mxu0 %v7289_v1  ;;  %v5655_v13 = vld [vmem:[%s7144_s28 + $0x968] sm:$0xf]  ;;  %v6802_v17 = vld [vmem:[%s7144_s28 + $0x974] sm:$0xf0]  ;;  %v3634_v26 = vadd.f32 %v3633_v15, %v3621_v14  ;;  %v5528_v28 = vor.u32 %v6770_v12, %v5527_v11 }
 0x15d   : > { %3871 = vmatpush.bf16.msra.mxu0 %v5592_v49  ;;  %3840 = vmatmul.bf16.vlgmr.msrb.gmra.mxu1 %v7293_v3  ;;  %v5783_v18 = vld [vmem:[%s7144_s28 + $0xa68] sm:$0xf]  ;;  %v6834_v19 = vld [vmem:[%s7144_s28 + $0xa74] sm:$0xf0]  ;;  %v5656_v42 = vor.u32 %v6802_v17, %v5655_v13 }
 0x15e   : > { %3884 = vmatpush.bf16.msra.mxu1 %v5720_v29  ;;  %3853 = vmatmul.bf16.vlgmr.msrb.gmra.mxu2 %v7286_v61  ;;  %v5911_v24 = vld [vmem:[%s7144_s28 + $0xb68] sm:$0xf]  ;;  %v6866_v25 = vld [vmem:[%s7144_s28 + $0xb74] sm:$0xf0]  ;;  %v5784_v46 = vor.u32 %v6834_v19, %v5783_v18 }
 0x15f   : > { %3897 = vmatpush.bf16.msra.mxu2 %v5848_v30  ;;  %3866 = vmatmul.bf16.vlgmr.msrb.gmra.mxu3 %v7291_v2  ;;  %v5511_v49 = vld [vmem:[%s7144_s28 + $0x848] sm:$0xf]  ;;  %v6766_v29 = vld [vmem:[%s7144_s28 + $0x854] sm:$0xf0]  ;;  %v5912_v20 = vor.u32 %v6866_v25, %v5911_v24 }
 0x160   : > { %3910 = vmatpush.bf16.msra.mxu3 %v5976_v33  ;;  %v5639_v30 = vld [vmem:[%s7144_s28 + $0x948] sm:$0xf]  ;;  %v6798_v32 = vld [vmem:[%s7144_s28 + $0x954] sm:$0xf0] }
 0x161   : > { %3872 = vmatpush.bf16.msra.mxu0 %v5576_v39  ;;  %v3646_v31 = vpop.f32.mrf.mxu2  ;;  %v5767_v33 = vld [vmem:[%s7144_s28 + $0xa48] sm:$0xf]  ;;  %v6830_v34 = vld [vmem:[%s7144_s28 + $0xa54] sm:$0xf0]  ;;  %v5512_v39 = vor.u32 %v6766_v29, %v5511_v49  ;;  %v5640_v43 = vor.u32 %v6798_v32, %v5639_v30 }
 0x162   : > { %3885 = vmatpush.bf16.msra.mxu1 %v5704_v40  ;;  %v3647_v35 = vadd.f32 %v3646_v31, %v3634_v26  ;;  %v3659_v36 = vpop.f32.mrf.mxu3  ;;  %v5895_v37 = vld [vmem:[%s7144_s28 + $0xb48] sm:$0xf]  ;;  %v6862_v38 = vld [vmem:[%s7144_s28 + $0xb54] sm:$0xf0]  ;;  %v5768_v44 = vor.u32 %v6830_v34, %v5767_v33  ;;  %v3635_v51 = vpop.f32.mrf.mxu1 }
 0x163   : > { %3898 = vmatpush.bf16.msra.mxu2 %v5832_v41  ;;  %v3622_v41 = vpop.f32.mrf.mxu0  ;;  %v5495_v45 = vld [vmem:[%s7144_s28 + $0x828] sm:$0xf]  ;;  %v5896_v52 = vor.u32 %v6862_v38, %v5895_v37  ;;  %v6794_v53 = vld [vmem:[%s7144_s28 + $0x934] sm:$0xf0] }
 0x164   : > { %3911 = vmatpush.bf16.msra.mxu3 %v5960_v47  ;;  %v7891_v40 = vadd.f32 %v3659_v36, %v3647_v35  ;;  %v6762_v47 = vld [vmem:[%s7144_s28 + $0x834] sm:$0xf0]  ;;  %v5623_v48 = vld [vmem:[%s7144_s28 + $0x928] sm:$0xf] }
 0x165   : > { %3873 = vmatpush.bf16.msra.mxu0 %v5560_v55  ;;  %v5751_v54 = vld [vmem:[%s7144_s28 + $0xa28] sm:$0xf]  ;;  %v6826_v55 = vld [vmem:[%s7144_s28 + $0xa34] sm:$0xf0]  ;;  %v5496_v58 = vor.u32 %v6762_v47, %v5495_v45  ;;  %v7035_v45 = vld [vmem:[#allocation1] sm:$0xff] }
 0x166   : > { %3886 = vmatpush.bf16.msra.mxu1 %v5688_v56  ;;  %v5879_v56 = vld [vmem:[%s7144_s28 + $0xb28] sm:$0xf]  ;;  %v6758_v60 = vld [vmem:[%s7144_s28 + $0x814] sm:$0xf0]  ;;  %v5752_v63 = vor.u32 %v6826_v55, %v5751_v54 }
 0x167   : > { %3899 = vmatpush.bf16.msra.mxu2 %v5816_v57  ;;  %v6858_v57 = vld [vmem:[%s7144_s28 + $0xb34] sm:$0xf0]  ;;  %v5479_v59 = vld [vmem:[%s7144_s28 + $0x808] sm:$0xf] }
 0x168   : > { %3912 = vmatpush.bf16.msra.mxu3 %v5944_v62  ;;  %v5624_v62 = vor.u32 %v6794_v53, %v5623_v48  ;;  %v5607_v0 = vld [vmem:[%s7144_s28 + $0x908] sm:$0xf]  ;;  %v6790_v4 = vld [vmem:[%s7144_s28 + $0x914] sm:$0xf0]  ;;  %v5480_v15 = vor.u32 %v6758_v60, %v5479_v59 }
 0x169   : > { %3874 = vmatpush.bf16.msra.mxu0 %v5544_v7  ;;  %v5735_v5 = vld [vmem:[%s7144_s28 + $0xa08] sm:$0xf]  ;;  %v3648_v6 = vpop.f32.mrf.mxu2  ;;  %v5880_v7 = vor.u32 %v6858_v57, %v5879_v56  ;;  %v6822_v8 = vld [vmem:[%s7144_s28 + $0xa14] sm:$0xf0]  ;;  %v5608_v19 = vor.u32 %v6790_v4, %v5607_v0 }
 0x16a   : > { %3887 = vmatpush.bf16.msra.mxu1 %v5672_v9  ;;  %v5863_v9 = vld [vmem:[%s7144_s28 + $0xb08] sm:$0xf]  ;;  %v3661_v11 = vpop.f32.mrf.mxu3  ;;  %v6914_v13 = vld [vmem:[%s7144_s28 + $0xcf4] sm:$0xf0]  ;;  %v5736_v24 = vor.u32 %v6822_v8, %v5735_v5 }
 0x16b   : > { %3900 = vmatpush.bf16.msra.mxu2 %v5800_v10  ;;  %v6854_v10 = vld [vmem:[%s7144_s28 + $0xb14] sm:$0xf0]  ;;  %v6103_v12 = vld [vmem:[%s7144_s28 + $0xce8] sm:$0xf] }
 0x16c   : > { %3913 = vmatpush.bf16.msra.mxu3 %v5928_v16  ;;  %v6231_v14 = vld [vmem:[%s7144_s28 + $0xde8] sm:$0xf]  ;;  %v6946_v16 = vld [vmem:[%s7144_s28 + $0xdf4] sm:$0xf0] }
 0x16d   : > { %3875 = vmatpush.bf16.msra.mxu0 %v5528_v28  ;;  %v6359_v17 = vld [vmem:[%s7144_s28 + $0xee8] sm:$0xf]  ;;  %v6978_v18 = vld [vmem:[%s7144_s28 + $0xef4] sm:$0xf0]  ;;  %v5864_v28 = vor.u32 %v6854_v10, %v5863_v9 }
 0x16e   : > { %3888 = vmatpush.bf16.msra.mxu1 %v5656_v42  ;;  %v6487_v25 = vld [vmem:[%s7144_s28 + $0xfe8] sm:$0xf]  ;;  %v7010_v26 = vld [vmem:[%s7144_s28 + $0xff4] sm:$0xf0]  ;;  %v6104_v42 = vor.u32 %v6914_v13, %v6103_v12  ;;  %v6360_v49 = vor.u32 %v6978_v18, %v6359_v17 }
 0x16f   : > { %3901 = vmatpush.bf16.msra.mxu2 %v5784_v46  ;;  %v6232_v46 = vor.u32 %v6946_v16, %v6231_v14  ;;  %v6087_v29 = vld [vmem:[%s7144_s28 + $0xcc8] sm:$0xf]  ;;  %v6910_v30 = vld [vmem:[%s7144_s28 + $0xcd4] sm:$0xf0] }
 0x170   : > { %3914 = vmatpush.bf16.msra.mxu3 %v5912_v20  ;;  %v6215_v31 = vld [vmem:[%s7144_s28 + $0xdc8] sm:$0xf]  ;;  %v6488_v20 = vor.u32 %v7010_v26, %v6487_v25  ;;  %v6942_v32 = vld [vmem:[%s7144_s28 + $0xdd4] sm:$0xf0]  ;;  %v6088_v37 = vor.u32 %v6910_v30, %v6087_v29 }
 0x171   : > { %3876 = vmatpush.bf16.msra.mxu0 %v5512_v39  ;;  %v6343_v33 = vld [vmem:[%s7144_s28 + $0xec8] sm:$0xf]  ;;  %v6974_v34 = vld [vmem:[%s7144_s28 + $0xed4] sm:$0xf0]  ;;  %v6216_v38 = vor.u32 %v6942_v32, %v6215_v31 }
 0x172   : > { %3889 = vmatpush.bf16.msra.mxu1 %v5640_v43  ;;  %v6471_v35 = vld [vmem:[%s7144_s28 + $0xfc8] sm:$0xf]  ;;  %v7006_v36 = vld [vmem:[%s7144_s28 + $0xfd4] sm:$0xf0]  ;;  %v6344_v39 = vor.u32 %v6974_v34, %v6343_v33 }
 0x173   : > { %3902 = vmatpush.bf16.msra.mxu2 %v5768_v44  ;;  %v6071_v41 = vld [vmem:[%s7144_s28 + $0xca8] sm:$0xf]  ;;  %v6906_v43 = vld [vmem:[%s7144_s28 + $0xcb4] sm:$0xf0]  ;;  %v6472_v47 = vor.u32 %v7006_v36, %v6471_v35 }
 0x174   : > { %3915 = vmatpush.bf16.msra.mxu3 %v5896_v52  ;;  %v6199_v44 = vld [vmem:[%s7144_s28 + $0xda8] sm:$0xf]  ;;  %v6938_v48 = vld [vmem:[%s7144_s28 + $0xdb4] sm:$0xf0] }
 0x175   : > { %3877 = vmatpush.bf16.msra.mxu0 %v5496_v58  ;;  %v6327_v51 = vld [vmem:[%s7144_s28 + $0xea8] sm:$0xf]  ;;  %v6970_v52 = vld [vmem:[%s7144_s28 + $0xeb4] sm:$0xf0]  ;;  %v6072_v58 = vor.u32 %v6906_v43, %v6071_v41  ;;  %v6200_v59 = vor.u32 %v6938_v48, %v6199_v44 }
 0x176   : > { %3890 = vmatpush.bf16.msra.mxu1 %v5624_v62  ;;  %v7036_v53 = vld [vmem:[#allocation1 + $0x12] sm:$0xff]  ;;  %v7037_v54 = vld [vmem:[#allocation1 + $0x9] sm:$0xff]  ;;  %v7038_v57 = vld [vmem:[#allocation1 + $0x1b] sm:$0xff]  ;;  %v6328_v60 = vor.u32 %v6970_v52, %v6327_v51 }
 0x177   : > { %3903 = vmatpush.bf16.msra.mxu2 %v5752_v63  ;;  %v6455_v55 = vld [vmem:[%s7144_s28 + $0xfa8] sm:$0xf]  ;;  %v7002_v56 = vld [vmem:[%s7144_s28 + $0xfb4] sm:$0xf0] }
 0x178   : > { %3916 = vmatpush.bf16.msra.mxu3 %v5880_v7  ;;  %v6055_v62 = vld [vmem:[%s7144_s28 + $0xc88] sm:$0xf]  ;;  %v6902_v63 = vld [vmem:[%s7144_s28 + $0xc94] sm:$0xf0]  ;;  %v6456_v4 = vor.u32 %v7002_v56, %v6455_v55 }
 0x179   : > { %3878 = vmatpush.bf16.msra.mxu0 %v5480_v15  ;;  %v6183_v0 = vld [vmem:[%s7144_s28 + $0xd88] sm:$0xf]  ;;  %v6934_v5 = vld [vmem:[%s7144_s28 + $0xd94] sm:$0xf0]  ;;  %v3672_v8 = vpop.f32.mrf.mxu0  ;;  %v6056_v12 = vor.u32 %v6902_v63, %v6055_v62 }
 0x17a   : > { %3891 = vmatpush.bf16.msra.mxu1 %v5608_v19  ;;  %v6311_v6 = vld [vmem:[%s7144_s28 + $0xe88] sm:$0xf]  ;;  %v6966_v7 = vld [vmem:[%s7144_s28 + $0xe94] sm:$0xf0]  ;;  %v3673_v11 = vadd.f32 %v3672_v8, %v7891_v40  ;;  %v3685_v13 = vpop.f32.mrf.mxu1  ;;  %v6184_v14 = vor.u32 %v6934_v5, %v6183_v0 }
 0x17b   : > { %3904 = vmatpush.bf16.msra.mxu2 %v5736_v24  ;;  %v6439_v9 = vld [vmem:[%s7144_s28 + $0xf88] sm:$0xf]  ;;  %v6998_v10 = vld [vmem:[%s7144_s28 + $0xf94] sm:$0xf0]  ;;  %v6312_v15 = vor.u32 %v6966_v7, %v6311_v6 }
 0x17c   : > { %3917 = vmatpush.bf16.msra.mxu3 %v5864_v28  ;;  %3879 = vmatmul.bf16.vlgmr.msra.gmra.mxu0 %v7035_v45  ;;  %v6039_v16 = vld [vmem:[%s7144_s28 + $0xc68] sm:$0xf]  ;;  %v6898_v17 = vld [vmem:[%s7144_s28 + $0xc74] sm:$0xf0]  ;;  %v6440_v19 = vor.u32 %v6998_v10, %v6439_v9  ;;  %v3686_v24 = vadd.f32 %v3685_v13, %v3673_v11 }
 0x17d   : > { %3923 = vmatpush.bf16.msrb.mxu0 %v6104_v42  ;;  %3892 = vmatmul.bf16.vlgmr.msra.gmra.mxu1 %v7037_v54  ;;  %v6167_v18 = vld [vmem:[%s7144_s28 + $0xd68] sm:$0xf]  ;;  %v6930_v25 = vld [vmem:[%s7144_s28 + $0xd74] sm:$0xf0] }
 0x17e   : > { %3936 = vmatpush.bf16.msrb.mxu1 %v6232_v46  ;;  %3905 = vmatmul.bf16.vlgmr.msra.gmra.mxu2 %v7036_v53  ;;  %v6295_v26 = vld [vmem:[%s7144_s28 + $0xe68] sm:$0xf]  ;;  %v6962_v40 = vld [vmem:[%s7144_s28 + $0xe74] sm:$0xf0]  ;;  %v6040_v46 = vor.u32 %v6898_v17, %v6039_v16  ;;  %v6560_v16 = vld [vmem:[%s7144_s28 + $0x1ec] sm:$0xf] }
 0x17f   : > { %3949 = vmatpush.bf16.msrb.mxu2 %v6360_v49  ;;  %3918 = vmatmul.bf16.vlgmr.msra.gmra.mxu3 %v7038_v57  ;;  %v6423_v28 = vld [vmem:[%s7144_s28 + $0xf68] sm:$0xf]  ;;  %v6994_v42 = vld [vmem:[%s7144_s28 + $0xf74] sm:$0xf0]  ;;  %v6168_v49 = vor.u32 %v6930_v25, %v6167_v18  ;;  %v6296_v29 = vor.u32 %v6962_v40, %v6295_v26  ;;  %v4825_v25 = vld [vmem:[%s7144_s28 + $0x2f8] sm:$0xf0] }
 0x180   : > { %3962 = vmatpush.bf16.msrb.mxu3 %v6488_v20  ;;  %v6023_v30 = vld [vmem:[%s7144_s28 + $0xc48] sm:$0xf]  ;;  %v6894_v31 = vld [vmem:[%s7144_s28 + $0xc54] sm:$0xf0]  ;;  %v6424_v32 = vor.u32 %v6994_v42, %v6423_v28  ;;  %v6624_v28 = vld [vmem:[%s7144_s28 + $0x3ec] sm:$0xf] }
 0x181   : > { %3924 = vmatpush.bf16.msrb.mxu0 %v6088_v37  ;;  %v6151_v20 = vld [vmem:[%s7144_s28 + $0xd48] sm:$0xf]  ;;  %v3698_v33 = vpop.f32.mrf.mxu2  ;;  %v6926_v34 = vld [vmem:[%s7144_s28 + $0xd54] sm:$0xf0]  ;;  %v3674_v43 = vpop.f32.mrf.mxu0  ;;  %v6024_v44 = vor.u32 %v6894_v31, %v6023_v30  ;;  %v4953_v42 = vld [vmem:[%s7144_s28 + $0x3f8] sm:$0xf0] }
 0x182   : > { %3937 = vmatpush.bf16.msrb.mxu1 %v6216_v38  ;;  %v6279_v35 = vld [vmem:[%s7144_s28 + $0xe48] sm:$0xf]  ;;  %v6958_v36 = vld [vmem:[%s7144_s28 + $0xe54] sm:$0xf0]  ;;  %v3699_v37 = vadd.f32 %v3698_v33, %v3686_v24  ;;  %v3711_v38 = vpop.f32.mrf.mxu3  ;;  %v3687_v45 = vpop.f32.mrf.mxu1  ;;  %v6152_v48 = vor.u32 %v6926_v34, %v6151_v20  ;;  %v6592_v24 = vld [vmem:[%s7144_s28 + $0x2ec] sm:$0xf]  ;;  %v4956_v33 = vor.u32 %v6624_v28, %v4953_v42 }
 0x183   : > { %3950 = vmatpush.bf16.msrb.mxu2 %v6344_v39  ;;  %v6407_v39 = vld [vmem:[%s7144_s28 + $0xf48] sm:$0xf]  ;;  %v6990_v41 = vld [vmem:[%s7144_s28 + $0xf54] sm:$0xf0]  ;;  %v6280_v51 = vor.u32 %v6958_v36, %v6279_v35  ;;  %v4828_v30 = vor.u32 %v6592_v24, %v4825_v25  ;;  %v6524_v31 = vld [vmem:[%s7144_s28 + $0xcc] sm:$0xf] }
 0x184   : > { %3963 = vmatpush.bf16.msrb.mxu3 %v6472_v47  ;;  %v7958_v47 = vadd.f32 %v3711_v38, %v3699_v37  ;;  %v6007_v52 = vld [vmem:[%s7144_s28 + $0xc28] sm:$0xf]  ;;  %v6890_v53 = vld [vmem:[%s7144_s28 + $0xc34] sm:$0xf0]  ;;  %v6408_v55 = vor.u32 %v6990_v41, %v6407_v39  ;;  %v4553_v20 = vld [vmem:[%s7144_s28 + $0xd8] sm:$0xf0] }
 0x185   : > { %3925 = vmatpush.bf16.msrb.mxu0 %v6072_v58  ;;  %v6135_v54 = vld [vmem:[%s7144_s28 + $0xd28] sm:$0xf]  ;;  %v6922_v56 = vld [vmem:[%s7144_s28 + $0xd34] sm:$0xf0]  ;;  %v6008_v62 = vor.u32 %v6890_v53, %v6007_v52  ;;  %v4681_v34 = vld [vmem:[%s7144_s28 + $0x1d8] sm:$0xf0]  ;;  %v4556_v39 = vor.u32 %v6524_v31, %v4553_v20 }
 0x186   : > { %3938 = vmatpush.bf16.msrb.mxu1 %v6200_v59  ;;  %v6263_v57 = vld [vmem:[%s7144_s28 + $0xe28] sm:$0xf]  ;;  %v6954_v58 = vld [vmem:[%s7144_s28 + $0xe34] sm:$0xf0]  ;;  %v6588_v35 = vld [vmem:[%s7144_s28 + $0x2cc] sm:$0xf] }
 0x187   : > { %3951 = vmatpush.bf16.msrb.mxu2 %v6328_v60  ;;  %v6391_v59 = vld [vmem:[%s7144_s28 + $0xf28] sm:$0xf]  ;;  %v6986_v60 = vld [vmem:[%s7144_s28 + $0xf34] sm:$0xf0]  ;;  %v6264_v5 = vor.u32 %v6954_v58, %v6263_v57  ;;  %v4809_v36 = vld [vmem:[%s7144_s28 + $0x2d8] sm:$0xf0] }
 0x188   : > { %3964 = vmatpush.bf16.msrb.mxu3 %v6456_v4  ;;  %v5991_v63 = vld [vmem:[%s7144_s28 + $0xc08] sm:$0xf]  ;;  %v6886_v0 = vld [vmem:[%s7144_s28 + $0xc14] sm:$0xf0]  ;;  %v6136_v4 = vor.u32 %v6922_v56, %v6135_v54  ;;  %v6392_v9 = vor.u32 %v6986_v60, %v6391_v59  ;;  %v6620_v37 = vld [vmem:[%s7144_s28 + $0x3cc] sm:$0xf]  ;;  %v4812_v43 = vor.u32 %v6588_v35, %v4809_v36 }
 0x189   : > { %3926 = vmatpush.bf16.msrb.mxu0 %v6056_v12  ;;  %v6119_v6 = vld [vmem:[%s7144_s28 + $0xd08] sm:$0xf]  ;;  %v6918_v7 = vld [vmem:[%s7144_s28 + $0xd14] sm:$0xf0]  ;;  %v3700_v13 = vpop.f32.mrf.mxu2  ;;  %v5992_v18 = vor.u32 %v6886_v0, %v5991_v63  ;;  %v4937_v38 = vld [vmem:[%s7144_s28 + $0x3d8] sm:$0xf0] }
 0x18a   : > { %3939 = vmatpush.bf16.msrb.mxu1 %v6184_v14  ;;  %v6247_v8 = vld [vmem:[%s7144_s28 + $0xe08] sm:$0xf]  ;;  %v6950_v10 = vld [vmem:[%s7144_s28 + $0xe14] sm:$0xf0]  ;;  %v6528_v14 = vld [vmem:[%s7144_s28 + $0xec] sm:$0xf]  ;;  %v3713_v17 = vpop.f32.mrf.mxu3  ;;  %v6120_v26 = vor.u32 %v6918_v7, %v6119_v6  ;;  %v4940_v52 = vor.u32 %v6620_v37, %v4937_v38 }
 0x18b   : > { %3952 = vmatpush.bf16.msrb.mxu2 %v6312_v15  ;;  %v6375_v11 = vld [vmem:[%s7144_s28 + $0xf08] sm:$0xf]  ;;  %v6982_v12 = vld [vmem:[%s7144_s28 + $0xf14] sm:$0xf0]  ;;  %v4569_v15 = vld [vmem:[%s7144_s28 + $0xf8] sm:$0xf0]  ;;  %v6248_v40 = vor.u32 %v6950_v10, %v6247_v8 }
 0x18c   : > { %3965 = vmatpush.bf16.msrb.mxu3 %v6440_v19  ;;  %v4697_v19 = vld [vmem:[%s7144_s28 + $0x1f8] sm:$0xf0]  ;;  %v6584_v54 = vld [vmem:[%s7144_s28 + $0x2ac] sm:$0xf] }
 0x18d   : > { %3927 = vmatpush.bf16.msrb.mxu0 %v6040_v46  ;;  %v6376_v46 = vor.u32 %v6982_v12, %v6375_v11  ;;  %v4537_v45 = vld [vmem:[%s7144_s28 + $0xb8] sm:$0xf0]  ;;  %v7041_v57 = vld [vmem:[#allocation1 + $0x2d] sm:$0xff] }
 0x18e   : > { %3940 = vmatpush.bf16.msrb.mxu1 %v6168_v49  ;;  %v4572_v49 = vor.u32 %v6528_v14, %v4569_v15  ;;  %v4665_v53 = vld [vmem:[%s7144_s28 + $0x1b8] sm:$0xf0]  ;;  %v6616_v58 = vld [vmem:[%s7144_s28 + $0x3ac] sm:$0xf] }
 0x18f   : > { %3953 = vmatpush.bf16.msrb.mxu2 %v6296_v29  ;;  %v4700_v29 = vor.u32 %v6560_v16, %v4697_v19  ;;  %v7040_v56 = vld [vmem:[#allocation1 + $0x36] sm:$0xff]  ;;  %v7042_v60 = vld [vmem:[#allocation1 + $0x3f] sm:$0xff]  ;;  %v6548_v6 = vld [vmem:[%s7144_s28 + $0x18c] sm:$0xf] }
 0x190   : > { %3966 = vmatpush.bf16.msrb.mxu3 %v6424_v32  ;;  %v6556_v32 = vld [vmem:[%s7144_s28 + $0x1cc] sm:$0xf]  ;;  %v4921_v59 = vld [vmem:[%s7144_s28 + $0x3b8] sm:$0xf0] }
 0x191   : > { %3928 = vmatpush.bf16.msrb.mxu0 %v6024_v44  ;;  %v4684_v41 = vor.u32 %v6556_v32, %v4681_v34  ;;  %v6520_v44 = vld [vmem:[%s7144_s28 + $0xac] sm:$0xf]  ;;  %v4924_v7 = vor.u32 %v6616_v58, %v4921_v59  ;;  %v4649_v8 = vld [vmem:[%s7144_s28 + $0x198] sm:$0xf0] }
 0x192   : > { %3941 = vmatpush.bf16.msrb.mxu1 %v6152_v48  ;;  %v6552_v48 = vld [vmem:[%s7144_s28 + $0x1ac] sm:$0xf]  ;;  %v4777_v10 = vld [vmem:[%s7144_s28 + $0x298] sm:$0xf0]  ;;  %v4652_v17 = vor.u32 %v6548_v6, %v4649_v8 }
 0x193   : > { %3954 = vmatpush.bf16.msrb.mxu2 %v6280_v51  ;;  %v7039_v51 = vld [vmem:[#allocation1 + $0x24] sm:$0xff]  ;;  %v4668_v63 = vor.u32 %v6552_v48, %v4665_v53  ;;  %v6612_v12 = vld [vmem:[%s7144_s28 + $0x38c] sm:$0xf]  ;;  %v4905_v13 = vld [vmem:[%s7144_s28 + $0x398] sm:$0xf0] }
 0x194   : > { %3967 = vmatpush.bf16.msrb.mxu3 %v6408_v55  ;;  %v4793_v55 = vld [vmem:[%s7144_s28 + $0x2b8] sm:$0xf0]  ;;  %v6512_v19 = vld [vmem:[%s7144_s28 + $0x6c] sm:$0xf] }
 0x195   : > { %3929 = vmatpush.bf16.msrb.mxu0 %v6008_v62  ;;  %v4540_v62 = vor.u32 %v6520_v44, %v4537_v45  ;;  %v4796_v0 = vor.u32 %v6584_v54, %v4793_v55  ;;  %v4505_v24 = vld [vmem:[%s7144_s28 + $0x78] sm:$0xf0]  ;;  %v6544_v25 = vld [vmem:[%s7144_s28 + $0x16c] sm:$0xf] }
 0x196   : > { %3942 = vmatpush.bf16.msrb.mxu1 %v6136_v4  ;;  %v6516_v4 = vld [vmem:[%s7144_s28 + $0x8c] sm:$0xf]  ;;  %v4633_v28 = vld [vmem:[%s7144_s28 + $0x178] sm:$0xf0] }
 0x197   : > { %3955 = vmatpush.bf16.msrb.mxu2 %v6264_v5  ;;  %v4521_v5 = vld [vmem:[%s7144_s28 + $0x98] sm:$0xf0]  ;;  %v6576_v42 = vld [vmem:[%s7144_s28 + $0x26c] sm:$0xf] }
 0x198   : > { %3968 = vmatpush.bf16.msrb.mxu3 %v6392_v9  ;;  %v6580_v9 = vld [vmem:[%s7144_s28 + $0x28c] sm:$0xf]  ;;  %v4524_v15 = vor.u32 %v6516_v4, %v4521_v5  ;;  %v4489_v32 = vld [vmem:[%s7144_s28 + $0x58] sm:$0xf0] }
 0x199   : > { %3930 = vmatpush.bf16.msrb.mxu0 %v5992_v18  ;;  %v3724_v11 = vpop.f32.mrf.mxu0  ;;  %v4780_v18 = vor.u32 %v6580_v9, %v4777_v10  ;;  %v6508_v20 = vld [vmem:[%s7144_s28 + $0x4c] sm:$0xf]  ;;  %v4617_v36 = vld [vmem:[%s7144_s28 + $0x158] sm:$0xf0] }
 0x19a   : > { %3943 = vmatpush.bf16.msrb.mxu1 %v6120_v26  ;;  %v3725_v14 = vadd.f32 %v3724_v11, %v7958_v47  ;;  %v3737_v16 = vpop.f32.mrf.mxu1  ;;  %v4908_v26 = vor.u32 %v6612_v12, %v4905_v13  ;;  %v4761_v47 = vld [vmem:[%s7144_s28 + $0x278] sm:$0xf0]  ;;  %v6572_v37 = vld [vmem:[%s7144_s28 + $0x24c] sm:$0xf]  ;;  %v4492_v48 = vor.u32 %v6508_v20, %v4489_v32 }
 0x19b   : > { %3956 = vmatpush.bf16.msrb.mxu2 %v6248_v40  ;;  %v4764_v31 = vor.u32 %v6576_v42, %v4761_v47  ;;  %v4745_v38 = vld [vmem:[%s7144_s28 + $0x258] sm:$0xf0]  ;;  %v6504_v55 = vld [vmem:[%s7144_s28 + $0x2c] sm:$0xf] }
 0x19c   : > { %3969 = vmatpush.bf16.msrb.mxu3 %v6376_v46  ;;  %3931 = vmatmul.bf16.vlgmr.msrb.gmra.mxu0 %v7039_v51  ;;  %v3738_v40 = vadd.f32 %v3737_v16, %v3725_v14  ;;  %v6608_v46 = vld [vmem:[%s7144_s28 + $0x36c] sm:$0xf]  ;;  %v4873_v44 = vld [vmem:[%s7144_s28 + $0x358] sm:$0xf0]  ;;  %v4748_v54 = vor.u32 %v6572_v37, %v4745_v38 }
 0x19d   : > { %3975 = vmatpush.bf16.msra.mxu0 %v4572_v49  ;;  %3944 = vmatmul.bf16.vlgmr.msrb.gmra.mxu1 %v7041_v57  ;;  %v4889_v49 = vld [vmem:[%s7144_s28 + $0x378] sm:$0xf0]  ;;  %v6536_v57 = vld [vmem:[%s7144_s28 + $0x12c] sm:$0xf] }
 0x19e   : > { %3988 = vmatpush.bf16.msra.mxu1 %v4700_v29  ;;  %3957 = vmatmul.bf16.vlgmr.msrb.gmra.mxu2 %v7040_v56  ;;  %v4508_v29 = vor.u32 %v6512_v19, %v4505_v24  ;;  %v4892_v34 = vor.u32 %v6608_v46, %v4889_v49  ;;  %v4473_v56 = vld [vmem:[%s7144_s28 + $0x38] sm:$0xf0]  ;;  %v6500_v6 = vld [vmem:[%s7144_s28 + $0xc] sm:$0xf] }
 0x19f   : > { %4001 = vmatpush.bf16.msra.mxu2 %v4828_v30  ;;  %3970 = vmatmul.bf16.vlgmr.msrb.gmra.mxu3 %v7042_v60  ;;  %v4636_v30 = vor.u32 %v6544_v25, %v4633_v28  ;;  %v4601_v59 = vld [vmem:[%s7144_s28 + $0x138] sm:$0xf0]  ;;  %v6568_v60 = vld [vmem:[%s7144_s28 + $0x22c] sm:$0xf]  ;;  %v4476_v5 = vor.u32 %v6504_v55, %v4473_v56 }
 0x1a0   : > { %4014 = vmatpush.bf16.msra.mxu3 %v4956_v33  ;;  %v6540_v33 = vld [vmem:[%s7144_s28 + $0x14c] sm:$0xf]  ;;  %v4857_v4 = vld [vmem:[%s7144_s28 + $0x338] sm:$0xf0]  ;;  %v4604_v9 = vor.u32 %v6536_v57, %v4601_v59 }
 0x1a1   : > { %3976 = vmatpush.bf16.msra.mxu0 %v4556_v39  ;;  %v3750_v35 = vpop.f32.mrf.mxu2  ;;  %v3726_v45 = vpop.f32.mrf.mxu0  ;;  %v4620_v53 = vor.u32 %v6540_v33, %v4617_v36  ;;  %v6532_v11 = vld [vmem:[%s7144_s28 + $0x10c] sm:$0xf]  ;;  %v4585_v12 = vld [vmem:[%s7144_s28 + $0x118] sm:$0xf0] }
 0x1a2   : > { %3989 = vmatpush.bf16.msra.mxu1 %v4684_v41  ;;  %v3751_v39 = vadd.f32 %v3750_v35, %v3738_v40  ;;  %v3763_v41 = vpop.f32.mrf.mxu3  ;;  %v3739_v51 = vpop.f32.mrf.mxu1  ;;  %v6564_v13 = vld [vmem:[%s7144_s28 + $0x20c] sm:$0xf]  ;;  %v5081_v19 = vld [vmem:[%s7144_s28 + $0x4f8] sm:$0xf0]  ;;  %v4588_v47 = vor.u32 %v6532_v11, %v4585_v12 }
 0x1a3   : > { %4002 = vmatpush.bf16.msra.mxu2 %v4812_v43  ;;  %v6604_v43 = vld [vmem:[%s7144_s28 + $0x34c] sm:$0xf]  ;;  %v5209_v40 = vld [vmem:[%s7144_s28 + $0x5f8] sm:$0xf0] }
 0x1a4   : > { %4015 = vmatpush.bf16.msra.mxu3 %v4940_v52  ;;  %v3764_v52 = vadd.f32 %v3763_v41, %v3751_v39  ;;  %v4876_v58 = vor.u32 %v6604_v43, %v4873_v44  ;;  %v6596_v16 = vld [vmem:[%s7144_s28 + $0x30c] sm:$0xf]  ;;  %v5337_v42 = vld [vmem:[%s7144_s28 + $0x6f8] sm:$0xf0] }
 0x1a5   : > { %3977 = vmatpush.bf16.msra.mxu0 %v4540_v62  ;;  %v4729_v62 = vld [vmem:[%s7144_s28 + $0x238] sm:$0xf0]  ;;  %v6688_v24 = vld [vmem:[%s7144_s28 + $0x5ec] sm:$0xf] }
 0x1a6   : > { %3990 = vmatpush.bf16.msra.mxu1 %v4668_v63  ;;  %v4187_v63 = vrot.slane %v3764_v52, 6  ;;  %v4732_v10 = vor.u32 %v6568_v60, %v4729_v62  ;;  %v6720_v28 = vld [vmem:[%s7144_s28 + $0x6ec] sm:$0xf]  ;;  %v5212_v20 = vor.u32 %v6688_v24, %v5209_v40  ;;  %v5193_v37 = vld [vmem:[%s7144_s28 + $0x5d8] sm:$0xf0] }
 0x1a7   : > { %4003 = vmatpush.bf16.msra.mxu2 %v4796_v0  ;;  %v6600_v0 = vld [vmem:[%s7144_s28 + $0x32c] sm:$0xf]  ;;  %v5340_v32 = vor.u32 %v6720_v28, %v5337_v42  ;;  %v5321_v39 = vld [vmem:[%s7144_s28 + $0x6d8] sm:$0xf0] }
 0x1a8   : > { %4016 = vmatpush.bf16.msra.mxu3 %v4924_v7  ;;  %v4457_v7 = vld [vmem:[%s7144_s28 + $0x18] sm:$0xf0]  ;;  %v8037_v8 = vsel %vm4190_vm0, %v7750_v50, %v4187_v63  ;;  %v4860_v14 = vor.u32 %v6600_v0, %v4857_v4  ;;  %v6752_v49 = vld [vmem:[%s7144_s28 + $0x7ec] sm:$0xf] }
 0x1a9   : > { %3978 = vmatpush.bf16.msra.mxu0 %v4524_v15  ;;  %v4713_v15 = vld [vmem:[%s7144_s28 + $0x218] sm:$0xf0]  ;;  %v3752_v50 = vpop.f32.mrf.mxu2  ;;  %v6652_v33 = vld [vmem:[%s7144_s28 + $0x4cc] sm:$0xf] }
 0x1aa   : > { %3991 = vmatpush.bf16.msra.mxu1 %v4652_v17  ;;  %v4841_v17 = vld [vmem:[%s7144_s28 + $0x318] sm:$0xf0]  ;;  %v3765_v25 = vpop.f32.mrf.mxu3  ;;  %v4716_v46 = vor.u32 %v6564_v13, %v4713_v15  ;;  %v6684_v35 = vld [vmem:[%s7144_s28 + $0x5cc] sm:$0xf] }
 0x1ab   : > { %4004 = vmatpush.bf16.msra.mxu2 %v4780_v18  ;;  %v6656_v18 = vld [vmem:[%s7144_s28 + $0x4ec] sm:$0xf]  ;;  %v5449_v43 = vld [vmem:[%s7144_s28 + $0x7d8] sm:$0xf0]  ;;  %v5196_v45 = vor.u32 %v6684_v35, %v5193_v37 }
 0x1ac   : > { %4017 = vmatpush.bf16.msra.mxu3 %v4908_v26  ;;  %v4460_v26 = vor.u32 %v6500_v6, %v4457_v7  ;;  %v6716_v38 = vld [vmem:[%s7144_s28 + $0x6cc] sm:$0xf]  ;;  %v5049_v52 = vld [vmem:[%s7144_s28 + $0x4b8] sm:$0xf0] }
 0x1ad   : > { %3979 = vmatpush.bf16.msra.mxu0 %v4508_v29  ;;  %v5465_v29 = vld [vmem:[%s7144_s28 + $0x7f8] sm:$0xf0]  ;;  %v6748_v41 = vld [vmem:[%s7144_s28 + $0x7cc] sm:$0xf] }
 0x1ae   : > { %3992 = vmatpush.bf16.msra.mxu1 %v4636_v30  ;;  %v4844_v30 = vor.u32 %v6596_v16, %v4841_v17  ;;  %v5468_v36 = vor.u32 %v6752_v49, %v5465_v29  ;;  %v6648_v51 = vld [vmem:[%s7144_s28 + $0x4ac] sm:$0xf]  ;;  %v5177_v55 = vld [vmem:[%s7144_s28 + $0x5b8] sm:$0xf0] }
 0x1af   : > { %4005 = vmatpush.bf16.msra.mxu2 %v4764_v31  ;;  %v5084_v31 = vor.u32 %v6656_v18, %v5081_v19  ;;  %v6712_v56 = vld [vmem:[%s7144_s28 + $0x6ac] sm:$0xf]  ;;  %v5305_v57 = vld [vmem:[%s7144_s28 + $0x6b8] sm:$0xf0]  ;;  %v5052_v60 = vor.u32 %v6648_v51, %v5049_v52 }
 0x1b0   : > { %4018 = vmatpush.bf16.msra.mxu3 %v4892_v34  ;;  %v5065_v34 = vld [vmem:[%s7144_s28 + $0x4d8] sm:$0xf0]  ;;  %v5308_v63 = vor.u32 %v6712_v56, %v5305_v57  ;;  %v6676_v4 = vld [vmem:[%s7144_s28 + $0x58c] sm:$0xf] }
 0x1b1   : > { %3980 = vmatpush.bf16.msra.mxu0 %v4492_v48  ;;  %v5068_v44 = vor.u32 %v6652_v33, %v5065_v34  ;;  %v5324_v48 = vor.u32 %v6716_v38, %v5321_v39  ;;  %v5433_v59 = vld [vmem:[%s7144_s28 + $0x7b8] sm:$0xf0]  ;;  %v6740_v7 = vld [vmem:[%s7144_s28 + $0x78c] sm:$0xf] }
 0x1b2   : > { %3993 = vmatpush.bf16.msra.mxu1 %v4620_v53  ;;  %v6680_v53 = vld [vmem:[%s7144_s28 + $0x5ac] sm:$0xf]  ;;  %v5033_v0 = vld [vmem:[%s7144_s28 + $0x498] sm:$0xf0] }
 0x1b3   : > { %4006 = vmatpush.bf16.msra.mxu2 %v4748_v54  ;;  %v5452_v54 = vor.u32 %v6748_v41, %v5449_v43  ;;  %v5180_v62 = vor.u32 %v6680_v53, %v5177_v55  ;;  %v5289_v6 = vld [vmem:[%s7144_s28 + $0x698] sm:$0xf0]  ;;  %v6640_v13 = vld [vmem:[%s7144_s28 + $0x46c] sm:$0xf] }
 0x1b4   : > { %4019 = vmatpush.bf16.msra.mxu3 %v4876_v58  ;;  %v6744_v58 = vld [vmem:[%s7144_s28 + $0x7ac] sm:$0xf]  ;;  %v5145_v50 = vld [vmem:[%s7144_s28 + $0x578] sm:$0xf0] }
 0x1b5   : > { %3981 = vmatpush.bf16.msra.mxu0 %v4476_v5  ;;  %v5161_v5 = vld [vmem:[%s7144_s28 + $0x598] sm:$0xf0]  ;;  %v6672_v15 = vld [vmem:[%s7144_s28 + $0x56c] sm:$0xf] }
 0x1b6   : > { %3994 = vmatpush.bf16.msra.mxu1 %v4604_v9  ;;  %v5417_v9 = vld [vmem:[%s7144_s28 + $0x798] sm:$0xf0]  ;;  %v5164_v11 = vor.u32 %v6676_v4, %v5161_v5  ;;  %v6704_v18 = vld [vmem:[%s7144_s28 + $0x66c] sm:$0xf]  ;;  %v5148_v28 = vor.u32 %v6672_v15, %v5145_v50 }
 0x1b7   : > { %4007 = vmatpush.bf16.msra.mxu2 %v4732_v10  ;;  %v5420_v17 = vor.u32 %v6740_v7, %v5417_v9  ;;  %v5273_v19 = vld [vmem:[%s7144_s28 + $0x678] sm:$0xf0]  ;;  %v6736_v25 = vld [vmem:[%s7144_s28 + $0x76c] sm:$0xf] }
 0x1b8   : > { %4020 = vmatpush.bf16.msra.mxu3 %v4860_v14  ;;  %v5017_v14 = vld [vmem:[%s7144_s28 + $0x478] sm:$0xf0]  ;;  %v5276_v42 = vor.u32 %v6704_v18, %v5273_v19  ;;  %v6668_v49 = vld [vmem:[%s7144_s28 + $0x54c] sm:$0xf] }
 0x1b9   : > { %3982 = vmatpush.bf16.msra.mxu0 %v4460_v26  ;;  %v3776_v10 = vpop.f32.mrf.mxu0  ;;  %v5401_v26 = vld [vmem:[%s7144_s28 + $0x778] sm:$0xf0]  ;;  %v5020_v40 = vor.u32 %v6640_v13, %v5017_v14  ;;  %v6732_v35 = vld [vmem:[%s7144_s28 + $0x74c] sm:$0xf] }
 0x1ba   : > { %3995 = vmatpush.bf16.msra.mxu1 %v4588_v47  ;;  %v3789_v16 = vpop.f32.mrf.mxu1  ;;  %v6636_v47 = vld [vmem:[%s7144_s28 + $0x44c] sm:$0xf]  ;;  %v5113_v53 = vld [vmem:[%s7144_s28 + $0x538] sm:$0xf0] }
 0x1bb   : > { %4008 = vmatpush.bf16.msra.mxu2 %v4716_v46  ;;  %v3790_v24 = vadd.f32 %v3789_v16, %v3776_v10  ;;  %v5001_v46 = vld [vmem:[%s7144_s28 + $0x458] sm:$0xf0]  ;;  %v6728_v56 = vld [vmem:[%s7144_s28 + $0x72c] sm:$0xf] }
 0x1bc   : > { %4021 = vmatpush.bf16.msra.mxu3 %v4844_v30  ;;  %3983 = vmatmul.bf16.vlgmr.msra.gmra.mxu0 %v7250_v22  ;;  %v5436_v22 = vor.u32 %v6744_v58, %v5433_v59  ;;  %v5404_v30 = vor.u32 %v6736_v25, %v5401_v26  ;;  %v5004_v37 = vor.u32 %v6636_v47, %v5001_v46  ;;  %v5241_v55 = vld [vmem:[%s7144_s28 + $0x638] sm:$0xf0]  ;;  %v6628_v59 = vld [vmem:[%s7144_s28 + $0x40c] sm:$0xf] }
 0x1bd   : > { %4027 = vmatpush.bf16.msrb.mxu0 %v5084_v31  ;;  %3996 = vmatmul.bf16.vlgmr.msra.gmra.mxu1 %v7257_v27  ;;  %v5129_v31 = vld [vmem:[%s7144_s28 + $0x558] sm:$0xf0]  ;;  %v6692_v4 = vld [vmem:[%s7144_s28 + $0x60c] sm:$0xf] }
 0x1be   : > { %4040 = vmatpush.bf16.msrb.mxu1 %v5212_v20  ;;  %4009 = vmatmul.bf16.vlgmr.msra.gmra.mxu2 %v7248_v21  ;;  %v6644_v21 = vld [vmem:[%s7144_s28 + $0x48c] sm:$0xf]  ;;  %v5132_v41 = vor.u32 %v6668_v49, %v5129_v31  ;;  %v5369_v57 = vld [vmem:[%s7144_s28 + $0x738] sm:$0xf0] }
 0x1bf   : > { %4053 = vmatpush.bf16.msrb.mxu2 %v5340_v32  ;;  %4022 = vmatmul.bf16.vlgmr.msra.gmra.mxu3 %v7252_v23  ;;  %v6708_v23 = vld [vmem:[%s7144_s28 + $0x68c] sm:$0xf]  ;;  %v5036_v27 = vor.u32 %v6644_v21, %v5033_v0  ;;  %v5257_v32 = vld [vmem:[%s7144_s28 + $0x658] sm:$0xf0]  ;;  %v5372_v5 = vor.u32 %v6728_v56, %v5369_v57 }
 0x1c0   : > { %4066 = vmatpush.bf16.msrb.mxu3 %v5468_v36  ;;  %v5292_v12 = vor.u32 %v6708_v23, %v5289_v6  ;;  %v6700_v20 = vld [vmem:[%s7144_s28 + $0x64c] sm:$0xf]  ;;  %v5385_v36 = vld [vmem:[%s7144_s28 + $0x758] sm:$0xf0] }
 0x1c1   : > { %4028 = vmatpush.bf16.msrb.mxu0 %v5068_v44  ;;  %v3802_v29 = vpop.f32.mrf.mxu2  ;;  %v3778_v39 = vpop.f32.mrf.mxu0  ;;  %v5260_v43 = vor.u32 %v6700_v20, %v5257_v32  ;;  %v6632_v44 = vld [vmem:[%s7144_s28 + $0x42c] sm:$0xf]  ;;  %v5388_v52 = vor.u32 %v6732_v35, %v5385_v36  ;;  %v5097_v0 = vld [vmem:[%s7144_s28 + $0x518] sm:$0xf0] }
 0x1c2   : > { %4041 = vmatpush.bf16.msrb.mxu1 %v5196_v45  ;;  %v3803_v33 = vadd.f32 %v3802_v29, %v3790_v24  ;;  %v3815_v34 = vpop.f32.mrf.mxu3  ;;  %v4985_v45 = vld [vmem:[%s7144_s28 + $0x438] sm:$0xf0]  ;;  %v3791_v51 = vpop.f32.mrf.mxu1  ;;  %v6660_v21 = vld [vmem:[%s7144_s28 + $0x50c] sm:$0xf] }
 0x1c3   : > { %4054 = vmatpush.bf16.msrb.mxu2 %v5324_v48  ;;  %v6664_v48 = vld [vmem:[%s7144_s28 + $0x52c] sm:$0xf]  ;;  %v4988_v58 = vor.u32 %v6632_v44, %v4985_v45  ;;  %v5225_v23 = vld [vmem:[%s7144_s28 + $0x618] sm:$0xf0]  ;;  %v5100_v16 = vor.u32 %v6660_v21, %v5097_v0 }
 0x1c4   : > { %4067 = vmatpush.bf16.msrb.mxu3 %v5452_v54  ;;  %v8097_v38 = vadd.f32 %v3815_v34, %v3803_v33  ;;  %v6696_v54 = vld [vmem:[%s7144_s28 + $0x62c] sm:$0xf]  ;;  %v5353_v7 = vld [vmem:[%s7144_s28 + $0x718] sm:$0xf0] }
 0x1c5   : > { %4029 = vmatpush.bf16.msrb.mxu0 %v5052_v60  ;;  %v4969_v60 = vld [vmem:[%s7144_s28 + $0x418] sm:$0xf0]  ;;  %v6724_v6 = vld [vmem:[%s7144_s28 + $0x70c] sm:$0xf] }
 0x1c6   : > { %4042 = vmatpush.bf16.msrb.mxu1 %v5180_v62  ;;  %v5116_v62 = vor.u32 %v6664_v48, %v5113_v53  ;;  %v5593_v10 = vld [vmem:[%s7144_s28 + $0x8f8] sm:$0xf0]  ;;  %v6848_v14 = vld [vmem:[%s7144_s28 + $0xaec] sm:$0xf]  ;;  %v5356_v19 = vor.u32 %v6724_v6, %v5353_v7 }
 0x1c7   : > { %4055 = vmatpush.bf16.msrb.mxu2 %v5308_v63  ;;  %v5244_v63 = vor.u32 %v6696_v54, %v5241_v55  ;;  %v5721_v13 = vld [vmem:[%s7144_s28 + $0x9f8] sm:$0xf0]  ;;  %v6880_v50 = vld [vmem:[%s7144_s28 + $0xbec] sm:$0xf] }
 0x1c8   : > { %4068 = vmatpush.bf16.msrb.mxu3 %v5436_v22  ;;  %v5849_v15 = vld [vmem:[%s7144_s28 + $0xaf8] sm:$0xf0]  ;;  %v6844_v49 = vld [vmem:[%s7144_s28 + $0xacc] sm:$0xf] }
 0x1c9   : > { %4030 = vmatpush.bf16.msrb.mxu0 %v5036_v27  ;;  %v3804_v22 = vpop.f32.mrf.mxu2  ;;  %v6784_v27 = vld [vmem:[%s7144_s28 + $0x8ec] sm:$0xf]  ;;  %v5977_v18 = vld [vmem:[%s7144_s28 + $0xbf8] sm:$0xf0]  ;;  %v5852_v26 = vor.u32 %v6848_v14, %v5849_v15 }
 0x1ca   : > { %4043 = vmatpush.bf16.msrb.mxu1 %v5164_v11  ;;  %v3817_v9 = vpop.f32.mrf.mxu3  ;;  %v6816_v11 = vld [vmem:[%s7144_s28 + $0x9ec] sm:$0xf]  ;;  %v5596_v24 = vor.u32 %v6784_v27, %v5593_v10  ;;  %v5980_v47 = vor.u32 %v6880_v50, %v5977_v18  ;;  %v5705_v46 = vld [vmem:[%s7144_s28 + $0x9d8] sm:$0xf0] }
 0x1cb   : > { %4056 = vmatpush.bf16.msrb.mxu2 %v5292_v12  ;;  %v4972_v12 = vor.u32 %v6628_v59, %v4969_v60  ;;  %v5724_v25 = vor.u32 %v6816_v11, %v5721_v13  ;;  %v5833_v29 = vld [vmem:[%s7144_s28 + $0xad8] sm:$0xf0]  ;;  %v6776_v34 = vld [vmem:[%s7144_s28 + $0x8ac] sm:$0xf] }
 0x1cc   : > { %4069 = vmatpush.bf16.msrb.mxu3 %v5420_v17  ;;  %v5228_v17 = vor.u32 %v6692_v4, %v5225_v23  ;;  %v5961_v31 = vld [vmem:[%s7144_s28 + $0xbd8] sm:$0xf0]  ;;  %v5836_v33 = vor.u32 %v6844_v49, %v5833_v29  ;;  %v6808_v36 = vld [vmem:[%s7144_s28 + $0x9ac] sm:$0xf] }
 0x1cd   : > { %4031 = vmatpush.bf16.msrb.mxu0 %v5020_v40  ;;  %v6780_v40 = vld [vmem:[%s7144_s28 + $0x8cc] sm:$0xf]  ;;  %v5561_v35 = vld [vmem:[%s7144_s28 + $0x8b8] sm:$0xf0] }
 0x1ce   : > { %4044 = vmatpush.bf16.msrb.mxu1 %v5148_v28  ;;  %v5577_v28 = vld [vmem:[%s7144_s28 + $0x8d8] sm:$0xf0]  ;;  %v6872_v44 = vld [vmem:[%s7144_s28 + $0xbac] sm:$0xf]  ;;  %v5564_v48 = vor.u32 %v6776_v34, %v5561_v35 }
 0x1cf   : > { %4057 = vmatpush.bf16.msrb.mxu2 %v5276_v42  ;;  %v6812_v42 = vld [vmem:[%s7144_s28 + $0x9cc] sm:$0xf]  ;;  %v5580_v20 = vor.u32 %v6780_v40, %v5577_v28  ;;  %v5689_v39 = vld [vmem:[%s7144_s28 + $0x9b8] sm:$0xf0] }
 0x1d0   : > { %4070 = vmatpush.bf16.msrb.mxu3 %v5404_v30  ;;  %v6876_v30 = vld [vmem:[%s7144_s28 + $0xbcc] sm:$0xf]  ;;  %v5708_v32 = vor.u32 %v6812_v42, %v5705_v46  ;;  %v5945_v45 = vld [vmem:[%s7144_s28 + $0xbb8] sm:$0xf0] }
 0x1d1   : > { %4032 = vmatpush.bf16.msrb.mxu0 %v5004_v37  ;;  %v5964_v37 = vor.u32 %v6876_v30, %v5961_v31  ;;  %v5545_v53 = vld [vmem:[%s7144_s28 + $0x898] sm:$0xf0]  ;;  %v6836_v55 = vld [vmem:[%s7144_s28 + $0xa8c] sm:$0xf] }
 0x1d2   : > { %4045 = vmatpush.bf16.msrb.mxu1 %v5132_v41  ;;  %v6840_v41 = vld [vmem:[%s7144_s28 + $0xaac] sm:$0xf]  ;;  %v5673_v54 = vld [vmem:[%s7144_s28 + $0x998] sm:$0xf0] }
 0x1d3   : > { %4058 = vmatpush.bf16.msrb.mxu2 %v5260_v43  ;;  %v5817_v43 = vld [vmem:[%s7144_s28 + $0xab8] sm:$0xf0]  ;;  %v6868_v57 = vld [vmem:[%s7144_s28 + $0xb8c] sm:$0xf] }
 0x1d4   : > { %4071 = vmatpush.bf16.msrb.mxu3 %v5388_v52  ;;  %v5820_v51 = vor.u32 %v6840_v41, %v5817_v43  ;;  %v6772_v52 = vld [vmem:[%s7144_s28 + $0x88c] sm:$0xf]  ;;  %v5801_v56 = vld [vmem:[%s7144_s28 + $0xa98] sm:$0xf0] }
 0x1d5   : > { %4033 = vmatpush.bf16.msrb.mxu0 %v4988_v58  ;;  %v5929_v58 = vld [vmem:[%s7144_s28 + $0xb98] sm:$0xf0]  ;;  %v6800_v0 = vld [vmem:[%s7144_s28 + $0x96c] sm:$0xf] }
 0x1d6   : > { %4046 = vmatpush.bf16.msrb.mxu1 %v5116_v62  ;;  %v5804_v62 = vor.u32 %v6836_v55, %v5801_v56  ;;  %v5529_v21 = vld [vmem:[%s7144_s28 + $0x878] sm:$0xf0]  ;;  %v6832_v6 = vld [vmem:[%s7144_s28 + $0xa6c] sm:$0xf] }
 0x1d7   : > { %4059 = vmatpush.bf16.msrb.mxu2 %v5244_v63  ;;  %v6768_v63 = vld [vmem:[%s7144_s28 + $0x86c] sm:$0xf]  ;;  %v5657_v23 = vld [vmem:[%s7144_s28 + $0x978] sm:$0xf0] }
 0x1d8   : > { %4072 = vmatpush.bf16.msrb.mxu3 %v5372_v5  ;;  %v5932_v5 = vor.u32 %v6868_v57, %v5929_v58  ;;  %v5785_v7 = vld [vmem:[%s7144_s28 + $0xa78] sm:$0xf0]  ;;  %v6864_v9 = vld [vmem:[%s7144_s28 + $0xb6c] sm:$0xf]  ;;  %v5532_v11 = vor.u32 %v6768_v63, %v5529_v21 }
 0x1d9   : > { %4034 = vmatpush.bf16.msrb.mxu0 %v4972_v12  ;;  %v3828_v59 = vpop.f32.mrf.mxu0  ;;  %v5913_v27 = vld [vmem:[%s7144_s28 + $0xb78] sm:$0xf0]  ;;  %v5788_v12 = vor.u32 %v6832_v6, %v5785_v7  ;;  %v6764_v13 = vld [vmem:[%s7144_s28 + $0x84c] sm:$0xf] }
 0x1da   : > { %4047 = vmatpush.bf16.msrb.mxu1 %v5100_v16  ;;  %v3829_v4 = vadd.f32 %v3828_v59, %v8097_v38  ;;  %v3841_v22 = vpop.f32.mrf.mxu1  ;;  %v5660_v38 = vor.u32 %v6800_v0, %v5657_v23  ;;  %v5513_v14 = vld [vmem:[%s7144_s28 + $0x858] sm:$0xf0]  ;;  %v6796_v15 = vld [vmem:[%s7144_s28 + $0x94c] sm:$0xf] }
 0x1db   : > { %4060 = vmatpush.bf16.msrb.mxu2 %v5228_v17  ;;  %v5916_v17 = vor.u32 %v6864_v9, %v5913_v27  ;;  %v5641_v50 = vld [vmem:[%s7144_s28 + $0x958] sm:$0xf0]  ;;  %v6828_v18 = vld [vmem:[%s7144_s28 + $0xa4c] sm:$0xf]  ;;  %v5516_v28 = vor.u32 %v6764_v13, %v5513_v14 }
 0x1dc   : > { %4073 = vmatpush.bf16.msrb.mxu3 %v5356_v19  ;;  %4035 = vmatmul.bf16.vlgmr.msrb.gmra.mxu0 %v7289_v1  ;;  %v6804_v1 = vld [vmem:[%s7144_s28 + $0x98c] sm:$0xf]  ;;  %v3842_v10 = vadd.f32 %v3841_v22, %v3829_v4  ;;  %v5769_v19 = vld [vmem:[%s7144_s28 + $0xa58] sm:$0xf0]  ;;  %v5644_v46 = vor.u32 %v6796_v15, %v5641_v50 }
 0x1dd   : > { %4079 = vmatpush.bf16.msra.mxu0 %v5596_v24  ;;  %4048 = vmatmul.bf16.vlgmr.msrb.gmra.mxu1 %v7293_v3  ;;  %v5548_v3 = vor.u32 %v6772_v52, %v5545_v53  ;;  %v5676_v60 = vor.u32 %v6804_v1, %v5673_v54  ;;  %v5897_v40 = vld [vmem:[%s7144_s28 + $0xb58] sm:$0xf0]  ;;  %v5772_v49 = vor.u32 %v6828_v18, %v5769_v19  ;;  %v6760_v29 = vld [vmem:[%s7144_s28 + $0x82c] sm:$0xf] }
 0x1de   : > { %4092 = vmatpush.bf16.msra.mxu1 %v5724_v25  ;;  %4061 = vmatmul.bf16.vlgmr.msrb.gmra.mxu2 %v7286_v61  ;;  %v5692_v61 = vor.u32 %v6808_v36, %v5689_v39  ;;  %v5497_v30 = vld [vmem:[%s7144_s28 + $0x838] sm:$0xf0]  ;;  %v6792_v31 = vld [vmem:[%s7144_s28 + $0x92c] sm:$0xf] }
 0x1df   : > { %4105 = vmatpush.bf16.msra.mxu2 %v5852_v26  ;;  %4074 = vmatmul.bf16.vlgmr.msrb.gmra.mxu3 %v7291_v2  ;;  %v5948_v2 = vor.u32 %v6872_v44, %v5945_v45  ;;  %v6860_v26 = vld [vmem:[%s7144_s28 + $0xb4c] sm:$0xf]  ;;  %v5753_v35 = vld [vmem:[%s7144_s28 + $0xa38] sm:$0xf0]  ;;  %v5500_v39 = vor.u32 %v6760_v29, %v5497_v30 }
 0x1e0   : > { %4118 = vmatpush.bf16.msra.mxu3 %v5980_v47  ;;  %v6824_v34 = vld [vmem:[%s7144_s28 + $0xa2c] sm:$0xf]  ;;  %v5481_v43 = vld [vmem:[%s7144_s28 + $0x818] sm:$0xf0] }
 0x1e1   : > { %4080 = vmatpush.bf16.msra.mxu0 %v5580_v20  ;;  %v3854_v16 = vpop.f32.mrf.mxu2  ;;  %v3830_v47 = vpop.f32.mrf.mxu0  ;;  %v6856_v36 = vld [vmem:[%s7144_s28 + $0xb2c] sm:$0xf]  ;;  %v5756_v45 = vor.u32 %v6824_v34, %v5753_v35  ;;  %v5737_v1 = vld [vmem:[%s7144_s28 + $0xa18] sm:$0xf0] }
 0x1e2   : > { %4093 = vmatpush.bf16.msra.mxu1 %v5708_v32  ;;  %v3855_v24 = vadd.f32 %v3854_v16, %v3842_v10  ;;  %v3867_v25 = vpop.f32.mrf.mxu3  ;;  %v3843_v20 = vpop.f32.mrf.mxu1  ;;  %v5900_v32 = vor.u32 %v6860_v26, %v5897_v40  ;;  %v6756_v41 = vld [vmem:[%s7144_s28 + $0x80c] sm:$0xf]  ;;  %v5865_v54 = vld [vmem:[%s7144_s28 + $0xb18] sm:$0xf0]  ;;  %v7044_v47 = vld [vmem:[#allocation1 + $0x12] sm:$0xff] }
 0x1e3   : > { %4106 = vmatpush.bf16.msra.mxu2 %v5836_v33  ;;  %v5625_v33 = vld [vmem:[%s7144_s28 + $0x938] sm:$0xf0]  ;;  %v6912_v56 = vld [vmem:[%s7144_s28 + $0xcec] sm:$0xf] }
 0x1e4   : > { %4119 = vmatpush.bf16.msra.mxu3 %v5964_v37  ;;  %v8168_v42 = vadd.f32 %v3867_v25, %v3855_v24  ;;  %v5881_v37 = vld [vmem:[%s7144_s28 + $0xb38] sm:$0xf0]  ;;  %v5628_v44 = vor.u32 %v6792_v31, %v5625_v33  ;;  %v6944_v58 = vld [vmem:[%s7144_s28 + $0xdec] sm:$0xf]  ;;  %v7043_v24 = vld [vmem:[#allocation1] sm:$0xff] }
 0x1e5   : > { %4081 = vmatpush.bf16.msra.mxu0 %v5564_v48  ;;  %v6788_v48 = vld [vmem:[%s7144_s28 + $0x90c] sm:$0xf]  ;;  %v5884_v53 = vor.u32 %v6856_v36, %v5881_v37  ;;  %v6105_v57 = vld [vmem:[%s7144_s28 + $0xcf8] sm:$0xf0] }
 0x1e6   : > { %4094 = vmatpush.bf16.msra.mxu1 %v5692_v61  ;;  %v5609_v61 = vld [vmem:[%s7144_s28 + $0x918] sm:$0xf0]  ;;  %v7008_v0 = vld [vmem:[%s7144_s28 + $0xfec] sm:$0xf] }
 0x1e7   : > { %4107 = vmatpush.bf16.msra.mxu2 %v5820_v51  ;;  %v6820_v51 = vld [vmem:[%s7144_s28 + $0xa0c] sm:$0xf]  ;;  %v6233_v59 = vld [vmem:[%s7144_s28 + $0xdf8] sm:$0xf0]  ;;  %v5612_v63 = vor.u32 %v6788_v48, %v5609_v61 }
 0x1e8   : > { %4120 = vmatpush.bf16.msra.mxu3 %v5948_v2  ;;  %v6852_v2 = vld [vmem:[%s7144_s28 + $0xb0c] sm:$0xf]  ;;  %v5740_v21 = vor.u32 %v6820_v51, %v5737_v1  ;;  %v6489_v4 = vld [vmem:[%s7144_s28 + $0xff8] sm:$0xf0]  ;;  %v6236_v23 = vor.u32 %v6944_v58, %v6233_v59 }
 0x1e9   : > { %4082 = vmatpush.bf16.msra.mxu0 %v5548_v3  ;;  %v3856_v52 = vpop.f32.mrf.mxu2  ;;  %v5484_v3 = vor.u32 %v6756_v41, %v5481_v43  ;;  %v5868_v22 = vor.u32 %v6852_v2, %v5865_v54  ;;  %v6908_v7 = vld [vmem:[%s7144_s28 + $0xccc] sm:$0xf]  ;;  %v6089_v9 = vld [vmem:[%s7144_s28 + $0xcd8] sm:$0xf0]  ;;  %v6492_v10 = vor.u32 %v7008_v0, %v6489_v4 }
 0x1ea   : > { %4095 = vmatpush.bf16.msra.mxu1 %v5676_v60  ;;  %v3869_v55 = vpop.f32.mrf.mxu3  ;;  %v6976_v60 = vld [vmem:[%s7144_s28 + $0xeec] sm:$0xf]  ;;  %v6473_v14 = vld [vmem:[%s7144_s28 + $0xfd8] sm:$0xf0]  ;;  %v6092_v15 = vor.u32 %v6908_v7, %v6089_v9 }
 0x1eb   : > { %4108 = vmatpush.bf16.msra.mxu2 %v5804_v62  ;;  %v6361_v62 = vld [vmem:[%s7144_s28 + $0xef8] sm:$0xf0]  ;;  %v6940_v27 = vld [vmem:[%s7144_s28 + $0xdcc] sm:$0xf] }
 0x1ec   : > { %4121 = vmatpush.bf16.msra.mxu3 %v5932_v5  ;;  %v6108_v5 = vor.u32 %v6912_v56, %v6105_v57  ;;  %v6364_v6 = vor.u32 %v6976_v60, %v6361_v62  ;;  %v7004_v13 = vld [vmem:[%s7144_s28 + $0xfcc] sm:$0xf]  ;;  %v6073_v18 = vld [vmem:[%s7144_s28 + $0xcb8] sm:$0xf0] }
 0x1ed   : > { %4083 = vmatpush.bf16.msra.mxu0 %v5532_v11  ;;  %v6217_v11 = vld [vmem:[%s7144_s28 + $0xdd8] sm:$0xf0]  ;;  %v6904_v50 = vld [vmem:[%s7144_s28 + $0xcac] sm:$0xf]  ;;  %v6476_v25 = vor.u32 %v7004_v13, %v6473_v14 }
 0x1ee   : > { %4096 = vmatpush.bf16.msra.mxu1 %v5660_v38  ;;  %v6972_v38 = vld [vmem:[%s7144_s28 + $0xecc] sm:$0xf]  ;;  %v6220_v16 = vor.u32 %v6940_v27, %v6217_v11  ;;  %v6201_v26 = vld [vmem:[%s7144_s28 + $0xdb8] sm:$0xf0]  ;;  %v6076_v31 = vor.u32 %v6904_v50, %v6073_v18 }
 0x1ef   : > { %4109 = vmatpush.bf16.msra.mxu2 %v5788_v12  ;;  %v6345_v12 = vld [vmem:[%s7144_s28 + $0xed8] sm:$0xf0]  ;;  %v6936_v19 = vld [vmem:[%s7144_s28 + $0xdac] sm:$0xf] }
 0x1f0   : > { %4122 = vmatpush.bf16.msra.mxu3 %v5916_v17  ;;  %v6348_v17 = vor.u32 %v6972_v38, %v6345_v12  ;;  %v6968_v40 = vld [vmem:[%s7144_s28 + $0xeac] sm:$0xf]  ;;  %v6457_v29 = vld [vmem:[%s7144_s28 + $0xfb8] sm:$0xf0]  ;;  %v6204_v20 = vor.u32 %v6936_v19, %v6201_v26 }
 0x1f1   : > { %4084 = vmatpush.bf16.msra.mxu0 %v5516_v28  ;;  %v6329_v28 = vld [vmem:[%s7144_s28 + $0xeb8] sm:$0xf0]  ;;  %v6900_v33 = vld [vmem:[%s7144_s28 + $0xc8c] sm:$0xf] }
 0x1f2   : > { %4097 = vmatpush.bf16.msra.mxu1 %v5644_v46  ;;  %v7045_v46 = vld [vmem:[#allocation1 + $0x9] sm:$0xff]  ;;  %v7046_v30 = vld [vmem:[#allocation1 + $0x1b] sm:$0xff] }
 0x1f3   : > { %4110 = vmatpush.bf16.msra.mxu2 %v5772_v49  ;;  %v7000_v49 = vld [vmem:[%s7144_s28 + $0xfac] sm:$0xf]  ;;  %v6057_v34 = vld [vmem:[%s7144_s28 + $0xc98] sm:$0xf0] }
 0x1f4   : > { %4123 = vmatpush.bf16.msra.mxu3 %v5900_v32  ;;  %v6332_v32 = vor.u32 %v6968_v40, %v6329_v28  ;;  %v6932_v35 = vld [vmem:[%s7144_s28 + $0xd8c] sm:$0xf]  ;;  %v6460_v36 = vor.u32 %v7000_v49, %v6457_v29  ;;  %v6185_v37 = vld [vmem:[%s7144_s28 + $0xd98] sm:$0xf0]  ;;  %v6060_v61 = vor.u32 %v6900_v33, %v6057_v34 }
 0x1f5   : > { %4085 = vmatpush.bf16.msra.mxu0 %v5500_v39  ;;  %v6964_v39 = vld [vmem:[%s7144_s28 + $0xe8c] sm:$0xf]  ;;  %v6313_v41 = vld [vmem:[%s7144_s28 + $0xe98] sm:$0xf0]  ;;  %v6188_v52 = vor.u32 %v6932_v35, %v6185_v37 }
 0x1f6   : > { %4098 = vmatpush.bf16.msra.mxu1 %v5628_v44  ;;  %v6996_v44 = vld [vmem:[%s7144_s28 + $0xf8c] sm:$0xf]  ;;  %v6041_v2 = vld [vmem:[%s7144_s28 + $0xc78] sm:$0xf0] }
 0x1f7   : > { %4111 = vmatpush.bf16.msra.mxu2 %v5756_v45  ;;  %v6441_v45 = vld [vmem:[%s7144_s28 + $0xf98] sm:$0xf0]  ;;  %v6896_v1 = vld [vmem:[%s7144_s28 + $0xc6c] sm:$0xf] }
 0x1f8   : > { %4124 = vmatpush.bf16.msra.mxu3 %v5884_v53  ;;  %v6316_v53 = vor.u32 %v6964_v39, %v6313_v41  ;;  %v6928_v54 = vld [vmem:[%s7144_s28 + $0xd6c] sm:$0xf]  ;;  %v6444_v55 = vor.u32 %v6996_v44, %v6441_v45  ;;  %v6169_v57 = vld [vmem:[%s7144_s28 + $0xd78] sm:$0xf0]  ;;  %v6044_v60 = vor.u32 %v6896_v1, %v6041_v2 }
 0x1f9   : > { %4086 = vmatpush.bf16.msra.mxu0 %v5484_v3  ;;  %v3880_v43 = vpop.f32.mrf.mxu0  ;;  %v6960_v58 = vld [vmem:[%s7144_s28 + $0xe6c] sm:$0xf]  ;;  %v6425_v59 = vld [vmem:[%s7144_s28 + $0xf78] sm:$0xf0]  ;;  %v6172_v62 = vor.u32 %v6928_v54, %v6169_v57 }
 0x1fa   : > { %4099 = vmatpush.bf16.msra.mxu1 %v5612_v63  ;;  %v3881_v48 = vadd.f32 %v3880_v43, %v8168_v42  ;;  %v3893_v51 = vpop.f32.mrf.mxu1  ;;  %v6297_v42 = vld [vmem:[%s7144_s28 + $0xe78] sm:$0xf0]  ;;  %v6992_v3 = vld [vmem:[%s7144_s28 + $0xf6c] sm:$0xf] }
 0x1fb   : > { %4112 = vmatpush.bf16.msra.mxu2 %v5740_v21  ;;  %v6300_v63 = vor.u32 %v6960_v58, %v6297_v42  ;;  %v6892_v21 = vld [vmem:[%s7144_s28 + $0xc4c] sm:$0xf]  ;;  %v6025_v0 = vld [vmem:[%s7144_s28 + $0xc58] sm:$0xf0] }
 0x1fc   : > { %4125 = vmatpush.bf16.msra.mxu3 %v5868_v22  ;;  %4087 = vmatmul.bf16.vlgmr.msra.gmra.mxu0 %v7043_v24  ;;  %v3894_v56 = vadd.f32 %v3893_v51, %v3881_v48  ;;  %v6924_v4 = vld [vmem:[%s7144_s28 + $0xd4c] sm:$0xf]  ;;  %v6428_v22 = vor.u32 %v6992_v3, %v6425_v59  ;;  %v6281_v7 = vld [vmem:[%s7144_s28 + $0xe58] sm:$0xf0]  ;;  %v6028_v12 = vor.u32 %v6892_v21, %v6025_v0  ;;  %v7047_v48 = vld [vmem:[#allocation1 + $0x24] sm:$0xff] }
 0x1fd   : > { %4131 = vmatpush.bf16.msrb.mxu0 %v6108_v5  ;;  %4100 = vmatmul.bf16.vlgmr.msra.gmra.mxu1 %v7045_v46  ;;  %v6409_v11 = vld [vmem:[%s7144_s28 + $0xf58] sm:$0xf0]  ;;  %v6920_v18 = vld [vmem:[%s7144_s28 + $0xd2c] sm:$0xf] }
 0x1fe   : > { %4144 = vmatpush.bf16.msrb.mxu1 %v6236_v23  ;;  %4113 = vmatmul.bf16.vlgmr.msra.gmra.mxu2 %v7044_v47  ;;  %v6153_v23 = vld [vmem:[%s7144_s28 + $0xd58] sm:$0xf0]  ;;  %v6984_v40 = vld [vmem:[%s7144_s28 + $0xf2c] sm:$0xf] }
 0x1ff   : > { %4157 = vmatpush.bf16.msrb.mxu2 %v6364_v6  ;;  %4126 = vmatmul.bf16.vlgmr.msra.gmra.mxu3 %v7046_v30  ;;  %v6956_v6 = vld [vmem:[%s7144_s28 + $0xe4c] sm:$0xf]  ;;  %v6009_v50 = vld [vmem:[%s7144_s28 + $0xc38] sm:$0xf0] }
 0x200   : > { %4170 = vmatpush.bf16.msrb.mxu3 %v6492_v10  ;;  %v6988_v10 = vld [vmem:[%s7144_s28 + $0xf4c] sm:$0xf]  ;;  %v6137_v24 = vld [vmem:[%s7144_s28 + $0xd38] sm:$0xf0] }
 0x201   : > { %4132 = vmatpush.bf16.msrb.mxu0 %v6092_v15  ;;  %v3906_v5 = vpop.f32.mrf.mxu2  ;;  %v3882_v38 = vpop.f32.mrf.mxu0  ;;  %v6156_v15 = vor.u32 %v6924_v4, %v6153_v23  ;;  %v6412_v19 = vor.u32 %v6988_v10, %v6409_v11  ;;  %v6265_v26 = vld [vmem:[%s7144_s28 + $0xe38] sm:$0xf0]  ;;  %v6140_v46 = vor.u32 %v6920_v18, %v6137_v24  ;;  %v6884_v29 = vld [vmem:[%s7144_s28 + $0xc0c] sm:$0xf] }
 0x202   : > { %4145 = vmatpush.bf16.msrb.mxu1 %v6220_v16  ;;  %v3907_v9 = vadd.f32 %v3906_v5, %v3894_v56  ;;  %v3919_v27 = vpop.f32.mrf.mxu3  ;;  %v3895_v13 = vpop.f32.mrf.mxu1  ;;  %v6284_v16 = vor.u32 %v6956_v6, %v6281_v7  ;;  %v6393_v28 = vld [vmem:[%s7144_s28 + $0xf38] sm:$0xf0]  ;;  %v6948_v33 = vld [vmem:[%s7144_s28 + $0xe0c] sm:$0xf] }
 0x203   : > { %4158 = vmatpush.bf16.msrb.mxu2 %v6348_v17  ;;  %v6888_v17 = vld [vmem:[%s7144_s28 + $0xc2c] sm:$0xf]  ;;  %v5993_v30 = vld [vmem:[%s7144_s28 + $0xc18] sm:$0xf0] }
 0x204   : > { %4171 = vmatpush.bf16.msrb.mxu3 %v6476_v25  ;;  %v3920_v14 = vadd.f32 %v3919_v27, %v3907_v9  ;;  %v6952_v25 = vld [vmem:[%s7144_s28 + $0xe2c] sm:$0xf]  ;;  %v6012_v47 = vor.u32 %v6888_v17, %v6009_v50  ;;  %v6249_v34 = vld [vmem:[%s7144_s28 + $0xe18] sm:$0xf0]  ;;  %v5996_v41 = vor.u32 %v6884_v29, %v5993_v30 }
 0x205   : > { %4133 = vmatpush.bf16.msrb.mxu0 %v6076_v31  ;;  %v6268_v49 = vor.u32 %v6952_v25, %v6265_v26  ;;  %v6916_v31 = vld [vmem:[%s7144_s28 + $0xd0c] sm:$0xf]  ;;  %v6377_v37 = vld [vmem:[%s7144_s28 + $0xf18] sm:$0xf0]  ;;  %v6252_v44 = vor.u32 %v6948_v33, %v6249_v34 }
 0x206   : > { %4146 = vmatpush.bf16.msrb.mxu1 %v6204_v20  ;;  %v6396_v20 = vor.u32 %v6984_v40, %v6393_v28  ;;  %v7049_v51 = vld [vmem:[#allocation1 + $0x36] sm:$0xff] }
 0x207   : > { %4159 = vmatpush.bf16.msrb.mxu2 %v6332_v32  ;;  %v6121_v32 = vld [vmem:[%s7144_s28 + $0xd18] sm:$0xf0] }
 0x208   : > { %4172 = vmatpush.bf16.msrb.mxu3 %v6460_v36  ;;  %v6980_v36 = vld [vmem:[%s7144_s28 + $0xf0c] sm:$0xf]  ;;  %v6124_v43 = vor.u32 %v6916_v31, %v6121_v32 }
 0x209   : > { %4134 = vmatpush.bf16.msrb.mxu0 %v6060_v61  ;;  %v3908_v35 = vpop.f32.mrf.mxu2  ;;  %v6380_v45 = vor.u32 %v6980_v36, %v6377_v37  ;;  %v7048_v61 = vld [vmem:[#allocation1 + $0x2d] sm:$0xff] }
 0x20a   : > { %4147 = vmatpush.bf16.msrb.mxu1 %v6188_v52  ;;  %v3921_v39 = vpop.f32.mrf.mxu3  ;;  %v7050_v52 = vld [vmem:[#allocation1 + $0x3f] sm:$0xff] }
 0x20b   : > { %4160 = vmatpush.bf16.msrb.mxu2 %v6316_v53 }
 0x20c   : > { %4173 = vmatpush.bf16.msrb.mxu3 %v6444_v55 }
 0x20d   : > { %4135 = vmatpush.bf16.msrb.mxu0 %v6044_v60 }
 0x20e   : > { %4148 = vmatpush.bf16.msrb.mxu1 %v6172_v62 }
 0x20f   : > { %4161 = vmatpush.bf16.msrb.mxu2 %v6300_v63 }
 0x210   : > { %4174 = vmatpush.bf16.msrb.mxu3 %v6428_v22 }
 0x211   : > { %4136 = vmatpush.bf16.msrb.mxu0 %v6028_v12 }
 0x212   : > { %4149 = vmatpush.bf16.msrb.mxu1 %v6156_v15 }
 0x213   : > { %4162 = vmatpush.bf16.msrb.mxu2 %v6284_v16 }
 0x214   : > { %4175 = vmatpush.bf16.msrb.mxu3 %v6412_v19 }
 0x215   : > { %4137 = vmatpush.bf16.msrb.mxu0 %v6012_v47 }
 0x216   : > { %4150 = vmatpush.bf16.msrb.mxu1 %v6140_v46 }
 0x217   : > { %4163 = vmatpush.bf16.msrb.mxu2 %v6268_v49 }
 0x218   : > { %4176 = vmatpush.bf16.msrb.mxu3 %v6396_v20 }
 0x219   : > { %4138 = vmatpush.bf16.msrb.mxu0 %v5996_v41  ;;  %v3932_v53 = vpop.f32.mrf.mxu0 }
 0x21a   : > { %4151 = vmatpush.bf16.msrb.mxu1 %v6124_v43  ;;  %v3933_v1 = vadd.f32 %v3932_v53, %v3920_v14  ;;  %v3945_v2 = vpop.f32.mrf.mxu1 }
 0x21b   : > { %4164 = vmatpush.bf16.msrb.mxu2 %v6252_v44 }
 0x21c   : > { %4177 = vmatpush.bf16.msrb.mxu3 %v6380_v45  ;;  %4139 = vmatmul.bf16.vlgmr.msrb.gmra.mxu0 %v7047_v48  ;;  %v3946_v54 = vadd.f32 %v3945_v2, %v3933_v1  ;;  %v240_v48 = vld [vmem:[#allocation2] sm:$0xff] }
 0x21d   : > { %4152 = vmatmul.bf16.vlgmr.msrb.gmra.mxu1 %v7048_v61 }
 0x21e   : > { %4165 = vmatmul.bf16.vlgmr.msrb.gmra.mxu2 %v7049_v51 }
 0x21f   : > { %4178 = vmatmul.bf16.vlgmr.msrb.gmra.mxu3 %v7050_v52 }
 0x221   : > { %v3958_v55 = vpop.f32.mrf.mxu2  ;;  %v3934_v58 = vpop.f32.mrf.mxu0 }
 0x222   : > { %v3959_v56 = vadd.f32 %v3958_v55, %v3946_v54  ;;  %v3971_v57 = vpop.f32.mrf.mxu3  ;;  %v3947_v42 = vpop.f32.mrf.mxu1 }
 0x224   : > { %v3972_v3 = vadd.f32 %v3971_v57, %v3959_v56 }
 0x226   : > { %v4188_v44 = vrot.slane %v3972_v3, 4 }
 0x229   : > { %v3960_v59 = vpop.f32.mrf.mxu2 }
 0x22a   : > { %v3973_v60 = vpop.f32.mrf.mxu3 }
 0x239   : > { %v3984_v62 = vpop.f32.mrf.mxu0 }
 0x23a   : > { %v3997_v63 = vpop.f32.mrf.mxu1 }
 0x23b   : > { %v3998_v21 = vadd.f32 %v3997_v63, %v3984_v62 }
 0x241   : > { %v4010_v0 = vpop.f32.mrf.mxu2  ;;  %v3986_v23 = vpop.f32.mrf.mxu0 }
 0x242   : > { %v4011_v4 = vadd.f32 %v4010_v0, %v3998_v21  ;;  %v4023_v22 = vpop.f32.mrf.mxu3  ;;  %v3999_v6 = vpop.f32.mrf.mxu1 }
 0x244   : > { %v4024_v5 = vadd.f32 %v4023_v22, %v4011_v4 }
 0x249   : > { %v4012_v7 = vpop.f32.mrf.mxu2 }
 0x24a   : > { %v4025_v9 = vpop.f32.mrf.mxu3 }
 0x259   : > { %v4036_v27 = vpop.f32.mrf.mxu0 }
 0x25a   : > { %v4049_v10 = vpop.f32.mrf.mxu1  ;;  %v4037_v50 = vadd.f32 %v4036_v27, %v4024_v5 }
 0x25c   : > { %v4050_v25 = vadd.f32 %v4049_v10, %v4037_v50 }
 0x261   : > { %v4062_v11 = vpop.f32.mrf.mxu2  ;;  %v4038_v12 = vpop.f32.mrf.mxu0 }
 0x262   : > { %v4075_v38 = vpop.f32.mrf.mxu3  ;;  %v4051_v13 = vpop.f32.mrf.mxu1  ;;  %v4063_v40 = vadd.f32 %v4062_v11, %v4050_v25 }
 0x264   : > { %v4076_v46 = vadd.f32 %v4075_v38, %v4063_v40 }
 0x269   : > { %v4064_v14 = vpop.f32.mrf.mxu2 }
 0x26a   : > { %v4077_v15 = vpop.f32.mrf.mxu3 }
 0x279   : > { %v4088_v16 = vpop.f32.mrf.mxu0 }
 0x27a   : > { %v4101_v17 = vpop.f32.mrf.mxu1  ;;  %v4089_v49 = vadd.f32 %v4088_v16, %v4076_v46 }
 0x27c   : > { %v4102_v29 = vadd.f32 %v4101_v17, %v4089_v49 }
 0x281   : > { %v4114_v18 = vpop.f32.mrf.mxu2  ;;  %v4090_v24 = vpop.f32.mrf.mxu0 }
 0x282   : > { %v4127_v19 = vpop.f32.mrf.mxu3  ;;  %v4103_v26 = vpop.f32.mrf.mxu1  ;;  %v4115_v30 = vadd.f32 %v4114_v18, %v4102_v29 }
 0x284   : > { %v4128_v31 = vadd.f32 %v4127_v19, %v4115_v30 }
 0x289   : > { %v4116_v28 = vpop.f32.mrf.mxu2 }
 0x28a   : > { %v4129_v47 = vpop.f32.mrf.mxu3 }
 0x299   : > { %v4140_v20 = vpop.f32.mrf.mxu0 }
 0x29a   : > { %v4153_v32 = vpop.f32.mrf.mxu1  ;;  %v4141_v33 = vadd.f32 %v4140_v20, %v4128_v31 }
 0x29c   : > { %v4154_v34 = vadd.f32 %v4153_v32, %v4141_v33 }
 0x2a1   : > { %v4166_v35 = vpop.f32.mrf.mxu2  ;;  %v4142_v39 = vpop.f32.mrf.mxu0 }
 0x2a2   : > { %v4167_v36 = vadd.f32 %v4166_v35, %v4154_v34  ;;  %v4179_v37 = vpop.f32.mrf.mxu3  ;;  %v4155_v41 = vpop.f32.mrf.mxu1 }
 0x2a4   : > { %v4180_v43 = vadd.f32 %v4179_v37, %v4167_v36 }
 0x2a6   : > { %v4189_v45 = vrot.slane %v4180_v43, 2 }
 0x2a8   : > { %v4193_v61 = vsel %vm4192_vm1, %v4188_v44, %v4189_v45  ;;  %4202 = sbr.rel (%p6493_p6) target bundleno = 856 (0x358), region = 48 }
 0x2a9   : > { %v4195_v51 = vsel %vm4194_vm2, %v8037_v8, %v4193_v61  ;;  %v4168_v52 = vpop.f32.mrf.mxu2 }
 0x2aa   : > { %v4197_v53 = vadd.f32 %v4195_v51, %v240_v48  ;;  %v4181_v1 = vpop.f32.mrf.mxu3 }
 0x2ac   : > { %4198 = vst [vmem:[#allocation2] sm:$0xff] %v4197_v53 }
 0x2ad   : > { %v4266_v2 = vld [vmem:[%s8466_s3 + $0x178] sm:$0xff]  ;;  %v4265_v55 = vld [vmem:[%s8466_s3 + $0x170] sm:$0xff]  ;;  %v4264_v58 = vld [vmem:[%s8466_s3 + $0x168] sm:$0xff]  ;;  %vm4377_vm3 = vcmask 41984  }
 0x2ae   : > { %v4234_v54 = vld [vmem:[%s8466_s3 + $0x78] sm:$0xff]  ;;  %4337 = vmatpush.msra.mxu2 %v4266_v2  ;;  %v4233_v56 = vld [vmem:[%s8466_s3 + $0x70] sm:$0xff]  ;;  %v4232_v3 = vld [vmem:[%s8466_s3 + $0x68] sm:$0xff] }
 0x2af   : > { %4297 = vmatpush.msra.mxu0 %v4234_v54  ;;  %v4282_v8 = vld [vmem:[%s8466_s3 + $0x1f8] sm:$0xff]  ;;  %v4281_v42 = vld [vmem:[%s8466_s3 + $0x1f0] sm:$0xff]  ;;  %v4280_v60 = vld [vmem:[%s8466_s3 + $0x1e8] sm:$0xff] }
 0x2b0   : > { %v4250_v57 = vld [vmem:[%s8466_s3 + $0xf8] sm:$0xff]  ;;  %4357 = vmatpush.msra.mxu3 %v4282_v8  ;;  %4338 = vmatpush.msra.mxu2 %v4265_v55  ;;  %v4249_v59 = vld [vmem:[%s8466_s3 + $0xf0] sm:$0xff]  ;;  %v4263_v62 = vld [vmem:[%s8466_s3 + $0x160] sm:$0xff] }
 0x2b1   : > { %4317 = vmatpush.msra.mxu1 %v4250_v57  ;;  %4298 = vmatpush.msra.mxu0 %v4233_v56  ;;  %v4231_v63 = vld [vmem:[%s8466_s3 + $0x60] sm:$0xff]  ;;  %v4248_v21 = vld [vmem:[%s8466_s3 + $0xe8] sm:$0xff]  ;;  %v4262_v22 = vld [vmem:[%s8466_s3 + $0x158] sm:$0xff] }
 0x2b2   : > { %4358 = vmatpush.msra.mxu3 %v4281_v42  ;;  %4339 = vmatpush.msra.mxu2 %v4264_v58  ;;  %v4279_v0 = vld [vmem:[%s8466_s3 + $0x1e0] sm:$0xff]  ;;  %v4230_v5 = vld [vmem:[%s8466_s3 + $0x58] sm:$0xff]  ;;  %v4261_v7 = vld [vmem:[%s8466_s3 + $0x150] sm:$0xff] }
 0x2b3   : > { %4318 = vmatpush.msra.mxu1 %v4249_v59  ;;  %4299 = vmatpush.msra.mxu0 %v4232_v3  ;;  %v4247_v4 = vld [vmem:[%s8466_s3 + $0xe0] sm:$0xff]  ;;  %v4278_v23 = vld [vmem:[%s8466_s3 + $0x1d8] sm:$0xff]  ;;  %v4229_v9 = vld [vmem:[%s8466_s3 + $0x50] sm:$0xff] }
 0x2b4   : > { %4359 = vmatpush.msra.mxu3 %v4280_v60  ;;  %4340 = vmatpush.msra.mxu2 %v4263_v62  ;;  %v4246_v6 = vld [vmem:[%s8466_s3 + $0xd8] sm:$0xff]  ;;  %v4277_v27 = vld [vmem:[%s8466_s3 + $0x1d0] sm:$0xff]  ;;  %v4260_v11 = vld [vmem:[%s8466_s3 + $0x148] sm:$0xff] }
 0x2b5   : > { %4319 = vmatpush.msra.mxu1 %v4248_v21  ;;  %4300 = vmatpush.msra.mxu0 %v4231_v63  ;;  %v4245_v10 = vld [vmem:[%s8466_s3 + $0xd0] sm:$0xff]  ;;  %v4228_v38 = vld [vmem:[%s8466_s3 + $0x48] sm:$0xff]  ;;  %v4259_v14 = vld [vmem:[%s8466_s3 + $0x140] sm:$0xff] }
 0x2b6   : > { %4360 = vmatpush.msra.mxu3 %v4279_v0  ;;  %4341 = vmatpush.msra.mxu2 %v4262_v22  ;;  %v4276_v12 = vld [vmem:[%s8466_s3 + $0x1c8] sm:$0xff]  ;;  %v4227_v15 = vld [vmem:[%s8466_s3 + $0x40] sm:$0xff]  ;;  %v4258_v50 = vld [vmem:[%s8466_s3 + $0x138] sm:$0xff] }
 0x2b7   : > { %4320 = vmatpush.msra.mxu1 %v4247_v4  ;;  %4301 = vmatpush.msra.mxu0 %v4230_v5  ;;  %v4244_v13 = vld [vmem:[%s8466_s3 + $0xc8] sm:$0xff]  ;;  %v4275_v16 = vld [vmem:[%s8466_s3 + $0x1c0] sm:$0xff]  ;;  %v4226_v18 = vld [vmem:[%s8466_s3 + $0x38] sm:$0xff] }
 0x2b8   : > { %4361 = vmatpush.msra.mxu3 %v4278_v23  ;;  %4342 = vmatpush.msra.mxu2 %v4261_v7  ;;  %v4243_v17 = vld [vmem:[%s8466_s3 + $0xc0] sm:$0xff]  ;;  %v4274_v19 = vld [vmem:[%s8466_s3 + $0x1b8] sm:$0xff]  ;;  %v4257_v25 = vld [vmem:[%s8466_s3 + $0x130] sm:$0xff] }
 0x2b9   : > { %4321 = vmatpush.msra.mxu1 %v4246_v6  ;;  %4302 = vmatpush.msra.mxu0 %v4229_v9  ;;  %v4242_v24 = vld [vmem:[%s8466_s3 + $0xb8] sm:$0xff]  ;;  %v4225_v26 = vld [vmem:[%s8466_s3 + $0x30] sm:$0xff]  ;;  %v4256_v47 = vld [vmem:[%s8466_s3 + $0x128] sm:$0xff] }
 0x2ba   : > { %4362 = vmatpush.msra.mxu3 %v4277_v27  ;;  %4343 = vmatpush.msra.mxu2 %v4260_v11  ;;  %v4273_v40 = vld [vmem:[%s8466_s3 + $0x1b0] sm:$0xff]  ;;  %v4224_v46 = vld [vmem:[%s8466_s3 + $0x28] sm:$0xff]  ;;  %v4255_v30 = vld [vmem:[%s8466_s3 + $0x120] sm:$0xff] }
 0x2bb   : > { %4322 = vmatpush.msra.mxu1 %v4245_v10  ;;  %4303 = vmatpush.msra.mxu0 %v4228_v38  ;;  %v4241_v28 = vld [vmem:[%s8466_s3 + $0xb0] sm:$0xff]  ;;  %v4272_v49 = vld [vmem:[%s8466_s3 + $0x1a8] sm:$0xff]  ;;  %v4223_v31 = vld [vmem:[%s8466_s3 + $0x20] sm:$0xff] }
 0x2bc   : > { %4363 = vmatpush.msra.mxu3 %v4276_v12  ;;  %4344 = vmatpush.msra.mxu2 %v4259_v14  ;;  %v4240_v29 = vld [vmem:[%s8466_s3 + $0xa8] sm:$0xff]  ;;  %v4204_v20 = vld [vmem:[%s8465_s2] sm:$0xf]  ;;  %v4254_v39 = vld [vmem:[%s8466_s3 + $0x118] sm:$0xff] }
 0x2bd   : > { %4323 = vmatpush.msra.mxu1 %v4244_v13  ;;  %4304 = vmatpush.msra.mxu0 %v4227_v15  ;;  %v4271_v32 = vld [vmem:[%s8466_s3 + $0x1a0] sm:$0xff]  ;;  %v4206_v34 = vperm.slane %v4204_v20, 0  ;;  %v4207_v35 = vperm.slane %v4204_v20, 1  ;;  %v4208_v36 = vperm.slane %v4204_v20, 2  ;;  %v4209_v37 = vperm.slane %v4204_v20, 3  ;;  %v4222_v41 = vld [vmem:[%s8466_s3 + $0x18] sm:$0xff] }
 0x2be   : > { %4364 = vmatpush.msra.mxu3 %v4275_v16  ;;  %4345 = vmatpush.msra.mxu2 %v4258_v50  ;;  %v4239_v33 = vld [vmem:[%s8466_s3 + $0xa0] sm:$0xff]  ;;  %v4270_v43 = vld [vmem:[%s8466_s3 + $0x198] sm:$0xff]  ;;  %v4253_v51 = vld [vmem:[%s8466_s3 + $0x110] sm:$0xff] }
 0x2bf   : > { %4324 = vmatpush.msra.mxu1 %v4243_v17  ;;  %4305 = vmatpush.msra.mxu0 %v4226_v18  ;;  %v4238_v44 = vld [vmem:[%s8466_s3 + $0x98] sm:$0xff]  ;;  %v4210_v45 = vrot.slane %v4207_v35, 6  ;;  %v4211_v48 = vrot.slane %v4208_v36, 4  ;;  %v4212_v61 = vrot.slane %v4209_v37, 2  ;;  %v4221_v52 = vld [vmem:[%s8466_s3 + $0x10] sm:$0xff]  ;;  %v4203_v53 = vld [vmem:[#allocation2] sm:$0xff] }
 0x2c0   : > { %4365 = vmatpush.msra.mxu3 %v4274_v19  ;;  %4346 = vmatpush.msra.mxu2 %v4257_v25  ;;  %v4269_v1 = vld [vmem:[%s8466_s3 + $0x190] sm:$0xff]  ;;  %v4252_v8 = vld [vmem:[%s8466_s3 + $0x108] sm:$0xff]  ;;  %v4251_v59 = vld [vmem:[%s8466_s3 + $0x100] sm:$0xff] }
 0x2c1   : > { %4325 = vmatpush.msra.mxu1 %v4242_v24  ;;  %4306 = vmatpush.msra.mxu0 %v4225_v26  ;;  %v4237_v2 = vld [vmem:[%s8466_s3 + $0x90] sm:$0xff]  ;;  %v4213_v54 = vsel %vm4190_vm0, %v4206_v34, %v4210_v45  ;;  %v4214_v55 = vsel %vm4192_vm1, %v4211_v48, %v4212_v61  ;;  %v4220_v56 = vld [vmem:[%s8466_s3 + $0x8] sm:$0xff]  ;;  %v4219_v60 = vld [vmem:[%s8466_s3] sm:$0xff] }
 0x2c2   : > { %4366 = vmatpush.msra.mxu3 %v4273_v40  ;;  %4347 = vmatpush.msra.mxu2 %v4256_v47  ;;  %v4215_v57 = vsel %vm4194_vm2, %v4213_v54, %v4214_v55  ;;  %v4268_v58 = vld [vmem:[%s8466_s3 + $0x188] sm:$0xff]  ;;  %v4267_v63 = vld [vmem:[%s8466_s3 + $0x180] sm:$0xff] }
 0x2c3   : > { %4326 = vmatpush.msra.mxu1 %v4241_v28  ;;  %4307 = vmatpush.msra.mxu0 %v4224_v46  ;;  %v4217_v42 = vadd.f32 %v4215_v57, %v4203_v53  ;;  %v4236_v3 = vld [vmem:[%s8466_s3 + $0x88] sm:$0xff]  ;;  %v4235_v21 = vld [vmem:[%s8466_s3 + $0x80] sm:$0xff] }
 0x2c4   : > { %4367 = vmatpush.msra.mxu3 %v4272_v49  ;;  %4348 = vmatpush.msra.mxu2 %v4255_v30  ;;  %v7051_v23 = vld [vmem:[%s8467_s4] ss:$0 sm:$0xff] }
 0x2c5   : > { %4327 = vmatpush.msra.mxu1 %v4240_v29  ;;  %4308 = vmatpush.msra.mxu0 %v4223_v31  ;;  %v4218_v62 = vmax.f32 %v4217_v42, 0.0 }
 0x2c6   : > { %4368 = vmatpush.msra.mxu3 %v4271_v32  ;;  %4349 = vmatpush.msra.mxu2 %v4254_v39 }
 0x2c7   : > { %4328 = vmatpush.msra.mxu1 %v4239_v33  ;;  %4309 = vmatpush.msra.mxu0 %v4222_v41  ;;  %4288 = vst [vmem:[#allocation1] ss:$4 sm:$0xff] %v4218_v62 }
 0x2c8   : > { %4369 = vmatpush.msra.mxu3 %v4270_v43  ;;  %4350 = vmatpush.msra.mxu2 %v4253_v51 }
 0x2c9   : > { %4329 = vmatpush.msra.mxu1 %v4238_v44  ;;  %4310 = vmatpush.msra.mxu0 %v4221_v52 }
 0x2ca   : > { %4370 = vmatpush.msra.mxu3 %v4269_v1  ;;  %4351 = vmatpush.msra.mxu2 %v4252_v8 }
 0x2cb   : > { %4330 = vmatpush.msra.mxu1 %v4237_v2  ;;  %4311 = vmatpush.msra.mxu0 %v4220_v56 }
 0x2cc   : > { %4371 = vmatpush.msra.mxu3 %v4268_v58  ;;  %4352 = vmatpush.msra.mxu2 %v4251_v59 }
 0x2cd   : > { %4331 = vmatpush.msra.mxu1 %v4236_v3  ;;  %4312 = vmatpush.msra.mxu0 %v4219_v60 }
 0x2ce   : > { %4372 = vmatpush.msra.mxu3 %v4267_v63  ;;  %v4291_v0 = vld.sshfl [vmem:[#allocation1 + $0x10] sm:$0xff pattern:$0x73625140]  ;;  %v4289_v4 = vld.sshfl [vmem:[#allocation1] sm:$0xff pattern:$0x73625140] }
 0x2cf   : > { %4332 = vmatpush.msra.mxu1 %v4235_v21  ;;  %4353 = vmatmul.f32.vlgmr.msra.gmra.mxu2 %v4291_v0  ;;  %v4292_v22 = vld.sshfl [vmem:[#allocation1 + $0x18] sm:$0xff pattern:$0x73625140]  ;;  %v4290_v5 = vld.sshfl [vmem:[#allocation1 + $0x8] sm:$0xff pattern:$0x73625140] }
 0x2d0   : > { %4313 = vmatmul.f32.vlgmr.msra.gmra.mxu0 %v4289_v4  ;;  %4373 = vmatmul.f32.vlgmr.msra.gmra.mxu3 %v4292_v22 }
 0x2d1   : > { %4333 = vmatmul.f32.vlgmr.msra.gmra.mxu1 %v4290_v5 }
 0x34d   : > { %v4314_v6 = vpop.f32.mrf.mxu0 }
 0x34e   : > { %v4315_v7 = vadd.f32 %v7051_v23, %v4314_v6  ;;  %v4334_v9 = vpop.f32.mrf.mxu1 }
 0x350   : > { %v4335_v27 = vadd.f32 %v4334_v9, %v4315_v7 }
 0x352   : > { %v4354_v10 = vpop.f32.mrf.mxu2 }
 0x353   : > { %v4355_v11 = vadd.f32 %v4354_v10, %v4335_v27  ;;  %v4374_v38 = vpop.f32.mrf.mxu3 }
 0x355   : > { %v4375_v12 = vadd.f32 %v4374_v38, %v4355_v11 }
 0x357   : > { %4378 = vst.msk [vmem:[#allocation3] sm:$0x3] %vm4377_vm3, %v4375_v12 }
 0x358 PF: > { %p7015_p7 = scmp.eq.s32.totalorder %s7130_s19, 10  ;;  %s7093_s23 = smov [#allocation3]  }
 0x359   : > { %s4385_s24 = sshll.u32 %s7093_s23, 4  ;;  %s4387_s27 = sshll.u32 %s8468_s5, 4  ;;  %s4386_s24 = int_to_ptr.vmem [resolvable:$true] %s4385_s24  ;;  %s4388_s27 = int_to_ptr.hbm [resolvable:$true] %s4387_s27 }
 0x35a   : > { %7012 = dma.vmem_to_hbm [thread:$0]  (%p7015_p7), %s4386_s24, 32, %s4388_s27, [#allocation4]  }
 0x35b   : > { %7085 = dma.done.wait (%p7015_p7), [#allocation4], 32  }
 0x35c   : > { %7087 = vsyncadd (%p7015_p7), [#allocation4], 4294967264 }
 0x35d PF: > { %s16_s18 = sadd.s32 1, %s7090_s18  }
 0x35e   : > { %p13_p8 = scmp.ge.s32.totalorder %s16_s18, 13  }
 0x360   :  { %15 = sbr.rel (!%p13_p8) target bundleno = 1 (0x1), region = 78 }
 0x365   :  { %4401 = vsyncpa [#allocation4], 1 }
 0x366   :  { %4403 = vsyncpa [#allocation4 + $0x1], 1 }

</bundles_post_ra>
